<compile_context>
chip_gen: v6e
topology: v6e:2x2x1
jax: 0.10.0
libtpu: 0.0.40
codegen_flags: <defaults>
</compile_context>

<pallas_src>
import numpy as np
import jax
import jax.numpy as jnp
from jax.experimental import pallas as pl
from jax.experimental.pallas import tpu as pltpu

_C = 32                       # channel width (Cin 24 zero-padded to 32 for layer 1)
_PACK = 4                     # samples lane-packed per group: 4 * 32 = 128 lanes
_LANES = _PACK * _C           # 128
_BN_EPS = 1e-5
_SQRT_2_OVER_PI = 0.7978845608028654


def _gelu_tanh(x):
    # tanh-approximate GELU -> transcendental lands on the EUP slot.
    return 0.5 * x * (1.0 + jnp.tanh(_SQRT_2_OVER_PI * (x + 0.044715 * (x * x * x))))


# ---------------------------------------------------------------------------
# Fused kernel factory (h, w, groups-per-step are static)
# ---------------------------------------------------------------------------
def _make_fused_kernel(h, w, g_step):
    s = h * w
    pad = -(-(w + 1) // 8) * 8          # sublane-aligned zero padding >= w+1 rows per side
    taps = [(dy, dx) for dy in range(3) for dx in range(3)]

    def kernel(x_ref, cw_ref, cs_ref, cb_ref, mask_ref, pmat_ref,
               w1_ref, b1_ref, w2_ref, b2_ref, o_ref, xp_ref, col_ref):
        # SAME-conv zero rows: written once per grid step (amortized over the batch tile).
        # Not hoisted to program_id==0: scratch is per-core and with ("parallel",) megacore
        # sharding a second TensorCore never executes step 0.
        zero_pad = jnp.zeros((pad, _LANES), jnp.float32)
        xp_ref[pl.ds(0, pad), :] = zero_pad                    # top pad
        xp_ref[pl.ds(pad + s, pad), :] = zero_pad              # bottom pad

        mask_l = mask_ref[:, 0:1]       # [S,1]: 0 where x == 0     (kills row wrap, ox=-1)
        mask_r = mask_ref[:, 1:2]       # [S,1]: 0 where x == W-1   (kills row wrap, ox=+1)

        for g in range(g_step):                                # static unroll over lane groups
            # stage this group's 4 lane-packed samples into the padded scratch (bf16 -> f32)
            xp_ref[pl.ds(pad, s), :] = x_ref[g].astype(jnp.float32)

            # --- 3x (conv 3x3 SAME + folded BN + GELU), all VMEM-resident ----------------
            act = None
            for layer in range(3):
                # im2col: 9 shifted / edge-masked taps -> one [S, 9*128] bf16 strip
                for t, (dy, dx) in enumerate(taps):
                    off = pad + (dy - 1) * w + (dx - 1)        # static offset
                    tap = xp_ref[pl.ds(off, s), :]             # [S, 128] f32
                    if dx == 0:
                        tap = tap * mask_l
                    elif dx == 2:
                        tap = tap * mask_r
                    col_ref[:, pl.ds(t * _LANES, _LANES)] = tap.astype(jnp.bfloat16)
                # one K=1152, N=128 matmul per layer (block-diag weights serve 4 samples)
                acc = jnp.dot(col_ref[...],
                              cw_ref[pl.ds(layer * 9 * _LANES, 9 * _LANES), :],
                              preferred_element_type=jnp.float32)          # [S, 128]
                scale = cs_ref[pl.ds(layer, 1), :]                          # [1, 128]
                shift = cb_ref[pl.ds(layer, 1), :]                          # [1, 128]
                act = _gelu_tanh(acc * scale + shift)                       # [S, 128] f32
                if layer < 2:
                    xp_ref[pl.ds(pad, s), :] = act                          # feed next conv

            # --- AdaptiveAvgPool2d((3,3)): tiny [9,S] @ [S,128] matmul -------------------
            pooled = jnp.dot(pmat_ref[...], act, preferred_element_type=jnp.float32)  # [9,128]

            # --- fc1 + GELU, lane-packed via block-diag weights (9 accumulating dots) ----
            hvec = b1_ref[...]                                              # [1, 128]
            for b in range(9):
                hvec = hvec + jnp.dot(pooled[b:b + 1, :],
                                      w1_ref[pl.ds(b * _LANES, _LANES), :],
                                      preferred_element_type=jnp.float32)
            hvec = _gelu_tanh(hvec)
            # TODO(synk): Dropout(p=0.3) is identity at inference; training-mode RNG mask not implemented.

            # --- fc2 + tanh (w2 padded to N=128; sample p's result lands in lane p) ------
            z = jnp.dot(hvec, w2_ref[...], preferred_element_type=jnp.float32) + b2_ref[...]
            zt = jnp.tanh(z)[:, 0:_PACK]                                    # [1, PACK]
            o_ref[pl.ds(0, 1), pl.ds(g, 1), pl.ds(0, _PACK)] = zt.reshape(1, 1, _PACK)

    return kernel, pad


# ---------------------------------------------------------------------------
# One-time host-side preparation (weight re-layout, BN folding, constant tables)
# ---------------------------------------------------------------------------
def _build_edge_masks(h, w):
    s = h * w
    m = np.ones((s, 2), np.float32)
    xs = np.arange(s) % w
    m[xs == 0, 0] = 0.0
    m[xs == w - 1, 1] = 0.0
    return jnp.asarray(m)


def _build_pool_matrix(h, w):
    # [9, h*w] averaging matrix for AdaptiveAvgPool2d((3,3)); exact bins (h, w divisible by 3)
    bh, bw = h // 3, w // 3
    p = np.zeros((9, h * w), np.float32)
    inv = 1.0 / (bh * bw)
    for ph in range(3):
        for pw in range(3):
            for r in range(bh):
                for c in range(bw):
                    p[ph * 3 + pw, (ph * bh + r) * w + pw * bw + c] = inv
    return jnp.asarray(p)


def prepare_params(params, h, w):
    """Done once, outside the jitted hot path: BN folding + block-diagonal lane packing."""
    assert h % 3 == 0 and w % 3 == 0, "AdaptiveAvgPool2d((3,3)) assumes exact bins here"
    eye_p = np.eye(_PACK, dtype=np.float32)

    cw_blocks, scales, shifts = [], [], []
    for layer in params["convs"]:
        cw = np.asarray(layer["w"], np.float32)            # [cout, cin, 3, 3]
        cb = np.asarray(layer["b"], np.float32)
        gamma = np.asarray(layer["gamma"], np.float32)
        beta = np.asarray(layer["beta"], np.float32)
        mean = np.asarray(layer["mean"], np.float32)
        var = np.asarray(layer["var"], np.float32)
        cin = cw.shape[1]
        wm = np.transpose(cw, (2, 3, 1, 0))                 # [3,3,cin,cout]
        if cin < _C:
            wm = np.pad(wm, ((0, 0), (0, 0), (0, _C - cin), (0, 0)))
        for dy in range(3):
            for dx in range(3):
                # [128,128] block-diagonal: same [32,32] tap matrix for each lane-packed sample
                cw_blocks.append(np.kron(eye_p, wm[dy, dx]))
        sc = gamma / np.sqrt(var + _BN_EPS)
        scales.append(np.tile(sc, _PACK))
        shifts.append(np.tile(beta + (cb - mean) * sc, _PACK))  # conv bias folded into BN shift

    fc1_w = np.asarray(params["fc1_w"], np.float32)         # [32, 288], in-index = c*9 + bin
    fc1_b = np.asarray(params["fc1_b"], np.float32)
    fc2_w = np.asarray(params["fc2_w"], np.float32)          # [1, 32]
    fc2_b = np.asarray(params["fc2_b"], np.float32)

    # per-bin [cin=32, cout=32] fc1 blocks (PyTorch flattens pooled NCHW as c*9 + bin)
    w1r = np.transpose(fc1_w.reshape(_C, _C, 9), (2, 1, 0))  # [bin, cin, cout]
    w1_blocks = [np.kron(eye_p, w1r[b]) for b in range(9)]   # 9 x [128, 128]

    # fc2 padded to N=128: column p holds sample-slot p's weights; columns >= PACK are zero
    w2sel = np.zeros((_LANES, _LANES), np.float32)
    for p in range(_PACK):
        w2sel[p * _C:(p + 1) * _C, p] = fc2_w[0]

    return dict(
        cw=jnp.asarray(np.concatenate(cw_blocks, axis=0), jnp.bfloat16),   # [3*9*128, 128]
        cs=jnp.asarray(np.stack(scales), jnp.float32),                     # [3, 128]
        cb=jnp.asarray(np.stack(shifts), jnp.float32),                     # [3, 128]
        w1=jnp.asarray(np.concatenate(w1_blocks, axis=0), jnp.float32),    # [9*128, 128]
        b1=jnp.asarray(np.tile(fc1_b, _PACK).reshape(1, _LANES), jnp.float32),
        w2=jnp.asarray(w2sel, jnp.float32),                                # [128, 128]
        b2=jnp.asarray(np.full((1, _LANES), float(fc2_b[0]), np.float32)),
        masks=_build_edge_masks(h, w),                                     # [h*w, 2]
        pmat=_build_pool_matrix(h, w),                                     # [9, h*w]
    )


# ---------------------------------------------------------------------------
# Fused forward (single pallas_call, grid over batch tiles of g_step*4 samples)
# ---------------------------------------------------------------------------
def cnn_forward_pallas(x_nchw, prep, groups_per_step=4):
    n, cin, h, w = x_nchw.shape
    s = h * w

    # NHWC-flatten, pad channels to 32
    x = jnp.transpose(x_nchw, (0, 2, 3, 1)).reshape(n, s, cin)
    if cin < _C:
        x = jnp.pad(x, ((0, 0), (0, 0), (0, _C - cin)))

    # pad batch to a whole number of (groups_per_step x 4-sample) tiles
    g_total_raw = -(-n // _PACK)
    g_step = max(1, min(groups_per_step, g_total_raw))
    n_steps = -(-g_total_raw // g_step)
    g_total = n_steps * g_step
    n_pad = g_total * _PACK
    if n_pad > n:
        x = jnp.pad(x, ((0, n_pad - n), (0, 0), (0, 0)))

    # lane-pack 4 samples per group: [G, PACK, S, 32] -> [G, S, 128]; DMA'd in bf16
    xg = (x.reshape(g_total, _PACK, s, _C)
            .transpose(0, 2, 1, 3)
            .reshape(g_total, s, _LANES)
            .astype(jnp.bfloat16))

    kernel, pad = _make_fused_kernel(h, w, g_step)

    def full(a):
        return pl.BlockSpec(a.shape, lambda i, _nd=a.ndim: (0,) * _nd)

    out = pl.pallas_call(
        kernel,
        out_shape=jax.ShapeDtypeStruct((n_steps, g_step, _PACK), jnp.float32),
        grid=(n_steps,),
        in_specs=[pl.BlockSpec((g_step, s, _LANES), lambda i: (i, 0, 0)),
                  full(prep["cw"]), full(prep["cs"]), full(prep["cb"]),
                  full(prep["masks"]), full(prep["pmat"]),
                  full(prep["w1"]), full(prep["b1"]), full(prep["w2"]), full(prep["b2"])],
        out_specs=pl.BlockSpec((1, g_step, _PACK), lambda i: (i, 0, 0)),
        scratch_shapes=[pltpu.VMEM((s + 2 * pad, _LANES), jnp.float32),    # padded activations
                        pltpu.VMEM((s, 9 * _LANES), jnp.bfloat16)],        # im2col strip
        compiler_params=pltpu.CompilerParams(dimension_semantics=("parallel",)),
    )(xg, prep["cw"], prep["cs"], prep["cb"], prep["masks"], prep["pmat"],
      prep["w1"], prep["b1"], prep["w2"], prep["b2"])
    return out.reshape(n_pad, 1)[:n]


# ---------------------------------------------------------------------------
# Pure-JAX reference (mirrors the PyTorch forward in eval mode, exact GELU)
# ---------------------------------------------------------------------------
def cnn_forward_reference(x_nchw, params):
    hi = jax.lax.Precision.HIGHEST
    x = jnp.transpose(x_nchw, (0, 2, 3, 1)).astype(jnp.float32)
    for layer in params["convs"]:
        cw = jnp.transpose(layer["w"], (2, 3, 1, 0))
        y = jax.lax.conv_general_dilated(x, cw, (1, 1), "SAME",
                                         dimension_numbers=("NHWC", "HWIO", "NHWC"),
                                         precision=hi) + layer["b"]
        y = (y - layer["mean"]) / jnp.sqrt(layer["var"] + _BN_EPS) * layer["gamma"] + layer["beta"]
        x = jax.nn.gelu(y, approximate=False)
    n, h, w, c = x.shape
    p = x.reshape(n, 3, h // 3, 3, w // 3, c).mean(axis=(2, 4))            # [N,3,3,C]
    feat = jnp.transpose(p, (0, 3, 1, 2)).reshape(n, c * 9)                # PyTorch .view order
    h1 = jax.nn.gelu(jnp.dot(feat, params["fc1_w"].T, precision=hi) + params["fc1_b"],
                     approximate=False)
    return jnp.tanh(jnp.dot(h1, params["fc2_w"].T, precision=hi) + params["fc2_b"])


# ---------------------------------------------------------------------------
# Deterministic synthetic parameters + driver
# ---------------------------------------------------------------------------
def _init_params(key):
    def nrm(k, shape, std):
        return std * jax.random.normal(k, shape, jnp.float32)

    keys = iter(jax.random.split(key, 32))
    convs = []
    cin = 24
    for _ in range(3):
        cout = 32
        convs.append(dict(
            w=nrm(next(keys), (cout, cin, 3, 3), 1.0 / np.sqrt(9 * cin)),
            b=nrm(next(keys), (cout,), 0.05),
            gamma=1.0 + nrm(next(keys), (cout,), 0.1),
            beta=nrm(next(keys), (cout,), 0.1),
            mean=nrm(next(keys), (cout,), 0.1),
            var=jax.random.uniform(next(keys), (cout,), jnp.float32, 0.5, 1.5),
        ))
        cin = cout
    return dict(
        convs=convs,
        fc1_w=nrm(next(keys), (32, 32 * 3 * 3), 1.0 / np.sqrt(288)),
        fc1_b=nrm(next(keys), (32,), 0.05),
        fc2_w=nrm(next(keys), (1, 32), 1.0 / np.sqrt(32)),
        fc2_b=nrm(next(keys), (1,), 0.05),
    )


if __name__ == "__main__":
    key = jax.random.PRNGKey(0)
    k_x, k_p = jax.random.split(key)

    N, C_IN, H, W = 2, 24, 12, 12          # 12x12 -> clean 4x4 adaptive-pool bins
    x = jax.random.normal(k_x, (N, C_IN, H, W), jnp.float32)
    params = _init_params(k_p)
    prep = prepare_params(params, H, W)    # one-time re-layout / folding, outside jit

    fwd = jax.jit(lambda xx: cnn_forward_pallas(xx, prep))
    out = jax.block_until_ready(fwd(x))

    ref = jax.block_until_ready(cnn_forward_reference(x, params))
    assert out.shape == (N, 1), out.shape
    # Tolerance covers tanh-approx GELU (reference uses exact erf) + bf16 conv operands.
    max_err = float(jnp.max(jnp.abs(out - ref)))
    assert max_err < 3e-2, f"mismatch vs reference: {max_err}"

    print("KERNEL_OK")
</pallas_src>

<mosaic_0001>
module attributes {stable_mosaic.version = 11 : i64} {
  func.func @kernel(%arg0: i32, %arg1: memref<1x144x128xbf16, #tpu.memory_space<vmem>>, %arg2: memref<3456x128xbf16, #tpu.memory_space<vmem>>, %arg3: memref<3x128xf32, #tpu.memory_space<vmem>>, %arg4: memref<3x128xf32, #tpu.memory_space<vmem>>, %arg5: memref<144x2xf32, #tpu.memory_space<vmem>>, %arg6: memref<9x144xf32, #tpu.memory_space<vmem>>, %arg7: memref<1152x128xf32, #tpu.memory_space<vmem>>, %arg8: memref<1x128xf32, #tpu.memory_space<vmem>>, %arg9: memref<128x128xf32, #tpu.memory_space<vmem>>, %arg10: memref<1x128xf32, #tpu.memory_space<vmem>>, %arg11: memref<1x1x4xf32, #tpu.memory_space<vmem>>, %arg12: memref<176x128xf32, #tpu.memory_space<vmem>>, %arg13: memref<144x1152xbf16, #tpu.memory_space<vmem>>) attributes {dimension_semantics = [#tpu.dimension_semantics<parallel>], iteration_bounds = array<i64: 1>, scalar_prefetch = 0 : i64, scratch_operands = 2 : i64, tpu.core_type = #tpu.core_type<tc>, window_params = [{transform_indices = @transform_0, window_bounds = array<i64: 1, 144, 128>}, {pipeline_mode = #tpu.pipeline_mode<synchronous>, transform_indices = @transform_1, window_bounds = array<i64: 3456, 128>}, {pipeline_mode = #tpu.pipeline_mode<synchronous>, transform_indices = @transform_2, window_bounds = array<i64: 3, 128>}, {pipeline_mode = #tpu.pipeline_mode<synchronous>, transform_indices = @transform_3, window_bounds = array<i64: 3, 128>}, {pipeline_mode = #tpu.pipeline_mode<synchronous>, transform_indices = @transform_4, window_bounds = array<i64: 144, 2>}, {pipeline_mode = #tpu.pipeline_mode<synchronous>, transform_indices = @transform_5, window_bounds = array<i64: 9, 144>}, {pipeline_mode = #tpu.pipeline_mode<synchronous>, transform_indices = @transform_6, window_bounds = array<i64: 1152, 128>}, {pipeline_mode = #tpu.pipeline_mode<synchronous>, transform_indices = @transform_7, window_bounds = array<i64: 1, 128>}, {pipeline_mode = #tpu.pipeline_mode<synchronous>, transform_indices = @transform_8, window_bounds = array<i64: 128, 128>}, {pipeline_mode = #tpu.pipeline_mode<synchronous>, transform_indices = @transform_9, window_bounds = array<i64: 1, 128>}, {transform_indices = @transform_10, window_bounds = array<i64: 1, 1, 4>}]} {
    %cst = arith.constant 0.000000e+00 : f32
    %0 = vector.broadcast %cst : f32 to vector<16x128xf32>
    %c0 = arith.constant 0 : index
    %c0_0 = arith.constant 0 : index
    %1 = vector.load %arg12[%c0, %c0_0] : memref<176x128xf32, #tpu.memory_space<vmem>>, vector<16x128xf32>
    tpu.vector_store %arg12[%c0, %c0_0], %0 {strides = array<i32>} : memref<176x128xf32, #tpu.memory_space<vmem>>, vector<16x128xf32>,
    %c160 = arith.constant 160 : index
    %c0_1 = arith.constant 0 : index
    %2 = vector.load %arg12[%c160, %c0_1] : memref<176x128xf32, #tpu.memory_space<vmem>>, vector<16x128xf32>
    tpu.vector_store %arg12[%c160, %c0_1], %0 {strides = array<i32>} : memref<176x128xf32, #tpu.memory_space<vmem>>, vector<16x128xf32>,
    %c0_2 = arith.constant 0 : index
    %c0_3 = arith.constant 0 : index
    %3 = vector.load %arg5[%c0_2, %c0_3] : memref<144x2xf32, #tpu.memory_space<vmem>>, vector<144x1xf32>
    %c0_4 = arith.constant 0 : index
    %c1 = arith.constant 1 : index
    %4 = vector.load %arg5[%c0_4, %c1] : memref<144x2xf32, #tpu.memory_space<vmem>>, vector<144x1xf32>
    %c0_5 = arith.constant 0 : index
    %c0_6 = arith.constant 0 : index
    %c0_7 = arith.constant 0 : index
    %5 = vector.load %arg1[%c0_5, %c0_6, %c0_7] : memref<1x144x128xbf16, #tpu.memory_space<vmem>>, vector<1x144x128xbf16>
    %6 = vector.shape_cast %5 : vector<1x144x128xbf16> to vector<144x128xbf16>
    %7 = arith.extf %6 : vector<144x128xbf16> to vector<144x128xf32>
    %c16 = arith.constant 16 : index
    %c0_8 = arith.constant 0 : index
    %8 = vector.load %arg12[%c16, %c0_8] : memref<176x128xf32, #tpu.memory_space<vmem>>, vector<144x128xf32>
    tpu.vector_store %arg12[%c16, %c0_8], %7 {strides = array<i32>} : memref<176x128xf32, #tpu.memory_space<vmem>>, vector<144x128xf32>,
    %c3 = arith.constant 3 : index
    %c0_9 = arith.constant 0 : index
    %9 = vector.load %arg12[%c3, %c0_9] : memref<176x128xf32, #tpu.memory_space<vmem>>, vector<144x128xf32>
    %10 = vector.broadcast %3 : vector<144x1xf32> to vector<144x128xf32>
    %11 = arith.mulf %9, %10 : vector<144x128xf32>
    %12 = arith.truncf %11 : vector<144x128xf32> to vector<144x128xbf16>
    %c0_10 = arith.constant 0 : index
    %c0_11 = arith.constant 0 : index
    %13 = vector.load %arg13[%c0_10, %c0_11] : memref<144x1152xbf16, #tpu.memory_space<vmem>>, vector<144x128xbf16>
    tpu.vector_store %arg13[%c0_10, %c0_11], %12 {strides = array<i32>} : memref<144x1152xbf16, #tpu.memory_space<vmem>>, vector<144x128xbf16>,
    %c4 = arith.constant 4 : index
    %c0_12 = arith.constant 0 : index
    %14 = vector.load %arg12[%c4, %c0_12] : memref<176x128xf32, #tpu.memory_space<vmem>>, vector<144x128xf32>
    %15 = arith.truncf %14 : vector<144x128xf32> to vector<144x128xbf16>
    %c0_13 = arith.constant 0 : index
    %c128 = arith.constant 128 : index
    %16 = vector.load %arg13[%c0_13, %c128] : memref<144x1152xbf16, #tpu.memory_space<vmem>>, vector<144x128xbf16>
    tpu.vector_store %arg13[%c0_13, %c128], %15 {strides = array<i32>} : memref<144x1152xbf16, #tpu.memory_space<vmem>>, vector<144x128xbf16>,
    %c5 = arith.constant 5 : index
    %c0_14 = arith.constant 0 : index
    %17 = vector.load %arg12[%c5, %c0_14] : memref<176x128xf32, #tpu.memory_space<vmem>>, vector<144x128xf32>
    %18 = vector.broadcast %4 : vector<144x1xf32> to vector<144x128xf32>
    %19 = arith.mulf %17, %18 : vector<144x128xf32>
    %20 = arith.truncf %19 : vector<144x128xf32> to vector<144x128xbf16>
    %c0_15 = arith.constant 0 : index
    %c256 = arith.constant 256 : index
    %21 = vector.load %arg13[%c0_15, %c256] : memref<144x1152xbf16, #tpu.memory_space<vmem>>, vector<144x128xbf16>
    tpu.vector_store %arg13[%c0_15, %c256], %20 {strides = array<i32>} : memref<144x1152xbf16, #tpu.memory_space<vmem>>, vector<144x128xbf16>,
    %c15 = arith.constant 15 : index
    %c0_16 = arith.constant 0 : index
    %22 = vector.load %arg12[%c15, %c0_16] : memref<176x128xf32, #tpu.memory_space<vmem>>, vector<144x128xf32>
    %23 = vector.broadcast %3 : vector<144x1xf32> to vector<144x128xf32>
    %24 = arith.mulf %22, %23 : vector<144x128xf32>
    %25 = arith.truncf %24 : vector<144x128xf32> to vector<144x128xbf16>
    %c0_17 = arith.constant 0 : index
    %c384 = arith.constant 384 : index
    %26 = vector.load %arg13[%c0_17, %c384] : memref<144x1152xbf16, #tpu.memory_space<vmem>>, vector<144x128xbf16>
    tpu.vector_store %arg13[%c0_17, %c384], %25 {strides = array<i32>} : memref<144x1152xbf16, #tpu.memory_space<vmem>>, vector<144x128xbf16>,
    %c16_18 = arith.constant 16 : index
    %c0_19 = arith.constant 0 : index
    %27 = vector.load %arg12[%c16_18, %c0_19] : memref<176x128xf32, #tpu.memory_space<vmem>>, vector<144x128xf32>
    %28 = arith.truncf %27 : vector<144x128xf32> to vector<144x128xbf16>
    %c0_20 = arith.constant 0 : index
    %c512 = arith.constant 512 : index
    %29 = vector.load %arg13[%c0_20, %c512] : memref<144x1152xbf16, #tpu.memory_space<vmem>>, vector<144x128xbf16>
    tpu.vector_store %arg13[%c0_20, %c512], %28 {strides = array<i32>} : memref<144x1152xbf16, #tpu.memory_space<vmem>>, vector<144x128xbf16>,
    %c17 = arith.constant 17 : index
    %c0_21 = arith.constant 0 : index
    %30 = vector.load %arg12[%c17, %c0_21] : memref<176x128xf32, #tpu.memory_space<vmem>>, vector<144x128xf32>
    %31 = vector.broadcast %4 : vector<144x1xf32> to vector<144x128xf32>
    %32 = arith.mulf %30, %31 : vector<144x128xf32>
    %33 = arith.truncf %32 : vector<144x128xf32> to vector<144x128xbf16>
    %c0_22 = arith.constant 0 : index
    %c640 = arith.constant 640 : index
    %34 = vector.load %arg13[%c0_22, %c640] : memref<144x1152xbf16, #tpu.memory_space<vmem>>, vector<144x128xbf16>
    tpu.vector_store %arg13[%c0_22, %c640], %33 {strides = array<i32>} : memref<144x1152xbf16, #tpu.memory_space<vmem>>, vector<144x128xbf16>,
    %c27 = arith.constant 27 : index
    %c0_23 = arith.constant 0 : index
    %35 = vector.load %arg12[%c27, %c0_23] : memref<176x128xf32, #tpu.memory_space<vmem>>, vector<144x128xf32>
    %36 = vector.broadcast %3 : vector<144x1xf32> to vector<144x128xf32>
    %37 = arith.mulf %35, %36 : vector<144x128xf32>
    %38 = arith.truncf %37 : vector<144x128xf32> to vector<144x128xbf16>
    %c0_24 = arith.constant 0 : index
    %c768 = arith.constant 768 : index
    %39 = vector.load %arg13[%c0_24, %c768] : memref<144x1152xbf16, #tpu.memory_space<vmem>>, vector<144x128xbf16>
    tpu.vector_store %arg13[%c0_24, %c768], %38 {strides = array<i32>} : memref<144x1152xbf16, #tpu.memory_space<vmem>>, vector<144x128xbf16>,
    %c28 = arith.constant 28 : index
    %c0_25 = arith.constant 0 : index
    %40 = vector.load %arg12[%c28, %c0_25] : memref<176x128xf32, #tpu.memory_space<vmem>>, vector<144x128xf32>
    %41 = arith.truncf %40 : vector<144x128xf32> to vector<144x128xbf16>
    %c0_26 = arith.constant 0 : index
    %c896 = arith.constant 896 : index
    %42 = vector.load %arg13[%c0_26, %c896] : memref<144x1152xbf16, #tpu.memory_space<vmem>>, vector<144x128xbf16>
    tpu.vector_store %arg13[%c0_26, %c896], %41 {strides = array<i32>} : memref<144x1152xbf16, #tpu.memory_space<vmem>>, vector<144x128xbf16>,
    %c29 = arith.constant 29 : index
    %c0_27 = arith.constant 0 : index
    %43 = vector.load %arg12[%c29, %c0_27] : memref<176x128xf32, #tpu.memory_space<vmem>>, vector<144x128xf32>
    %44 = vector.broadcast %4 : vector<144x1xf32> to vector<144x128xf32>
    %45 = arith.mulf %43, %44 : vector<144x128xf32>
    %46 = arith.truncf %45 : vector<144x128xf32> to vector<144x128xbf16>
    %c0_28 = arith.constant 0 : index
    %c1024 = arith.constant 1024 : index
    %47 = vector.load %arg13[%c0_28, %c1024] : memref<144x1152xbf16, #tpu.memory_space<vmem>>, vector<144x128xbf16>
    tpu.vector_store %arg13[%c0_28, %c1024], %46 {strides = array<i32>} : memref<144x1152xbf16, #tpu.memory_space<vmem>>, vector<144x128xbf16>,
    %c0_29 = arith.constant 0 : index
    %c0_30 = arith.constant 0 : index
    %48 = vector.load %arg13[%c0_29, %c0_30] : memref<144x1152xbf16, #tpu.memory_space<vmem>>, vector<144x1152xbf16>
    %c0_31 = arith.constant 0 : index
    %c0_32 = arith.constant 0 : index
    %49 = vector.load %arg2[%c0_31, %c0_32] : memref<3456x128xbf16, #tpu.memory_space<vmem>>, vector<1152x128xbf16>
    %cst_33 = arith.constant dense<0.000000e+00> : vector<144x128xf32>
    %50 = tpu.matmul %48, %49, %cst_33 {dimension_numbers = #tpu.dot_dimension_numbers<[1], [0], [0], [1], [0, 0, 1, 1], [], []>} : vector<144x1152xbf16>, vector<1152x128xbf16>, vector<144x128xf32> -> vector<144x128xf32>
    %c0_34 = arith.constant 0 : index
    %c0_35 = arith.constant 0 : index
    %51 = vector.load %arg3[%c0_34, %c0_35] : memref<3x128xf32, #tpu.memory_space<vmem>>, vector<1x128xf32>
    %c0_36 = arith.constant 0 : index
    %c0_37 = arith.constant 0 : index
    %52 = vector.load %arg4[%c0_36, %c0_37] : memref<3x128xf32, #tpu.memory_space<vmem>>, vector<1x128xf32>
    %53 = vector.broadcast %51 : vector<1x128xf32> to vector<144x128xf32>
    %54 = arith.mulf %50, %53 : vector<144x128xf32>
    %55 = vector.broadcast %52 : vector<1x128xf32> to vector<144x128xf32>
    %56 = arith.addf %54, %55 : vector<144x128xf32>
    %cst_38 = arith.constant 5.000000e-01 : f32
    %57 = vector.broadcast %cst_38 : f32 to vector<144x128xf32>
    %58 = arith.mulf %57, %56 : vector<144x128xf32>
    %59 = arith.mulf %56, %56 : vector<144x128xf32>
    %60 = arith.mulf %59, %56 : vector<144x128xf32>
    %cst_39 = arith.constant 4.471500e-02 : f32
    %61 = vector.broadcast %cst_39 : f32 to vector<144x128xf32>
    %62 = arith.mulf %61, %60 : vector<144x128xf32>
    %63 = arith.addf %56, %62 : vector<144x128xf32>
    %cst_40 = arith.constant 0.797884583 : f32
    %64 = vector.broadcast %cst_40 : f32 to vector<144x128xf32>
    %65 = arith.mulf %64, %63 : vector<144x128xf32>
    %66 = math.tanh %65 : vector<144x128xf32>
    %cst_41 = arith.constant 1.000000e+00 : f32
    %67 = vector.broadcast %cst_41 : f32 to vector<144x128xf32>
    %68 = arith.addf %67, %66 : vector<144x128xf32>
    %69 = arith.mulf %58, %68 : vector<144x128xf32>
    %c16_42 = arith.constant 16 : index
    %c0_43 = arith.constant 0 : index
    %70 = vector.load %arg12[%c16_42, %c0_43] : memref<176x128xf32, #tpu.memory_space<vmem>>, vector<144x128xf32>
    tpu.vector_store %arg12[%c16_42, %c0_43], %69 {strides = array<i32>} : memref<176x128xf32, #tpu.memory_space<vmem>>, vector<144x128xf32>,
    %c3_44 = arith.constant 3 : index
    %c0_45 = arith.constant 0 : index
    %71 = vector.load %arg12[%c3_44, %c0_45] : memref<176x128xf32, #tpu.memory_space<vmem>>, vector<144x128xf32>
    %72 = vector.broadcast %3 : vector<144x1xf32> to vector<144x128xf32>
    %73 = arith.mulf %71, %72 : vector<144x128xf32>
    %74 = arith.truncf %73 : vector<144x128xf32> to vector<144x128xbf16>
    %c0_46 = arith.constant 0 : index
    %c0_47 = arith.constant 0 : index
    %75 = vector.load %arg13[%c0_46, %c0_47] : memref<144x1152xbf16, #tpu.memory_space<vmem>>, vector<144x128xbf16>
    tpu.vector_store %arg13[%c0_46, %c0_47], %74 {strides = array<i32>} : memref<144x1152xbf16, #tpu.memory_space<vmem>>, vector<144x128xbf16>,
    %c4_48 = arith.constant 4 : index
    %c0_49 = arith.constant 0 : index
    %76 = vector.load %arg12[%c4_48, %c0_49] : memref<176x128xf32, #tpu.memory_space<vmem>>, vector<144x128xf32>
    %77 = arith.truncf %76 : vector<144x128xf32> to vector<144x128xbf16>
    %c0_50 = arith.constant 0 : index
    %c128_51 = arith.constant 128 : index
    %78 = vector.load %arg13[%c0_50, %c128_51] : memref<144x1152xbf16, #tpu.memory_space<vmem>>, vector<144x128xbf16>
    tpu.vector_store %arg13[%c0_50, %c128_51], %77 {strides = array<i32>} : memref<144x1152xbf16, #tpu.memory_space<vmem>>, vector<144x128xbf16>,
    %c5_52 = arith.constant 5 : index
    %c0_53 = arith.constant 0 : index
    %79 = vector.load %arg12[%c5_52, %c0_53] : memref<176x128xf32, #tpu.memory_space<vmem>>, vector<144x128xf32>
    %80 = vector.broadcast %4 : vector<144x1xf32> to vector<144x128xf32>
    %81 = arith.mulf %79, %80 : vector<144x128xf32>
    %82 = arith.truncf %81 : vector<144x128xf32> to vector<144x128xbf16>
    %c0_54 = arith.constant 0 : index
    %c256_55 = arith.constant 256 : index
    %83 = vector.load %arg13[%c0_54, %c256_55] : memref<144x1152xbf16, #tpu.memory_space<vmem>>, vector<144x128xbf16>
    tpu.vector_store %arg13[%c0_54, %c256_55], %82 {strides = array<i32>} : memref<144x1152xbf16, #tpu.memory_space<vmem>>, vector<144x128xbf16>,
    %c15_56 = arith.constant 15 : index
    %c0_57 = arith.constant 0 : index
    %84 = vector.load %arg12[%c15_56, %c0_57] : memref<176x128xf32, #tpu.memory_space<vmem>>, vector<144x128xf32>
    %85 = vector.broadcast %3 : vector<144x1xf32> to vector<144x128xf32>
    %86 = arith.mulf %84, %85 : vector<144x128xf32>
    %87 = arith.truncf %86 : vector<144x128xf32> to vector<144x128xbf16>
    %c0_58 = arith.constant 0 : index
    %c384_59 = arith.constant 384 : index
    %88 = vector.load %arg13[%c0_58, %c384_59] : memref<144x1152xbf16, #tpu.memory_space<vmem>>, vector<144x128xbf16>
    tpu.vector_store %arg13[%c0_58, %c384_59], %87 {strides = array<i32>} : memref<144x1152xbf16, #tpu.memory_space<vmem>>, vector<144x128xbf16>,
    %c16_60 = arith.constant 16 : index
    %c0_61 = arith.constant 0 : index
    %89 = vector.load %arg12[%c16_60, %c0_61] : memref<176x128xf32, #tpu.memory_space<vmem>>, vector<144x128xf32>
    %90 = arith.truncf %89 : vector<144x128xf32> to vector<144x128xbf16>
    %c0_62 = arith.constant 0 : index
    %c512_63 = arith.constant 512 : index
    %91 = vector.load %arg13[%c0_62, %c512_63] : memref<144x1152xbf16, #tpu.memory_space<vmem>>, vector<144x128xbf16>
    tpu.vector_store %arg13[%c0_62, %c512_63], %90 {strides = array<i32>} : memref<144x1152xbf16, #tpu.memory_space<vmem>>, vector<144x128xbf16>,
    %c17_64 = arith.constant 17 : index
    %c0_65 = arith.constant 0 : index
    %92 = vector.load %arg12[%c17_64, %c0_65] : memref<176x128xf32, #tpu.memory_space<vmem>>, vector<144x128xf32>
    %93 = vector.broadcast %4 : vector<144x1xf32> to vector<144x128xf32>
    %94 = arith.mulf %92, %93 : vector<144x128xf32>
    %95 = arith.truncf %94 : vector<144x128xf32> to vector<144x128xbf16>
    %c0_66 = arith.constant 0 : index
    %c640_67 = arith.constant 640 : index
    %96 = vector.load %arg13[%c0_66, %c640_67] : memref<144x1152xbf16, #tpu.memory_space<vmem>>, vector<144x128xbf16>
    tpu.vector_store %arg13[%c0_66, %c640_67], %95 {strides = array<i32>} : memref<144x1152xbf16, #tpu.memory_space<vmem>>, vector<144x128xbf16>,
    %c27_68 = arith.constant 27 : index
    %c0_69 = arith.constant 0 : index
    %97 = vector.load %arg12[%c27_68, %c0_69] : memref<176x128xf32, #tpu.memory_space<vmem>>, vector<144x128xf32>
    %98 = vector.broadcast %3 : vector<144x1xf32> to vector<144x128xf32>
    %99 = arith.mulf %97, %98 : vector<144x128xf32>
    %100 = arith.truncf %99 : vector<144x128xf32> to vector<144x128xbf16>
    %c0_70 = arith.constant 0 : index
    %c768_71 = arith.constant 768 : index
    %101 = vector.load %arg13[%c0_70, %c768_71] : memref<144x1152xbf16, #tpu.memory_space<vmem>>, vector<144x128xbf16>
    tpu.vector_store %arg13[%c0_70, %c768_71], %100 {strides = array<i32>} : memref<144x1152xbf16, #tpu.memory_space<vmem>>, vector<144x128xbf16>,
    %c28_72 = arith.constant 28 : index
    %c0_73 = arith.constant 0 : index
    %102 = vector.load %arg12[%c28_72, %c0_73] : memref<176x128xf32, #tpu.memory_space<vmem>>, vector<144x128xf32>
    %103 = arith.truncf %102 : vector<144x128xf32> to vector<144x128xbf16>
    %c0_74 = arith.constant 0 : index
    %c896_75 = arith.constant 896 : index
    %104 = vector.load %arg13[%c0_74, %c896_75] : memref<144x1152xbf16, #tpu.memory_space<vmem>>, vector<144x128xbf16>
    tpu.vector_store %arg13[%c0_74, %c896_75], %103 {strides = array<i32>} : memref<144x1152xbf16, #tpu.memory_space<vmem>>, vector<144x128xbf16>,
    %c29_76 = arith.constant 29 : index
    %c0_77 = arith.constant 0 : index
    %105 = vector.load %arg12[%c29_76, %c0_77] : memref<176x128xf32, #tpu.memory_space<vmem>>, vector<144x128xf32>
    %106 = vector.broadcast %4 : vector<144x1xf32> to vector<144x128xf32>
    %107 = arith.mulf %105, %106 : vector<144x128xf32>
    %108 = arith.truncf %107 : vector<144x128xf32> to vector<144x128xbf16>
    %c0_78 = arith.constant 0 : index
    %c1024_79 = arith.constant 1024 : index
    %109 = vector.load %arg13[%c0_78, %c1024_79] : memref<144x1152xbf16, #tpu.memory_space<vmem>>, vector<144x128xbf16>
    tpu.vector_store %arg13[%c0_78, %c1024_79], %108 {strides = array<i32>} : memref<144x1152xbf16, #tpu.memory_space<vmem>>, vector<144x128xbf16>,
    %c0_80 = arith.constant 0 : index
    %c0_81 = arith.constant 0 : index
    %110 = vector.load %arg13[%c0_80, %c0_81] : memref<144x1152xbf16, #tpu.memory_space<vmem>>, vector<144x1152xbf16>
    %c1152 = arith.constant 1152 : index
    %c0_82 = arith.constant 0 : index
    %111 = vector.load %arg2[%c1152, %c0_82] : memref<3456x128xbf16, #tpu.memory_space<vmem>>, vector<1152x128xbf16>
    %cst_83 = arith.constant dense<0.000000e+00> : vector<144x128xf32>
    %112 = tpu.matmul %110, %111, %cst_83 {dimension_numbers = #tpu.dot_dimension_numbers<[1], [0], [0], [1], [0, 0, 1, 1], [], []>} : vector<144x1152xbf16>, vector<1152x128xbf16>, vector<144x128xf32> -> vector<144x128xf32>
    %c1_84 = arith.constant 1 : index
    %c0_85 = arith.constant 0 : index
    %113 = vector.load %arg3[%c1_84, %c0_85] : memref<3x128xf32, #tpu.memory_space<vmem>>, vector<1x128xf32>
    %c1_86 = arith.constant 1 : index
    %c0_87 = arith.constant 0 : index
    %114 = vector.load %arg4[%c1_86, %c0_87] : memref<3x128xf32, #tpu.memory_space<vmem>>, vector<1x128xf32>
    %115 = vector.broadcast %113 : vector<1x128xf32> to vector<144x128xf32>
    %116 = arith.mulf %112, %115 : vector<144x128xf32>
    %117 = vector.broadcast %114 : vector<1x128xf32> to vector<144x128xf32>
    %118 = arith.addf %116, %117 : vector<144x128xf32>
    %cst_88 = arith.constant 5.000000e-01 : f32
    %119 = vector.broadcast %cst_88 : f32 to vector<144x128xf32>
    %120 = arith.mulf %119, %118 : vector<144x128xf32>
    %121 = arith.mulf %118, %118 : vector<144x128xf32>
    %122 = arith.mulf %121, %118 : vector<144x128xf32>
    %cst_89 = arith.constant 4.471500e-02 : f32
    %123 = vector.broadcast %cst_89 : f32 to vector<144x128xf32>
    %124 = arith.mulf %123, %122 : vector<144x128xf32>
    %125 = arith.addf %118, %124 : vector<144x128xf32>
    %cst_90 = arith.constant 0.797884583 : f32
    %126 = vector.broadcast %cst_90 : f32 to vector<144x128xf32>
    %127 = arith.mulf %126, %125 : vector<144x128xf32>
    %128 = math.tanh %127 : vector<144x128xf32>
    %cst_91 = arith.constant 1.000000e+00 : f32
    %129 = vector.broadcast %cst_91 : f32 to vector<144x128xf32>
    %130 = arith.addf %129, %128 : vector<144x128xf32>
    %131 = arith.mulf %120, %130 : vector<144x128xf32>
    %c16_92 = arith.constant 16 : index
    %c0_93 = arith.constant 0 : index
    %132 = vector.load %arg12[%c16_92, %c0_93] : memref<176x128xf32, #tpu.memory_space<vmem>>, vector<144x128xf32>
    tpu.vector_store %arg12[%c16_92, %c0_93], %131 {strides = array<i32>} : memref<176x128xf32, #tpu.memory_space<vmem>>, vector<144x128xf32>,
    %c3_94 = arith.constant 3 : index
    %c0_95 = arith.constant 0 : index
    %133 = vector.load %arg12[%c3_94, %c0_95] : memref<176x128xf32, #tpu.memory_space<vmem>>, vector<144x128xf32>
    %134 = vector.broadcast %3 : vector<144x1xf32> to vector<144x128xf32>
    %135 = arith.mulf %133, %134 : vector<144x128xf32>
    %136 = arith.truncf %135 : vector<144x128xf32> to vector<144x128xbf16>
    %c0_96 = arith.constant 0 : index
    %c0_97 = arith.constant 0 : index
    %137 = vector.load %arg13[%c0_96, %c0_97] : memref<144x1152xbf16, #tpu.memory_space<vmem>>, vector<144x128xbf16>
    tpu.vector_store %arg13[%c0_96, %c0_97], %136 {strides = array<i32>} : memref<144x1152xbf16, #tpu.memory_space<vmem>>, vector<144x128xbf16>,
    %c4_98 = arith.constant 4 : index
    %c0_99 = arith.constant 0 : index
    %138 = vector.load %arg12[%c4_98, %c0_99] : memref<176x128xf32, #tpu.memory_space<vmem>>, vector<144x128xf32>
    %139 = arith.truncf %138 : vector<144x128xf32> to vector<144x128xbf16>
    %c0_100 = arith.constant 0 : index
    %c128_101 = arith.constant 128 : index
    %140 = vector.load %arg13[%c0_100, %c128_101] : memref<144x1152xbf16, #tpu.memory_space<vmem>>, vector<144x128xbf16>
    tpu.vector_store %arg13[%c0_100, %c128_101], %139 {strides = array<i32>} : memref<144x1152xbf16, #tpu.memory_space<vmem>>, vector<144x128xbf16>,
    %c5_102 = arith.constant 5 : index
    %c0_103 = arith.constant 0 : index
    %141 = vector.load %arg12[%c5_102, %c0_103] : memref<176x128xf32, #tpu.memory_space<vmem>>, vector<144x128xf32>
    %142 = vector.broadcast %4 : vector<144x1xf32> to vector<144x128xf32>
    %143 = arith.mulf %141, %142 : vector<144x128xf32>
    %144 = arith.truncf %143 : vector<144x128xf32> to vector<144x128xbf16>
    %c0_104 = arith.constant 0 : index
    %c256_105 = arith.constant 256 : index
    %145 = vector.load %arg13[%c0_104, %c256_105] : memref<144x1152xbf16, #tpu.memory_space<vmem>>, vector<144x128xbf16>
    tpu.vector_store %arg13[%c0_104, %c256_105], %144 {strides = array<i32>} : memref<144x1152xbf16, #tpu.memory_space<vmem>>, vector<144x128xbf16>,
    %c15_106 = arith.constant 15 : index
    %c0_107 = arith.constant 0 : index
    %146 = vector.load %arg12[%c15_106, %c0_107] : memref<176x128xf32, #tpu.memory_space<vmem>>, vector<144x128xf32>
    %147 = vector.broadcast %3 : vector<144x1xf32> to vector<144x128xf32>
    %148 = arith.mulf %146, %147 : vector<144x128xf32>
    %149 = arith.truncf %148 : vector<144x128xf32> to vector<144x128xbf16>
    %c0_108 = arith.constant 0 : index
    %c384_109 = arith.constant 384 : index
    %150 = vector.load %arg13[%c0_108, %c384_109] : memref<144x1152xbf16, #tpu.memory_space<vmem>>, vector<144x128xbf16>
    tpu.vector_store %arg13[%c0_108, %c384_109], %149 {strides = array<i32>} : memref<144x1152xbf16, #tpu.memory_space<vmem>>, vector<144x128xbf16>,
    %c16_110 = arith.constant 16 : index
    %c0_111 = arith.constant 0 : index
    %151 = vector.load %arg12[%c16_110, %c0_111] : memref<176x128xf32, #tpu.memory_space<vmem>>, vector<144x128xf32>
    %152 = arith.truncf %151 : vector<144x128xf32> to vector<144x128xbf16>
    %c0_112 = arith.constant 0 : index
    %c512_113 = arith.constant 512 : index
    %153 = vector.load %arg13[%c0_112, %c512_113] : memref<144x1152xbf16, #tpu.memory_space<vmem>>, vector<144x128xbf16>
    tpu.vector_store %arg13[%c0_112, %c512_113], %152 {strides = array<i32>} : memref<144x1152xbf16, #tpu.memory_space<vmem>>, vector<144x128xbf16>,
    %c17_114 = arith.constant 17 : index
    %c0_115 = arith.constant 0 : index
    %154 = vector.load %arg12[%c17_114, %c0_115] : memref<176x128xf32, #tpu.memory_space<vmem>>, vector<144x128xf32>
    %155 = vector.broadcast %4 : vector<144x1xf32> to vector<144x128xf32>
    %156 = arith.mulf %154, %155 : vector<144x128xf32>
    %157 = arith.truncf %156 : vector<144x128xf32> to vector<144x128xbf16>
    %c0_116 = arith.constant 0 : index
    %c640_117 = arith.constant 640 : index
    %158 = vector.load %arg13[%c0_116, %c640_117] : memref<144x1152xbf16, #tpu.memory_space<vmem>>, vector<144x128xbf16>
    tpu.vector_store %arg13[%c0_116, %c640_117], %157 {strides = array<i32>} : memref<144x1152xbf16, #tpu.memory_space<vmem>>, vector<144x128xbf16>,
    %c27_118 = arith.constant 27 : index
    %c0_119 = arith.constant 0 : index
    %159 = vector.load %arg12[%c27_118, %c0_119] : memref<176x128xf32, #tpu.memory_space<vmem>>, vector<144x128xf32>
    %160 = vector.broadcast %3 : vector<144x1xf32> to vector<144x128xf32>
    %161 = arith.mulf %159, %160 : vector<144x128xf32>
    %162 = arith.truncf %161 : vector<144x128xf32> to vector<144x128xbf16>
    %c0_120 = arith.constant 0 : index
    %c768_121 = arith.constant 768 : index
    %163 = vector.load %arg13[%c0_120, %c768_121] : memref<144x1152xbf16, #tpu.memory_space<vmem>>, vector<144x128xbf16>
    tpu.vector_store %arg13[%c0_120, %c768_121], %162 {strides = array<i32>} : memref<144x1152xbf16, #tpu.memory_space<vmem>>, vector<144x128xbf16>,
    %c28_122 = arith.constant 28 : index
    %c0_123 = arith.constant 0 : index
    %164 = vector.load %arg12[%c28_122, %c0_123] : memref<176x128xf32, #tpu.memory_space<vmem>>, vector<144x128xf32>
    %165 = arith.truncf %164 : vector<144x128xf32> to vector<144x128xbf16>
    %c0_124 = arith.constant 0 : index
    %c896_125 = arith.constant 896 : index
    %166 = vector.load %arg13[%c0_124, %c896_125] : memref<144x1152xbf16, #tpu.memory_space<vmem>>, vector<144x128xbf16>
    tpu.vector_store %arg13[%c0_124, %c896_125], %165 {strides = array<i32>} : memref<144x1152xbf16, #tpu.memory_space<vmem>>, vector<144x128xbf16>,
    %c29_126 = arith.constant 29 : index
    %c0_127 = arith.constant 0 : index
    %167 = vector.load %arg12[%c29_126, %c0_127] : memref<176x128xf32, #tpu.memory_space<vmem>>, vector<144x128xf32>
    %168 = vector.broadcast %4 : vector<144x1xf32> to vector<144x128xf32>
    %169 = arith.mulf %167, %168 : vector<144x128xf32>
    %170 = arith.truncf %169 : vector<144x128xf32> to vector<144x128xbf16>
    %c0_128 = arith.constant 0 : index
    %c1024_129 = arith.constant 1024 : index
    %171 = vector.load %arg13[%c0_128, %c1024_129] : memref<144x1152xbf16, #tpu.memory_space<vmem>>, vector<144x128xbf16>
    tpu.vector_store %arg13[%c0_128, %c1024_129], %170 {strides = array<i32>} : memref<144x1152xbf16, #tpu.memory_space<vmem>>, vector<144x128xbf16>,
    %c0_130 = arith.constant 0 : index
    %c0_131 = arith.constant 0 : index
    %172 = vector.load %arg13[%c0_130, %c0_131] : memref<144x1152xbf16, #tpu.memory_space<vmem>>, vector<144x1152xbf16>
    %c2304 = arith.constant 2304 : index
    %c0_132 = arith.constant 0 : index
    %173 = vector.load %arg2[%c2304, %c0_132] : memref<3456x128xbf16, #tpu.memory_space<vmem>>, vector<1152x128xbf16>
    %cst_133 = arith.constant dense<0.000000e+00> : vector<144x128xf32>
    %174 = tpu.matmul %172, %173, %cst_133 {dimension_numbers = #tpu.dot_dimension_numbers<[1], [0], [0], [1], [0, 0, 1, 1], [], []>} : vector<144x1152xbf16>, vector<1152x128xbf16>, vector<144x128xf32> -> vector<144x128xf32>
    %c2 = arith.constant 2 : index
    %c0_134 = arith.constant 0 : index
    %175 = vector.load %arg3[%c2, %c0_134] : memref<3x128xf32, #tpu.memory_space<vmem>>, vector<1x128xf32>
    %c2_135 = arith.constant 2 : index
    %c0_136 = arith.constant 0 : index
    %176 = vector.load %arg4[%c2_135, %c0_136] : memref<3x128xf32, #tpu.memory_space<vmem>>, vector<1x128xf32>
    %177 = vector.broadcast %175 : vector<1x128xf32> to vector<144x128xf32>
    %178 = arith.mulf %174, %177 : vector<144x128xf32>
    %179 = vector.broadcast %176 : vector<1x128xf32> to vector<144x128xf32>
    %180 = arith.addf %178, %179 : vector<144x128xf32>
    %cst_137 = arith.constant 5.000000e-01 : f32
    %181 = vector.broadcast %cst_137 : f32 to vector<144x128xf32>
    %182 = arith.mulf %181, %180 : vector<144x128xf32>
    %183 = arith.mulf %180, %180 : vector<144x128xf32>
    %184 = arith.mulf %183, %180 : vector<144x128xf32>
    %cst_138 = arith.constant 4.471500e-02 : f32
    %185 = vector.broadcast %cst_138 : f32 to vector<144x128xf32>
    %186 = arith.mulf %185, %184 : vector<144x128xf32>
    %187 = arith.addf %180, %186 : vector<144x128xf32>
    %cst_139 = arith.constant 0.797884583 : f32
    %188 = vector.broadcast %cst_139 : f32 to vector<144x128xf32>
    %189 = arith.mulf %188, %187 : vector<144x128xf32>
    %190 = math.tanh %189 : vector<144x128xf32>
    %cst_140 = arith.constant 1.000000e+00 : f32
    %191 = vector.broadcast %cst_140 : f32 to vector<144x128xf32>
    %192 = arith.addf %191, %190 : vector<144x128xf32>
    %193 = arith.mulf %182, %192 : vector<144x128xf32>
    %c0_141 = arith.constant 0 : index
    %c0_142 = arith.constant 0 : index
    %194 = vector.load %arg6[%c0_141, %c0_142] : memref<9x144xf32, #tpu.memory_space<vmem>>, vector<9x144xf32>
    %cst_143 = arith.constant dense<0.000000e+00> : vector<9x128xf32>
    %195 = tpu.matmul %194, %193, %cst_143 {dimension_numbers = #tpu.dot_dimension_numbers<[1], [0], [0], [1], [0, 0, 1, 1], [], []>} : vector<9x144xf32>, vector<144x128xf32>, vector<9x128xf32> -> vector<9x128xf32>
    %c0_144 = arith.constant 0 : index
    %c0_145 = arith.constant 0 : index
    %196 = vector.load %arg8[%c0_144, %c0_145] : memref<1x128xf32, #tpu.memory_space<vmem>>, vector<1x128xf32>
    %197 = vector.extract_strided_slice %195 {offsets = [0, 0], sizes = [1, 128], strides = [1, 1]} : vector<9x128xf32> to vector<1x128xf32>
    %c0_146 = arith.constant 0 : index
    %c0_147 = arith.constant 0 : index
    %198 = vector.load %arg7[%c0_146, %c0_147] : memref<1152x128xf32, #tpu.memory_space<vmem>>, vector<128x128xf32>
    %cst_148 = arith.constant dense<0.000000e+00> : vector<1x128xf32>
    %199 = tpu.matmul %197, %198, %cst_148 {dimension_numbers = #tpu.dot_dimension_numbers<[1], [0], [0], [1], [0, 0, 1, 1], [], []>} : vector<1x128xf32>, vector<128x128xf32>, vector<1x128xf32> -> vector<1x128xf32>
    %200 = arith.addf %196, %199 : vector<1x128xf32>
    %201 = vector.extract_strided_slice %195 {offsets = [1, 0], sizes = [1, 128], strides = [1, 1]} : vector<9x128xf32> to vector<1x128xf32>
    %c128_149 = arith.constant 128 : index
    %c0_150 = arith.constant 0 : index
    %202 = vector.load %arg7[%c128_149, %c0_150] : memref<1152x128xf32, #tpu.memory_space<vmem>>, vector<128x128xf32>
    %cst_151 = arith.constant dense<0.000000e+00> : vector<1x128xf32>
    %203 = tpu.matmul %201, %202, %cst_151 {dimension_numbers = #tpu.dot_dimension_numbers<[1], [0], [0], [1], [0, 0, 1, 1], [], []>} : vector<1x128xf32>, vector<128x128xf32>, vector<1x128xf32> -> vector<1x128xf32>
    %204 = arith.addf %200, %203 : vector<1x128xf32>
    %205 = vector.extract_strided_slice %195 {offsets = [2, 0], sizes = [1, 128], strides = [1, 1]} : vector<9x128xf32> to vector<1x128xf32>
    %c256_152 = arith.constant 256 : index
    %c0_153 = arith.constant 0 : index
    %206 = vector.load %arg7[%c256_152, %c0_153] : memref<1152x128xf32, #tpu.memory_space<vmem>>, vector<128x128xf32>
    %cst_154 = arith.constant dense<0.000000e+00> : vector<1x128xf32>
    %207 = tpu.matmul %205, %206, %cst_154 {dimension_numbers = #tpu.dot_dimension_numbers<[1], [0], [0], [1], [0, 0, 1, 1], [], []>} : vector<1x128xf32>, vector<128x128xf32>, vector<1x128xf32> -> vector<1x128xf32>
    %208 = arith.addf %204, %207 : vector<1x128xf32>
    %209 = vector.extract_strided_slice %195 {offsets = [3, 0], sizes = [1, 128], strides = [1, 1]} : vector<9x128xf32> to vector<1x128xf32>
    %c384_155 = arith.constant 384 : index
    %c0_156 = arith.constant 0 : index
    %210 = vector.load %arg7[%c384_155, %c0_156] : memref<1152x128xf32, #tpu.memory_space<vmem>>, vector<128x128xf32>
    %cst_157 = arith.constant dense<0.000000e+00> : vector<1x128xf32>
    %211 = tpu.matmul %209, %210, %cst_157 {dimension_numbers = #tpu.dot_dimension_numbers<[1], [0], [0], [1], [0, 0, 1, 1], [], []>} : vector<1x128xf32>, vector<128x128xf32>, vector<1x128xf32> -> vector<1x128xf32>
    %212 = arith.addf %208, %211 : vector<1x128xf32>
    %213 = vector.extract_strided_slice %195 {offsets = [4, 0], sizes = [1, 128], strides = [1, 1]} : vector<9x128xf32> to vector<1x128xf32>
    %c512_158 = arith.constant 512 : index
    %c0_159 = arith.constant 0 : index
    %214 = vector.load %arg7[%c512_158, %c0_159] : memref<1152x128xf32, #tpu.memory_space<vmem>>, vector<128x128xf32>
    %cst_160 = arith.constant dense<0.000000e+00> : vector<1x128xf32>
    %215 = tpu.matmul %213, %214, %cst_160 {dimension_numbers = #tpu.dot_dimension_numbers<[1], [0], [0], [1], [0, 0, 1, 1], [], []>} : vector<1x128xf32>, vector<128x128xf32>, vector<1x128xf32> -> vector<1x128xf32>
    %216 = arith.addf %212, %215 : vector<1x128xf32>
    %217 = vector.extract_strided_slice %195 {offsets = [5, 0], sizes = [1, 128], strides = [1, 1]} : vector<9x128xf32> to vector<1x128xf32>
    %c640_161 = arith.constant 640 : index
    %c0_162 = arith.constant 0 : index
    %218 = vector.load %arg7[%c640_161, %c0_162] : memref<1152x128xf32, #tpu.memory_space<vmem>>, vector<128x128xf32>
    %cst_163 = arith.constant dense<0.000000e+00> : vector<1x128xf32>
    %219 = tpu.matmul %217, %218, %cst_163 {dimension_numbers = #tpu.dot_dimension_numbers<[1], [0], [0], [1], [0, 0, 1, 1], [], []>} : vector<1x128xf32>, vector<128x128xf32>, vector<1x128xf32> -> vector<1x128xf32>
    %220 = arith.addf %216, %219 : vector<1x128xf32>
    %221 = vector.extract_strided_slice %195 {offsets = [6, 0], sizes = [1, 128], strides = [1, 1]} : vector<9x128xf32> to vector<1x128xf32>
    %c768_164 = arith.constant 768 : index
    %c0_165 = arith.constant 0 : index
    %222 = vector.load %arg7[%c768_164, %c0_165] : memref<1152x128xf32, #tpu.memory_space<vmem>>, vector<128x128xf32>
    %cst_166 = arith.constant dense<0.000000e+00> : vector<1x128xf32>
    %223 = tpu.matmul %221, %222, %cst_166 {dimension_numbers = #tpu.dot_dimension_numbers<[1], [0], [0], [1], [0, 0, 1, 1], [], []>} : vector<1x128xf32>, vector<128x128xf32>, vector<1x128xf32> -> vector<1x128xf32>
    %224 = arith.addf %220, %223 : vector<1x128xf32>
    %225 = vector.extract_strided_slice %195 {offsets = [7, 0], sizes = [1, 128], strides = [1, 1]} : vector<9x128xf32> to vector<1x128xf32>
    %c896_167 = arith.constant 896 : index
    %c0_168 = arith.constant 0 : index
    %226 = vector.load %arg7[%c896_167, %c0_168] : memref<1152x128xf32, #tpu.memory_space<vmem>>, vector<128x128xf32>
    %cst_169 = arith.constant dense<0.000000e+00> : vector<1x128xf32>
    %227 = tpu.matmul %225, %226, %cst_169 {dimension_numbers = #tpu.dot_dimension_numbers<[1], [0], [0], [1], [0, 0, 1, 1], [], []>} : vector<1x128xf32>, vector<128x128xf32>, vector<1x128xf32> -> vector<1x128xf32>
    %228 = arith.addf %224, %227 : vector<1x128xf32>
    %229 = vector.extract_strided_slice %195 {offsets = [8, 0], sizes = [1, 128], strides = [1, 1]} : vector<9x128xf32> to vector<1x128xf32>
    %c1024_170 = arith.constant 1024 : index
    %c0_171 = arith.constant 0 : index
    %230 = vector.load %arg7[%c1024_170, %c0_171] : memref<1152x128xf32, #tpu.memory_space<vmem>>, vector<128x128xf32>
    %cst_172 = arith.constant dense<0.000000e+00> : vector<1x128xf32>
    %231 = tpu.matmul %229, %230, %cst_172 {dimension_numbers = #tpu.dot_dimension_numbers<[1], [0], [0], [1], [0, 0, 1, 1], [], []>} : vector<1x128xf32>, vector<128x128xf32>, vector<1x128xf32> -> vector<1x128xf32>
    %232 = arith.addf %228, %231 : vector<1x128xf32>
    %cst_173 = arith.constant 5.000000e-01 : f32
    %233 = vector.broadcast %cst_173 : f32 to vector<1x128xf32>
    %234 = arith.mulf %233, %232 : vector<1x128xf32>
    %235 = arith.mulf %232, %232 : vector<1x128xf32>
    %236 = arith.mulf %235, %232 : vector<1x128xf32>
    %cst_174 = arith.constant 4.471500e-02 : f32
    %237 = vector.broadcast %cst_174 : f32 to vector<1x128xf32>
    %238 = arith.mulf %237, %236 : vector<1x128xf32>
    %239 = arith.addf %232, %238 : vector<1x128xf32>
    %cst_175 = arith.constant 0.797884583 : f32
    %240 = vector.broadcast %cst_175 : f32 to vector<1x128xf32>
    %241 = arith.mulf %240, %239 : vector<1x128xf32>
    %242 = math.tanh %241 : vector<1x128xf32>
    %cst_176 = arith.constant 1.000000e+00 : f32
    %243 = vector.broadcast %cst_176 : f32 to vector<1x128xf32>
    %244 = arith.addf %243, %242 : vector<1x128xf32>
    %245 = arith.mulf %234, %244 : vector<1x128xf32>
    %c0_177 = arith.constant 0 : index
    %c0_178 = arith.constant 0 : index
    %246 = vector.load %arg9[%c0_177, %c0_178] : memref<128x128xf32, #tpu.memory_space<vmem>>, vector<128x128xf32>
    %cst_179 = arith.constant dense<0.000000e+00> : vector<1x128xf32>
    %247 = tpu.matmul %245, %246, %cst_179 {dimension_numbers = #tpu.dot_dimension_numbers<[1], [0], [0], [1], [0, 0, 1, 1], [], []>} : vector<1x128xf32>, vector<128x128xf32>, vector<1x128xf32> -> vector<1x128xf32>
    %c0_180 = arith.constant 0 : index
    %c0_181 = arith.constant 0 : index
    %248 = vector.load %arg10[%c0_180, %c0_181] : memref<1x128xf32, #tpu.memory_space<vmem>>, vector<1x128xf32>
    %249 = arith.addf %247, %248 : vector<1x128xf32>
    %250 = math.tanh %249 : vector<1x128xf32>
    %251 = vector.extract_strided_slice %250 {offsets = [0, 0], sizes = [1, 4], strides = [1, 1]} : vector<1x128xf32> to vector<1x4xf32>
    %252 = vector.shape_cast %251 : vector<1x4xf32> to vector<1x1x4xf32>
    %c0_182 = arith.constant 0 : index
    %c0_183 = arith.constant 0 : index
    %c0_184 = arith.constant 0 : index
    %253 = vector.load %arg11[%c0_182, %c0_183, %c0_184] : memref<1x1x4xf32, #tpu.memory_space<vmem>>, vector<1x1x4xf32>
    tpu.vector_store %arg11[%c0_182, %c0_183, %c0_184], %252 {strides = array<i32>} : memref<1x1x4xf32, #tpu.memory_space<vmem>>, vector<1x1x4xf32>,
    return
  }
  func.func @transform_0(%arg0: i32) -> (i32, i32, i32) {
    %c0_i32 = arith.constant 0 : i32
    %c0_i32_0 = arith.constant 0 : i32
    %c0_i32_1 = arith.constant 0 : i32
    return %arg0, %c0_i32, %c0_i32_0 : i32, i32, i32
  }
  func.func @transform_1(%arg0: i32) -> (i32, i32) {
    %c0_i32 = arith.constant 0 : i32
    %c0_i32_0 = arith.constant 0 : i32
    %c0_i32_1 = arith.constant 0 : i32
    return %c0_i32, %c0_i32_0 : i32, i32
  }
  func.func @transform_2(%arg0: i32) -> (i32, i32) {
    %c0_i32 = arith.constant 0 : i32
    %c0_i32_0 = arith.constant 0 : i32
    %c0_i32_1 = arith.constant 0 : i32
    return %c0_i32, %c0_i32_0 : i32, i32
  }
  func.func @transform_3(%arg0: i32) -> (i32, i32) {
    %c0_i32 = arith.constant 0 : i32
    %c0_i32_0 = arith.constant 0 : i32
    %c0_i32_1 = arith.constant 0 : i32
    return %c0_i32, %c0_i32_0 : i32, i32
  }
  func.func @transform_4(%arg0: i32) -> (i32, i32) {
    %c0_i32 = arith.constant 0 : i32
    %c0_i32_0 = arith.constant 0 : i32
    %c0_i32_1 = arith.constant 0 : i32
    return %c0_i32, %c0_i32_0 : i32, i32
  }
  func.func @transform_5(%arg0: i32) -> (i32, i32) {
    %c0_i32 = arith.constant 0 : i32
    %c0_i32_0 = arith.constant 0 : i32
    %c0_i32_1 = arith.constant 0 : i32
    return %c0_i32, %c0_i32_0 : i32, i32
  }
  func.func @transform_6(%arg0: i32) -> (i32, i32) {
    %c0_i32 = arith.constant 0 : i32
    %c0_i32_0 = arith.constant 0 : i32
    %c0_i32_1 = arith.constant 0 : i32
    return %c0_i32, %c0_i32_0 : i32, i32
  }
  func.func @transform_7(%arg0: i32) -> (i32, i32) {
    %c0_i32 = arith.constant 0 : i32
    %c0_i32_0 = arith.constant 0 : i32
    %c0_i32_1 = arith.constant 0 : i32
    return %c0_i32, %c0_i32_0 : i32, i32
  }
  func.func @transform_8(%arg0: i32) -> (i32, i32) {
    %c0_i32 = arith.constant 0 : i32
    %c0_i32_0 = arith.constant 0 : i32
    %c0_i32_1 = arith.constant 0 : i32
    return %c0_i32, %c0_i32_0 : i32, i32
  }
  func.func @transform_9(%arg0: i32) -> (i32, i32) {
    %c0_i32 = arith.constant 0 : i32
    %c0_i32_0 = arith.constant 0 : i32
    %c0_i32_1 = arith.constant 0 : i32
    return %c0_i32, %c0_i32_0 : i32, i32
  }
  func.func @transform_10(%arg0: i32) -> (i32, i32, i32) {
    %c0_i32 = arith.constant 0 : i32
    %c0_i32_0 = arith.constant 0 : i32
    %c0_i32_1 = arith.constant 0 : i32
    return %arg0, %c0_i32, %c0_i32_0 : i32, i32, i32
  }
}

</mosaic_0001>

<bundles_post_ra>
// kernel: _lambda_.1
= control target key start
LH: loop header
LB: loop body
LE: loop exit
PB: predicated region body
PF: predicated region fallthrough
CT: control target
= control target key end

     0   :  { %15 = vsyncpa [#allocation5], 0  ;;  %s16227_s0 = inlined_call_operand.vmem [shape: bf16[1,144,128], index: 0, kind: input, shape index: {}]   ;;  %s16228_s1 = inlined_call_operand.hbm [shape: bf16[3456,128], index: 1, kind: input, shape index: {}]   ;;  %s16229_s2 = inlined_call_operand.vmem [shape: f32[3,128], index: 2, kind: input, shape index: {}]   ;;  %s16230_s3 = inlined_call_operand.vmem [shape: f32[3,128], index: 3, kind: input, shape index: {}]   ;;  %s16231_s4 = inlined_call_operand.vmem [shape: f32[144,2], index: 4, kind: input, shape index: {}]   ;;  %s16232_s5 = inlined_call_operand.vmem [shape: f32[9,144], index: 5, kind: input, shape index: {}]   ;;  %s16233_s6 = inlined_call_operand.hbm [shape: f32[1152,128], index: 6, kind: input, shape index: {}]   ;;  %s16234_s7 = inlined_call_operand.vmem [shape: f32[1,128], index: 7, kind: input, shape index: {}]   ;;  %s16235_s8 = inlined_call_operand.vmem [shape: f32[128,128], index: 8, kind: input, shape index: {}]   ;;  %s16236_s9 = inlined_call_operand.vmem [shape: f32[1,128], index: 9, kind: input, shape index: {}]   ;;  %s16237_s10 = inlined_call_operand.vmem [shape: f32[1,1,4], index: 10, kind: output, shape index: {}]  }
   0x1   :  { %16 = vsyncpa [#allocation7], 0  ;;  %s13786_s13 = smov [#allocation4]  }
   0x2   :  { %s24_s14 = sshll.u32 %s13786_s13, 4  ;;  %s25_s14 = int_to_ptr.vmem [resolvable:$true] %s24_s14 }
   0x3   :  { %s13750_s15 = scalar_lea.vmem %s25_s14, 27648  ;;  %p13755_p1 = scmp.lt.s32.totalorder %s25_s14, %s25_s14 }
   0x4   :  { %p13751_p0 = scmp.ne.s32.totalorder %s25_s14, %s13750_s15  ;;  %p13756_p2 = scmp.lt.s32.totalorder %s13750_s15, %s13750_s15 }
   0x6   :  { %p13757_p3 = por %p13756_p2, %p13755_p1 }
   0x8   :  { %p13758_p4 = pnand %p13757_p3, %p13751_p0 }
   0xa   :  { %13761 = shalt.err (!%p13758_p4)
}
   0xb   :  { %s13787_s16 = smov 64   ;;  %s13788_s17 = smov 4  }
   0xc   :  { %30 = dma.hbm_to_vmem [thread:$0]  %s16228_s1, 27648, %s25_s14, [#allocation5], %s13787_s16, %s13787_s16, %s13788_s17  }
   0xd   :  { %s13789_s20 = smov [#allocation6]  }
   0xe   :  { %s44_s21 = sshll.u32 %s13789_s20, 4  ;;  %s45_s21 = int_to_ptr.vmem [resolvable:$true] %s44_s21 }
   0xf   :  { %s13770_s22 = scalar_lea.vmem %s45_s21, 18432  ;;  %p13775_p6 = scmp.lt.s32.totalorder %s45_s21, %s45_s21 }
  0x10   :  { %p13771_p5 = scmp.ne.s32.totalorder %s45_s21, %s13770_s22  ;;  %p13776_p7 = scmp.lt.s32.totalorder %s13770_s22, %s13770_s22 }
  0x12   :  { %p13777_p8 = por %p13776_p7, %p13775_p6 }
  0x14   :  { %p13778_p9 = pnand %p13777_p8, %p13771_p5 }
  0x16   :  { %13781 = shalt.err (!%p13778_p9)
}
  0x17   :  { %s13790_s23 = smov 128   ;;  %s13791_s24 = smov 8  }
  0x18   :  { %50 = dma.hbm_to_vmem [thread:$0]  %s16233_s6, 18432, %s45_s21, [#allocation7], %s13790_s23, %s13790_s23, %s13791_s24  }
  0x19   :  { %13782 = dma.done.wait [#allocation5], 27648  }
  0x1a   :  { %13783 = vsyncadd [#allocation5], 4294939648 }
  0x1b   :  { %13784 = dma.done.wait [#allocation7], 18432  }
  0x1c   :  { %13785 = vsyncadd [#allocation7], 4294948864  ;;  %v13792_v0 = vmov 0   ;;  %v13793_v1 = vmov 0.0   ;;  %v13860_v2 = vld [vmem:[%s16231_s4 + $0x10] sm:$0xff]  ;;  %v13865_v3 = vld [vmem:[%s16231_s4] sm:$0xff] }
  0x1d   :  { %13068 = vset.pattern.permute.xlu1 %v13792_v0  ;;  %13067 = vset.pattern.permute.xlu0 %v13792_v0  ;;  %64 = vst [vmem:[#allocation2] sm:$0xff] %v13793_v1  ;;  %65 = vst [vmem:[#allocation2 + $0x8] sm:$0xff] %v13793_v1  ;;  %v13872_v4 = vld [vmem:[%s16231_s4 + $0x18] sm:$0xff]  ;;  %v13877_v5 = vld [vmem:[%s16231_s4 + $0x8] sm:$0xff]  ;;  %vm13795_vm0 = vmmov 0   ;;  %vm9021_vm1 = vcmask 130048  }
  0x1e   :  { %66 = vst [vmem:[#allocation2 + $0xa0] sm:$0xff] %v13793_v1  ;;  %67 = vst [vmem:[#allocation2 + $0xa8] sm:$0xff] %v13793_v1  ;;  %170 = vperm.xlu1 %13068, %v13860_v2   ;;  %160 = vperm.xlu0 %13067, %v13865_v3   ;;  %v13884_v6 = vld [vmem:[%s16231_s4 + $0x28] sm:$0xff]  ;;  %v13889_v7 = vld [vmem:[%s16231_s4 + $0x20] sm:$0xff]  ;;  %vm9999_vm2 = vcmask 24576  }
  0x1f   :  { %v13071_v8 = vld [vmem:[#allocation4 + $0x78] sm:$0xff]   ;;  %v13894_v10 = vld [vmem:[%s16231_s4 + $0x38] sm:$0xff]  ;;  %v13073_v11 = vld [vmem:[#allocation4 + $0x70] sm:$0xff]  }
  0x20   :  { %v13072_v9 = vld [vmem:[#allocation4 + $0x38] sm:$0xff]   ;;  %11490 = vmatprep.subr.bf16.mxu0 %v13071_v8  ;;  %v13074_v13 = vld [vmem:[#allocation4 + $0x30] sm:$0xff]   ;;  %v13075_v14 = vld [vmem:[#allocation4 + $0x68] sm:$0xff]  }
  0x21   :  { %v13901_v12 = vld [vmem:[%s16231_s4 + $0x30] sm:$0xff]  ;;  %11491 = vmatpush3.bf16.msra.mxu0 %v13072_v9  ;;  %v13906_v15 = vld [vmem:[%s16231_s4 + $0x48] sm:$0xff]  ;;  %v13911_v16 = vld [vmem:[%s16231_s4 + $0x40] sm:$0xff] }
  0x22   :  { %175 = vperm.xlu1 %13068, %v13872_v4   ;;  %165 = vperm.xlu0 %13067, %v13877_v5   ;;  %v11447_v17 = vld [vmem:[%s16227_s0] sm:$0xff]   ;;  %v11482_v18 = vld [vmem:[%s16227_s0 + $0x8] sm:$0xff]   ;;  %v11483_v19 = vld [vmem:[%s16227_s0 + $0x10] sm:$0xff]  }
  0x23   :  { %11492 = vmatprep.subr.bf16.mxu0 %v13073_v11  ;;  %v13076_v20 = vld [vmem:[#allocation4 + $0x28] sm:$0xff]   ;;  %v11448_v21 = vunpack.c.l.bf16 %v11447_v17  ;;  %v11449_v22 = vunpack.c.h.bf16 %v11447_v17  ;;  %v11452_v23 = vunpack.c.l.bf16 %v11482_v18  ;;  %v11453_v24 = vunpack.c.h.bf16 %v11482_v18  ;;  %v13077_v25 = vld [vmem:[#allocation4 + $0x60] sm:$0xff]   ;;  %v13934_v29 = vld [vmem:[%s16231_s4 + $0x50] sm:$0xff] }
  0x24   :  { %v11456_v26 = vunpack.c.l.bf16 %v11483_v19  ;;  %v11457_v27 = vunpack.c.h.bf16 %v11483_v19  ;;  %v13927_v28 = vld [vmem:[%s16231_s4 + $0x58] sm:$0xff]  ;;  %v13079_v32 = vld [vmem:[#allocation4 + $0x58] sm:$0xff]   ;;  %v13942_v35 = vld [vmem:[%s16231_s4 + $0x68] sm:$0xff]  ;;  %v13794_v18 = vmov 1  }
  0x25   :  { %11493 = vmatpush3.bf16.msra.mxu0 %v13074_v13  ;;  %122 = vst [vmem:[#allocation2 + $0x10] sm:$0xff] %v11448_v21  ;;  %123 = vst [vmem:[#allocation2 + $0x18] sm:$0xff] %v11449_v22  ;;  %v13078_v30 = vld [vmem:[#allocation4 + $0x20] sm:$0xff]   ;;  %v11485_v36 = vld [vmem:[%s16227_s0 + $0x20] sm:$0xff]  }
  0x26   :  { %185 = vperm.xlu1 %13068, %v13884_v6   ;;  %180 = vperm.xlu0 %13067, %v13889_v7   ;;  %124 = vst [vmem:[#allocation2 + $0x20] sm:$0xff] %v11452_v23  ;;  %125 = vst [vmem:[#allocation2 + $0x28] sm:$0xff] %v11453_v24  ;;  %v11484_v31 = vld [vmem:[%s16227_s0 + $0x18] sm:$0xff]   ;;  %v13952_v37 = vld [vmem:[%s16231_s4 + $0x60] sm:$0xff]  ;;  %v11464_v38 = vunpack.c.l.bf16 %v11485_v36  ;;  %v11465_v39 = vunpack.c.h.bf16 %v11485_v36 }
  0x27   :  { %11494 = vmatprep.subr.bf16.mxu0 %v13075_v14  ;;  %126 = vst [vmem:[#allocation2 + $0x30] sm:$0xff] %v11456_v26  ;;  %127 = vst [vmem:[#allocation2 + $0x38] sm:$0xff] %v11457_v27  ;;  %v11460_v33 = vunpack.c.l.bf16 %v11484_v31  ;;  %v11461_v34 = vunpack.c.h.bf16 %v11484_v31  ;;  %v13080_v40 = vld [vmem:[#allocation4 + $0x18] sm:$0xff]   ;;  %v13081_v41 = vld [vmem:[#allocation4 + $0x50] sm:$0xff]  }
  0x28   :  { %130 = vst [vmem:[#allocation2 + $0x50] sm:$0xff] %v11464_v38  ;;  %131 = vst [vmem:[#allocation2 + $0x58] sm:$0xff] %v11465_v39  ;;  %v13959_v42 = vld [vmem:[%s16231_s4 + $0x78] sm:$0xff]  ;;  %v13964_v43 = vld [vmem:[%s16231_s4 + $0x70] sm:$0xff] }
  0x29   :  { %11495 = vmatpush3.bf16.msra.mxu0 %v13076_v20  ;;  %128 = vst [vmem:[#allocation2 + $0x40] sm:$0xff] %v11460_v33  ;;  %129 = vst [vmem:[#allocation2 + $0x48] sm:$0xff] %v11461_v34  ;;  %v13082_v44 = vld [vmem:[#allocation4 + $0x10] sm:$0xff]   ;;  %v13083_v45 = vld [vmem:[#allocation4 + $0x48] sm:$0xff]  }
  0x2a   :  { %195 = vperm.xlu1 %13068, %v13894_v10   ;;  %190 = vperm.xlu0 %13067, %v13901_v12   ;;  %v11486_v46 = vld [vmem:[%s16227_s0 + $0x28] sm:$0xff]   ;;  %v13979_v51 = vld [vmem:[%s16231_s4 + $0x80] sm:$0xff]  ;;  %v13085_v54 = vld [vmem:[#allocation4 + $0x40] sm:$0xff]  }
  0x2b   :  { %11496 = vmatprep.subr.bf16.mxu0 %v13077_v25  ;;  %v11468_v47 = vunpack.c.l.bf16 %v11486_v46  ;;  %v11469_v48 = vunpack.c.h.bf16 %v11486_v46  ;;  %v356_v49 = vld [vmem:[#allocation2 + $0x4] sm:$0xff]  ;;  %v11487_v56 = vld [vmem:[%s16227_s0 + $0x30] sm:$0xff]   ;;  %v13086_v61 = vld [vmem:[#allocation4] sm:$0xff]  }
  0x2c   :  { %v13974_v50 = vld [vmem:[%s16231_s4 + $0x88] sm:$0xff]  ;;  %v13084_v52 = vld [vmem:[#allocation4 + $0x8] sm:$0xff]   ;;  %v13981_v53 = vpack.c.bf16 %v356_v49, %v356_v49  ;;  %v11472_v58 = vunpack.c.l.bf16 %v11487_v56  ;;  %v11473_v59 = vunpack.c.h.bf16 %v11487_v56  ;;  %v13089_v60 = vld [vmem:[#allocation4 + $0xf8] sm:$0xff]  }
  0x2d   :  { %11497 = vmatpush3.bf16.msra.mxu0 %v13078_v30  ;;  %132 = vst [vmem:[#allocation2 + $0x60] sm:$0xff] %v11468_v47  ;;  %133 = vst [vmem:[#allocation2 + $0x68] sm:$0xff] %v11469_v48  ;;  %v357_v55 = vld [vmem:[#allocation2 + $0xc] sm:$0xff]  ;;  %11560 = vmatprep.subr.bf16.mxu1 %v13089_v60  ;;  %v358_v63 = vld [vmem:[#allocation2 + $0x14] sm:$0xff] }
  0x2e   :  { %205 = vperm.xlu1 %13068, %v13906_v15   ;;  %200 = vperm.xlu0 %13067, %v13911_v16   ;;  %v10979_v57 = vpack.c.bf16 %v357_v55, %v357_v55  ;;  %446 = vst [vmem:[#allocation3 + $0x4] sm:$0xf] %v13981_v53  ;;  %v13090_v62 = vld [vmem:[#allocation4 + $0xb8] sm:$0xff]   ;;  %134 = vst [vmem:[#allocation2 + $0x70] sm:$0xff] %v11472_v58  ;;  %v359_v0 = vld [vmem:[#allocation2 + $0x1c] sm:$0xff]  ;;  %v10980_v8 = vpack.c.bf16 %v358_v63, %v358_v63 }
  0x2f   :  { %11498 = vmatprep.subr.bf16.mxu0 %v13079_v32  ;;  %135 = vst [vmem:[#allocation2 + $0x78] sm:$0xff] %v11473_v59  ;;  %v11488_v1 = vld [vmem:[%s16227_s0 + $0x38] sm:$0xff]   ;;  %11561 = vmatpush3.bf16.msra.mxu1 %v13090_v62  ;;  %v10981_v9 = vpack.c.bf16 %v359_v0, %v359_v0  ;;  %v13093_v14 = vld [vmem:[#allocation4 + $0xf0] sm:$0xff]   ;;  %v11489_v19 = vld [vmem:[%s16227_s0 + $0x40] sm:$0xff]  }
  0x30   :  { %447 = vst [vmem:[#allocation3 + $0x28] sm:$0xf] %v10979_v57  ;;  %v11476_v11 = vunpack.c.l.bf16 %v11488_v1  ;;  %v11477_v13 = vunpack.c.h.bf16 %v11488_v1  ;;  %v13094_v17 = vld [vmem:[#allocation4 + $0xb0] sm:$0xff]   ;;  %448 = vst [vmem:[#allocation3 + $0x4c] sm:$0xf] %v10980_v8  ;;  %11562 = vmatprep.subr.bf16.mxu1 %v13093_v14  ;;  %v11480_v21 = vunpack.c.l.bf16 %v11489_v19  ;;  %v11481_v22 = vunpack.c.h.bf16 %v11489_v19  ;;  %v13098_v26 = vld [vmem:[#allocation4 + $0xe8] sm:$0xff]  }
  0x31   :  { %11499 = vmatpush3.bf16.msra.mxu0 %v13080_v40  ;;  %449 = vst [vmem:[#allocation3 + $0x70] sm:$0xf] %v10981_v9  ;;  %v360_v20 = vld [vmem:[#allocation2 + $0x24] sm:$0xff]  ;;  %v361_v23 = vld [vmem:[#allocation2 + $0x2c] sm:$0xff]  ;;  %v13101_v27 = vld [vmem:[#allocation4 + $0xa0] sm:$0xff]  }
  0x32   :  { %215 = vperm.xlu1 %13068, %v13927_v28   ;;  %210 = vperm.xlu0 %13067, %v13934_v29   ;;  %136 = vst [vmem:[#allocation2 + $0x80] sm:$0xff] %v11476_v11  ;;  %137 = vst [vmem:[#allocation2 + $0x88] sm:$0xff] %v11477_v13  ;;  %v10982_v24 = vpack.c.bf16 %v360_v20, %v360_v20  ;;  %v10983_v25 = vpack.c.bf16 %v361_v23, %v361_v23  ;;  %v13103_v30 = vld [vmem:[#allocation4 + $0xd8] sm:$0xff]   ;;  %v13107_v34 = vld [vmem:[#allocation4 + $0xd0] sm:$0xff]  }
  0x33   :  { %11500 = vmatprep.subr.bf16.mxu0 %v13081_v41  ;;  %11563 = vmatpush3.bf16.msra.mxu1 %v13094_v17  ;;  %138 = vst [vmem:[#allocation2 + $0x90] sm:$0xff] %v11480_v21  ;;  %139 = vst [vmem:[#allocation2 + $0x98] sm:$0xff] %v11481_v22  ;;  %v13106_v33 = vld [vmem:[#allocation4 + $0x98] sm:$0xff]   ;;  %v13113_v39 = vld [vmem:[#allocation4 + $0x88] sm:$0xff]  }
  0x34   :  { %450 = vst [vmem:[#allocation3 + $0x94] sm:$0xf] %v10982_v24  ;;  %451 = vst [vmem:[#allocation3 + $0xb8] sm:$0xf] %v10983_v25  ;;  %11564 = vmatprep.subr.bf16.mxu1 %v13098_v26  ;;  %v367_v40 = vld [vmem:[#allocation2 + $0x5c] sm:$0xff]  ;;  %v791_v59 = vld [vmem:[#allocation2 + $0x28] sm:$0xff] }
  0x35   :  { %11501 = vmatpush3.bf16.msra.mxu0 %v13082_v44  ;;  %v10989_v41 = vpack.c.bf16 %v367_v40, %v367_v40  ;;  %v13123_v44 = vld [vmem:[#allocation4 + $0x178] sm:$0xff]   ;;  %v789_v55 = vld [vmem:[#allocation2 + $0x18] sm:$0xff]  ;;  %v790_v58 = vld [vmem:[#allocation2 + $0x20] sm:$0xff] }
  0x36   :  { %225 = vperm.xlu1 %13068, %v13942_v35   ;;  %220 = vperm.xlu0 %13067, %v13952_v37   ;;  %v11033_v57 = vpack.c.bf16 %v789_v55, %v789_v55  ;;  %v11034_v60 = vpack.c.bf16 %v790_v58, %v790_v58  ;;  %v13166_v62 = vld [vmem:[#allocation4 + $0x1f8] sm:$0xff]   ;;  %v793_v0 = vld [vmem:[#allocation2 + $0x38] sm:$0xff]  ;;  %v794_v9 = vld [vmem:[#allocation2 + $0x40] sm:$0xff] }
  0x37   :  { %11502 = vmatprep.subr.bf16.mxu0 %v13083_v45  ;;  %457 = vst [vmem:[#allocation3 + $0x190] sm:$0xf] %v10989_v41  ;;  %1246 = vst [vmem:[#allocation3 + $0x13c] sm:$0xf] %v10989_v41  ;;  %v792_v63 = vld [vmem:[#allocation2 + $0x30] sm:$0xff]  ;;  %v11037_v8 = vpack.c.bf16 %v793_v0, %v793_v0  ;;  %v795_v11 = vld [vmem:[#allocation2 + $0x48] sm:$0xff]  ;;  %v11038_v13 = vpack.c.bf16 %v794_v9, %v794_v9 }
  0x38   :  { %879 = vst [vmem:[#allocation3 + $0x34] sm:$0xf] %v11033_v57  ;;  %880 = vst [vmem:[#allocation3 + $0x58] sm:$0xf] %v11034_v60  ;;  %v11036_v1 = vpack.c.bf16 %v792_v63, %v792_v63  ;;  %v11039_v14 = vpack.c.bf16 %v795_v11, %v795_v11  ;;  %v796_v17 = vld [vmem:[#allocation2 + $0x50] sm:$0xff]  ;;  %v1148_v21 = vld [vmem:[#allocation2 + $0x1c] sm:$0xff] }
  0x39   :  { %11503 = vmatpush3.bf16.msra.mxu0 %v13084_v52  ;;  %v372_v49 = vld [vmem:[#allocation2 + $0x84] sm:$0xff]  ;;  %883 = vst [vmem:[#allocation3 + $0xc4] sm:$0xf] %v11037_v8  ;;  %884 = vst [vmem:[#allocation3 + $0xe8] sm:$0xf] %v11038_v13  ;;  %v11040_v19 = vpack.c.bf16 %v796_v17, %v796_v17  ;;  %v11086_v23 = vpack.c.bf16 %v1148_v21, %v1148_v21  ;;  %v14017_v57 = vld [vmem:[#allocation2 + $0x33] sm:$0xff] }
  0x3a   :  { %235 = vperm.xlu1 %13068, %v13959_v42   ;;  %230 = vperm.xlu0 %13067, %v13964_v43   ;;  %v10994_v52 = vpack.c.bf16 %v372_v49, %v372_v49  ;;  %882 = vst [vmem:[#allocation3 + $0xa0] sm:$0xf] %v11036_v1  ;;  %885 = vst [vmem:[#allocation3 + $0x10c] sm:$0xf] %v11039_v14  ;;  %v1149_v22 = vld [vmem:[#allocation2 + $0x24] sm:$0xff]  ;;  %v804_v40 = vld [vmem:[#allocation2 + $0x90] sm:$0xff] }
  0x3b   :  { %11504 = vmatprep.subr.bf16.mxu0 %v13085_v54  ;;  %v788_v54 = vld [vmem:[#allocation2 + $0x10] sm:$0xff]  ;;  %886 = vst [vmem:[#allocation3 + $0x130] sm:$0xf] %v11040_v19  ;;  %v11087_v24 = vpack.c.bf16 %v1149_v22, %v1149_v22  ;;  %1238 = vst [vmem:[#allocation3 + $0x1c] sm:$0xf] %v11086_v23  ;;  %v798_v25 = vld [vmem:[#allocation2 + $0x60] sm:$0xff]  ;;  %v11048_v41 = vpack.c.bf16 %v804_v40, %v804_v40 }
  0x3c   :  { %462 = vst [vmem:[#allocation3 + $0x244] sm:$0xf] %v10994_v52  ;;  %1251 = vst [vmem:[#allocation3 + $0x1f0] sm:$0xf] %v10994_v52  ;;  %v11032_v56 = vpack.c.bf16 %v788_v54, %v788_v54  ;;  %v799_v26 = vld [vmem:[#allocation2 + $0x68] sm:$0xff]  ;;  %v663_v63 = vld [vmem:[#allocation2 + $0x17] sm:$0xff] }
  0x3d   :  { %11505 = vmatpush3.bf16.msra.mxu0 %v13086_v61  ;;  %v11035_v61 = vpack.c.bf16 %v791_v59, %v791_v59  ;;  %1239 = vst [vmem:[#allocation3 + $0x40] sm:$0xf] %v11087_v24  ;;  %894 = vst [vmem:[#allocation3 + $0x250] sm:$0xf] %v11048_v41  ;;  %v3213_v52 = vld [vmem:[#allocation2 + $0x3] sm:$0xff]  ;;  %v141_v58 = vld [vmem:[#allocation2 + $0xb] sm:$0xff] }
  0x3e   :  { %245 = vperm.xlu1 %13068, %v13974_v50   ;;  %240 = vperm.xlu0 %13067, %v13979_v51   ;;  %878 = vst [vmem:[#allocation3 + $0x10] sm:$0xf] %v11032_v56  ;;  %v665_v56 = vld [vmem:[#allocation2 + $0x27] sm:$0xff] }
  0x3f   :  { %11630 = vmatprep.subr.bf16.mxu0 %v13123_v44  ;;  %881 = vst [vmem:[#allocation3 + $0x7c] sm:$0xf] %v11035_v61  ;;  %v1023_v0 = vld [vmem:[#allocation2 + $0x23] sm:$0xff] }
  0x40   :  { %v14029_v21 = vld [vmem:[#allocation2 + $0x43] sm:$0xff] }
  0x42   :  { %13070 = vset.pattern.permute.xlu1 %v13794_v18  ;;  %13069 = vset.pattern.permute.xlu0 %v13794_v18  ;;  %v797_v18 = vld [vmem:[#allocation2 + $0x58] sm:$0xff] }
  0x43   :  { %487 = vperm.xlu1 %13070, %v13877_v5   ;;  %483 = vperm.xlu0 %13069, %v13865_v3   ;;  %v13099_v3 = vld [vmem:[#allocation4 + $0xa8] sm:$0xff]   ;;  %v13100_v5 = vld [vmem:[#allocation4 + $0xe0] sm:$0xff]   ;;  %v11041_v20 = vpack.c.bf16 %v797_v18, %v797_v18 }
  0x44   :  { %11565 = vmatpush3.bf16.msra.mxu1 %v13099_v3  ;;  %v11042_v3 = vpack.c.bf16 %v798_v25, %v798_v25 }
  0x45   :  { %11566 = vmatprep.subr.bf16.mxu1 %v13100_v5  ;;  %887 = vst [vmem:[#allocation3 + $0x154] sm:$0xf] %v11041_v20  ;;  %v1150_v5 = vld [vmem:[#allocation2 + $0x2c] sm:$0xff]  ;;  %v667_v20 = vld [vmem:[#allocation2 + $0x37] sm:$0xff] }
  0x46   :  { %888 = vst [vmem:[#allocation3 + $0x178] sm:$0xf] %v11042_v3  ;;  %v666_v3 = vld [vmem:[#allocation2 + $0x2f] sm:$0xff] }
  0x47   :  { %491 = vperm.xlu1 %13070, %v13860_v2   ;;  %495 = vperm.xlu0 %13069, %v13872_v4   ;;  %v362_v2 = vld [vmem:[#allocation2 + $0x34] sm:$0xff]  ;;  %v363_v4 = vld [vmem:[#allocation2 + $0x3c] sm:$0xff] }
  0x48   :  { %11567 = vmatpush3.bf16.msra.mxu1 %v13101_v27  ;;  %v10984_v31 = vpack.c.bf16 %v362_v2, %v362_v2  ;;  %v10985_v32 = vpack.c.bf16 %v363_v4, %v363_v4  ;;  %v1151_v27 = vld [vmem:[#allocation2 + $0x34] sm:$0xff]  ;;  %v11088_v2 = vpack.c.bf16 %v1150_v5, %v1150_v5 }
  0x49   :  { %11568 = vmatprep.subr.bf16.mxu1 %v13103_v30  ;;  %v11043_v30 = vpack.c.bf16 %v799_v26, %v799_v26  ;;  %v11089_v4 = vpack.c.bf16 %v1151_v27, %v1151_v27 }
  0x4a   :  { %452 = vst [vmem:[#allocation3 + $0xdc] sm:$0xf] %v10984_v31  ;;  %453 = vst [vmem:[#allocation3 + $0x100] sm:$0xf] %v10985_v32  ;;  %v800_v31 = vld [vmem:[#allocation2 + $0x70] sm:$0xff]  ;;  %v801_v32 = vld [vmem:[#allocation2 + $0x78] sm:$0xff] }
  0x4b   :  { %499 = vperm.xlu1 %13070, %v13889_v7   ;;  %503 = vperm.xlu0 %13069, %v13884_v6   ;;  %v13108_v6 = vld [vmem:[#allocation4 + $0x90] sm:$0xff]   ;;  %v13110_v7 = vld [vmem:[#allocation4 + $0xc8] sm:$0xff]   ;;  %889 = vst [vmem:[#allocation3 + $0x19c] sm:$0xf] %v11043_v30  ;;  %1240 = vst [vmem:[#allocation3 + $0x64] sm:$0xf] %v11088_v2 }
  0x4c   :  { %11569 = vmatpush3.bf16.msra.mxu1 %v13106_v33  ;;  %v11044_v33 = vpack.c.bf16 %v800_v31, %v800_v31  ;;  %1241 = vst [vmem:[#allocation3 + $0x88] sm:$0xf] %v11089_v4 }
  0x4d   :  { %11570 = vmatprep.subr.bf16.mxu1 %v13107_v34  ;;  %v1152_v34 = vld [vmem:[#allocation2 + $0x3c] sm:$0xff] }
  0x4e   :  { %890 = vst [vmem:[#allocation3 + $0x1c0] sm:$0xf] %v11044_v33 }
  0x4f   :  { %507 = vperm.xlu1 %13070, %v13901_v12   ;;  %511 = vperm.xlu0 %13069, %v13894_v10   ;;  %v364_v10 = vld [vmem:[#allocation2 + $0x44] sm:$0xff]  ;;  %v365_v12 = vld [vmem:[#allocation2 + $0x4c] sm:$0xff] }
  0x50   :  { %11571 = vmatpush3.bf16.msra.mxu1 %v13108_v6  ;;  %v10986_v36 = vpack.c.bf16 %v364_v10, %v364_v10  ;;  %v10987_v38 = vpack.c.bf16 %v365_v12, %v365_v12  ;;  %v1153_v6 = vld [vmem:[#allocation2 + $0x44] sm:$0xff]  ;;  %v11090_v10 = vpack.c.bf16 %v1152_v34, %v1152_v34 }
  0x51   :  { %11572 = vmatprep.subr.bf16.mxu1 %v13110_v7  ;;  %v11045_v7 = vpack.c.bf16 %v801_v32, %v801_v32  ;;  %v11091_v12 = vpack.c.bf16 %v1153_v6, %v1153_v6  ;;  %v1026_v32 = vld [vmem:[#allocation2 + $0x3b] sm:$0xff] }
  0x52   :  { %454 = vst [vmem:[#allocation3 + $0x124] sm:$0xf] %v10986_v36  ;;  %455 = vst [vmem:[#allocation3 + $0x148] sm:$0xf] %v10987_v38  ;;  %v802_v36 = vld [vmem:[#allocation2 + $0x80] sm:$0xff]  ;;  %v803_v38 = vld [vmem:[#allocation2 + $0x88] sm:$0xff] }
  0x53   :  { %515 = vperm.xlu1 %13070, %v13911_v16   ;;  %519 = vperm.xlu0 %13069, %v13906_v15   ;;  %v13114_v16 = vld [vmem:[#allocation4 + $0xc0] sm:$0xff]   ;;  %891 = vst [vmem:[#allocation3 + $0x1e4] sm:$0xf] %v11045_v7  ;;  %1242 = vst [vmem:[#allocation3 + $0xac] sm:$0xf] %v11090_v10  ;;  %v669_v10 = vld [vmem:[#allocation2 + $0x47] sm:$0xff] }
  0x54   :  { %11573 = vmatpush3.bf16.msra.mxu1 %v13113_v39  ;;  %v13115_v15 = vld [vmem:[#allocation4 + $0x80] sm:$0xff]   ;;  %v11046_v39 = vpack.c.bf16 %v802_v36, %v802_v36  ;;  %1243 = vst [vmem:[#allocation3 + $0xd0] sm:$0xf] %v11091_v12 }
  0x55   :  { %11574 = vmatprep.subr.bf16.mxu1 %v13114_v16  ;;  %v11047_v16 = vpack.c.bf16 %v803_v38, %v803_v38  ;;  %v14045_v12 = vld [vmem:[#allocation2 + $0x53] sm:$0xff] }
  0x56   :  { %892 = vst [vmem:[#allocation3 + $0x208] sm:$0xf] %v11046_v39 }
  0x57   :  { %523 = vperm.xlu1 %13070, %v13934_v29   ;;  %527 = vperm.xlu0 %13069, %v13927_v28   ;;  %v366_v29 = vld [vmem:[#allocation2 + $0x54] sm:$0xff]  ;;  %893 = vst [vmem:[#allocation3 + $0x22c] sm:$0xf] %v11047_v16 }
  0x58   :  { %v10988_v28 = vpack.c.bf16 %v366_v29, %v366_v29  ;;  %11575 = vmatpush3.bf16.msra.mxu1 %v13115_v15  ;;  %v1154_v15 = vld [vmem:[#allocation2 + $0x4c] sm:$0xff] }
  0x59   :  { %11700 = vmatprep.subr.bf16.mxu1 %v13166_v62  ;;  %v11092_v29 = vpack.c.bf16 %v1154_v15, %v1154_v15  ;;  %v668_v15 = vld [vmem:[#allocation2 + $0x3f] sm:$0xff] }
  0x5a   :  { %456 = vst [vmem:[#allocation3 + $0x16c] sm:$0xf] %v10988_v28  ;;  %1245 = vst [vmem:[#allocation3 + $0x118] sm:$0xf] %v10988_v28  ;;  %v805_v28 = vld [vmem:[#allocation2 + $0x98] sm:$0xff] }
  0x5b   :  { %531 = vperm.xlu1 %13070, %v13952_v37   ;;  %535 = vperm.xlu0 %13069, %v13942_v35   ;;  %v368_v35 = vld [vmem:[#allocation2 + $0x64] sm:$0xff]  ;;  %v369_v37 = vld [vmem:[#allocation2 + $0x6c] sm:$0xff]  ;;  %1244 = vst [vmem:[#allocation3 + $0xf4] sm:$0xf] %v11092_v29  ;;  %v11049_v44 = vpack.c.bf16 %v805_v28, %v805_v28 }
  0x5c   :  { %v10990_v45 = vpack.c.bf16 %v368_v35, %v368_v35  ;;  %v10991_v46 = vpack.c.bf16 %v369_v37, %v369_v37  ;;  %v1163_v35 = vld [vmem:[#allocation2 + $0x94] sm:$0xff]  ;;  %v1028_v29 = vld [vmem:[#allocation2 + $0x4b] sm:$0xff] }
  0x5d   :  { %895 = vst [vmem:[#allocation3 + $0x274] sm:$0xf] %v11049_v44  ;;  %v11101_v37 = vpack.c.bf16 %v1163_v35, %v1163_v35 }
  0x5e   :  { %458 = vst [vmem:[#allocation3 + $0x1b4] sm:$0xf] %v10990_v45  ;;  %459 = vst [vmem:[#allocation3 + $0x1d8] sm:$0xf] %v10991_v46 }
  0x5f   :  { %539 = vperm.xlu1 %13070, %v13964_v43   ;;  %543 = vperm.xlu0 %13069, %v13959_v42   ;;  %1247 = vst [vmem:[#allocation3 + $0x160] sm:$0xf] %v10990_v45  ;;  %1248 = vst [vmem:[#allocation3 + $0x184] sm:$0xf] %v10991_v46  ;;  %v370_v42 = vld [vmem:[#allocation2 + $0x74] sm:$0xff]  ;;  %v371_v43 = vld [vmem:[#allocation2 + $0x7c] sm:$0xff] }
  0x60   :  { %v10992_v47 = vpack.c.bf16 %v370_v42, %v370_v42  ;;  %v10993_v48 = vpack.c.bf16 %v371_v43, %v371_v43  ;;  %v1164_v45 = vld [vmem:[#allocation2 + $0x9c] sm:$0xff]  ;;  %v1165_v46 = vld [vmem:[#allocation2 + $0xa4] sm:$0xff]  ;;  %v142_v42 = vld [vmem:[#allocation2 + $0x13] sm:$0xff]  ;;  %1253 = vst [vmem:[#allocation3 + $0x238] sm:$0xf] %v11101_v37 }
  0x61   :  { %v664_v43 = vld [vmem:[#allocation2 + $0x1f] sm:$0xff]  ;;  %v11102_v49 = vpack.c.bf16 %v1164_v45, %v1164_v45 }
  0x62   :  { %460 = vst [vmem:[#allocation3 + $0x1fc] sm:$0xf] %v10992_v47  ;;  %1249 = vst [vmem:[#allocation3 + $0x1a8] sm:$0xf] %v10992_v47  ;;  %v1024_v47 = vld [vmem:[#allocation2 + $0x2b] sm:$0xff] }
  0x63   :  { %547 = vperm.xlu1 %13070, %v13979_v51   ;;  %551 = vperm.xlu0 %13069, %v13974_v50   ;;  %461 = vst [vmem:[#allocation3 + $0x220] sm:$0xf] %v10993_v48  ;;  %1250 = vst [vmem:[#allocation3 + $0x1cc] sm:$0xf] %v10993_v48  ;;  %v373_v51 = vld [vmem:[#allocation2 + $0x8c] sm:$0xff] }
  0x64   :  { %v10995_v50 = vpack.c.bf16 %v373_v51, %v373_v51  ;;  %v662_v48 = vld [vmem:[#allocation2 + $0xf] sm:$0xff]  ;;  %v11103_v51 = vpack.c.bf16 %v1165_v46, %v1165_v46  ;;  %1254 = vst [vmem:[#allocation3 + $0x25c] sm:$0xf] %v11102_v49 }
  0x66   :  { %463 = vst [vmem:[#allocation3 + $0x268] sm:$0xf] %v10995_v50  ;;  %1252 = vst [vmem:[#allocation3 + $0x214] sm:$0xf] %v10995_v50  ;;  %v1022_v50 = vld [vmem:[#allocation2 + $0x1b] sm:$0xff] }
  0x67   :  { %1255 = vst [vmem:[#allocation3 + $0x280] sm:$0xf] %v11103_v51 }
  0x99   :  { %v14013_v54 = vpop.permute.xlu1 %170  ;;  %v14015_v55 = vpop.permute.xlu0 %160 }
  0x9a   :  { %16338 = vst [vmem:[#allocation10_spill] sm:$0xff] %v14013_v54  ;;  %16339 = vst [vmem:[#allocation11_spill] sm:$0xff] %v14015_v55  ;;  %v250_v59 = vmul.f32 %v14013_v54, %v142_v42  ;;  %v682_v60 = vmul.f32 %v664_v43, %v14013_v54  ;;  %v1042_v61 = vmul.f32 %v1024_v47, %v14013_v54 }
  0x9b   :  { %v680_v62 = vmul.f32 %v662_v48, %v14015_v55  ;;  %v1040_v1 = vmul.f32 %v1022_v50, %v14015_v55  ;;  %v248_v8 = vmul.f32 %v3213_v52, %v14015_v55 }
  0x9c   :  { %v10962_v9 = vpack.c.bf16 %v250_v59, %v250_v59  ;;  %v11016_v11 = vpack.c.bf16 %v682_v60, %v682_v60  ;;  %v11070_v13 = vpack.c.bf16 %v1042_v61, %v1042_v61 }
  0x9d   :  { %v11014_v14 = vpack.c.bf16 %v680_v62, %v680_v62  ;;  %v11068_v17 = vpack.c.bf16 %v1040_v1, %v1040_v1  ;;  %v14025_v18 = vpop.permute.xlu1 %175  ;;  %v14027_v19 = vpop.permute.xlu0 %165  ;;  %v14031_v22 = vpack.c.bf16 %v248_v8, %v248_v8 }
  0x9e   :  { %16340 = vst [vmem:[#allocation12_spill] sm:$0xff] %v14025_v18  ;;  %16341 = vst [vmem:[#allocation13_spill] sm:$0xff] %v14027_v19  ;;  %v251_v23 = vmul.f32 %v1022_v50, %v14025_v18  ;;  %v683_v24 = vmul.f32 %v665_v56, %v14025_v18  ;;  %v1043_v25 = vmul.f32 %v14017_v57, %v14025_v18  ;;  %v14064_v50 = vld [vmem:[#allocation2 + $0x63] sm:$0xff]  ;;  %v670_v56 = vld [vmem:[#allocation2 + $0x4f] sm:$0xff] }
  0x9f   :  { %340 = vst [vmem:[#allocation3 + $0x48] sm:$0xf] %v10962_v9  ;;  %772 = vst [vmem:[#allocation3 + $0x54] sm:$0xf] %v11016_v11  ;;  %v249_v26 = vmul.f32 %v14027_v19, %v141_v58  ;;  %v681_v5 = vmul.f32 %v663_v63, %v14027_v19  ;;  %v1041_v27 = vmul.f32 %v1023_v0, %v14027_v19 }
  0xa0   :  { %1132 = vst [vmem:[#allocation3 + $0x60] sm:$0xf] %v11070_v13  ;;  %770 = vst [vmem:[#allocation3 + $0xc] sm:$0xf] %v11014_v14  ;;  %v10963_v30 = vpack.c.bf16 %v251_v23, %v251_v23  ;;  %v11017_v2 = vpack.c.bf16 %v683_v24, %v683_v24  ;;  %v11071_v4 = vpack.c.bf16 %v1043_v25, %v1043_v25  ;;  %v13087_v13 = vld [vmem:[#allocation3 + $0x4] ss:$36 sps:$4 sm:$0xff]  }
  0xa1   :  { %1130 = vst [vmem:[#allocation3 + $0x18] sm:$0xf] %v11068_v17  ;;  %338 = vst [vmem:[#allocation3] sm:$0xf] %v14031_v22  ;;  %v10961_v31 = vpack.c.bf16 %v249_v26, %v249_v26  ;;  %v11015_v33 = vpack.c.bf16 %v681_v5, %v681_v5  ;;  %v11069_v34 = vpack.c.bf16 %v1041_v27, %v1041_v27  ;;  %v14041_v6 = vpop.permute.xlu1 %185  ;;  %v14043_v7 = vpop.permute.xlu0 %180  ;;  %v673_v14 = vld [vmem:[#allocation2 + $0x67] sm:$0xff]  ;;  %v672_v26 = vld [vmem:[#allocation2 + $0x5f] sm:$0xff]  ;;  %2494 = vmatprep.mubr.bf16.mxu0 %v13087_v13 }
  0xa2   :  { %341 = vst [vmem:[#allocation3 + $0x6c] sm:$0xf] %v10963_v30  ;;  %773 = vst [vmem:[#allocation3 + $0x78] sm:$0xf] %v11017_v2  ;;  %v253_v36 = vmul.f32 %v1024_v47, %v14041_v6  ;;  %v685_v38 = vmul.f32 %v667_v20, %v14041_v6  ;;  %v1045_v39 = vmul.f32 %v14029_v21, %v14041_v6  ;;  %v671_v47 = vld [vmem:[#allocation2 + $0x57] sm:$0xff]  ;;  %v1036_v13 = vld [vmem:[#allocation2 + $0x8b] sm:$0xff] }
  0xa3   :  { %1133 = vst [vmem:[#allocation3 + $0x84] sm:$0xf] %v11071_v4  ;;  %339 = vst [vmem:[#allocation3 + $0x24] sm:$0xf] %v10961_v31  ;;  %v252_v16 = vmul.f32 %v1023_v0, %v14043_v7  ;;  %v684_v40 = vmul.f32 %v666_v3, %v14043_v7  ;;  %v1044_v28 = vmul.f32 %v1026_v32, %v14043_v7  ;;  %v1030_v0 = vld [vmem:[#allocation2 + $0x5b] sm:$0xff]  ;;  %v14082_v30 = vld [vmem:[#allocation2 + $0x73] sm:$0xff] }
  0xa4   :  { %771 = vst [vmem:[#allocation3 + $0x30] sm:$0xf] %v11015_v33  ;;  %1131 = vst [vmem:[#allocation3 + $0x3c] sm:$0xf] %v11069_v34  ;;  %v10965_v41 = vpack.c.bf16 %v253_v36, %v253_v36  ;;  %v11019_v44 = vpack.c.bf16 %v685_v38, %v685_v38  ;;  %v11073_v35 = vpack.c.bf16 %v1045_v39, %v1045_v39  ;;  %v13091_v3 = vld [vmem:[#allocation3 + $0x4c] ss:$36 sps:$4 sm:$0xff]  }
  0xa5   :  { %v10964_v37 = vpack.c.bf16 %v252_v16, %v252_v16  ;;  %v11018_v45 = vpack.c.bf16 %v684_v40, %v684_v40  ;;  %v11072_v46 = vpack.c.bf16 %v1044_v28, %v1044_v28  ;;  %v14054_v42 = vpop.permute.xlu1 %195  ;;  %v14056_v43 = vpop.permute.xlu0 %190  ;;  %v13124_v4 = vld [vmem:[#allocation4 + $0x138] sm:$0xff]  }
  0xa6   :  { %16342 = vst [vmem:[#allocation14_spill] sm:$0xff] %v14054_v42  ;;  %16343 = vst [vmem:[#allocation15_spill] sm:$0xff] %v14056_v43  ;;  %v255_v48 = vmul.f32 %v1026_v32, %v14054_v42  ;;  %v687_v49 = vmul.f32 %v669_v10, %v14054_v42  ;;  %v1047_v51 = vmul.f32 %v14045_v12, %v14054_v42  ;;  %v1032_v34 = vld [vmem:[#allocation2 + $0x6b] sm:$0xff]  ;;  %v675_v16 = vld [vmem:[#allocation2 + $0x77] sm:$0xff] }
  0xa7   :  { %343 = vst [vmem:[#allocation3 + $0xb4] sm:$0xf] %v10965_v41  ;;  %775 = vst [vmem:[#allocation3 + $0xc0] sm:$0xf] %v11019_v44  ;;  %v254_v52 = vmul.f32 %v14017_v57, %v14056_v43  ;;  %v686_v58 = vmul.f32 %v668_v15, %v14056_v43  ;;  %v1046_v59 = vmul.f32 %v1028_v29, %v14056_v43  ;;  %v13130_v10 = vld [vmem:[#allocation4 + $0x170] sm:$0xff]  }
  0xa8   :  { %1135 = vst [vmem:[#allocation3 + $0xcc] sm:$0xf] %v11073_v35  ;;  %342 = vst [vmem:[#allocation3 + $0x90] sm:$0xf] %v10964_v37  ;;  %v10967_v60 = vpack.c.bf16 %v255_v48, %v255_v48  ;;  %v11021_v61 = vpack.c.bf16 %v687_v49, %v687_v49  ;;  %v11075_v62 = vpack.c.bf16 %v1047_v51, %v1047_v51  ;;  %v1382_v25 = vld [vmem:[#allocation3] sm:$0xff]  ;;  %v14096_v37 = vld [vmem:[#allocation2 + $0x83] sm:$0xff] }
  0xa9   :  { %774 = vst [vmem:[#allocation3 + $0x9c] sm:$0xf] %v11018_v45  ;;  %1134 = vst [vmem:[#allocation3 + $0xa8] sm:$0xf] %v11072_v46  ;;  %v10966_v63 = vpack.c.bf16 %v254_v52, %v254_v52  ;;  %v11020_v1 = vpack.c.bf16 %v686_v58, %v686_v58  ;;  %v11074_v8 = vpack.c.bf16 %v1046_v59, %v1046_v59  ;;  %v14068_v9 = vpop.permute.xlu1 %205  ;;  %v14070_v11 = vpop.permute.xlu0 %200  ;;  %v674_v41 = vld [vmem:[#allocation2 + $0x6f] sm:$0xff]  ;;  %v1034_v45 = vld [vmem:[#allocation2 + $0x7b] sm:$0xff] }
  0xaa   :  { %16344 = vst [vmem:[#allocation16_spill] sm:$0xff] %v14068_v9  ;;  %16345 = vst [vmem:[#allocation17_spill] sm:$0xff] %v14070_v11  ;;  %v1387_v57 = vld [vmem:[#allocation3 + $0x24] sm:$0xff]  ;;  %v257_v17 = vmul.f32 %v1028_v29, %v14068_v9  ;;  %v689_v20 = vmul.f32 %v671_v47, %v14068_v9  ;;  %v1049_v23 = vmul.f32 %v14064_v50, %v14068_v9  ;;  %v13131_v46 = vld [vmem:[#allocation4 + $0x130] sm:$0xff]  }
  0xab   :  { %345 = vst [vmem:[#allocation3 + $0xfc] sm:$0xf] %v10967_v60  ;;  %777 = vst [vmem:[#allocation3 + $0x108] sm:$0xf] %v11021_v61  ;;  %v256_v24 = vmul.f32 %v14029_v21, %v14070_v11  ;;  %v688_v5 = vmul.f32 %v670_v56, %v14070_v11  ;;  %v1048_v27 = vmul.f32 %v1030_v0, %v14070_v11  ;;  %v13133_v52 = vld [vmem:[#allocation4 + $0x168] sm:$0xff]   ;;  %v1037_v61 = vld [vmem:[#allocation2 + $0x93] sm:$0xff] }
  0xac   :  { %1137 = vst [vmem:[#allocation3 + $0x114] sm:$0xf] %v11075_v62  ;;  %344 = vst [vmem:[#allocation3 + $0xd8] sm:$0xf] %v10966_v63  ;;  %v10169_v2 = vcombine.low %v1382_v25, %v1387_v57  ;;  %v10969_v31 = vpack.c.bf16 %v257_v17, %v257_v17  ;;  %v11023_v21 = vpack.c.bf16 %v689_v20, %v689_v20  ;;  %v677_v60 = vld [vmem:[#allocation2 + $0x87] sm:$0xff]  ;;  %v676_v57 = vld [vmem:[#allocation2 + $0x7f] sm:$0xff] }
  0xad   :  { %3321 = vst [vmem:[#allocation3] sm:$0xf] %v14031_v22  ;;  %3429 = vst [vmem:[#allocation3 + $0x4] sm:$0xf] %v13981_v53  ;;  %v11077_v32 = vpack.c.bf16 %v1049_v23, %v1049_v23  ;;  %v10968_v33 = vpack.c.bf16 %v256_v24, %v256_v24  ;;  %v11022_v53 = vpack.c.bf16 %v688_v5, %v688_v5  ;;  %v14084_v38 = vpop.permute.xlu1 %215  ;;  %v14086_v39 = vpop.permute.xlu0 %210  ;;  %v13137_v62 = vld [vmem:[#allocation4 + $0x128] sm:$0xff]  }
  0xae   :  { %776 = vst [vmem:[#allocation3 + $0xe4] sm:$0xf] %v11020_v1  ;;  %1136 = vst [vmem:[#allocation3 + $0xf0] sm:$0xf] %v11074_v8  ;;  %v11076_v36 = vpack.c.bf16 %v1048_v27, %v1048_v27  ;;  %2495 = vmatmul.mubr.bf16.vlgmr.msra.gmra.mxu0 %v10169_v2  ;;  %v259_v15 = vmul.f32 %v1030_v0, %v14084_v38  ;;  %v691_v29 = vmul.f32 %v673_v14, %v14084_v38  ;;  %v13140_v14 = vld [vmem:[#allocation4 + $0x160] sm:$0xff]  }
  0xaf   :  { %16346 = vst [vmem:[#allocation18_spill] sm:$0xff] %v14084_v38  ;;  %16347 = vst [vmem:[#allocation19_spill] sm:$0xff] %v14086_v39  ;;  %v1051_v40 = vmul.f32 %v14082_v30, %v14084_v38  ;;  %v258_v28 = vmul.f32 %v14045_v12, %v14086_v39  ;;  %2502 = vmatprep.mubr.bf16.mxu0 %v13091_v3  ;;  %v690_v44 = vmul.f32 %v672_v26, %v14086_v39  ;;  %v13095_v23 = vld [vmem:[#allocation3 + $0x48] ss:$36 sps:$4 sm:$0xff]   ;;  %v13096_v24 = vld [vmem:[#allocation3 + $0x94] ss:$36 sps:$4 sm:$0xff]  }
  0xb0   :  { %347 = vst [vmem:[#allocation3 + $0x144] sm:$0xf] %v10969_v31  ;;  %779 = vst [vmem:[#allocation3 + $0x150] sm:$0xf] %v11023_v21  ;;  %v1050_v35 = vmul.f32 %v1032_v34, %v14086_v39  ;;  %11631 = vmatpush3.bf16.msra.mxu0 %v13124_v4  ;;  %v10971_v47 = vpack.c.bf16 %v259_v15, %v259_v15  ;;  %v11025_v48 = vpack.c.bf16 %v691_v29, %v691_v29  ;;  %v13141_v15 = vld [vmem:[#allocation4 + $0x120] sm:$0xff]  }
  0xb1   :  { %1139 = vst [vmem:[#allocation3 + $0x15c] sm:$0xf] %v11077_v32  ;;  %346 = vst [vmem:[#allocation3 + $0x120] sm:$0xf] %v10968_v33  ;;  %v11079_v49 = vpack.c.bf16 %v1051_v40, %v1051_v40  ;;  %v10970_v51 = vpack.c.bf16 %v258_v28, %v258_v28  ;;  %11632 = vmatprep.subr.bf16.mxu0 %v13130_v10  ;;  %v11024_v12 = vpack.c.bf16 %v690_v44, %v690_v44  ;;  %v14098_v58 = vpop.permute.xlu1 %225  ;;  %v14100_v59 = vpop.permute.xlu0 %220  ;;  %v1038_v44 = vld [vmem:[#allocation2 + $0x9b] sm:$0xff] }
  0xb2   :  { %778 = vst [vmem:[#allocation3 + $0x12c] sm:$0xf] %v11022_v53  ;;  %1138 = vst [vmem:[#allocation3 + $0x138] sm:$0xf] %v11076_v36  ;;  %v11078_v56 = vpack.c.bf16 %v1050_v35, %v1050_v35  ;;  %v261_v63 = vmul.f32 %v1032_v34, %v14098_v58  ;;  %v693_v0 = vmul.f32 %v675_v16, %v14098_v58  ;;  %v1039_v34 = vld [vmem:[#allocation2 + $0xa3] sm:$0xff]  ;;  %v679_v36 = vld [vmem:[#allocation2 + $0x97] sm:$0xff] }
  0xb3   :  { %16348 = vst [vmem:[#allocation20_spill] sm:$0xff] %v14098_v58  ;;  %16349 = vst [vmem:[#allocation21_spill] sm:$0xff] %v14100_v59  ;;  %v1053_v1 = vmul.f32 %v14096_v37, %v14098_v58  ;;  %v260_v8 = vmul.f32 %v14064_v50, %v14100_v59  ;;  %v692_v17 = vmul.f32 %v674_v41, %v14100_v59  ;;  %v678_v16 = vld [vmem:[#allocation2 + $0x8f] sm:$0xff] }
  0xb4   :  { %349 = vst [vmem:[#allocation3 + $0x18c] sm:$0xf] %v10971_v47  ;;  %781 = vst [vmem:[#allocation3 + $0x198] sm:$0xf] %v11025_v48  ;;  %v1052_v20 = vmul.f32 %v1034_v45, %v14100_v59  ;;  %11633 = vmatpush3.bf16.msra.mxu0 %v13131_v46  ;;  %v10973_v25 = vpack.c.bf16 %v261_v63, %v261_v63  ;;  %v11027_v26 = vpack.c.bf16 %v693_v0, %v693_v0  ;;  %v13143_v35 = vld [vmem:[#allocation4 + $0x158] sm:$0xff]   ;;  %v13150_v63 = vld [vmem:[#allocation4 + $0x150] sm:$0xff]  }
  0xb5   :  { %1141 = vst [vmem:[#allocation3 + $0x1a4] sm:$0xf] %v11079_v49  ;;  %348 = vst [vmem:[#allocation3 + $0x168] sm:$0xf] %v10970_v51  ;;  %v11081_v3 = vpack.c.bf16 %v1053_v1, %v1053_v1  ;;  %v10972_v5 = vpack.c.bf16 %v260_v8, %v260_v8  ;;  %11634 = vmatprep.subr.bf16.mxu0 %v13133_v52  ;;  %v11026_v27 = vpack.c.bf16 %v692_v17, %v692_v17  ;;  %v14110_v50 = vpop.permute.xlu1 %235  ;;  %v14112_v4 = vpop.permute.xlu0 %230  ;;  %v13147_v48 = vld [vmem:[#allocation4 + $0x118] sm:$0xff]  }
  0xb6   :  { %780 = vst [vmem:[#allocation3 + $0x174] sm:$0xf] %v11024_v12  ;;  %1140 = vst [vmem:[#allocation3 + $0x180] sm:$0xf] %v11078_v56  ;;  %v11080_v2 = vpack.c.bf16 %v1052_v20, %v1052_v20  ;;  %2503 = vmatmul.mubr.bf16.gmra.mxu0 %v13095_v23  ;;  %v263_v31 = vmul.f32 %v1034_v45, %v14110_v50  ;;  %v695_v21 = vmul.f32 %v677_v60, %v14110_v50  ;;  %v13102_v56 = vld [vmem:[#allocation3 + $0x90] ss:$36 sps:$4 sm:$0xff]  }
  0xb7   :  { %16350 = vst [vmem:[#allocation22_spill] sm:$0xff] %v14110_v50  ;;  %16351 = vst [vmem:[#allocation23_spill] sm:$0xff] %v14112_v4  ;;  %v1055_v32 = vmul.f32 %v1037_v61, %v14110_v50  ;;  %v262_v33 = vmul.f32 %v14082_v30, %v14112_v4  ;;  %2510 = vmatprep.mubr.bf16.mxu0 %v13096_v24  ;;  %v694_v10 = vmul.f32 %v676_v57, %v14112_v4  ;;  %v897_v60 = vld [vmem:[#allocation2 + $0x19] sm:$0xff]  ;;  %v465_v61 = vld [vmem:[#allocation2 + $0xd] sm:$0xff] }
  0xb8   :  { %351 = vst [vmem:[#allocation3 + $0x1d4] sm:$0xf] %v10973_v25  ;;  %783 = vst [vmem:[#allocation3 + $0x1e0] sm:$0xf] %v11027_v26  ;;  %v1054_v53 = vmul.f32 %v1036_v13, %v14112_v4  ;;  %11635 = vmatpush3.bf16.msra.mxu0 %v13137_v62  ;;  %v10975_v29 = vpack.c.bf16 %v263_v31, %v263_v31  ;;  %v11029_v40 = vpack.c.bf16 %v695_v21, %v695_v21  ;;  %v896_v62 = vld [vmem:[#allocation2 + $0x11] sm:$0xff]  ;;  %v14134_v20 = vld [vmem:[#allocation2 + $0x25] sm:$0xff] }
  0xb9   :  { %1143 = vst [vmem:[#allocation3 + $0x1ec] sm:$0xf] %v11081_v3  ;;  %350 = vst [vmem:[#allocation3 + $0x1b0] sm:$0xf] %v10972_v5  ;;  %v11083_v28 = vpack.c.bf16 %v1055_v32, %v1055_v32  ;;  %v10974_v41 = vpack.c.bf16 %v262_v33, %v262_v33  ;;  %11636 = vmatprep.subr.bf16.mxu0 %v13140_v14  ;;  %v11028_v30 = vpack.c.bf16 %v694_v10, %v694_v10  ;;  %v14121_v46 = vpop.permute.xlu1 %245  ;;  %v14123_v47 = vpop.permute.xlu0 %240  ;;  %v13104_v8 = vld [vmem:[#allocation3 + $0xdc] ss:$36 sps:$4 sm:$0xff]  }
  0xba   :  { %782 = vst [vmem:[#allocation3 + $0x1bc] sm:$0xf] %v11026_v27  ;;  %1142 = vst [vmem:[#allocation3 + $0x1c8] sm:$0xf] %v11080_v2  ;;  %v11082_v45 = vpack.c.bf16 %v1054_v53, %v1054_v53  ;;  %v265_v49 = vmul.f32 %v1036_v13, %v14121_v46  ;;  %v697_v51 = vmul.f32 %v679_v36, %v14121_v46  ;;  %v1256_v24 = vld [vmem:[#allocation2 + $0x1d] sm:$0xff]  ;;  %v3447_v25 = vld [vmem:[#allocation2 + $0x5] sm:$0xff] }
  0xbb   :  { %16352 = vst [vmem:[#allocation24_spill] sm:$0xff] %v14121_v46  ;;  %16353 = vst [vmem:[#allocation25_spill] sm:$0xff] %v14123_v47  ;;  %v1057_v52 = vmul.f32 %v1039_v34, %v14121_v46  ;;  %v264_v12 = vmul.f32 %v14096_v37, %v14123_v47  ;;  %v696_v0 = vmul.f32 %v678_v16, %v14123_v47  ;;  %v466_v5 = vld [vmem:[#allocation2 + $0x15] sm:$0xff]  ;;  %v898_v27 = vld [vmem:[#allocation2 + $0x21] sm:$0xff] }
  0xbc   :  { %353 = vst [vmem:[#allocation3 + $0x21c] sm:$0xf] %v10975_v29  ;;  %785 = vst [vmem:[#allocation3 + $0x228] sm:$0xf] %v11029_v40  ;;  %v1056_v1 = vmul.f32 %v1038_v44, %v14123_v47  ;;  %11637 = vmatpush3.bf16.msra.mxu0 %v13141_v15  ;;  %v10977_v57 = vpack.c.bf16 %v265_v49, %v265_v49  ;;  %v11031_v13 = vpack.c.bf16 %v697_v51, %v697_v51  ;;  %v899_v33 = vld [vmem:[#allocation2 + $0x29] sm:$0xff]  ;;  %v13153_v10 = vld [vmem:[#allocation4 + $0x148] sm:$0xff]  }
  0xbd   :  { %1145 = vst [vmem:[#allocation3 + $0x234] sm:$0xf] %v11083_v28  ;;  %352 = vst [vmem:[#allocation3 + $0x1f8] sm:$0xf] %v10974_v41  ;;  %v14132_v14 = vpack.c.bf16 %v1057_v52, %v1057_v52  ;;  %v10976_v17 = vpack.c.bf16 %v264_v12, %v264_v12  ;;  %11638 = vmatprep.subr.bf16.mxu0 %v13143_v35  ;;  %v11030_v37 = vpack.c.bf16 %v696_v0, %v696_v0  ;;  %v13151_v34 = vld [vmem:[#allocation4 + $0x110] sm:$0xff]   ;;  %v14148_v41 = vld [vmem:[#allocation2 + $0x35] sm:$0xff] }
  0xbe   :  { %784 = vst [vmem:[#allocation3 + $0x204] sm:$0xf] %v11028_v30  ;;  %1144 = vst [vmem:[#allocation3 + $0x210] sm:$0xf] %v11082_v45  ;;  %v11084_v23 = vpack.c.bf16 %v1056_v1, %v1056_v1  ;;  %2511 = vmatmul.mubr.bf16.gmra.mxu0 %v13102_v56  ;;  %v14137_v26 = vpop.permute.xlu1 %487  ;;  %v14139_v3 = vpop.permute.xlu0 %483  ;;  %v1258_v36 = vld [vmem:[#allocation2 + $0x2d] sm:$0xff]  ;;  %v13155_v44 = vld [vmem:[#allocation4 + $0x108] sm:$0xff]  }
  0xbf   :  { %16354 = vst [vmem:[#allocation26_spill] sm:$0xff] %v14132_v14  ;;  %355 = vst [vmem:[#allocation3 + $0x264] sm:$0xf] %v10977_v57  ;;  %2518 = vmatprep.mubr.bf16.mxu0 %v13104_v8  ;;  %v555_v2 = vmul.f32 %v14137_v26, %v465_v61  ;;  %v915_v31 = vmul.f32 %v897_v60, %v14137_v26  ;;  %v1275_v21 = vmul.f32 %v14134_v20, %v14137_v26  ;;  %v13160_v51 = vld [vmem:[#allocation4 + $0x140] sm:$0xff]   ;;  %v13109_v61 = vld [vmem:[#allocation3 + $0xd8] ss:$36 sps:$4 sm:$0xff]  }
  0xc0   :  { %787 = vst [vmem:[#allocation3 + $0x270] sm:$0xf] %v11031_v13  ;;  %1147 = vst [vmem:[#allocation3 + $0x27c] sm:$0xf] %v14132_v14  ;;  %v914_v32 = vmul.f32 %v896_v62, %v14139_v3  ;;  %11639 = vmatpush3.bf16.msra.mxu0 %v13147_v48  ;;  %v1274_v53 = vmul.f32 %v1256_v24, %v14139_v3  ;;  %v554_v16 = vmul.f32 %v3447_v25, %v14139_v3  ;;  %v900_v48 = vld [vmem:[#allocation2 + $0x31] sm:$0xff]  ;;  %v1260_v1 = vld [vmem:[#allocation2 + $0x3d] sm:$0xff] }
  0xc1   :  { %354 = vst [vmem:[#allocation3 + $0x240] sm:$0xf] %v10976_v17  ;;  %16355 = vst [vmem:[#allocation27_spill] sm:$0xff] %v14139_v3  ;;  %11640 = vmatprep.subr.bf16.mxu0 %v13150_v63  ;;  %v10997_v15 = vpack.c.bf16 %v555_v2, %v555_v2  ;;  %v11051_v29 = vpack.c.bf16 %v915_v31, %v915_v31  ;;  %v11105_v40 = vpack.c.bf16 %v1275_v21, %v1275_v21  ;;  %v13111_v62 = vld [vmem:[#allocation3 + $0x124] ss:$36 sps:$4 sm:$0xff]   ;;  %v902_v2 = vld [vmem:[#allocation2 + $0x41] sm:$0xff] }
  0xc2   :  { %786 = vst [vmem:[#allocation3 + $0x24c] sm:$0xf] %v11030_v37  ;;  %1146 = vst [vmem:[#allocation3 + $0x258] sm:$0xf] %v11084_v23  ;;  %v11050_v28 = vpack.c.bf16 %v914_v32, %v914_v32  ;;  %v11104_v35 = vpack.c.bf16 %v1274_v53, %v1274_v53  ;;  %v14150_v30 = vpop.permute.xlu1 %491  ;;  %v14152_v45 = vpop.permute.xlu0 %495  ;;  %v14154_v49 = vpack.c.bf16 %v554_v16, %v554_v16  ;;  %v901_v37 = vld [vmem:[#allocation2 + $0x39] sm:$0xff]  ;;  %v14236_v46 = vld [vmem:[#allocation2 + $0x8d] sm:$0xff] }
  0xc3   :  { %645 = vst [vmem:[#allocation3 + $0x2c] sm:$0xf] %v10997_v15  ;;  %1005 = vst [vmem:[#allocation3 + $0x38] sm:$0xf] %v11051_v29  ;;  %v556_v52 = vmul.f32 %v14150_v30, %v466_v5  ;;  %v916_v12 = vmul.f32 %v898_v27, %v14150_v30  ;;  %v1276_v56 = vmul.f32 %v1258_v36, %v14150_v30  ;;  %v14166_v5 = vld [vmem:[#allocation2 + $0x45] sm:$0xff]  ;;  %v13161_v31 = vld [vmem:[#allocation4 + $0x100] sm:$0xff]  }
  0xc4   :  { %1365 = vst [vmem:[#allocation3 + $0x44] sm:$0xf] %v11105_v40  ;;  %1004 = vst [vmem:[#allocation3 + $0x14] sm:$0xf] %v11050_v28  ;;  %v557_v60 = vmul.f32 %v1256_v24, %v14152_v45  ;;  %11641 = vmatpush3.bf16.msra.mxu0 %v13151_v34  ;;  %v917_v63 = vmul.f32 %v899_v33, %v14152_v45  ;;  %v1277_v0 = vmul.f32 %v14148_v41, %v14152_v45  ;;  %v14175_v53 = vld [vmem:[#allocation3 + $0x25c] ss:$36 sps:$4 sm:$0xff]  }
  0xc5   :  { %1364 = vst [vmem:[#allocation3 + $0x20] sm:$0xf] %v11104_v35  ;;  %644 = vst [vmem:[#allocation3 + $0x8] sm:$0xf] %v14154_v49  ;;  %11642 = vmatprep.subr.bf16.mxu0 %v13153_v10  ;;  %v10998_v8 = vpack.c.bf16 %v556_v52, %v556_v52  ;;  %v11052_v57 = vpack.c.bf16 %v916_v12, %v916_v12  ;;  %v11106_v13 = vpack.c.bf16 %v1276_v56, %v1276_v56  ;;  %v903_v10 = vld [vmem:[#allocation2 + $0x49] sm:$0xff] }
  0xc6   :  { %v10999_v17 = vpack.c.bf16 %v557_v60, %v557_v60  ;;  %2519 = vmatmul.mubr.bf16.gmra.mxu0 %v13109_v61  ;;  %v11053_v23 = vpack.c.bf16 %v917_v63, %v917_v63  ;;  %v11107_v24 = vpack.c.bf16 %v1277_v0, %v1277_v0  ;;  %v14164_v25 = vpop.permute.xlu1 %499  ;;  %v14168_v27 = vpop.permute.xlu0 %503  ;;  %v1262_v29 = vld [vmem:[#allocation2 + $0x4d] sm:$0xff]  ;;  %4058 = vst [vmem:[#allocation3 + $0x27c] sm:$0xf] %v14132_v14 }
  0xc7   :  { %16356 = vst [vmem:[#allocation28_spill] sm:$0xff] %v14164_v25  ;;  %16357 = vst [vmem:[#allocation29_spill] sm:$0xff] %v14168_v27  ;;  %2526 = vmatprep.mubr.bf16.mxu0 %v13111_v62  ;;  %v558_v21 = vmul.f32 %v14134_v20, %v14164_v25  ;;  %v918_v32 = vmul.f32 %v900_v48, %v14164_v25  ;;  %v1278_v33 = vmul.f32 %v1260_v1, %v14164_v25  ;;  %v904_v60 = vld [vmem:[#allocation2 + $0x51] sm:$0xff] }
  0xc8   :  { %646 = vst [vmem:[#allocation3 + $0x50] sm:$0xf] %v10998_v8  ;;  %1006 = vst [vmem:[#allocation3 + $0x5c] sm:$0xf] %v11052_v57  ;;  %v559_v34 = vmul.f32 %v1258_v36, %v14168_v27  ;;  %11643 = vmatpush3.bf16.msra.mxu0 %v13155_v44  ;;  %v919_v16 = vmul.f32 %v901_v37, %v14168_v27  ;;  %v1279_v15 = vmul.f32 %v14166_v5, %v14168_v27  ;;  %v14181_v36 = vld [vmem:[#allocation2 + $0x55] sm:$0xff]  ;;  %v13170_v37 = vld [vmem:[#allocation4 + $0x1f0] sm:$0xff]  }
  0xc9   :  { %1366 = vst [vmem:[#allocation3 + $0x68] sm:$0xf] %v11106_v13  ;;  %647 = vst [vmem:[#allocation3 + $0x74] sm:$0xf] %v10999_v17  ;;  %11644 = vmatprep.subr.bf16.mxu0 %v13160_v51  ;;  %v11000_v20 = vpack.c.bf16 %v558_v21, %v558_v21  ;;  %v11054_v40 = vpack.c.bf16 %v918_v32, %v918_v32  ;;  %v11108_v28 = vpack.c.bf16 %v1278_v33, %v1278_v33  ;;  %v13169_v61 = vld [vmem:[#allocation4 + $0x1b8] sm:$0xff]   ;;  %v905_v17 = vld [vmem:[#allocation2 + $0x59] sm:$0xff] }
  0xca   :  { %1007 = vst [vmem:[#allocation3 + $0x80] sm:$0xf] %v11053_v23  ;;  %1367 = vst [vmem:[#allocation3 + $0x8c] sm:$0xf] %v11107_v24  ;;  %v11001_v35 = vpack.c.bf16 %v559_v34, %v559_v34  ;;  %v11055_v44 = vpack.c.bf16 %v919_v16, %v919_v16  ;;  %v11109_v48 = vpack.c.bf16 %v1279_v15, %v1279_v15  ;;  %v14183_v52 = vpop.permute.xlu1 %507  ;;  %v14185_v12 = vpop.permute.xlu0 %511  ;;  %v1388_v56 = vld [vmem:[#allocation3 + $0x2c] sm:$0xff]  ;;  %v14199_v16 = vld [vmem:[#allocation2 + $0x65] sm:$0xff] }
  0xcb   :  { %16358 = vst [vmem:[#allocation30_spill] sm:$0xff] %v14183_v52  ;;  %16359 = vst [vmem:[#allocation31_spill] sm:$0xff] %v14185_v12  ;;  %v560_v51 = vmul.f32 %v14148_v41, %v14183_v52  ;;  %v920_v62 = vmul.f32 %v902_v2, %v14183_v52  ;;  %v1280_v63 = vmul.f32 %v1262_v29, %v14183_v52  ;;  %v13116_v8 = vld [vmem:[#allocation3 + $0x120] ss:$36 sps:$4 sm:$0xff]   ;;  %v13117_v13 = vld [vmem:[#allocation3 + $0xc] ss:$36 sps:$4 sm:$0xff]  }
  0xcc   :  { %648 = vst [vmem:[#allocation3 + $0x98] sm:$0xf] %v11000_v20  ;;  %1008 = vst [vmem:[#allocation3 + $0xa4] sm:$0xf] %v11054_v40  ;;  %v561_v0 = vmul.f32 %v1260_v1, %v14185_v12  ;;  %v1383_v57 = vld [vmem:[#allocation3 + $0x8] sm:$0xff]  ;;  %11645 = vmatpush3.bf16.msra.mxu0 %v13161_v31  ;;  %v921_v23 = vmul.f32 %v903_v10, %v14185_v12  ;;  %v1281_v24 = vmul.f32 %v14181_v36, %v14185_v12  ;;  %v14196_v32 = vld [vmem:[#allocation2] sm:$0xff] }
  0xcd   :  { %1368 = vst [vmem:[#allocation3 + $0xb0] sm:$0xf] %v11108_v28  ;;  %649 = vst [vmem:[#allocation3 + $0xbc] sm:$0xf] %v11001_v35  ;;  %v1264_v41 = vld [vmem:[#allocation2 + $0x5d] sm:$0xff]  ;;  %v10171_v21 = vcombine.low %v1383_v57, %v1388_v56  ;;  %12551 = vmatprep.subr.bf16.mxu0 %v14196_v32  ;;  %v11002_v1 = vpack.c.bf16 %v560_v51, %v560_v51  ;;  %v11056_v33 = vpack.c.bf16 %v920_v62, %v920_v62  ;;  %v1266_v57 = vld [vmem:[#allocation2 + $0x6d] sm:$0xff] }
  0xce   :  { %1009 = vst [vmem:[#allocation3 + $0xc8] sm:$0xf] %v11055_v44  ;;  %1369 = vst [vmem:[#allocation3 + $0xd4] sm:$0xf] %v11109_v48  ;;  %v13119_v2 = vld [vmem:[#allocation3 + $0x16c] ss:$36 sps:$4 sm:$0xff]   ;;  %v11110_v31 = vpack.c.bf16 %v1280_v63, %v1280_v63  ;;  %v11003_v34 = vpack.c.bf16 %v561_v0, %v561_v0  ;;  %2527 = vmatmul.mubr.bf16.gmra.mxu0 %v13116_v8  ;;  %v11057_v15 = vpack.c.bf16 %v921_v23, %v921_v23  ;;  %v14203_v40 = vpop.permute.xlu1 %515  ;;  %v14205_v28 = vpop.permute.xlu0 %519 }
  0xcf   :  { %3555 = vst [vmem:[#allocation3 + $0x8] sm:$0xf] %v14154_v49  ;;  %v14201_v10 = vld [vmem:[#allocation3 + $0x168] sm:$0xff]  ;;  %v11111_v20 = vpack.c.bf16 %v1281_v24, %v1281_v24  ;;  %2599 = vmatprep.mubr.bf16.mxu1 %v13117_v13  ;;  %16360 = vst [vmem:[#allocation32_spill] sm:$0xff] %v14203_v40  ;;  %2534 = vmatprep.mubr.bf16.mxu0 %v13119_v2  ;;  %v13121_v35 = vld [vmem:[#allocation3 + $0x54] ss:$36 sps:$4 sm:$0xff]   ;;  %v562_v48 = vmul.f32 %v14166_v5, %v14203_v40 }
  0xd0   :  { %16361 = vst [vmem:[#allocation33_spill] sm:$0xff] %v14205_v28  ;;  %v906_v44 = vld [vmem:[#allocation2 + $0x61] sm:$0xff]  ;;  %650 = vst [vmem:[#allocation3 + $0xe0] sm:$0xf] %v11002_v1  ;;  %v922_v56 = vmul.f32 %v904_v60, %v14203_v40  ;;  %v1282_v51 = vmul.f32 %v1264_v41, %v14203_v40  ;;  %v563_v62 = vmul.f32 %v1262_v29, %v14205_v28  ;;  %2600 = vmatmul.mubr.bf16.vlgmr.msra.gmra.mxu1 %v10171_v21  ;;  %v907_v13 = vld [vmem:[#allocation2 + $0x69] sm:$0xff] }
  0xd1   :  { %1010 = vst [vmem:[#allocation3 + $0xec] sm:$0xf] %v11056_v33  ;;  %1370 = vst [vmem:[#allocation3 + $0xf8] sm:$0xf] %v11110_v31  ;;  %v1437_v63 = vld [vmem:[#allocation3 + $0x18c] sm:$0xff]  ;;  %v923_v0 = vmul.f32 %v905_v17, %v14205_v28  ;;  %v1283_v8 = vmul.f32 %v14199_v16, %v14205_v28  ;;  %2607 = vmatprep.mubr.bf16.mxu1 %v13121_v35  ;;  %11701 = vmatpush3.bf16.msra.mxu1 %v13169_v61  ;;  %v13171_v5 = vld [vmem:[#allocation4 + $0x1b0] sm:$0xff]  }
  0xd2   :  { %651 = vst [vmem:[#allocation3 + $0x104] sm:$0xf] %v11003_v34  ;;  %1011 = vst [vmem:[#allocation3 + $0x110] sm:$0xf] %v11057_v15  ;;  %v11004_v23 = vpack.c.bf16 %v562_v48, %v562_v48  ;;  %v11058_v60 = vpack.c.bf16 %v922_v56, %v922_v56  ;;  %v11112_v24 = vpack.c.bf16 %v1282_v51, %v1282_v51  ;;  %v14215_v1 = vld [vmem:[#allocation2 + $0x75] sm:$0xff]  ;;  %11702 = vmatprep.subr.bf16.mxu1 %v13170_v37  ;;  %v14217_v33 = vpop.permute.xlu1 %523  ;;  %v14219_v17 = vpop.permute.xlu0 %527  ;;  %v13176_v15 = vld [vmem:[#allocation4 + $0x1e8] sm:$0xff]  }
  0xd3   :  { %1371 = vst [vmem:[#allocation3 + $0x11c] sm:$0xf] %v11111_v20  ;;  %v11005_v2 = vpack.c.bf16 %v563_v62, %v563_v62  ;;  %v11059_v29 = vpack.c.bf16 %v923_v0, %v923_v0  ;;  %v11113_v21 = vpack.c.bf16 %v1283_v8, %v1283_v8  ;;  %16362 = vst [vmem:[#allocation34_spill] sm:$0xff] %v14217_v33  ;;  %v908_v34 = vld [vmem:[#allocation2 + $0x71] sm:$0xff]  ;;  %v909_v48 = vld [vmem:[#allocation2 + $0x79] sm:$0xff] }
  0xd4   :  { %16363 = vst [vmem:[#allocation35_spill] sm:$0xff] %v14219_v17  ;;  %v10214_v31 = vcombine.low %v14201_v10, %v1437_v63  ;;  %652 = vst [vmem:[#allocation3 + $0x128] sm:$0xf] %v11004_v23  ;;  %v564_v61 = vmul.f32 %v14181_v36, %v14217_v33  ;;  %v924_v20 = vmul.f32 %v906_v44, %v14217_v33  ;;  %v14227_v56 = vld [vmem:[#allocation2 + $0x85] sm:$0xff]  ;;  %v1268_v63 = vld [vmem:[#allocation2 + $0x7d] sm:$0xff] }
  0xd5   :  { %1012 = vst [vmem:[#allocation3 + $0x134] sm:$0xf] %v11058_v60  ;;  %1372 = vst [vmem:[#allocation3 + $0x140] sm:$0xf] %v11112_v24  ;;  %v1284_v37 = vmul.f32 %v1266_v57, %v14217_v33  ;;  %v565_v35 = vmul.f32 %v1264_v41, %v14219_v17  ;;  %v13179_v51 = vld [vmem:[#allocation4 + $0x1a8] sm:$0xff]   ;;  %v925_v10 = vmul.f32 %v907_v13, %v14219_v17  ;;  %11703 = vmatpush3.bf16.msra.mxu1 %v13171_v5  ;;  %v13180_v36 = vld [vmem:[#allocation4 + $0x1e0] sm:$0xff]  }
  0xd6   :  { %653 = vst [vmem:[#allocation3 + $0x14c] sm:$0xf] %v11005_v2  ;;  %1013 = vst [vmem:[#allocation3 + $0x158] sm:$0xf] %v11059_v29  ;;  %v1285_v62 = vmul.f32 %v14215_v1, %v14219_v17  ;;  %v13125_v0 = vld [vmem:[#allocation3 + $0x1b4] ss:$36 sps:$4 sm:$0xff]   ;;  %v11006_v44 = vpack.c.bf16 %v564_v61, %v564_v61  ;;  %v11060_v8 = vpack.c.bf16 %v924_v20, %v924_v20  ;;  %2535 = vmatmul.mubr.bf16.gmra.mxu0 %v10214_v31  ;;  %v14232_v14 = vpop.permute.xlu1 %531  ;;  %v14234_v29 = vpop.permute.xlu0 %535 }
  0xd7   :  { %1373 = vst [vmem:[#allocation3 + $0x164] sm:$0xf] %v11113_v21  ;;  %v11114_v23 = vpack.c.bf16 %v1284_v37, %v1284_v37  ;;  %v11007_v60 = vpack.c.bf16 %v565_v35, %v565_v35  ;;  %v13127_v41 = vld [vmem:[#allocation3 + $0x50] ss:$36 sps:$4 sm:$0xff]   ;;  %v11061_v24 = vpack.c.bf16 %v925_v10, %v925_v10  ;;  %16364 = vst [vmem:[#allocation36_spill] sm:$0xff] %v14232_v14  ;;  %2542 = vmatprep.mubr.bf16.mxu0 %v13125_v0  ;;  %v911_v37 = vld [vmem:[#allocation2 + $0x89] sm:$0xff] }
  0xd8   :  { %v11115_v2 = vpack.c.bf16 %v1285_v62, %v1285_v62  ;;  %16365 = vst [vmem:[#allocation37_spill] sm:$0xff] %v14234_v29  ;;  %v13128_v13 = vld [vmem:[#allocation3 + $0x9c] ss:$36 sps:$4 sm:$0xff]   ;;  %v910_v21 = vld [vmem:[#allocation2 + $0x81] sm:$0xff]  ;;  %11704 = vmatprep.subr.bf16.mxu1 %v13176_v15  ;;  %654 = vst [vmem:[#allocation3 + $0x170] sm:$0xf] %v11006_v44  ;;  %v566_v5 = vmul.f32 %v14199_v16, %v14232_v14  ;;  %v926_v31 = vmul.f32 %v908_v34, %v14232_v14 }
  0xd9   :  { %1014 = vst [vmem:[#allocation3 + $0x17c] sm:$0xf] %v11060_v8  ;;  %1374 = vst [vmem:[#allocation3 + $0x188] sm:$0xf] %v11114_v23  ;;  %v1286_v61 = vmul.f32 %v1268_v63, %v14232_v14  ;;  %v567_v20 = vmul.f32 %v1266_v57, %v14234_v29  ;;  %2608 = vmatmul.mubr.bf16.gmra.mxu1 %v13127_v41  ;;  %v927_v35 = vmul.f32 %v909_v48, %v14234_v29  ;;  %v1271_v10 = vld [vmem:[#allocation2 + $0x95] sm:$0xff]  ;;  %v13281_v14 = vld [vmem:[#allocation4 + $0x2d0] sm:$0xff]  }
  0xda   :  { %655 = vst [vmem:[#allocation3 + $0x194] sm:$0xf] %v11007_v60  ;;  %1015 = vst [vmem:[#allocation3 + $0x1a0] sm:$0xf] %v11061_v24  ;;  %v1287_v15 = vmul.f32 %v14227_v56, %v14234_v29  ;;  %2615 = vmatprep.mubr.bf16.mxu1 %v13128_v13  ;;  %11705 = vmatpush3.bf16.msra.mxu1 %v13179_v51  ;;  %v13181_v62 = vld [vmem:[#allocation4 + $0x1a0] sm:$0xff]   ;;  %v11008_v16 = vpack.c.bf16 %v566_v5, %v566_v5  ;;  %v13186_v8 = vld [vmem:[#allocation4 + $0x1d8] sm:$0xff]   ;;  %v14246_v60 = vpop.permute.xlu1 %539  ;;  %v14248_v41 = vpop.permute.xlu0 %543 }
  0xdb   :  { %1375 = vst [vmem:[#allocation3 + $0x1ac] sm:$0xf] %v11115_v2  ;;  %v11062_v0 = vpack.c.bf16 %v926_v31, %v926_v31  ;;  %v11116_v34 = vpack.c.bf16 %v1286_v61, %v1286_v61  ;;  %v11009_v44 = vpack.c.bf16 %v567_v20, %v567_v20  ;;  %11706 = vmatprep.subr.bf16.mxu1 %v13180_v36  ;;  %16366 = vst [vmem:[#allocation38_spill] sm:$0xff] %v14246_v60  ;;  %v912_v48 = vld [vmem:[#allocation2 + $0x91] sm:$0xff]  ;;  %v1272_v24 = vld [vmem:[#allocation2 + $0x9d] sm:$0xff] }
  0xdc   :  { %v11063_v57 = vpack.c.bf16 %v927_v35, %v927_v35  ;;  %v11117_v23 = vpack.c.bf16 %v1287_v15, %v1287_v15  ;;  %16367 = vst [vmem:[#allocation39_spill] sm:$0xff] %v14248_v41  ;;  %v13189_v2 = vld [vmem:[#allocation4 + $0x198] sm:$0xff]   ;;  %656 = vst [vmem:[#allocation3 + $0x1b8] sm:$0xf] %v11008_v16  ;;  %v568_v51 = vmul.f32 %v14215_v1, %v14246_v60  ;;  %v13132_v31 = vld [vmem:[#allocation3 + $0x1b0] ss:$36 sps:$4 sm:$0xff]  }
  0xdd   :  { %1016 = vst [vmem:[#allocation3 + $0x1c4] sm:$0xf] %v11062_v0  ;;  %1376 = vst [vmem:[#allocation3 + $0x1d0] sm:$0xf] %v11116_v34  ;;  %v928_v13 = vmul.f32 %v910_v21, %v14246_v60  ;;  %v1288_v36 = vmul.f32 %v14236_v46, %v14246_v60  ;;  %v569_v5 = vmul.f32 %v1268_v63, %v14248_v41  ;;  %v913_v61 = vld [vmem:[#allocation2 + $0x99] sm:$0xff]  ;;  %v7095_v20 = vld [vmem:[#allocation2 + $0xa5] sm:$0xff] }
  0xde   :  { %657 = vst [vmem:[#allocation3 + $0x1dc] sm:$0xf] %v11009_v44  ;;  %1017 = vst [vmem:[#allocation3 + $0x1e8] sm:$0xf] %v11063_v57  ;;  %v929_v35 = vmul.f32 %v911_v37, %v14248_v41  ;;  %v1289_v15 = vmul.f32 %v1271_v10, %v14248_v41  ;;  %v13134_v16 = vld [vmem:[#allocation3 + $0x1fc] ss:$36 sps:$4 sm:$0xff]   ;;  %11707 = vmatpush3.bf16.msra.mxu1 %v13181_v62  ;;  %v11010_v1 = vpack.c.bf16 %v568_v51, %v568_v51  ;;  %v14258_v3 = vpop.permute.xlu1 %547  ;;  %v14260_v60 = vpop.permute.xlu0 %551 }
  0xdf   :  { %1377 = vst [vmem:[#allocation3 + $0x1f4] sm:$0xf] %v11117_v23  ;;  %v13190_v0 = vld [vmem:[#allocation4 + $0x1d0] sm:$0xff]   ;;  %v11064_v34 = vpack.c.bf16 %v928_v13, %v928_v13  ;;  %v11118_v21 = vpack.c.bf16 %v1288_v36, %v1288_v36  ;;  %v11011_v44 = vpack.c.bf16 %v569_v5, %v569_v5  ;;  %2543 = vmatmul.mubr.bf16.gmra.mxu0 %v13132_v31  ;;  %16368 = vst [vmem:[#allocation40_spill] sm:$0xff] %v14258_v3  ;;  %v13138_v57 = vld [vmem:[#allocation3 + $0xe4] ss:$36 sps:$4 sm:$0xff]  }
  0xe0   :  { %v13136_v47 = vld [vmem:[#allocation3 + $0x98] ss:$36 sps:$4 sm:$0xff]   ;;  %v11065_v50 = vpack.c.bf16 %v929_v35, %v929_v35  ;;  %v11119_v63 = vpack.c.bf16 %v1289_v15, %v1289_v15  ;;  %16369 = vst [vmem:[#allocation41_spill] sm:$0xff] %v14260_v60  ;;  %2550 = vmatprep.mubr.bf16.mxu0 %v13134_v16  ;;  %11708 = vmatprep.subr.bf16.mxu1 %v13186_v8  ;;  %658 = vst [vmem:[#allocation3 + $0x200] sm:$0xf] %v11010_v1  ;;  %v13201_v15 = vld [vmem:[#allocation4 + $0x180] sm:$0xff]  }
  0xe1   :  { %1018 = vst [vmem:[#allocation3 + $0x20c] sm:$0xf] %v11064_v34  ;;  %1378 = vst [vmem:[#allocation3 + $0x218] sm:$0xf] %v11118_v21  ;;  %v570_v37 = vmul.f32 %v14227_v56, %v14258_v3  ;;  %v930_v10 = vmul.f32 %v912_v48, %v14258_v3  ;;  %v1290_v62 = vmul.f32 %v1272_v24, %v14258_v3  ;;  %2616 = vmatmul.mubr.bf16.gmra.mxu1 %v13136_v47  ;;  %v13191_v13 = vld [vmem:[#allocation4 + $0x190] sm:$0xff]   ;;  %v13196_v48 = vld [vmem:[#allocation4 + $0x1c8] sm:$0xff]  }
  0xe2   :  { %659 = vst [vmem:[#allocation3 + $0x224] sm:$0xf] %v11011_v44  ;;  %v571_v23 = vmul.f32 %v14236_v46, %v14260_v60  ;;  %1019 = vst [vmem:[#allocation3 + $0x230] sm:$0xf] %v11065_v50  ;;  %v931_v51 = vmul.f32 %v913_v61, %v14260_v60  ;;  %v7113_v8 = vmul.f32 %v7095_v20, %v14260_v60  ;;  %2623 = vmatprep.mubr.bf16.mxu1 %v13138_v57  ;;  %v13197_v46 = vld [vmem:[#allocation4 + $0x188] sm:$0xff]   ;;  %v13208_v44 = vld [vmem:[#allocation4 + $0x238] sm:$0xff]  }
  0xe3   :  { %1379 = vst [vmem:[#allocation3 + $0x23c] sm:$0xf] %v11119_v63  ;;  %11709 = vmatpush3.bf16.msra.mxu1 %v13189_v2  ;;  %v11012_v36 = vpack.c.bf16 %v570_v37, %v570_v37  ;;  %v11066_v5 = vpack.c.bf16 %v930_v10, %v930_v10  ;;  %v11120_v56 = vpack.c.bf16 %v1290_v62, %v1290_v62  ;;  %v13142_v50 = vld [vmem:[#allocation3 + $0x1f8] ss:$36 sps:$4 sm:$0xff]   ;;  %v13144_v47 = vld [vmem:[#allocation3 + $0x244] ss:$36 sps:$4 sm:$0xff]  }
  0xe4   :  { %v11013_v31 = vpack.c.bf16 %v571_v23, %v571_v23  ;;  %11710 = vmatprep.subr.bf16.mxu1 %v13190_v0  ;;  %v11067_v24 = vpack.c.bf16 %v931_v51, %v931_v51  ;;  %v14270_v35 = vpack.c.bf16 %v7113_v8, %v7113_v8  ;;  %v13200_v2 = vld [vmem:[#allocation4 + $0x1c0] sm:$0xff]   ;;  %v13146_v61 = vld [vmem:[#allocation3 + $0xe0] ss:$36 sps:$4 sm:$0xff]   ;;  %v13156_v16 = vld [vmem:[#allocation3 + $0x14] ss:$36 sps:$4 sm:$0xff]  }
  0xe5   :  { %660 = vst [vmem:[#allocation3 + $0x248] sm:$0xf] %v11012_v36  ;;  %1020 = vst [vmem:[#allocation3 + $0x254] sm:$0xf] %v11066_v5  ;;  %v13148_v20 = vld [vmem:[#allocation3 + $0x12c] ss:$36 sps:$4 sm:$0xff]  }
  0xe6   :  { %16370 = vst [vmem:[#allocation42_spill] sm:$0xff] %v14270_v35  ;;  %1380 = vst [vmem:[#allocation3 + $0x260] sm:$0xf] %v11120_v56  ;;  %v13152_v0 = vld [vmem:[#allocation3 + $0x240] ss:$36 sps:$4 sm:$0xff]   ;;  %v13215_v62 = vld [vmem:[#allocation4 + $0x230] sm:$0xff]  }
  0xe7   :  { %661 = vst [vmem:[#allocation3 + $0x26c] sm:$0xf] %v11013_v31  ;;  %1021 = vst [vmem:[#allocation3 + $0x278] sm:$0xf] %v11067_v24  ;;  %11711 = vmatpush3.bf16.msra.mxu1 %v13191_v13  ;;  %2551 = vmatmul.mubr.bf16.gmra.mxu0 %v13142_v50  ;;  %v13154_v1 = vld [vmem:[#allocation3 + $0x128] ss:$36 sps:$4 sm:$0xff]  }
  0xe8   :  { %1381 = vst [vmem:[#allocation3 + $0x284] sm:$0xf] %v14270_v35  ;;  %11712 = vmatprep.subr.bf16.mxu1 %v13196_v48  ;;  %2558 = vmatprep.mubr.bf16.mxu0 %v13144_v47  ;;  %v13158_v34 = vld [vmem:[#allocation3 + $0x174] ss:$36 sps:$4 sm:$0xff]   ;;  %v13164_v57 = vld [vmem:[#allocation3 + $0x5c] ss:$36 sps:$4 sm:$0xff]  }
  0xe9   :  { %2624 = vmatmul.mubr.bf16.gmra.mxu1 %v13146_v61  ;;  %v13162_v63 = vld [vmem:[#allocation3 + $0x10] ss:$36 sps:$4 sm:$0xff]   ;;  %v13167_v10 = vld [vmem:[#allocation3 + $0x1bc] ss:$36 sps:$4 sm:$0xff]   ;;  %v13174_v8 = vld [vmem:[#allocation3 + $0xa4] ss:$36 sps:$4 sm:$0xff]  }
  0xea   :  { %2631 = vmatprep.mubr.bf16.mxu1 %v13148_v20  ;;  %v13163_v37 = vld [vmem:[#allocation3 + $0x170] ss:$36 sps:$4 sm:$0xff]   ;;  %v13172_v51 = vld [vmem:[#allocation3 + $0x58] ss:$36 sps:$4 sm:$0xff]   ;;  %v13177_v36 = vld [vmem:[#allocation3 + $0x204] ss:$36 sps:$4 sm:$0xff]  }
  0xeb   :  { %11713 = vmatpush3.bf16.msra.mxu1 %v13197_v46  ;;  %v13220_v23 = vld [vmem:[#allocation4 + $0x228] sm:$0xff]   ;;  %v13173_v13 = vld [vmem:[#allocation3 + $0x1b8] ss:$36 sps:$4 sm:$0xff]   ;;  %v13223_v5 = vld [vmem:[#allocation4 + $0x220] sm:$0xff]  }
  0xec   :  { %11714 = vmatprep.subr.bf16.mxu1 %v13200_v2  ;;  %v4076_v56 = vld [vmem:[#allocation2 + $0xa4] sm:$0xff]  ;;  %v13228_v48 = vld [vmem:[#allocation4 + $0x218] sm:$0xff]   ;;  %v13184_v46 = vld [vmem:[#allocation3 + $0xec] ss:$36 sps:$4 sm:$0xff]  }
  0xed   :  { %v14278_v31 = vpack.c.bf16 %v4076_v56, %v4076_v56  ;;  %v13182_v24 = vld [vmem:[#allocation3 + $0xa0] ss:$36 sps:$4 sm:$0xff]   ;;  %v13187_v47 = vld [vmem:[#allocation3 + $0x24c] ss:$36 sps:$4 sm:$0xff]   ;;  %v13231_v2 = vld [vmem:[#allocation4 + $0x210] sm:$0xff]  }
  0xee   :  { %v13183_v50 = vld [vmem:[#allocation3 + $0x200] ss:$36 sps:$4 sm:$0xff]   ;;  %v13234_v61 = vld [vmem:[#allocation4 + $0x208] sm:$0xff]   ;;  %v13192_v20 = vld [vmem:[#allocation3 + $0xe8] ss:$36 sps:$4 sm:$0xff]  }
  0xef   :  { %11715 = vmatpush3.bf16.msra.mxu1 %v13201_v15  ;;  %2559 = vmatmul.mubr.bf16.gmra.mxu0 %v13152_v0  ;;  %v14273_v21 = vld [vmem:[#allocation3 + $0x260] ss:$36 sps:$4 sm:$0xff]   ;;  %16371 = vst [vmem:[#allocation43_spill] sm:$0xff] %v14278_v31  ;;  %4166 = vst [vmem:[#allocation3 + $0x280] sm:$0xf] %v14278_v31  ;;  %v13265_v41 = vld [vmem:[#allocation4 + $0x2f0] sm:$0xff]  }
  0xf0   :  { %2704 = vmatprep.mubr.bf16.mxu0 %v13156_v16  ;;  %4292 = vst [vmem:[#allocation3 + $0x284] sm:$0xf] %v14270_v35  ;;  %v13194_v15 = vld [vmem:[#allocation3 + $0x134] ss:$36 sps:$4 sm:$0xff]   ;;  %v13193_v16 = vld [vmem:[#allocation3 + $0x248] ss:$36 sps:$4 sm:$0xff]  }
  0xf1   :  { %2632 = vmatmul.mubr.bf16.gmra.mxu1 %v13154_v1  ;;  %v13198_v0 = vld [vmem:[#allocation3 + $0x1c] ss:$36 sps:$4 sm:$0xff]   ;;  %v13237_v1 = vld [vmem:[#allocation4 + $0x200] sm:$0xff]   ;;  %v13227_v56 = vld [vmem:[#allocation3 + $0xf0] ss:$36 sps:$4 sm:$0xff]  }
  0xf2   :  { %2639 = vmatprep.mubr.bf16.mxu1 %v13158_v34  ;;  %v13202_v34 = vld [vmem:[#allocation3 + $0x130] ss:$36 sps:$4 sm:$0xff]   ;;  %v13257_v35 = vld [vmem:[#allocation4 + $0x278] sm:$0xff]  }
  0xf7   :  { %2705 = vmatmul.mubr.bf16.vlgmr.msra.gmra.mxu0 %v13162_v63  ;;  %v13205_v63 = vld [vmem:[#allocation3 + $0x18] ss:$36 sps:$4 sm:$0xff]  }
  0xf8   :  { %2712 = vmatprep.mubr.bf16.mxu0 %v13164_v57  ;;  %12552 = vmatpush3.bf16.msra.mxu0 %v13208_v44  ;;  %v13203_v44 = vld [vmem:[#allocation3 + $0x17c] ss:$36 sps:$4 sm:$0xff]   ;;  %v13206_v57 = vld [vmem:[#allocation3 + $0x64] ss:$36 sps:$4 sm:$0xff]  }
  0xf9   :  { %2640 = vmatmul.mubr.bf16.gmra.mxu1 %v13163_v37  ;;  %12553 = vmatprep.subr.bf16.mxu0 %v14196_v32  ;;  %v13209_v37 = vld [vmem:[#allocation3 + $0x178] ss:$36 sps:$4 sm:$0xff]  }
  0xfa   :  { %2647 = vmatprep.mubr.bf16.mxu1 %v13167_v10  ;;  %v13210_v10 = vld [vmem:[#allocation3 + $0x1c4] ss:$36 sps:$4 sm:$0xff]  }
  0xfc   :  { %12554 = vmatpush3.bf16.msra.mxu0 %v13215_v62  ;;  %v13212_v62 = vld [vmem:[#allocation3 + $0x60] ss:$36 sps:$4 sm:$0xff]  }
  0xfd   :  { %12555 = vmatprep.subr.bf16.mxu0 %v14196_v32 }
  0xff   :  { %2713 = vmatmul.mubr.bf16.gmra.mxu0 %v13172_v51  ;;  %v13216_v51 = vld [vmem:[#allocation3 + $0x1c0] ss:$36 sps:$4 sm:$0xff]  }
 0x100   :  { %2720 = vmatprep.mubr.bf16.mxu0 %v13174_v8  ;;  %12556 = vmatpush3.bf16.msra.mxu0 %v13220_v23  ;;  %v13213_v23 = vld [vmem:[#allocation3 + $0xac] ss:$36 sps:$4 sm:$0xff]  }
 0x101   :  { %2648 = vmatmul.mubr.bf16.gmra.mxu1 %v13173_v13  ;;  %12557 = vmatprep.subr.bf16.mxu0 %v14196_v32  ;;  %v13219_v8 = vld [vmem:[#allocation3 + $0xa8] ss:$36 sps:$4 sm:$0xff]   ;;  %v13221_v13 = vld [vmem:[#allocation3 + $0xf4] ss:$36 sps:$4 sm:$0xff]  }
 0x102   :  { %2655 = vmatprep.mubr.bf16.mxu1 %v13177_v36  ;;  %v13224_v36 = vld [vmem:[#allocation3 + $0x208] ss:$36 sps:$4 sm:$0xff]  }
 0x104   :  { %12558 = vmatpush3.bf16.msra.mxu0 %v13223_v5  ;;  %v13225_v5 = vld [vmem:[#allocation3 + $0x254] ss:$36 sps:$4 sm:$0xff]  }
 0x105   :  { %12559 = vmatprep.subr.bf16.mxu0 %v14196_v32 }
 0x107   :  { %2721 = vmatmul.mubr.bf16.gmra.mxu0 %v13182_v24  ;;  %v13232_v24 = vld [vmem:[#allocation3 + $0x250] ss:$36 sps:$4 sm:$0xff]  }
 0x108   :  { %2728 = vmatprep.mubr.bf16.mxu0 %v13184_v46  ;;  %12560 = vmatpush3.bf16.msra.mxu0 %v13228_v48  ;;  %v13229_v48 = vld [vmem:[#allocation3 + $0x13c] ss:$36 sps:$4 sm:$0xff]  }
 0x109   :  { %2656 = vmatmul.mubr.bf16.gmra.mxu1 %v13183_v50  ;;  %12561 = vmatprep.subr.bf16.mxu0 %v14196_v32  ;;  %v13233_v46 = vld [vmem:[#allocation3 + $0x138] ss:$36 sps:$4 sm:$0xff]   ;;  %v13235_v50 = vld [vmem:[#allocation3 + $0x184] ss:$36 sps:$4 sm:$0xff]  }
 0x10a   :  { %2663 = vmatprep.mubr.bf16.mxu1 %v13187_v47  ;;  %v13735_v47 = vld [vmem:[#allocation2] sm:$0xff] }
 0x10c   :  { %12562 = vmatpush3.bf16.msra.mxu0 %v13231_v2  ;;  %v13238_v2 = vld [vmem:[#allocation3 + $0x20] ss:$36 sps:$4 sm:$0xff]  }
 0x10d   :  { %12563 = vmatprep.subr.bf16.mxu0 %v14196_v32 }
 0x10f   :  { %2729 = vmatmul.mubr.bf16.gmra.mxu0 %v13192_v20  ;;  %v13240_v20 = vld [vmem:[#allocation3 + $0x1cc] ss:$36 sps:$4 sm:$0xff]  }
 0x110   :  { %2736 = vmatprep.mubr.bf16.mxu0 %v13194_v15  ;;  %12564 = vmatpush3.bf16.msra.mxu0 %v13234_v61  ;;  %v13239_v61 = vld [vmem:[#allocation3 + $0x180] ss:$36 sps:$4 sm:$0xff]   ;;  %v13242_v15 = vld [vmem:[#allocation3 + $0x68] ss:$36 sps:$4 sm:$0xff]  }
 0x111   :  { %2664 = vmatmul.mubr.bf16.gmra.mxu1 %v13193_v16  ;;  %12565 = vmatprep.subr.bf16.mxu0 %v14196_v32  ;;  %v13217_v32 = vld [vmem:[#allocation3 + $0x20c] ss:$36 sps:$4 sm:$0xff]  }
 0x112   :  { %2809 = vmatprep.mubr.bf16.mxu1 %v13198_v0  ;;  %v13243_v16 = vld [vmem:[#allocation3 + $0x1c8] ss:$36 sps:$4 sm:$0xff]   ;;  %v13244_v0 = vld [vmem:[#allocation3 + $0x214] ss:$36 sps:$4 sm:$0xff]  }
 0x114   :  { %12566 = vmatpush3.bf16.msra.mxu0 %v13237_v1  ;;  %v13246_v1 = vld [vmem:[#allocation3 + $0xb0] ss:$36 sps:$4 sm:$0xff]  }
 0x117   :  { %2737 = vmatmul.mubr.bf16.gmra.mxu0 %v13202_v34  ;;  %v13247_v34 = vld [vmem:[#allocation3 + $0x210] ss:$36 sps:$4 sm:$0xff]  }
 0x118   :  { %2744 = vmatprep.mubr.bf16.mxu0 %v13203_v44  ;;  %v1465_v44 = vld [vmem:[#allocation3 + $0x258] sm:$0xff] }
 0x119   :  { %2810 = vmatmul.mubr.bf16.vlgmr.msra.gmra.mxu1 %v13205_v63  ;;  %v1470_v63 = vld [vmem:[#allocation3 + $0x27c] sm:$0xff] }
 0x11a   :  { %2817 = vmatprep.mubr.bf16.mxu1 %v13206_v57  ;;  %v13250_v57 = vld [vmem:[#allocation3 + $0xf8] ss:$36 sps:$4 sm:$0xff]  }
 0x11f   :  { %2745 = vmatmul.mubr.bf16.gmra.mxu0 %v13209_v37  ;;  %v10247_v37 = vcombine.low %v1465_v44, %v1470_v63 }
 0x120   :  { %2752 = vmatprep.mubr.bf16.mxu0 %v13210_v10  ;;  %v13251_v10 = vld [vmem:[#allocation3 + $0x140] ss:$36 sps:$4 sm:$0xff]  }
 0x121   :  { %2818 = vmatmul.mubr.bf16.gmra.mxu1 %v13212_v62  ;;  %v13252_v62 = vld [vmem:[#allocation3 + $0x188] ss:$36 sps:$4 sm:$0xff]  }
 0x122   :  { %2825 = vmatprep.mubr.bf16.mxu1 %v13213_v23  ;;  %v13253_v23 = vld [vmem:[#allocation3 + $0x1d0] ss:$36 sps:$4 sm:$0xff]  }
 0x127   :  { %2753 = vmatmul.mubr.bf16.gmra.mxu0 %v13216_v51 }
 0x128   :  { %2760 = vmatprep.mubr.bf16.mxu0 %v13217_v32 }
 0x129   :  { %2826 = vmatmul.mubr.bf16.gmra.mxu1 %v13219_v8 }
 0x12a   :  { %2833 = vmatprep.mubr.bf16.mxu1 %v13221_v13 }
 0x12f   :  { %2761 = vmatmul.mubr.bf16.gmra.mxu0 %v13224_v36  ;;  %v13254_v36 = vld [vmem:[#allocation3 + $0x218] ss:$36 sps:$4 sm:$0xff]  }
 0x130   :  { %2768 = vmatprep.mubr.bf16.mxu0 %v13225_v5 }
 0x131   :  { %2834 = vmatmul.mubr.bf16.gmra.mxu1 %v13227_v56 }
 0x132   :  { %2841 = vmatprep.mubr.bf16.mxu1 %v13229_v48 }
 0x137   :  { %2769 = vmatmul.mubr.bf16.gmra.mxu0 %v13232_v24 }
 0x138   :  { %12567 = vmatprep.mubr.msk.bf16.mxu0 %vm13795_vm0, %v13735_v47 }
 0x139   :  { %2842 = vmatmul.mubr.bf16.gmra.mxu1 %v13233_v46 }
 0x13a   :  { %2849 = vmatprep.mubr.bf16.mxu1 %v13235_v50 }
 0x13f   :  { %12568 = vmatmul.mubr.bf16.vlgmr.msra.gmra.mxu0 %v13238_v2 }
 0x140   :  { %12571 = vmatprep.mubr.msk.bf16.mxu0 %vm13795_vm0, %v13735_v47 }
 0x141   :  { %2850 = vmatmul.mubr.bf16.gmra.mxu1 %v13239_v61 }
 0x142   :  { %2857 = vmatprep.mubr.bf16.mxu1 %v13240_v20 }
 0x147   :  { %12572 = vmatmul.mubr.bf16.gmra.mxu0 %v13242_v15 }
 0x148   :  { %12575 = vmatprep.mubr.msk.bf16.mxu0 %vm13795_vm0, %v13735_v47 }
 0x149   :  { %2858 = vmatmul.mubr.bf16.gmra.mxu1 %v13243_v16 }
 0x14a   :  { %2865 = vmatprep.mubr.bf16.mxu1 %v13244_v0 }
 0x14f   :  { %12576 = vmatmul.mubr.bf16.gmra.mxu0 %v13246_v1 }
 0x150   :  { %12579 = vmatprep.mubr.msk.bf16.mxu0 %vm13795_vm0, %v13735_v47 }
 0x151   :  { %2866 = vmatmul.mubr.bf16.gmra.mxu1 %v13247_v34 }
 0x152   :  { %2873 = vmatprep.mubr.bf16.mxu1 %v14175_v53 }
 0x157   :  { %12580 = vmatmul.mubr.bf16.gmra.mxu0 %v13250_v57 }
 0x158   :  { %12583 = vmatprep.mubr.msk.bf16.mxu0 %vm13795_vm0, %v13735_v47 }
 0x159   :  { %2874 = vmatmul.mubr.bf16.gmra.mxu1 %v10247_v37 }
 0x15f   :  { %12584 = vmatmul.mubr.bf16.gmra.mxu0 %v13251_v10 }
 0x160   :  { %12587 = vmatprep.mubr.msk.bf16.mxu0 %vm13795_vm0, %v13735_v47 }
 0x167   :  { %12588 = vmatmul.mubr.bf16.gmra.mxu0 %v13252_v62 }
 0x168   :  { %12591 = vmatprep.mubr.msk.bf16.mxu0 %vm13795_vm0, %v13735_v47 }
 0x16e   :  { %v11506_v51 = vpop.f32.mrf.mxu0 }
 0x16f   :  { %12592 = vmatmul.mubr.bf16.gmra.mxu0 %v13253_v23 }
 0x170   :  { %12595 = vmatprep.mubr.msk.bf16.mxu0 %vm13795_vm0, %v13735_v47  ;;  %v11507_v53 = vpop.f32.mrf.mxu0 }
 0x171   :  { %v11508_v32 = vadd.f32 %v11507_v53, %v11506_v51 }
 0x172   :  { %v11509_v8 = vpop.f32.mrf.mxu0 }
 0x174   :  { %v11510_v13 = vpop.f32.mrf.mxu0 }
 0x176   :  { %v11512_v5 = vpop.f32.mrf.mxu0 }
 0x177   :  { %12596 = vmatmul.mubr.bf16.gmra.mxu0 %v13254_v36 }
 0x178   :  { %12599 = vmatprep.mubr.msk.bf16.mxu0 %vm13795_vm0, %v13735_v47  ;;  %v11513_v56 = vpop.f32.mrf.mxu0 }
 0x179   :  { %v11514_v48 = vadd.f32 %v11513_v56, %v11512_v5  ;;  %v11511_v56 = vadd.f32 %v11510_v13, %v11509_v8  ;;  %v13260_v8 = vld [vmem:[#allocation4 + $0x270] sm:$0xff]   ;;  %v13261_v13 = vld [vmem:[#allocation4 + $0x2f8] sm:$0xff]  }
 0x17a   :  { %v11515_v24 = vpop.f32.mrf.mxu0 }
 0x17c   :  { %v11516_v46 = vpop.f32.mrf.mxu0 }
 0x17e   :  { %v11518_v50 = vpop.f32.mrf.mxu0 }
 0x17f   :  { %12600 = vmatmul.mubr.bf16.gmra.mxu0 %v14273_v21 }
 0x180   :  { %v11519_v2 = vpop.f32.mrf.mxu0 }
 0x181   :  { %v14297_v61 = vadd.f32 %v11519_v2, %v11518_v50  ;;  %v13256_v2 = vld [vmem:[#allocation4 + $0x2b8] sm:$0xff]  }
 0x182   :  { %v14299_v20 = vpop.f32.mrf.mxu0  ;;  %11787 = vmatprep.subr.bf16.mxu1 %v13256_v2  ;;  %v13262_v2 = vld [vmem:[#allocation4 + $0x2a8] sm:$0xff]  }
 0x183   :  { %11788 = vmatpush3.bf16.msra.mxu1 %v13257_v35  ;;  %v13263_v35 = vld [vmem:[#allocation4 + $0x330] sm:$0xff]  }
 0x184   :  { %v14301_v15 = vpop.f32.mrf.mxu0 }
 0x186   :  { %v11524_v16 = vpop.f32.mrf.mxu0 }
 0x188   :  { %v11525_v0 = vpop.f32.mrf.mxu0 }
 0x189   :  { %v14303_v1 = vadd.f32 %v11525_v0, %v11524_v16 }
 0x18a   :  { %v14305_v34 = vpop.f32.mrf.mxu0 }
 0x18c   :  { %v14307_v47 = vpop.f32.mrf.mxu0 }
 0x18e   :  { %v11530_v44 = vpop.f32.mrf.mxu0 }
 0x190   :  { %v11576_v63 = vpop.f32.mrf.mxu1  ;;  %v11531_v57 = vpop.f32.mrf.mxu0 }
 0x191   :  { %v14309_v37 = vadd.f32 %v11531_v57, %v11530_v44 }
 0x192   :  { %v11577_v21 = vpop.f32.mrf.mxu1  ;;  %v14311_v10 = vpop.f32.mrf.mxu0 }
 0x193   :  { %v11578_v62 = vadd.f32 %v11577_v21, %v11576_v63 }
 0x194   :  { %v11579_v23 = vpop.f32.mrf.mxu1  ;;  %v14313_v51 = vpop.f32.mrf.mxu0 }
 0x195   :  { %v14315_v53 = vadd.f32 %v11578_v62, %v11508_v32  ;;  %v13258_v32 = vld [vmem:[#allocation4 + $0x2b0] sm:$0xff]   ;;  %v13259_v62 = vld [vmem:[#allocation4 + $0x338] sm:$0xff]  }
 0x196   :  { %v11580_v36 = vpop.f32.mrf.mxu1  ;;  %v11536_v5 = vpop.f32.mrf.mxu0  ;;  %11789 = vmatprep.subr.bf16.mxu1 %v13258_v32  ;;  %11857 = vmatprep.subr.bf16.mxu0 %v13259_v62 }
 0x197   :  { %v11581_v50 = vadd.f32 %v11580_v36, %v11579_v23  ;;  %11790 = vmatpush3.bf16.msra.mxu1 %v13260_v8  ;;  %11858 = vmatpush3.bf16.msra.mxu0 %v13261_v13  ;;  %v13268_v8 = vld [vmem:[#allocation4 + $0x260] sm:$0xff]   ;;  %v13269_v13 = vld [vmem:[#allocation4 + $0x2e8] sm:$0xff]  }
 0x198   :  { %v11537_v0 = vpop.f32.mrf.mxu0  ;;  %11791 = vmatprep.subr.bf16.mxu1 %v13262_v2  ;;  %11859 = vmatprep.subr.bf16.mxu0 %v13263_v35  ;;  %v13270_v2 = vld [vmem:[#allocation4 + $0x298] sm:$0xff]   ;;  %v13271_v35 = vld [vmem:[#allocation4 + $0x320] sm:$0xff]  }
 0x199   :  { %v11582_v16 = vpop.f32.mrf.mxu1  ;;  %v14317_v31 = vadd.f32 %v11581_v50, %v11511_v56  ;;  %v14319_v44 = vadd.f32 %v11537_v0, %v11536_v5  ;;  %v11517_v56 = vadd.f32 %v11516_v46, %v11515_v24  ;;  %v13266_v24 = vld [vmem:[#allocation4 + $0x2a0] sm:$0xff]  }
 0x19a   :  { %v14321_v63 = vpop.f32.mrf.mxu0 }
 0x19b   :  { %v11583_v57 = vpop.f32.mrf.mxu1  ;;  %11860 = vmatpush3.bf16.msra.mxu0 %v13265_v41  ;;  %v11523_v41 = vadd.f32 %v14301_v15, %v14299_v20  ;;  %v13274_v20 = vld [vmem:[#allocation4 + $0x290] sm:$0xff]   ;;  %v13275_v15 = vld [vmem:[#allocation4 + $0x318] sm:$0xff]  }
 0x19c   :  { %v11584_v21 = vadd.f32 %v11583_v57, %v11582_v16  ;;  %v14323_v3 = vpop.f32.mrf.mxu0  ;;  %v13264_v57 = vld [vmem:[#allocation4 + $0x268] sm:$0xff]  }
 0x19d   :  { %v11585_v60 = vpop.f32.mrf.mxu1  ;;  %11792 = vmatpush3.bf16.msra.mxu1 %v13264_v57  ;;  %v13272_v57 = vld [vmem:[#allocation4 + $0x258] sm:$0xff]  }
 0x19e   :  { %v14325_v23 = vadd.f32 %v11584_v21, %v11514_v48  ;;  %11793 = vmatprep.subr.bf16.mxu1 %v13266_v24 }
 0x19f   :  { %v11586_v36 = vpop.f32.mrf.mxu1  ;;  %v11542_v5 = vpop.f32.mrf.mxu0 }
 0x1a0   :  { %v11587_v50 = vadd.f32 %v11586_v36, %v11585_v60  ;;  %v13267_v60 = vld [vmem:[#allocation4 + $0x328] sm:$0xff]  }
 0x1a1   :  { %v11588_v16 = vpop.f32.mrf.mxu1  ;;  %v11543_v0 = vpop.f32.mrf.mxu0  ;;  %11861 = vmatprep.subr.bf16.mxu0 %v13267_v60  ;;  %11794 = vmatpush3.bf16.msra.mxu1 %v13268_v8 }
 0x1a2   :  { %v14327_v4 = vadd.f32 %v11587_v50, %v11517_v56  ;;  %v14329_v29 = vadd.f32 %v11543_v0, %v11542_v5  ;;  %11862 = vmatpush3.bf16.msra.mxu0 %v13269_v13  ;;  %11795 = vmatprep.subr.bf16.mxu1 %v13270_v2  ;;  %v13276_v13 = vld [vmem:[#allocation4 + $0x250] sm:$0xff]   ;;  %v11529_v2 = vadd.f32 %v14307_v47, %v14305_v34  ;;  %v13282_v34 = vld [vmem:[#allocation4 + $0x280] sm:$0xff]   ;;  %v13283_v47 = vld [vmem:[#allocation4 + $0x308] sm:$0xff]  }
 0x1a3   :  { %v11589_v48 = vpop.f32.mrf.mxu1  ;;  %v14331_v21 = vpop.f32.mrf.mxu0  ;;  %11863 = vmatprep.subr.bf16.mxu0 %v13271_v35 }
 0x1a4   :  { %v11590_v32 = vadd.f32 %v11589_v48, %v11588_v16  ;;  %v13273_v48 = vld [vmem:[#allocation4 + $0x2e0] sm:$0xff]  }
 0x1a5   :  { %v11591_v46 = vpop.f32.mrf.mxu1  ;;  %v14333_v62 = vpop.f32.mrf.mxu0  ;;  %11796 = vmatpush3.bf16.msra.mxu1 %v13272_v57 }
 0x1a6   :  { %v14336_v36 = vadd.f32 %v11590_v32, %v14297_v61  ;;  %11864 = vmatpush3.bf16.msra.mxu0 %v13273_v48  ;;  %11797 = vmatprep.subr.bf16.mxu1 %v13274_v20 }
 0x1a7   :  { %v11592_v5 = vpop.f32.mrf.mxu1  ;;  %v11548_v56 = vpop.f32.mrf.mxu0  ;;  %11865 = vmatprep.subr.bf16.mxu0 %v13275_v15 }
 0x1a8   :  { %v11593_v50 = vadd.f32 %v11592_v5, %v11591_v46  ;;  %v13277_v5 = vld [vmem:[#allocation4 + $0x2d8] sm:$0xff]  }
 0x1a9   :  { %v11594_v16 = vpop.f32.mrf.mxu1  ;;  %v11549_v0 = vpop.f32.mrf.mxu0  ;;  %11798 = vmatpush3.bf16.msra.mxu1 %v13276_v13 }
 0x1aa   :  { %v14340_v58 = vadd.f32 %v11593_v50, %v11523_v41  ;;  %v14342_v61 = vadd.f32 %v11549_v0, %v11548_v56  ;;  %11866 = vmatpush3.bf16.msra.mxu0 %v13277_v5  ;;  %v13279_v0 = vld [vmem:[#allocation4 + $0x310] sm:$0xff]   ;;  %v13284_v5 = vld [vmem:[#allocation4 + $0x240] sm:$0xff]  }
 0x1ab   :  { %v11595_v32 = vpop.f32.mrf.mxu1  ;;  %v14344_v24 = vpop.f32.mrf.mxu0  ;;  %11867 = vmatprep.subr.bf16.mxu0 %v13279_v0 }
 0x1ac   :  { %v11596_v60 = vadd.f32 %v11595_v32, %v11594_v16  ;;  %v13278_v16 = vld [vmem:[#allocation4 + $0x288] sm:$0xff]  }
 0x1ad   :  { %v11597_v46 = vpop.f32.mrf.mxu1  ;;  %v14346_v8 = vpop.f32.mrf.mxu0  ;;  %v13280_v32 = vld [vmem:[#allocation4 + $0x248] sm:$0xff]   ;;  %11799 = vmatprep.subr.bf16.mxu1 %v13278_v16 }
 0x1ae   :  { %v14349_v41 = vadd.f32 %v11596_v60, %v14303_v1  ;;  %11800 = vmatpush3.bf16.msra.mxu1 %v13280_v32  ;;  %11868 = vmatpush3.bf16.msra.mxu0 %v13281_v14  ;;  %v11535_v14 = vadd.f32 %v14313_v51, %v14311_v10 }
 0x1af   :  { %v11598_v56 = vpop.f32.mrf.mxu1  ;;  %v11554_v50 = vpop.f32.mrf.mxu0  ;;  %11801 = vmatprep.subr.bf16.mxu1 %v13282_v34  ;;  %11869 = vmatprep.subr.bf16.mxu0 %v13283_v47  ;;  %v13288_v34 = vld [vmem:[#allocation4 + $0x300] sm:$0xff]  }
 0x1b0   :  { %v11599_v35 = vadd.f32 %v11598_v56, %v11597_v46  ;;  %v13285_v56 = vld [vmem:[#allocation4 + $0x2c8] sm:$0xff]  }
 0x1b1   :  { %v11600_v57 = vpop.f32.mrf.mxu1  ;;  %v11555_v48 = vpop.f32.mrf.mxu0 }
 0x1b2   :  { %v14353_v59 = vadd.f32 %v11599_v35, %v11529_v2  ;;  %v14355_v1 = vadd.f32 %v11555_v48, %v11554_v50  ;;  %11802 = vmatpush3.bf16.msra.mxu1 %v13284_v5  ;;  %11870 = vmatpush3.bf16.msra.mxu0 %v13285_v56  ;;  %v13289_v5 = vld [vmem:[#allocation4 + $0x2c0] sm:$0xff]  }
 0x1b3   :  { %v11601_v60 = vpop.f32.mrf.mxu1  ;;  %v14357_v20 = vpop.f32.mrf.mxu0  ;;  %11871 = vmatprep.subr.bf16.mxu0 %v13288_v34 }
 0x1b4   :  { %v11602_v15 = vadd.f32 %v11601_v60, %v11600_v57 }
 0x1b5   :  { %v11603_v46 = vpop.f32.mrf.mxu1  ;;  %v14359_v13 = vpop.f32.mrf.mxu0 }
 0x1b6   :  { %v14362_v2 = vadd.f32 %v11602_v15, %v14309_v37  ;;  %11872 = vmatpush3.bf16.msra.mxu0 %v13289_v5 }
 0x1b7   :  { %v11604_v50 = vpop.f32.mrf.mxu1  ;;  %v11646_v35 = vpop.f32.mrf.mxu0 }
 0x1b8   :  { %v11605_v16 = vadd.f32 %v11604_v50, %v11603_v46  ;;  %v11541_v50 = vadd.f32 %v14323_v3, %v14321_v63 }
 0x1b9   :  { %v11606_v0 = vpop.f32.mrf.mxu1  ;;  %v11647_v57 = vpop.f32.mrf.mxu0 }
 0x1ba   :  { %v14366_v48 = vadd.f32 %v11605_v16, %v11535_v14  ;;  %v11648_v32 = vadd.f32 %v11647_v57, %v11646_v35 }
 0x1bb   :  { %v11607_v60 = vpop.f32.mrf.mxu1  ;;  %v11649_v17 = vpop.f32.mrf.mxu0 }
 0x1bc   :  { %v14369_v37 = vadd.f32 %v11648_v32, %v14315_v53  ;;  %v11608_v15 = vadd.f32 %v11607_v60, %v11606_v0 }
 0x1bd   :  { %v11609_v47 = vpop.f32.mrf.mxu1  ;;  %v11650_v33 = vpop.f32.mrf.mxu0 }
 0x1be   :  { %v14372_v56 = vadd.f32 %v11608_v15, %v14319_v44  ;;  %v11651_v10 = vadd.f32 %v11650_v33, %v11649_v17 }
 0x1bf   :  { %v11610_v51 = vpop.f32.mrf.mxu1  ;;  %v11652_v46 = vpop.f32.mrf.mxu0 }
 0x1c0   :  { %v14377_v35 = vadd.f32 %v11651_v10, %v14317_v31  ;;  %v11611_v53 = vadd.f32 %v11610_v51, %v11609_v47  ;;  %v11547_v47 = vadd.f32 %v14333_v62, %v14331_v21 }
 0x1c1   :  { %v11612_v14 = vpop.f32.mrf.mxu1  ;;  %v11653_v16 = vpop.f32.mrf.mxu0 }
 0x1c2   :  { %v14379_v0 = vadd.f32 %v11611_v53, %v11541_v50  ;;  %v11654_v57 = vadd.f32 %v11653_v16, %v11652_v46 }
 0x1c3   :  { %v11613_v32 = vpop.f32.mrf.mxu1  ;;  %v11655_v44 = vpop.f32.mrf.mxu0 }
 0x1c4   :  { %v14382_v33 = vadd.f32 %v11654_v57, %v14325_v23  ;;  %v11614_v17 = vadd.f32 %v11613_v32, %v11612_v14 }
 0x1c5   :  { %v11615_v60 = vpop.f32.mrf.mxu1  ;;  %v11656_v15 = vpop.f32.mrf.mxu0 }
 0x1c6   :  { %v14385_v34 = vadd.f32 %v11614_v17, %v14329_v29  ;;  %v11657_v3 = vadd.f32 %v11656_v15, %v11655_v44  ;;  %v11553_v17 = vadd.f32 %v14346_v8, %v14344_v24 }
 0x1c7   :  { %v11616_v31 = vpop.f32.mrf.mxu1  ;;  %v11658_v63 = vpop.f32.mrf.mxu0 }
 0x1c8   :  { %v14390_v5 = vadd.f32 %v11657_v3, %v14327_v4  ;;  %v11617_v10 = vadd.f32 %v11616_v31, %v11615_v60 }
 0x1c9   :  { %v11618_v51 = vpop.f32.mrf.mxu1  ;;  %v11659_v46 = vpop.f32.mrf.mxu0 }
 0x1ca   :  { %v14392_v23 = vadd.f32 %v11617_v10, %v11547_v47  ;;  %v11660_v50 = vadd.f32 %v11659_v46, %v11658_v63 }
 0x1cb   :  { %v11619_v53 = vpop.f32.mrf.mxu1  ;;  %v11661_v14 = vpop.f32.mrf.mxu0 }
 0x1cc   :  { %v14395_v29 = vadd.f32 %v11660_v50, %v14336_v36  ;;  %v11620_v16 = vadd.f32 %v11619_v53, %v11618_v51 }
 0x1cd   :  { %v11621_v57 = vpop.f32.mrf.mxu1  ;;  %v11662_v32 = vpop.f32.mrf.mxu0 }
 0x1ce   :  { %v14398_v44 = vadd.f32 %v11620_v16, %v14342_v61  ;;  %v11663_v21 = vadd.f32 %v11662_v32, %v11661_v14  ;;  %v11559_v14 = vadd.f32 %v14359_v13, %v14357_v20 }
 0x1cf   :  { %v11622_v4 = vpop.f32.mrf.mxu1  ;;  %v11664_v62 = vpop.f32.mrf.mxu0 }
 0x1d0   :  { %v14403_v60 = vadd.f32 %v11663_v21, %v14340_v58  ;;  %v11623_v15 = vadd.f32 %v11622_v4, %v11621_v57 }
 0x1d1   :  { %v11624_v3 = vpop.f32.mrf.mxu1  ;;  %v11665_v31 = vpop.f32.mrf.mxu0 }
 0x1d2   :  { %v14405_v36 = vadd.f32 %v11623_v15, %v11553_v17  ;;  %v11666_v63 = vadd.f32 %v11665_v31, %v11664_v62 }
 0x1d3   :  { %v11625_v47 = vpop.f32.mrf.mxu1  ;;  %v11667_v10 = vpop.f32.mrf.mxu0 }
 0x1d4   :  { %v14408_v61 = vadd.f32 %v11666_v63, %v14349_v41  ;;  %v11626_v51 = vadd.f32 %v11625_v47, %v11624_v3 }
 0x1d5   :  { %v11627_v46 = vpop.f32.mrf.mxu1  ;;  %v11668_v50 = vpop.f32.mrf.mxu0 }
 0x1d6   :  { %v14411_v53 = vadd.f32 %v11626_v51, %v14355_v1  ;;  %v11669_v24 = vadd.f32 %v11668_v50, %v11667_v10 }
 0x1d7   :  { %v11628_v58 = vpop.f32.mrf.mxu1  ;;  %v11670_v8 = vpop.f32.mrf.mxu0 }
 0x1d8   :  { %v14416_v16 = vadd.f32 %v11669_v24, %v14353_v59  ;;  %v11629_v57 = vadd.f32 %v11628_v58, %v11627_v46 }
 0x1d9   :  { %v11716_v32 = vpop.f32.mrf.mxu1  ;;  %v11671_v21 = vpop.f32.mrf.mxu0 }
 0x1da   :  { %v14418_v41 = vadd.f32 %v11629_v57, %v11559_v14  ;;  %v11672_v4 = vadd.f32 %v11671_v21, %v11670_v8 }
 0x1db   :  { %v11717_v62 = vpop.f32.mrf.mxu1  ;;  %v11673_v17 = vpop.f32.mrf.mxu0 }
 0x1dc   :  { %v14421_v1 = vadd.f32 %v11672_v4, %v14362_v2 }
 0x1dd   :  { %v11719_v15 = vpop.f32.mrf.mxu1  ;;  %v11674_v3 = vpop.f32.mrf.mxu0 }
 0x1de   :  { %v11675_v31 = vadd.f32 %v11674_v3, %v11673_v17 }
 0x1df   :  { %v11720_v63 = vpop.f32.mrf.mxu1  ;;  %v11676_v47 = vpop.f32.mrf.mxu0 }
 0x1e0   :  { %v14424_v20 = vadd.f32 %v11675_v31, %v14366_v48  ;;  %v13316_v48 = vld [vmem:[#allocation4 + $0x3b8] sm:$0xff]  }
 0x1e1   :  { %v11722_v59 = vpop.f32.mrf.mxu1  ;;  %v11677_v13 = vpop.f32.mrf.mxu0  ;;  %11927 = vmatprep.subr.bf16.mxu1 %v13316_v48 }
 0x1e2   :  { %v11678_v10 = vadd.f32 %v11677_v13, %v11676_v47 }
 0x1e3   :  { %v11723_v51 = vpop.f32.mrf.mxu1  ;;  %v11679_v46 = vpop.f32.mrf.mxu0 }
 0x1e4   :  { %v14427_v50 = vadd.f32 %v11678_v10, %v14372_v56 }
 0x1e5   :  { %v14429_v24 = vpop.f32.mrf.mxu1  ;;  %v11680_v2 = vpop.f32.mrf.mxu0 }
 0x1e6   :  { %v11681_v58 = vadd.f32 %v11680_v2, %v11679_v46 }
 0x1e7   :  { %v14431_v8 = vpop.f32.mrf.mxu1  ;;  %v11682_v14 = vpop.f32.mrf.mxu0 }
 0x1e8   :  { %v14434_v57 = vadd.f32 %v11681_v58, %v14379_v0  ;;  %v13325_v58 = vld [vmem:[#allocation4 + $0x438] sm:$0xff]  }
 0x1e9   :  { %v14436_v21 = vpop.f32.mrf.mxu1  ;;  %v11683_v4 = vpop.f32.mrf.mxu0  ;;  %11997 = vmatprep.subr.bf16.mxu0 %v13325_v58  ;;  %v11718_v58 = vadd.f32 %v11717_v62, %v11716_v32  ;;  %v14479_v32 = vld [vmem:[%s16229_s2] ss:$0 sm:$0xff] }
 0x1ea   :  { %v11684_v17 = vadd.f32 %v11683_v4, %v11682_v14 }
 0x1eb   :  { %v14438_v3 = vpop.f32.mrf.mxu1  ;;  %v11685_v56 = vpop.f32.mrf.mxu0  ;;  %v2812_v52 = vadd.f32 %v11718_v58, %v14369_v37 }
 0x1ec   :  { %v14441_v31 = vadd.f32 %v11684_v17, %v14385_v34 }
 0x1ed   :  { %v14443_v47 = vpop.f32.mrf.mxu1  ;;  %v11686_v13 = vpop.f32.mrf.mxu0 }
 0x1ee   :  { %v11687_v10 = vadd.f32 %v11686_v13, %v11685_v56 }
 0x1ef   :  { %v14445_v46 = vpop.f32.mrf.mxu1  ;;  %v11688_v0 = vpop.f32.mrf.mxu0 }
 0x1f0   :  { %v14448_v2 = vadd.f32 %v11687_v10, %v14392_v23 }
 0x1f1   :  { %v14450_v38 = vpop.f32.mrf.mxu1  ;;  %v11689_v14 = vpop.f32.mrf.mxu0 }
 0x1f2   :  { %v11690_v48 = vadd.f32 %v11689_v14, %v11688_v0 }
 0x1f3   :  { %v14452_v4 = vpop.f32.mrf.mxu1  ;;  %v11691_v34 = vpop.f32.mrf.mxu0 }
 0x1f4   :  { %v14455_v17 = vadd.f32 %v11690_v48, %v14398_v44 }
 0x1f5   :  { %v14457_v39 = vpop.f32.mrf.mxu1  ;;  %v11692_v56 = vpop.f32.mrf.mxu0 }
 0x1f6   :  { %v11693_v13 = vadd.f32 %v11692_v56, %v11691_v34  ;;  %v11721_v56 = vadd.f32 %v11720_v63, %v11719_v15  ;;  %v11724_v15 = vadd.f32 %v11723_v51, %v11722_v59 }
 0x1f7   :  { %v14459_v28 = vpop.f32.mrf.mxu1  ;;  %v11694_v23 = vpop.f32.mrf.mxu0 }
 0x1f8   :  { %v14462_v10 = vadd.f32 %v11693_v13, %v14405_v36  ;;  %v2820_v59 = vadd.f32 %v11724_v15, %v14382_v33 }
 0x1f9   :  { %v14464_v40 = vpop.f32.mrf.mxu1  ;;  %v11695_v0 = vpop.f32.mrf.mxu0 }
 0x1fa   :  { %v11696_v14 = vadd.f32 %v11695_v0, %v11694_v23  ;;  %v14487_v23 = vld [vmem:[%s16230_s3] ss:$0 sm:$0xff]  ;;  %v2815_v0 = vadd.f32 %v11721_v56, %v14377_v35  ;;  %v11727_v35 = vadd.f32 %v14431_v8, %v14429_v24  ;;  %v11730_v24 = vadd.f32 %v14438_v3, %v14436_v21 }
 0x1fb   :  { %v14466_v9 = vpop.f32.mrf.mxu1  ;;  %v11697_v11 = vpop.f32.mrf.mxu0 }
 0x1fc   :  { %v14469_v44 = vadd.f32 %v11696_v14, %v14411_v53  ;;  %v2823_v15 = vadd.f32 %v11727_v35, %v14390_v5 }
 0x1fd   :  { %v14471_v48 = vpop.f32.mrf.mxu1  ;;  %v11698_v34 = vpop.f32.mrf.mxu0 }
 0x1fe   :  { %v11699_v12 = vadd.f32 %v11698_v34, %v11697_v11 }
 0x1ff   :  { %v14474_v36 = vpop.f32.mrf.mxu1  ;;  %v2916_v13 = vpop.f32.mrf.mxu0 }
 0x200   :  { %v14482_v62 = vadd.f32 %v11699_v12, %v14418_v41  ;;  %v2917_v53 = vadd.f32 %v2916_v13, %v2812_v52 }
 0x201   :  { %v14489_v11 = vpop.f32.mrf.mxu1  ;;  %v12569_v37 = vpop.f32.mrf.mxu0 }
 0x202   :  { %v2993_v63 = vmul.f32 %v14479_v32, %v2917_v53 }
 0x203   :  { %v14493_v58 = vpop.f32.mrf.mxu1  ;;  %v2919_v14 = vpop.f32.mrf.mxu0 }
 0x204   :  { %v14496_v12 = vadd.f32 %v14487_v23, %v2993_v63  ;;  %v2920_v52 = vadd.f32 %v2919_v14, %v2815_v0 }
 0x205   :  { %v14498_v41 = vpop.f32.mrf.mxu1  ;;  %v12570_v34 = vpop.f32.mrf.mxu0 }
 0x206   :  { %v3051_v13 = vmul.f32 %v14496_v12, %v14496_v12  ;;  %v2994_v37 = vmul.f32 %v14479_v32, %v2920_v52 }
 0x207   :  { %v14506_v51 = vpop.f32.mrf.mxu1  ;;  %v2924_v56 = vpop.f32.mrf.mxu0 }
 0x208   :  { %v3069_v53 = vmul.f32 %v3051_v13, %v14496_v12  ;;  %v14510_v63 = vadd.f32 %v14487_v23, %v2994_v37  ;;  %v2925_v0 = vadd.f32 %v2924_v56, %v2820_v59 }
 0x209   :  { %v14512_v14 = vpop.f32.mrf.mxu1  ;;  %v12573_v34 = vpop.f32.mrf.mxu0 }
 0x20a   :  { %v3087_v42 = vmul.f32 0.044715, %v3069_v53  ;;  %v3052_v52 = vmul.f32 %v14510_v63, %v14510_v63  ;;  %v2995_v33 = vmul.f32 %v14479_v32, %v2925_v0  ;;  %v11733_v0 = vadd.f32 %v14445_v46, %v14443_v47 }
 0x20b   :  { %v14519_v8 = vpop.f32.mrf.mxu1  ;;  %v2927_v13 = vpop.f32.mrf.mxu0 }
 0x20c   :  { %v3105_v37 = vadd.f32 %v3087_v42, %v14496_v12  ;;  %v3070_v59 = vmul.f32 %v3052_v52, %v14510_v63  ;;  %v14525_v56 = vadd.f32 %v14487_v23, %v2995_v33  ;;  %v2928_v53 = vadd.f32 %v2927_v13, %v2823_v15 }
 0x20d   :  { %v11755_v34 = vpop.f32.mrf.mxu1  ;;  %v12574_v43 = vpop.f32.mrf.mxu0  ;;  %v2828_v42 = vadd.f32 %v11730_v24, %v14395_v29  ;;  %v2831_v25 = vadd.f32 %v11733_v0, %v14403_v60  ;;  %v11745_v60 = vadd.f32 %v14474_v36, %v14471_v48 }
 0x20e   :  { %v3123_v27 = vmul.f32 0.7978846, %v3105_v37  ;;  %v3088_v21 = vmul.f32 0.044715, %v3070_v59  ;;  %v3053_v3 = vmul.f32 %v14525_v56, %v14525_v56  ;;  %v2996_v5 = vmul.f32 %v14479_v32, %v2928_v53 }
 0x20f   :  { %v11756_v35 = vpop.f32.mrf.mxu1  ;;  %v2932_v52 = vpop.f32.mrf.mxu0  ;;  %v11736_v37 = vadd.f32 %v14452_v4, %v14450_v38 }
 0x210   :  { %13622 = vtanh.f32 %v3123_v27  ;;  %v3106_v33 = vadd.f32 %v3088_v21, %v14510_v63  ;;  %v3071_v15 = vmul.f32 %v3053_v3, %v14525_v56  ;;  %v14536_v43 = vadd.f32 %v14487_v23, %v2996_v5 }
 0x211   :  { %v2933_v47 = vadd.f32 %v2932_v52, %v2828_v42  ;;  %v11758_v46 = vpop.f32.mrf.mxu1  ;;  %v12577_v13 = vpop.f32.mrf.mxu0  ;;  %v11739_v27 = vadd.f32 %v14459_v28, %v14457_v39  ;;  %v11742_v5 = vadd.f32 %v14466_v9, %v14464_v40  ;;  %v14549_v42 = vld [vmem:[#allocation2 + $0x4] sm:$0xff] }
 0x212   :  { %v3124_v59 = vmul.f32 0.7978846, %v3106_v33  ;;  %v3089_v53 = vmul.f32 0.044715, %v3071_v15  ;;  %v3054_v29 = vmul.f32 %v14536_v43, %v14536_v43  ;;  %v11748_v33 = vadd.f32 %v14493_v58, %v14489_v11 }
 0x213   :  { %v2997_v24 = vmul.f32 %v14479_v32, %v2933_v47  ;;  %v11759_v21 = vpop.f32.mrf.mxu1  ;;  %v2935_v3 = vpop.f32.mrf.mxu0  ;;  %v2839_v13 = vadd.f32 %v11739_v27, %v14416_v16  ;;  %v2844_v58 = vadd.f32 %v11742_v5, %v14421_v1  ;;  %v2847_v16 = vadd.f32 %v11745_v60, %v14424_v20 }
 0x214   :  { %13624 = vtanh.f32 %v3124_v59  ;;  %v3107_v38 = vadd.f32 %v3089_v53, %v14525_v56  ;;  %v2936_v4 = vadd.f32 %v2935_v3, %v2831_v25  ;;  %v3072_v39 = vmul.f32 %v3054_v29, %v14536_v43 }
 0x215   :  { %v14555_v28 = vadd.f32 %v14487_v23, %v2997_v24  ;;  %v11761_v0 = vpop.f32.mrf.mxu1  ;;  %v12578_v52 = vpop.f32.mrf.mxu0  ;;  %v2836_v25 = vadd.f32 %v11736_v37, %v14408_v61  ;;  %v11302_v59 = vpack.c.bf16 %v14549_v42, %v14549_v42  ;;  %v11751_v61 = vadd.f32 %v14506_v51, %v14498_v41 }
 0x216   :  { %v3125_v9 = vmul.f32 0.7978846, %v3107_v38  ;;  %v2998_v40 = vmul.f32 %v14479_v32, %v2936_v4  ;;  %v3090_v15 = vmul.f32 0.044715, %v3072_v39  ;;  %v3033_v27 = vmul.f32 0.5, %v14496_v12 }
 0x217   :  { %v3055_v47 = vmul.f32 %v14555_v28, %v14555_v28  ;;  %v11762_v48 = vpop.f32.mrf.mxu1  ;;  %v2940_v36 = vpop.f32.mrf.mxu0  ;;  %v14580_v1 = vadd.f32 %v11748_v33, %v14427_v50  ;;  %v11754_v41 = vadd.f32 %v14519_v8, %v14512_v14  ;;  %v11757_v5 = vadd.f32 %v11756_v35, %v11755_v34 }
 0x218   :  { %13626 = vtanh.f32 %v3125_v9  ;;  %v14567_v53 = vadd.f32 %v14487_v23, %v2998_v40  ;;  %v2941_v11 = vadd.f32 %v2940_v36, %v2836_v25  ;;  %v3108_v37 = vadd.f32 %v3090_v15, %v14536_v43 }
 0x219   :  { %v3073_v29 = vmul.f32 %v3055_v47, %v14555_v28  ;;  %v11764_v24 = vpop.f32.mrf.mxu1  ;;  %v12581_v3 = vpop.f32.mrf.mxu0  ;;  %v3034_v9 = vmul.f32 0.5, %v14510_v63  ;;  %v3035_v15 = vmul.f32 0.5, %v14525_v56  ;;  %v14590_v14 = vadd.f32 %v11751_v61, %v14434_v57 }
 0x21a   :  { %v3056_v38 = vmul.f32 %v14567_v53, %v14567_v53  ;;  %v2999_v4 = vmul.f32 %v14479_v32, %v2941_v11  ;;  %v3126_v51 = vmul.f32 0.7978846, %v3108_v37  ;;  %v11760_v34 = vadd.f32 %v11759_v21, %v11758_v46 }
 0x21b   :  { %v3091_v39 = vmul.f32 0.044715, %v3073_v29  ;;  %v2943_v52 = vpop.f32.mrf.mxu0  ;;  %v11765_v60 = vpop.f32.mrf.mxu1  ;;  %v14597_v56 = vadd.f32 %v11757_v5, %v14448_v2  ;;  %v14600_v29 = vmul.f32 0.5, %v14536_v43  ;;  %v11763_v3 = vadd.f32 %v11762_v48, %v11761_v0 }
 0x21c   :  { %v3074_v20 = vmul.f32 %v3056_v38, %v14567_v53  ;;  %v3021_v12 = vadd.f32 %v14487_v23, %v2999_v4  ;;  %v2944_v40 = vadd.f32 %v2943_v52, %v2839_v13  ;;  %13628 = vtanh.f32 %v3126_v51 }
 0x21d   :  { %v13623_v25 = vpop.eup %13622  ;;  %v3109_v50 = vadd.f32 %v3091_v39, %v14555_v28  ;;  %v12582_v33 = vpop.f32.mrf.mxu0  ;;  %v14594_v13 = vadd.f32 %v11754_v41, %v14441_v31  ;;  %v14608_v43 = vmul.f32 0.5, %v14555_v28  ;;  %v11766_v5 = vadd.f32 %v11765_v60, %v11764_v24 }
 0x21e   :  { %v3159_v8 = vadd.f32 1.0, %v13623_v25  ;;  %v3092_v35 = vmul.f32 0.044715, %v3074_v20  ;;  %v3057_v63 = vmul.f32 %v3021_v12, %v3021_v12  ;;  %v3000_v36 = vmul.f32 %v14479_v32, %v2944_v40  ;;  %v11767_v46 = vpop.f32.mrf.mxu1 }
 0x21f   :  { %v3127_v47 = vmul.f32 0.7978846, %v3109_v50  ;;  %v2948_v11 = vpop.f32.mrf.mxu0  ;;  %v14612_v50 = vmul.f32 0.5, %v14567_v53  ;;  %v14616_v28 = vadd.f32 %v11763_v3, %v14462_v10  ;;  %v14618_v60 = vmul.f32 0.5, %v3021_v12 }
 0x220   :  { %v3177_v37 = vmul.f32 %v3159_v8, %v3033_v27  ;;  %v3110_v57 = vadd.f32 %v3092_v35, %v14567_v53  ;;  %v3075_v61 = vmul.f32 %v3057_v63, %v3021_v12  ;;  %v3022_v38 = vadd.f32 %v14487_v23, %v3000_v36 }
 0x221   :  { %v13625_v21 = vpop.eup %13624  ;;  %13630 = vtanh.f32 %v3127_v47  ;;  %v2949_v4 = vadd.f32 %v2948_v11, %v2844_v58  ;;  %v12585_v51 = vpop.f32.mrf.mxu0  ;;  %v14605_v27 = vadd.f32 %v11760_v34, %v14455_v17  ;;  %v14624_v47 = vadd.f32 %v11766_v5, %v14469_v44 }
 0x222   :  { %3195 = vst [vmem:[#allocation2 + $0x10] sm:$0xff] %v3177_v37  ;;  %v3160_v31 = vadd.f32 1.0, %v13625_v21  ;;  %v3128_v41 = vmul.f32 0.7978846, %v3110_v57  ;;  %v3093_v2 = vmul.f32 0.044715, %v3075_v61  ;;  %v3058_v39 = vmul.f32 %v3022_v38, %v3022_v38  ;;  %v11768_v58 = vpop.f32.mrf.mxu1 }
 0x223   :  { %v3001_v52 = vmul.f32 %v14479_v32, %v2949_v4  ;;  %v2951_v20 = vpop.f32.mrf.mxu0  ;;  %v14628_v37 = vmul.f32 0.5, %v3022_v38 }
 0x224   :  { %v3178_v0 = vmul.f32 %v3160_v31, %v3034_v9  ;;  %13632 = vtanh.f32 %v3128_v41  ;;  %v3111_v48 = vadd.f32 %v3093_v2, %v3021_v12  ;;  %v2952_v40 = vadd.f32 %v2951_v20, %v2847_v16 }
 0x225   :  { %v13627_v25 = vpop.eup %13626  ;;  %v3076_v33 = vmul.f32 %v3058_v39, %v3022_v38  ;;  %v3023_v17 = vadd.f32 %v14487_v23, %v3001_v52  ;;  %v12586_v8 = vpop.f32.mrf.mxu0  ;;  %v14621_v16 = vadd.f32 %v11768_v58, %v11767_v46 }
 0x226   :  { %3196 = vst [vmem:[#allocation2 + $0x18] sm:$0xff] %v3178_v0  ;;  %v3161_v24 = vadd.f32 1.0, %v13627_v25  ;;  %v3129_v9 = vmul.f32 0.7978846, %v3111_v48  ;;  %v3002_v34 = vmul.f32 %v14479_v32, %v2952_v40 }
 0x227   :  { %v3094_v35 = vmul.f32 0.044715, %v3076_v33  ;;  %v3059_v63 = vmul.f32 %v3023_v17, %v3023_v17  ;;  %v2956_v53 = vpop.f32.mrf.mxu0  ;;  %v14630_v57 = vmul.f32 0.5, %v3023_v17 }
 0x228   :  { %v3179_v36 = vmul.f32 %v3161_v24, %v3035_v15  ;;  %13634 = vtanh.f32 %v3129_v9  ;;  %v3024_v10 = vadd.f32 %v14487_v23, %v3002_v34  ;;  %v2957_v11 = vadd.f32 %v2956_v53, %v14580_v1 }
 0x229   :  { %v3112_v12 = vadd.f32 %v3094_v35, %v3022_v38  ;;  %v3077_v61 = vmul.f32 %v3059_v63, %v3023_v17  ;;  %v12589_v21 = vpop.f32.mrf.mxu0  ;;  %v3214_v46 = vld [vmem:[#allocation2 + $0xb] sm:$0xff]  ;;  %v13629_v4 = vpop.eup %13628 }
 0x22a   :  { %v3340_v3 = vld [vmem:[#allocation2 + $0xc] sm:$0xff]  ;;  %3197 = vst [vmem:[#allocation2 + $0x20] sm:$0xff] %v3179_v36  ;;  %v14632_v51 = vmul.f32 0.5, %v3024_v10  ;;  %v3060_v44 = vmul.f32 %v3024_v10, %v3024_v10  ;;  %v3003_v15 = vmul.f32 %v14479_v32, %v2957_v11  ;;  %v3232_v31 = vmul.f32 %v3214_v46, %v14027_v19 }
 0x22b   :  { %v3448_v41 = vld [vmem:[#allocation2 + $0xd] sm:$0xff]  ;;  %v3162_v1 = vadd.f32 1.0, %v13629_v4  ;;  %v3130_v2 = vmul.f32 0.7978846, %v3112_v12  ;;  %v3095_v5 = vmul.f32 0.044715, %v3077_v61  ;;  %v2959_v38 = vpop.f32.mrf.mxu0  ;;  %v11141_v39 = vpack.c.bf16 %v3340_v3, %v3340_v3 }
 0x22c   :  { %v3078_v52 = vmul.f32 %v3060_v44, %v3024_v10  ;;  %v3025_v20 = vadd.f32 %v14487_v23, %v3003_v15  ;;  %v2960_v0 = vadd.f32 %v2959_v38, %v14590_v14  ;;  %v11123_v48 = vpack.c.bf16 %v3232_v31, %v3232_v31  ;;  %v3573_v58 = vld [vmem:[#allocation2 + $0xf] sm:$0xff] }
 0x22d   :  { %v3180_v40 = vmul.f32 %v3162_v1, %v14600_v29  ;;  %13636 = vtanh.f32 %v3130_v2  ;;  %v3113_v25 = vadd.f32 %v3095_v5, %v3023_v17  ;;  %v12590_v33 = vpop.f32.mrf.mxu0  ;;  %3430 = vst [vmem:[#allocation3 + $0x28] sm:$0xf] %v11141_v39  ;;  %v3466_v8 = vmul.f32 %v3448_v41, %v14137_v26  ;;  %v3574_v53 = vld [vmem:[#allocation2 + $0x17] sm:$0xff] }
 0x22e   :  { %v13631_v24 = vpop.eup %13630  ;;  %v3096_v9 = vmul.f32 0.044715, %v3078_v52  ;;  %v14640_v34 = vmul.f32 0.5, %v3025_v20  ;;  %v3061_v35 = vmul.f32 %v3025_v20, %v3025_v20  ;;  %v3004_v63 = vmul.f32 %v14479_v32, %v2960_v0  ;;  %3322 = vst [vmem:[#allocation3 + $0x24] sm:$0xf] %v11123_v48  ;;  %v3215_v3 = vld [vmem:[#allocation2 + $0x13] sm:$0xff] }
 0x22f   :  { %3198 = vst [vmem:[#allocation2 + $0x28] sm:$0xff] %v3180_v40  ;;  %v3163_v14 = vadd.f32 1.0, %v13631_v24  ;;  %v3131_v36 = vmul.f32 0.7978846, %v3113_v25  ;;  %v2964_v11 = vpop.f32.mrf.mxu0  ;;  %v11159_v29 = vpack.c.bf16 %v3466_v8, %v3466_v8  ;;  %v3591_v17 = vmul.f32 %v3573_v58, %v14015_v55  ;;  %v4293_v25 = vld [vmem:[#allocation3] sm:$0xff] }
 0x230   :  { %v3114_v12 = vadd.f32 %v3096_v9, %v3024_v10  ;;  %v3079_v61 = vmul.f32 %v3061_v35, %v3025_v20  ;;  %v3026_v21 = vadd.f32 %v14487_v23, %v3004_v63  ;;  %v2965_v46 = vadd.f32 %v2964_v11, %v14594_v13  ;;  %6232 = vst [vmem:[#allocation3] sm:$0xf] %v14031_v22 }
 0x231   :  { %v13633_v4 = vpop.eup %13632  ;;  %v3181_v44 = vmul.f32 %v3163_v14, %v14608_v43  ;;  %13638 = vtanh.f32 %v3131_v36  ;;  %v12593_v15 = vpop.f32.mrf.mxu0  ;;  %3556 = vst [vmem:[#allocation3 + $0x2c] sm:$0xf] %v11159_v29  ;;  %v3592_v31 = vmul.f32 %v3574_v53, %v14027_v19  ;;  %v11176_v41 = vpack.c.bf16 %v3591_v17, %v3591_v17  ;;  %v14648_v38 = vld [vmem:[#allocation2 + $0x1b] sm:$0xff]  ;;  %v13317_v53 = vld [vmem:[#allocation4 + $0x378] sm:$0xff]   ;;  %v13324_v29 = vld [vmem:[#allocation4 + $0x3b0] sm:$0xff]  }
 0x232   :  { %v3164_v1 = vadd.f32 1.0, %v13633_v4  ;;  %v3132_v2 = vmul.f32 0.7978846, %v3114_v12  ;;  %v3097_v5 = vmul.f32 0.044715, %v3079_v61  ;;  %v14652_v10 = vadd.f32 %v14621_v16, %v14482_v62  ;;  %v3341_v36 = vld [vmem:[#allocation2 + $0x14] sm:$0xff] }
 0x233   :  { %3199 = vst [vmem:[#allocation2 + $0x30] sm:$0xff] %v3181_v44  ;;  %v3062_v13 = vmul.f32 %v3026_v21, %v3026_v21  ;;  %v3005_v39 = vmul.f32 %v14479_v32, %v2965_v46  ;;  %v2967_v43 = vpop.f32.mrf.mxu0  ;;  %v11177_v52 = vpack.c.bf16 %v3592_v31, %v3592_v31  ;;  %3681 = vst [vmem:[#allocation3 + $0xc] sm:$0xf] %v11176_v41  ;;  %v3342_v11 = vld [vmem:[#allocation2 + $0x1c] sm:$0xff]  ;;  %v14668_v17 = vmul.f32 0.5, %v3026_v21 }
 0x234   :  { %v3233_v0 = vmul.f32 %v3215_v3, %v14013_v54  ;;  %v3182_v48 = vmul.f32 %v3164_v1, %v14612_v50  ;;  %13640 = vtanh.f32 %v3132_v2  ;;  %v3115_v58 = vadd.f32 %v3097_v5, %v3025_v20  ;;  %v13286_v9 = vld [vmem:[#allocation3 + $0x4] ss:$36 sps:$4 sm:$0xff]   ;;  %v3450_v44 = vld [vmem:[#allocation2 + $0x1d] sm:$0xff]  ;;  %v13326_v5 = vld [vmem:[#allocation4 + $0x370] sm:$0xff]  }
 0x235   :  { %v2968_v40 = vadd.f32 %v2967_v43, %v14597_v56  ;;  %v13635_v33 = vpop.eup %13634  ;;  %v3080_v8 = vmul.f32 %v3062_v13, %v3026_v21  ;;  %v14659_v62 = vadd.f32 %v14487_v23, %v3005_v39  ;;  %v12594_v16 = vpop.f32.mrf.mxu0  ;;  %v4298_v24 = vld [vmem:[#allocation3 + $0x24] sm:$0xff]  ;;  %3682 = vst [vmem:[#allocation3 + $0x30] sm:$0xf] %v11177_v52  ;;  %v3234_v35 = vmul.f32 %v14648_v38, %v14025_v18  ;;  %v13331_v52 = vld [vmem:[#allocation4 + $0x3a8] sm:$0xff]  }
 0x236   :  { %v11124_v63 = vpack.c.bf16 %v3233_v0, %v3233_v0  ;;  %3200 = vst [vmem:[#allocation2 + $0x38] sm:$0xff] %v3182_v48  ;;  %v3165_v50 = vadd.f32 1.0, %v13635_v33  ;;  %v3133_v20 = vmul.f32 0.7978846, %v3115_v58  ;;  %6340 = vst [vmem:[#allocation3 + $0x4] sm:$0xf] %v11302_v59  ;;  %v10486_v14 = vcombine.low %v4293_v25, %v4298_v24  ;;  %5405 = vmatprep.mubr.bf16.mxu1 %v13286_v9 }
 0x237   :  { %v3006_v56 = vmul.f32 %v14479_v32, %v2968_v40  ;;  %v3098_v12 = vmul.f32 0.044715, %v3080_v8  ;;  %v3063_v61 = vmul.f32 %v14659_v62, %v14659_v62  ;;  %v2972_v46 = vpop.f32.mrf.mxu0  ;;  %v11125_v3 = vpack.c.bf16 %v3234_v35, %v3234_v35  ;;  %v3449_v4 = vld [vmem:[#allocation2 + $0x15] sm:$0xff]  ;;  %v3575_v33 = vld [vmem:[#allocation2 + $0x1f] sm:$0xff] }
 0x238   :  { %3323 = vst [vmem:[#allocation3 + $0x48] sm:$0xf] %v11124_v63  ;;  %v3183_v22 = vmul.f32 %v3165_v50, %v14618_v60  ;;  %13642 = vtanh.f32 %v3133_v20  ;;  %v2973_v59 = vadd.f32 %v2972_v46, %v14605_v27  ;;  %5406 = vmatmul.mubr.bf16.vlgmr.msra.gmra.mxu1 %v10486_v14  ;;  %v11142_v1 = vpack.c.bf16 %v3341_v36, %v3341_v36  ;;  %v13327_v43 = vld [vmem:[#allocation4 + $0x3f8] sm:$0xff]   ;;  %v13332_v36 = vld [vmem:[#allocation4 + $0x430] sm:$0xff]  }
 0x239   :  { %v14674_v42 = vadd.f32 %v14487_v23, %v3006_v56  ;;  %v3116_v15 = vadd.f32 %v3098_v12, %v3026_v21  ;;  %v3081_v31 = vmul.f32 %v3063_v61, %v14659_v62  ;;  %v12597_v41 = vpop.f32.mrf.mxu0  ;;  %3324 = vst [vmem:[#allocation3 + $0x6c] sm:$0xf] %v11125_v3  ;;  %v11143_v2 = vpack.c.bf16 %v3342_v11, %v3342_v11  ;;  %v13333_v11 = vld [vmem:[#allocation4 + $0x368] sm:$0xff]  }
 0x23a   :  { %11928 = vmatpush3.bf16.msra.mxu1 %v13317_v53  ;;  %v13637_v13 = vpop.eup %13636  ;;  %3201 = vst [vmem:[#allocation2 + $0x40] sm:$0xff] %v3183_v22  ;;  %v14679_v60 = vmul.f32 0.5, %v14659_v62  ;;  %v3007_v27 = vmul.f32 %v14479_v32, %v2973_v59  ;;  %v3467_v21 = vmul.f32 %v3449_v4, %v14150_v30  ;;  %3431 = vst [vmem:[#allocation3 + $0x4c] sm:$0xf] %v11142_v1  ;;  %v4294_v9 = vld [vmem:[#allocation3 + $0x8] sm:$0xff] }
 0x23b   :  { %v3064_v39 = vmul.f32 %v14674_v42, %v14674_v42  ;;  %11929 = vmatprep.subr.bf16.mxu1 %v13324_v29  ;;  %v3166_v0 = vadd.f32 1.0, %v13637_v13  ;;  %v3134_v48 = vmul.f32 0.7978846, %v3116_v15  ;;  %v3099_v58 = vmul.f32 0.044715, %v3081_v31  ;;  %v2975_v40 = vpop.f32.mrf.mxu0 }
 0x23c   :  { %3432 = vst [vmem:[#allocation3 + $0x70] sm:$0xf] %v11143_v2  ;;  %v3468_v25 = vmul.f32 %v3450_v44, %v14152_v45  ;;  %4149 = vst [vmem:[#allocation3 + $0x1c] sm:$0xf] %v11143_v2  ;;  %v14688_v16 = vadd.f32 %v14487_v23, %v3007_v27  ;;  %v2976_v24 = vadd.f32 %v2975_v40, %v14616_v28  ;;  %v4299_v35 = vld [vmem:[#allocation3 + $0x2c] sm:$0xff]  ;;  %v14695_v12 = vmul.f32 0.5, %v14674_v42 }
 0x23d   :  { %v3082_v8 = vmul.f32 %v3064_v39, %v14674_v42  ;;  %v13290_v63 = vld [vmem:[#allocation3 + $0xc] ss:$36 sps:$4 sm:$0xff]   ;;  %v11160_v53 = vpack.c.bf16 %v3467_v21, %v3467_v21  ;;  %v3184_v50 = vmul.f32 %v3166_v0, %v14628_v37  ;;  %13644 = vtanh.f32 %v3134_v48  ;;  %6466 = vst [vmem:[#allocation3 + $0x8] sm:$0xf] %v14154_v49  ;;  %v12598_v56 = vpop.f32.mrf.mxu0  ;;  %v13334_v44 = vld [vmem:[#allocation4 + $0x3f0] sm:$0xff]  }
 0x23e   :  { %v3117_v20 = vadd.f32 %v3099_v58, %v14659_v62  ;;  %v10488_v14 = vcombine.low %v4294_v9, %v4299_v35  ;;  %11930 = vmatpush3.bf16.msra.mxu1 %v13326_v5  ;;  %v13639_v29 = vpop.eup %13638  ;;  %v3065_v61 = vmul.f32 %v14688_v16, %v14688_v16  ;;  %v3008_v37 = vmul.f32 %v14479_v32, %v2976_v24  ;;  %v3576_v62 = vld [vmem:[#allocation2 + $0x27] sm:$0xff]  ;;  %v13338_v49 = vld [vmem:[#allocation4 + $0x3a0] sm:$0xff]   ;;  %v13345_v56 = vld [vmem:[#allocation4 + $0x398] sm:$0xff]  }
 0x23f   :  { %v3100_v28 = vmul.f32 0.044715, %v3082_v8  ;;  %5510 = vmatprep.mubr.bf16.mxu0 %v13290_v63  ;;  %3557 = vst [vmem:[#allocation3 + $0x50] sm:$0xf] %v11160_v53  ;;  %11931 = vmatprep.subr.bf16.mxu1 %v13331_v52  ;;  %3202 = vst [vmem:[#allocation2 + $0x48] sm:$0xff] %v3184_v50  ;;  %v3167_v46 = vadd.f32 1.0, %v13639_v29  ;;  %v2980_v4 = vpop.f32.mrf.mxu0  ;;  %v11161_v22 = vpack.c.bf16 %v3468_v25, %v3468_v25 }
 0x240   :  { %v3135_v3 = vmul.f32 0.7978846, %v3117_v20  ;;  %5511 = vmatmul.mubr.bf16.vlgmr.msra.gmra.mxu0 %v10488_v14  ;;  %v3593_v59 = vmul.f32 %v3575_v33, %v14013_v54  ;;  %v3083_v31 = vmul.f32 %v3065_v61, %v14688_v16  ;;  %v14704_v41 = vadd.f32 %v14487_v23, %v3008_v37  ;;  %v14707_v2 = vld [vmem:[#allocation2 + $0x23] sm:$0xff]  ;;  %v14711_v52 = vld [vmem:[#allocation2 + $0x2b] sm:$0xff]  ;;  %v13340_v48 = vld [vmem:[#allocation4 + $0x360] sm:$0xff]  }
 0x241   :  { %v3118_v15 = vadd.f32 %v3100_v28, %v14674_v42  ;;  %v2981_v1 = vadd.f32 %v2980_v4, %v14624_v47  ;;  %11998 = vmatpush3.bf16.msra.mxu0 %v13327_v43  ;;  %v13339_v5 = vld [vmem:[#allocation4 + $0x428] sm:$0xff]   ;;  %v13641_v13 = vpop.eup %13640  ;;  %v3185_v39 = vmul.f32 %v3167_v46, %v14630_v57  ;;  %v12601_v27 = vpop.f32.mrf.mxu0  ;;  %3558 = vst [vmem:[#allocation3 + $0x74] sm:$0xf] %v11161_v22  ;;  %v14714_v43 = vmul.f32 0.5, %v14688_v16  ;;  %v13294_v53 = vld [vmem:[#allocation3 + $0x48] ss:$36 sps:$4 sm:$0xff]  }
 0x242   :  { %13646 = vtanh.f32 %v3135_v3  ;;  %v3594_v21 = vmul.f32 %v3576_v62, %v14025_v18  ;;  %v11178_v42 = vpack.c.bf16 %v3593_v59, %v3593_v59  ;;  %v3343_v0 = vld [vmem:[#allocation2 + $0x24] sm:$0xff]  ;;  %11999 = vmatprep.subr.bf16.mxu0 %v13332_v36  ;;  %11932 = vmatpush3.bf16.msra.mxu1 %v13333_v11  ;;  %v3168_v47 = vadd.f32 1.0, %v13641_v13  ;;  %v13346_v61 = vld [vmem:[#allocation4 + $0x420] sm:$0xff]   ;;  %v3452_v3 = vld [vmem:[#allocation2 + $0x2d] sm:$0xff] }
 0x243   :  { %v3136_v58 = vmul.f32 0.7978846, %v3118_v15  ;;  %v3101_v40 = vmul.f32 0.044715, %v3083_v31  ;;  %11933 = vmatprep.subr.bf16.mxu1 %v13338_v49  ;;  %3203 = vst [vmem:[#allocation2 + $0x50] sm:$0xff] %v3185_v39  ;;  %v3066_v57 = vmul.f32 %v14704_v41, %v14704_v41  ;;  %v3009_v25 = vmul.f32 %v14479_v32, %v2981_v1  ;;  %v2983_v8 = vpop.f32.mrf.mxu0  ;;  %v13341_v20 = vld [vmem:[#allocation4 + $0x3e8] sm:$0xff]  }
 0x244   :  { %v13292_v33 = vld [vmem:[#allocation3 + $0x4c] ss:$36 sps:$4 sm:$0xff]   ;;  %v11179_v24 = vpack.c.bf16 %v3594_v21, %v3594_v21  ;;  %3683 = vst [vmem:[#allocation3 + $0x54] sm:$0xf] %v11178_v42  ;;  %v3235_v9 = vmul.f32 %v14707_v2, %v14043_v7  ;;  %v3186_v35 = vmul.f32 %v3168_v47, %v14632_v51  ;;  %v2984_v50 = vadd.f32 %v2983_v8, %v14652_v10  ;;  %v3451_v46 = vld [vmem:[#allocation2 + $0x25] sm:$0xff]  ;;  %v3577_v15 = vld [vmem:[#allocation2 + $0x2f] sm:$0xff] }
 0x245   :  { %13648 = vtanh.f32 %v3136_v58  ;;  %v3119_v63 = vadd.f32 %v3101_v40, %v14688_v16  ;;  %12000 = vmatpush3.bf16.msra.mxu0 %v13334_v44  ;;  %v13643_v14 = vpop.eup %13642  ;;  %v3084_v36 = vmul.f32 %v3066_v57, %v14704_v41  ;;  %v14726_v11 = vadd.f32 %v14487_v23, %v3009_v25  ;;  %5413 = vmatprep.mubr.bf16.mxu1 %v13292_v33  ;;  %v12602_v29 = vpop.f32.mrf.mxu0  ;;  %v3344_v16 = vld [vmem:[#allocation2 + $0x2c] sm:$0xff]  ;;  %v3578_v31 = vld [vmem:[#allocation2 + $0x37] sm:$0xff] }
 0x246   :  { %3684 = vst [vmem:[#allocation3 + $0x78] sm:$0xf] %v11179_v24  ;;  %v3236_v51 = vmul.f32 %v14711_v52, %v14041_v6  ;;  %v11126_v28 = vpack.c.bf16 %v3235_v9, %v3235_v9  ;;  %3204 = vst [vmem:[#allocation2 + $0x58] sm:$0xff] %v3186_v35  ;;  %v3169_v10 = vadd.f32 1.0, %v13643_v14  ;;  %5414 = vmatmul.mubr.bf16.gmra.mxu1 %v13294_v53  ;;  %12001 = vmatprep.subr.bf16.mxu0 %v13339_v5  ;;  %v13347_v1 = vld [vmem:[#allocation4 + $0x358] sm:$0xff]   ;;  %v13348_v39 = vld [vmem:[#allocation4 + $0x3e0] sm:$0xff]  }
 0x247   :  { %v3137_v37 = vmul.f32 0.7978846, %v3119_v63  ;;  %v3010_v62 = vmul.f32 %v14479_v32, %v2984_v50  ;;  %v11144_v49 = vpack.c.bf16 %v3343_v0, %v3343_v0  ;;  %v14732_v4 = vmul.f32 0.5, %v14704_v41  ;;  %11934 = vmatpush3.bf16.msra.mxu1 %v13340_v48  ;;  %v13352_v27 = vld [vmem:[#allocation4 + $0x390] sm:$0xff]   ;;  %v13353_v21 = vld [vmem:[#allocation4 + $0x418] sm:$0xff]   ;;  %v14753_v9 = vld [vmem:[#allocation2 + $0x3b] sm:$0xff] }
 0x248   :  { %v3102_v22 = vmul.f32 0.044715, %v3084_v36  ;;  %v3067_v59 = vmul.f32 %v14726_v11, %v14726_v11  ;;  %v11127_v44 = vpack.c.bf16 %v3236_v51, %v3236_v51  ;;  %3325 = vst [vmem:[#allocation3 + $0x90] sm:$0xf] %v11126_v28  ;;  %v3187_v13 = vmul.f32 %v3169_v10, %v14640_v34  ;;  %11935 = vmatprep.subr.bf16.mxu1 %v13345_v56  ;;  %v16372_v48 = vld [vmem:[#allocation28_spill] sm:$0xff]  ;;  %v16373_v34 = vld [vmem:[#allocation29_spill] sm:$0xff] }
 0x249   :  { %13650 = vtanh.f32 %v3137_v37  ;;  %v14738_v32 = vadd.f32 %v14487_v23, %v3010_v62  ;;  %v11145_v5 = vpack.c.bf16 %v3344_v16, %v3344_v16  ;;  %3433 = vst [vmem:[#allocation3 + $0x94] sm:$0xf] %v11144_v49  ;;  %12002 = vmatpush3.bf16.msra.mxu0 %v13341_v20  ;;  %4150 = vst [vmem:[#allocation3 + $0x40] sm:$0xf] %v11144_v49  ;;  %v14744_v40 = vld [vmem:[#allocation2 + $0x33] sm:$0xff]  ;;  %v13354_v57 = vld [vmem:[#allocation4 + $0x350] sm:$0xff]  }
 0x24a   :  { %v3120_v42 = vadd.f32 %v3102_v22, %v14704_v41  ;;  %v3085_v0 = vmul.f32 %v3067_v59, %v14726_v11  ;;  %3326 = vst [vmem:[#allocation3 + $0xb4] sm:$0xf] %v11127_v44  ;;  %v3469_v47 = vmul.f32 %v3451_v46, %v16372_v48  ;;  %v3470_v58 = vmul.f32 %v3452_v3, %v16373_v34  ;;  %v3345_v23 = vld [vmem:[#allocation2 + $0x34] sm:$0xff]  ;;  %v13645_v25 = vpop.eup %13644  ;;  %v3346_v14 = vld [vmem:[#allocation2 + $0x3c] sm:$0xff]  ;;  %v13360_v59 = vld [vmem:[#allocation4 + $0x410] sm:$0xff]  }
 0x24b   :  { %12003 = vmatprep.subr.bf16.mxu0 %v13346_v61  ;;  %3205 = vst [vmem:[#allocation2 + $0x60] sm:$0xff] %v3187_v13  ;;  %v14747_v33 = vmul.f32 0.5, %v14726_v11  ;;  %v3068_v41 = vmul.f32 %v14738_v32, %v14738_v32  ;;  %3434 = vst [vmem:[#allocation3 + $0xb8] sm:$0xf] %v11145_v5  ;;  %v3595_v8 = vmul.f32 %v3577_v15, %v14043_v7  ;;  %v3453_v35 = vld [vmem:[#allocation2 + $0x35] sm:$0xff]  ;;  %v3170_v53 = vadd.f32 1.0, %v13645_v25 }
 0x24c   :  { %v3596_v24 = vmul.f32 %v3578_v31, %v14041_v6  ;;  %v13355_v63 = vld [vmem:[#allocation4 + $0x3d8] sm:$0xff]   ;;  %4151 = vst [vmem:[#allocation3 + $0x64] sm:$0xf] %v11145_v5  ;;  %v3138_v50 = vmul.f32 0.7978846, %v3120_v42  ;;  %v11162_v56 = vpack.c.bf16 %v3469_v47, %v3469_v47  ;;  %11936 = vmatpush3.bf16.msra.mxu1 %v13347_v1  ;;  %v13359_v36 = vld [vmem:[#allocation4 + $0x388] sm:$0xff]   ;;  %v11163_v16 = vpack.c.bf16 %v3470_v58, %v3470_v58 }
 0x24d   :  { %v3103_v20 = vmul.f32 0.044715, %v3085_v0  ;;  %v3086_v29 = vmul.f32 %v3068_v41, %v14738_v32  ;;  %v13295_v51 = vld [vmem:[#allocation3 + $0x54] ss:$36 sps:$4 sm:$0xff]   ;;  %v11180_v61 = vpack.c.bf16 %v3595_v8, %v3595_v8  ;;  %12004 = vmatpush3.bf16.msra.mxu0 %v13348_v39  ;;  %v3188_v37 = vmul.f32 %v3170_v53, %v14668_v17  ;;  %11937 = vmatprep.subr.bf16.mxu1 %v13352_v27  ;;  %v16375_v31 = vld [vmem:[#allocation14_spill] sm:$0xff] }
 0x24e   :  { %v13297_v28 = vld [vmem:[#allocation3 + $0x50] ss:$36 sps:$4 sm:$0xff]   ;;  %v11181_v10 = vpack.c.bf16 %v3596_v24, %v3596_v24  ;;  %13652 = vtanh.f32 %v3138_v50  ;;  %3559 = vst [vmem:[#allocation3 + $0x98] sm:$0xf] %v11162_v56  ;;  %12005 = vmatprep.subr.bf16.mxu0 %v13353_v21  ;;  %5518 = vmatprep.mubr.bf16.mxu0 %v13295_v51  ;;  %3560 = vst [vmem:[#allocation3 + $0xbc] sm:$0xf] %v11163_v16  ;;  %v3238_v17 = vmul.f32 %v14753_v9, %v16375_v31 }
 0x24f   :  { %v3121_v62 = vadd.f32 %v3103_v20, %v14726_v11  ;;  %v16374_v49 = vld [vmem:[#allocation15_spill] sm:$0xff]  ;;  %v13647_v44 = vpop.eup %13646  ;;  %v3104_v15 = vmul.f32 0.044715, %v3086_v29  ;;  %3685 = vst [vmem:[#allocation3 + $0x9c] sm:$0xf] %v11180_v61  ;;  %v11146_v1 = vpack.c.bf16 %v3345_v23, %v3345_v23  ;;  %v11147_v11 = vpack.c.bf16 %v3346_v14, %v3346_v14  ;;  %v14762_v5 = vld [vmem:[#allocation4 + $0x3d0] sm:$0xff]   ;;  %5519 = vmatmul.mubr.bf16.gmra.mxu0 %v13297_v28 }
 0x250   :  { %v3237_v46 = vmul.f32 %v14744_v40, %v16374_v49  ;;  %v3454_v3 = vld [vmem:[#allocation2 + $0x3d] sm:$0xff]  ;;  %3686 = vst [vmem:[#allocation3 + $0xc0] sm:$0xf] %v11181_v10  ;;  %v3580_v13 = vld [vmem:[#allocation2 + $0x47] sm:$0xff]  ;;  %3206 = vst [vmem:[#allocation2 + $0x68] sm:$0xff] %v3188_v37  ;;  %v3171_v39 = vadd.f32 1.0, %v13647_v44  ;;  %11938 = vmatpush3.bf16.msra.mxu1 %v13354_v57  ;;  %v11129_v23 = vpack.c.bf16 %v3238_v17, %v3238_v17 }
 0x251   :  { %v3579_v22 = vld [vmem:[#allocation2 + $0x3f] sm:$0xff]  ;;  %v3139_v42 = vmul.f32 0.7978846, %v3121_v62  ;;  %v3122_v41 = vadd.f32 %v3104_v15, %v14738_v32  ;;  %3435 = vst [vmem:[#allocation3 + $0xdc] sm:$0xf] %v11146_v1  ;;  %v14772_v50 = vld [vmem:[#allocation2 + $0x4b] sm:$0xff]  ;;  %12006 = vmatpush3.bf16.msra.mxu0 %v13355_v63  ;;  %v3598_v16 = vmul.f32 %v3580_v13, %v16375_v31  ;;  %11939 = vmatprep.subr.bf16.mxu1 %v13359_v36 }
 0x252   :  { %v11128_v27 = vpack.c.bf16 %v3237_v46, %v3237_v46  ;;  %v16376_v21 = vld [vmem:[#allocation30_spill] sm:$0xff]  ;;  %v14765_v47 = vld [vmem:[#allocation2 + $0x43] sm:$0xff]  ;;  %3436 = vst [vmem:[#allocation3 + $0x100] sm:$0xf] %v11147_v11  ;;  %v3597_v53 = vmul.f32 %v3579_v22, %v16374_v49  ;;  %v3348_v20 = vld [vmem:[#allocation2 + $0x4c] sm:$0xff]  ;;  %v13649_v57 = vpop.eup %13648  ;;  %v3189_v14 = vmul.f32 %v3171_v39, %v14679_v60  ;;  %12007 = vmatprep.subr.bf16.mxu0 %v13360_v59 }
 0x253   :  { %v3471_v0 = vmul.f32 %v3453_v35, %v16376_v21  ;;  %v3347_v58 = vld [vmem:[#allocation2 + $0x44] sm:$0xff]  ;;  %v14774_v35 = vld [vmem:[#allocation4 + $0x380] sm:$0xff]   ;;  %4152 = vst [vmem:[#allocation3 + $0x88] sm:$0xf] %v11146_v1  ;;  %4153 = vst [vmem:[#allocation3 + $0xac] sm:$0xf] %v11147_v11  ;;  %13654 = vtanh.f32 %v3139_v42  ;;  %v11183_v60 = vpack.c.bf16 %v3598_v16, %v3598_v16  ;;  %v11149_v42 = vpack.c.bf16 %v3348_v20, %v3348_v20 }
 0x254   :  { %v14767_v25 = vld [vmem:[#allocation4 + $0x348] sm:$0xff]   ;;  %3327 = vst [vmem:[#allocation3 + $0xd8] sm:$0xf] %v11128_v27  ;;  %v3172_v61 = vadd.f32 1.0, %v13649_v57  ;;  %v3140_v10 = vmul.f32 0.7978846, %v3122_v41  ;;  %v11182_v37 = vpack.c.bf16 %v3597_v53, %v3597_v53  ;;  %v11148_v36 = vpack.c.bf16 %v3347_v58, %v3347_v58 }
 0x255   :  { %v16377_v8 = vld [vmem:[#allocation31_spill] sm:$0xff]  ;;  %v11164_v28 = vpack.c.bf16 %v3471_v0, %v3471_v0  ;;  %3328 = vst [vmem:[#allocation3 + $0xfc] sm:$0xf] %v11129_v23  ;;  %v3456_v62 = vld [vmem:[#allocation2 + $0x4d] sm:$0xff]  ;;  %3207 = vst [vmem:[#allocation2 + $0x70] sm:$0xff] %v3189_v14  ;;  %12008 = vmatpush3.bf16.msra.mxu0 %v14762_v5  ;;  %11940 = vmatpush3.bf16.msra.mxu1 %v14767_v25 }
 0x256   :  { %v3472_v24 = vmul.f32 %v3454_v3, %v16377_v8  ;;  %v3455_v56 = vld [vmem:[#allocation2 + $0x45] sm:$0xff]  ;;  %v3581_v46 = vld [vmem:[#allocation2 + $0x4f] sm:$0xff]  ;;  %v3582_v59 = vld [vmem:[#allocation2 + $0x57] sm:$0xff]  ;;  %v3190_v39 = vmul.f32 %v3172_v61, %v14695_v12  ;;  %13656 = vtanh.f32 %v3140_v10  ;;  %3687 = vst [vmem:[#allocation3 + $0xe4] sm:$0xf] %v11182_v37  ;;  %v13651_v57 = vpop.eup %13650  ;;  %11941 = vmatprep.subr.bf16.mxu1 %v14774_v35 }
 0x257   :  { %v13298_v29 = vld [vmem:[#allocation3 + $0x94] ss:$36 sps:$4 sm:$0xff]   ;;  %3561 = vst [vmem:[#allocation3 + $0xe0] sm:$0xf] %v11164_v28  ;;  %v16378_v22 = vld [vmem:[#allocation17_spill] sm:$0xff]  ;;  %v13370_v13 = vld [vmem:[#allocation4 + $0x340] sm:$0xff]  }
 0x258   :  { %v13300_v51 = vld [vmem:[#allocation3 + $0x90] ss:$36 sps:$4 sm:$0xff]   ;;  %v11165_v63 = vpack.c.bf16 %v3472_v24, %v3472_v24  ;;  %5421 = vmatprep.mubr.bf16.mxu1 %v13298_v29  ;;  %v3239_v44 = vmul.f32 %v14765_v47, %v16378_v22  ;;  %v16379_v15 = vld [vmem:[#allocation16_spill] sm:$0xff]  ;;  %v14782_v1 = vld [vmem:[#allocation2 + $0x53] sm:$0xff]  ;;  %3688 = vst [vmem:[#allocation3 + $0x108] sm:$0xf] %v11183_v60  ;;  %v3599_v20 = vmul.f32 %v3581_v46, %v16378_v22 }
 0x259   :  { %v13369_v3 = vld [vmem:[#allocation4 + $0x408] sm:$0xff]   ;;  %v3240_v17 = vmul.f32 %v14772_v50, %v16379_v15  ;;  %v3349_v11 = vld [vmem:[#allocation2 + $0x54] sm:$0xff]  ;;  %5422 = vmatmul.mubr.bf16.gmra.mxu1 %v13300_v51  ;;  %v16380_v27 = vld [vmem:[#allocation32_spill] sm:$0xff]  ;;  %3437 = vst [vmem:[#allocation3 + $0x124] sm:$0xf] %v11148_v36  ;;  %v3173_v16 = vadd.f32 1.0, %v13651_v57  ;;  %v3600_v10 = vmul.f32 %v3582_v59, %v16379_v15 }
 0x25a   :  { %3562 = vst [vmem:[#allocation3 + $0x104] sm:$0xf] %v11165_v63  ;;  %v3473_v0 = vmul.f32 %v3455_v56, %v16380_v27  ;;  %v14786_v41 = vld [vmem:[#allocation2 + $0x5b] sm:$0xff]  ;;  %v13301_v14 = vld [vmem:[#allocation3 + $0x9c] ss:$36 sps:$4 sm:$0xff]   ;;  %v11130_v12 = vpack.c.bf16 %v3239_v44, %v3239_v44  ;;  %3208 = vst [vmem:[#allocation2 + $0x78] sm:$0xff] %v3190_v39  ;;  %12009 = vmatprep.subr.bf16.mxu0 %v13369_v3  ;;  %11942 = vmatpush3.bf16.msra.mxu1 %v13370_v13 }
 0x25b   :  { %16381 = vst [vmem:[#allocation28_spill] sm:$0xff] %v14786_v41  ;;  %v3350_v23 = vld [vmem:[#allocation2 + $0x5c] sm:$0xff]  ;;  %v11131_v29 = vpack.c.bf16 %v3240_v17, %v3240_v17  ;;  %v16382_v51 = vld [vmem:[#allocation33_spill] sm:$0xff]  ;;  %4154 = vst [vmem:[#allocation3 + $0xd0] sm:$0xf] %v11148_v36  ;;  %5526 = vmatprep.mubr.bf16.mxu0 %v13301_v14  ;;  %v11150_v36 = vpack.c.bf16 %v3349_v11, %v3349_v11  ;;  %v3191_v57 = vmul.f32 %v3173_v16, %v14714_v43  ;;  %v13653_v43 = vpop.eup %13652 }
 0x25c   :  { %v3457_v24 = vld [vmem:[#allocation2 + $0x55] sm:$0xff]  ;;  %v3458_v53 = vld [vmem:[#allocation2 + $0x5d] sm:$0xff]  ;;  %v3474_v28 = vmul.f32 %v3456_v62, %v16382_v51  ;;  %v13303_v5 = vld [vmem:[#allocation3 + $0x98] ss:$36 sps:$4 sm:$0xff]   ;;  %3438 = vst [vmem:[#allocation3 + $0x148] sm:$0xf] %v11149_v42  ;;  %v11166_v61 = vpack.c.bf16 %v3473_v0, %v3473_v0  ;;  %v11184_v62 = vpack.c.bf16 %v3599_v20, %v3599_v20  ;;  %v11185_v35 = vpack.c.bf16 %v3600_v10, %v3600_v10 }
 0x25d   :  { %v14789_v58 = vld [vmem:[#allocation4 + $0x3c8] sm:$0xff]   ;;  %v14794_v56 = vld [vmem:[#allocation4 + $0x400] sm:$0xff]   ;;  %4155 = vst [vmem:[#allocation3 + $0xf4] sm:$0xf] %v11149_v42  ;;  %3329 = vst [vmem:[#allocation3 + $0x120] sm:$0xf] %v11130_v12  ;;  %5527 = vmatmul.mubr.bf16.gmra.mxu0 %v13303_v5  ;;  %v11151_v42 = vpack.c.bf16 %v3350_v23, %v3350_v23 }
 0x25e   :  { %v16383_v63 = vld [vmem:[#allocation19_spill] sm:$0xff]  ;;  %3330 = vst [vmem:[#allocation3 + $0x144] sm:$0xf] %v11131_v29  ;;  %v11167_v25 = vpack.c.bf16 %v3474_v28, %v3474_v28  ;;  %v16384_v46 = vld [vmem:[#allocation18_spill] sm:$0xff]  ;;  %3563 = vst [vmem:[#allocation3 + $0x128] sm:$0xf] %v11166_v61  ;;  %12010 = vmatpush3.bf16.msra.mxu0 %v14789_v58 }
 0x25f   :  { %v3241_v37 = vmul.f32 %v14782_v1, %v16383_v63  ;;  %v3583_v60 = vld [vmem:[#allocation2 + $0x5f] sm:$0xff]  ;;  %v3584_v44 = vld [vmem:[#allocation2 + $0x67] sm:$0xff]  ;;  %v3242_v17 = vmul.f32 %v14786_v41, %v16384_v46  ;;  %3689 = vst [vmem:[#allocation3 + $0x12c] sm:$0xf] %v11184_v62  ;;  %3439 = vst [vmem:[#allocation3 + $0x16c] sm:$0xf] %v11150_v36  ;;  %12011 = vmatprep.subr.bf16.mxu0 %v14794_v56 }
 0x260   :  { %v14802_v39 = vld [vmem:[#allocation2 + $0x63] sm:$0xff]  ;;  %v13304_v14 = vld [vmem:[#allocation3 + $0xdc] ss:$36 sps:$4 sm:$0xff]   ;;  %3564 = vst [vmem:[#allocation3 + $0x14c] sm:$0xf] %v11167_v25  ;;  %v16385_v28 = vld [vmem:[#allocation34_spill] sm:$0xff]  ;;  %v3601_v41 = vmul.f32 %v3583_v60, %v16383_v63  ;;  %v3602_v23 = vmul.f32 %v3584_v44, %v16384_v46  ;;  %v13655_v46 = vpop.eup %13654 }
 0x261   :  { %v3351_v59 = vld [vmem:[#allocation2 + $0x64] sm:$0xff]  ;;  %v11132_v3 = vpack.c.bf16 %v3241_v37, %v3241_v37  ;;  %v11133_v29 = vpack.c.bf16 %v3242_v17, %v3242_v17  ;;  %v3475_v20 = vmul.f32 %v3457_v24, %v16385_v28  ;;  %v14808_v22 = vld [vmem:[#allocation4 + $0x3c0] sm:$0xff]   ;;  %4156 = vst [vmem:[#allocation3 + $0x118] sm:$0xf] %v11150_v36  ;;  %3209 = vst [vmem:[#allocation2 + $0x80] sm:$0xff] %v3191_v57  ;;  %v3174_v60 = vadd.f32 1.0, %v13653_v43 }
 0x262   :  { %v3459_v0 = vld [vmem:[#allocation2 + $0x65] sm:$0xff]  ;;  %3690 = vst [vmem:[#allocation3 + $0x150] sm:$0xf] %v11185_v35  ;;  %3440 = vst [vmem:[#allocation3 + $0x190] sm:$0xf] %v11151_v42  ;;  %v16387_v5 = vld [vmem:[#allocation21_spill] sm:$0xff]  ;;  %5429 = vmatprep.mubr.bf16.mxu1 %v13304_v14  ;;  %v11186_v17 = vpack.c.bf16 %v3601_v41, %v3601_v41  ;;  %v11187_v35 = vpack.c.bf16 %v3602_v23, %v3602_v23  ;;  %12012 = vmatpush3.bf16.msra.mxu0 %v14808_v22 }
 0x263   :  { %v13306_v12 = vld [vmem:[#allocation3 + $0xd8] ss:$36 sps:$4 sm:$0xff]   ;;  %v16386_v11 = vld [vmem:[#allocation35_spill] sm:$0xff]  ;;  %3331 = vst [vmem:[#allocation3 + $0x168] sm:$0xf] %v11132_v3  ;;  %v3243_v24 = vmul.f32 %v14802_v39, %v16387_v5  ;;  %v11168_v25 = vpack.c.bf16 %v3475_v20, %v3475_v20  ;;  %v14817_v36 = vld [vmem:[#allocation2 + $0x10] sm:$0xff]  ;;  %v3192_v41 = vmul.f32 %v3174_v60, %v14732_v4 }
 0x264   :  { %v3476_v15 = vmul.f32 %v3458_v53, %v16386_v11  ;;  %v14811_v16 = vld [vmem:[#allocation2 + $0x6b] sm:$0xff]  ;;  %v11152_v53 = vpack.c.bf16 %v3351_v59, %v3351_v59  ;;  %4157 = vst [vmem:[#allocation3 + $0x13c] sm:$0xf] %v11151_v42  ;;  %3332 = vst [vmem:[#allocation3 + $0x18c] sm:$0xf] %v11133_v29  ;;  %5430 = vmatmul.mubr.bf16.gmra.mxu1 %v13306_v12  ;;  %v14822_v14 = vld [vmem:[#allocation2 + $0x18] sm:$0xff] }
 0x265   :  { %v3352_v61 = vld [vmem:[#allocation2 + $0x6c] sm:$0xff]  ;;  %v13307_v57 = vld [vmem:[#allocation3 + $0xe4] ss:$36 sps:$4 sm:$0xff]   ;;  %v11134_v58 = vpack.c.bf16 %v3243_v24, %v3243_v24  ;;  %3565 = vst [vmem:[#allocation3 + $0x170] sm:$0xf] %v11168_v25  ;;  %3210 = vst [vmem:[#allocation2 + $0x88] sm:$0xff] %v3192_v41 }
 0x266   :  { %v3460_v10 = vld [vmem:[#allocation2 + $0x6d] sm:$0xff]  ;;  %v11169_v62 = vpack.c.bf16 %v3476_v15, %v3476_v15  ;;  %v11153_v42 = vpack.c.bf16 %v3352_v61, %v3352_v61  ;;  %3441 = vst [vmem:[#allocation3 + $0x1b4] sm:$0xf] %v11152_v53  ;;  %v3808_v15 = vld [vmem:[#allocation2 + $0x19] sm:$0xff]  ;;  %4158 = vst [vmem:[#allocation3 + $0x160] sm:$0xf] %v11152_v53  ;;  %5534 = vmatprep.mubr.bf16.mxu0 %v13307_v57  ;;  %v11194_v57 = vpack.c.bf16 %v14817_v36, %v14817_v36 }
 0x267   :  { %v16388_v37 = vld [vmem:[#allocation36_spill] sm:$0xff]  ;;  %v13309_v59 = vld [vmem:[#allocation3 + $0xe0] ss:$36 sps:$4 sm:$0xff]   ;;  %3691 = vst [vmem:[#allocation3 + $0x174] sm:$0xf] %v11186_v17  ;;  %v14829_v61 = vld [vmem:[#allocation2] sm:$0xff] }
 0x268   :  { %v3477_v13 = vmul.f32 %v3459_v0, %v16388_v37  ;;  %v3585_v44 = vld [vmem:[#allocation2 + $0x6f] sm:$0xff]  ;;  %3566 = vst [vmem:[#allocation3 + $0x194] sm:$0xf] %v11169_v62  ;;  %v3586_v43 = vld [vmem:[#allocation2 + $0x77] sm:$0xff]  ;;  %16391 = vst [vmem:[#allocation44_spill] sm:$0xff] %v14829_v61  ;;  %12603 = vmatprep.subr.bf16.mxu1 %v14829_v61  ;;  %v3175_v62 = vadd.f32 1.0, %v13655_v46  ;;  %5535 = vmatmul.mubr.bf16.gmra.mxu0 %v13309_v59 }
 0x269   :  { %v16389_v3 = vld [vmem:[#allocation20_spill] sm:$0xff]  ;;  %v3807_v29 = vld [vmem:[#allocation2 + $0x11] sm:$0xff]  ;;  %v3603_v23 = vmul.f32 %v3585_v44, %v16387_v5  ;;  %3692 = vst [vmem:[#allocation3 + $0x198] sm:$0xf] %v11187_v35  ;;  %3333 = vst [vmem:[#allocation3 + $0x1b0] sm:$0xf] %v11134_v58 }
 0x26a   :  { %v3244_v0 = vmul.f32 %v14811_v16, %v16389_v3  ;;  %v16390_v56 = vld [vmem:[#allocation37_spill] sm:$0xff]  ;;  %v11170_v20 = vpack.c.bf16 %v3477_v13, %v3477_v13  ;;  %3442 = vst [vmem:[#allocation3 + $0x1d8] sm:$0xf] %v11153_v42  ;;  %v16392_v13 = vld [vmem:[#allocation23_spill] sm:$0xff]  ;;  %4159 = vst [vmem:[#allocation3 + $0x184] sm:$0xf] %v11153_v42  ;;  %v3193_v36 = vmul.f32 %v3175_v62, %v14747_v33 }
 0x26b   :  { %v3478_v12 = vmul.f32 %v3460_v10, %v16390_v56  ;;  %v14827_v37 = vld [vmem:[#allocation2 + $0x73] sm:$0xff]  ;;  %v3604_v10 = vmul.f32 %v3586_v43, %v16389_v3  ;;  %v11188_v44 = vpack.c.bf16 %v3603_v23, %v3603_v23  ;;  %v3701_v35 = vld [vmem:[#allocation2 + $0x20] sm:$0xff]  ;;  %v3050_v58 = vmul.f32 0.5, %v14738_v32  ;;  %v13657_v23 = vpop.eup %13656  ;;  %3789 = vst [vmem:[#allocation3 + $0x10] sm:$0xf] %v11194_v57 }
 0x26c   :  { %v3353_v24 = vld [vmem:[#allocation2 + $0x74] sm:$0xff]  ;;  %v11135_v4 = vpack.c.bf16 %v3244_v0, %v3244_v0  ;;  %v3245_v60 = vmul.f32 %v14827_v37, %v16392_v13  ;;  %3567 = vst [vmem:[#allocation3 + $0x1b8] sm:$0xf] %v11170_v20  ;;  %v3702_v0 = vld [vmem:[#allocation2 + $0x28] sm:$0xff]  ;;  %v11195_v32 = vpack.c.bf16 %v14822_v14, %v14822_v14  ;;  %v16394_v22 = vld [vmem:[#allocation27_spill] sm:$0xff]  ;;  %v3951_v33 = vmul.f32 %v14648_v38, %v14015_v55 }
 0x26d   :  { %v13310_v53 = vld [vmem:[#allocation3 + $0x124] ss:$36 sps:$4 sm:$0xff]   ;;  %v11154_v25 = vpack.c.bf16 %v3353_v24, %v3353_v24  ;;  %v11171_v17 = vpack.c.bf16 %v3478_v12, %v3478_v12  ;;  %v11189_v42 = vpack.c.bf16 %v3604_v10, %v3604_v10  ;;  %v3809_v20 = vld [vmem:[#allocation2 + $0x21] sm:$0xff]  ;;  %3693 = vst [vmem:[#allocation3 + $0x1bc] sm:$0xf] %v11188_v44  ;;  %v3825_v59 = vmul.f32 %v3807_v29, %v16394_v22 }
 0x26e   :  { %v3461_v61 = vld [vmem:[#allocation2 + $0x75] sm:$0xff]  ;;  %5437 = vmatprep.mubr.bf16.mxu1 %v13310_v53  ;;  %3334 = vst [vmem:[#allocation3 + $0x1d4] sm:$0xf] %v11135_v4  ;;  %v11136_v41 = vpack.c.bf16 %v3245_v60, %v3245_v60  ;;  %v3826_v53 = vmul.f32 %v3808_v15, %v14137_v26  ;;  %v3810_v4 = vld [vmem:[#allocation2 + $0x29] sm:$0xff]  ;;  %v3176_v10 = vadd.f32 1.0, %v13657_v23  ;;  %3211 = vst [vmem:[#allocation2 + $0x90] sm:$0xff] %v3193_v36 }
 0x26f   :  { %v13312_v43 = vld [vmem:[#allocation3 + $0x120] ss:$36 sps:$4 sm:$0xff]   ;;  %3443 = vst [vmem:[#allocation3 + $0x1fc] sm:$0xf] %v11154_v25  ;;  %v16393_v46 = vld [vmem:[#allocation38_spill] sm:$0xff]  ;;  %v11212_v15 = vpack.c.bf16 %v3825_v59, %v3825_v59  ;;  %v11196_v44 = vpack.c.bf16 %v3701_v35, %v3701_v35  ;;  %v11197_v57 = vpack.c.bf16 %v3702_v0, %v3702_v0  ;;  %v11230_v36 = vpack.c.bf16 %v3951_v33, %v3951_v33  ;;  %v16396_v55 = vld [vmem:[#allocation39_spill] sm:$0xff] }
 0x270   :  { %v3479_v12 = vmul.f32 %v3461_v61, %v16393_v46  ;;  %4160 = vst [vmem:[#allocation3 + $0x1a8] sm:$0xf] %v11154_v25  ;;  %v13313_v24 = vld [vmem:[#allocation3 + $0x12c] ss:$36 sps:$4 sm:$0xff]   ;;  %3568 = vst [vmem:[#allocation3 + $0x1dc] sm:$0xf] %v11171_v17  ;;  %v3952_v25 = vmul.f32 %v14707_v2, %v14027_v19  ;;  %v11213_v17 = vpack.c.bf16 %v3826_v53, %v3826_v53  ;;  %5438 = vmatmul.mubr.bf16.gmra.mxu1 %v13312_v43 }
 0x271   :  { %v13318_v60 = vld [vmem:[#allocation3 + $0x16c] ss:$36 sps:$4 sm:$0xff]   ;;  %3694 = vst [vmem:[#allocation3 + $0x1e0] sm:$0xf] %v11189_v42  ;;  %3335 = vst [vmem:[#allocation3 + $0x1f8] sm:$0xf] %v11136_v41  ;;  %5542 = vmatprep.mubr.bf16.mxu0 %v13313_v24  ;;  %v3194_v42 = vmul.f32 %v3176_v10, %v3050_v58  ;;  %v3827_v0 = vmul.f32 %v3809_v20, %v14150_v30  ;;  %v3953_v33 = vmul.f32 %v14711_v52, %v14013_v54 }
 0x272   :  { %v11172_v61 = vpack.c.bf16 %v3479_v12, %v3479_v12  ;;  %v13315_v14 = vld [vmem:[#allocation3 + $0x128] ss:$36 sps:$4 sm:$0xff]   ;;  %3790 = vst [vmem:[#allocation3 + $0x34] sm:$0xf] %v11195_v32  ;;  %5445 = vmatprep.mubr.bf16.mxu1 %v13318_v60  ;;  %v13321_v24 = vld [vmem:[#allocation3 + $0x174] ss:$36 sps:$4 sm:$0xff]   ;;  %v11231_v35 = vpack.c.bf16 %v3952_v25, %v3952_v25  ;;  %v3954_v20 = vmul.f32 %v14744_v40, %v14025_v18 }
 0x273   :  { %v14849_v62 = vld [vmem:[#allocation2 + $0x7b] sm:$0xff]  ;;  %3915 = vst [vmem:[#allocation3 + $0x14] sm:$0xf] %v11212_v15  ;;  %3916 = vst [vmem:[#allocation3 + $0x38] sm:$0xf] %v11213_v17  ;;  %v14856_v58 = vld [vmem:[#allocation2 + $0x30] sm:$0xff]  ;;  %5543 = vmatmul.mubr.bf16.gmra.mxu0 %v13315_v14  ;;  %v11214_v52 = vpack.c.bf16 %v3827_v0, %v3827_v0 }
 0x274   :  { %v3354_v29 = vld [vmem:[#allocation2 + $0x7c] sm:$0xff]  ;;  %3569 = vst [vmem:[#allocation3 + $0x200] sm:$0xf] %v11172_v61  ;;  %3791 = vst [vmem:[#allocation3 + $0x58] sm:$0xf] %v11196_v44  ;;  %v3811_v59 = vld [vmem:[#allocation2 + $0x31] sm:$0xff]  ;;  %v3828_v61 = vmul.f32 %v3810_v4, %v14152_v45  ;;  %v11233_v40 = vpack.c.bf16 %v3954_v20, %v3954_v20  ;;  %5550 = vmatprep.mubr.bf16.mxu0 %v13321_v24  ;;  %v11198_v24 = vpack.c.bf16 %v14856_v58, %v14856_v58 }
 0x275   :  { %v16395_v41 = vld [vmem:[#allocation22_spill] sm:$0xff]  ;;  %v11155_v38 = vpack.c.bf16 %v3354_v29, %v3354_v29  ;;  %3792 = vst [vmem:[#allocation3 + $0x7c] sm:$0xf] %v11197_v57  ;;  %3212 = vst [vmem:[#allocation2 + $0x98] sm:$0xff] %v3194_v42  ;;  %v3588_v10 = vld [vmem:[#allocation2 + $0x87] sm:$0xff]  ;;  %v3955_v58 = vmul.f32 %v14753_v9, %v14043_v7 }
 0x276   :  { %v3246_v12 = vmul.f32 %v14849_v62, %v16395_v41  ;;  %v3462_v23 = vld [vmem:[#allocation2 + $0x7d] sm:$0xff]  ;;  %4041 = vst [vmem:[#allocation3 + $0x18] sm:$0xf] %v11230_v36  ;;  %v3606_v15 = vmul.f32 %v3588_v10, %v16395_v41  ;;  %v16397_v44 = vld [vmem:[#allocation25_spill] sm:$0xff]  ;;  %4042 = vst [vmem:[#allocation3 + $0x3c] sm:$0xf] %v11231_v35 }
 0x277   :  { %v3587_v2 = vld [vmem:[#allocation2 + $0x7f] sm:$0xff]  ;;  %v3480_v19 = vmul.f32 %v3462_v23, %v16396_v55  ;;  %3444 = vst [vmem:[#allocation3 + $0x220] sm:$0xf] %v11155_v38  ;;  %4161 = vst [vmem:[#allocation3 + $0x1cc] sm:$0xf] %v11155_v38  ;;  %v11215_v23 = vpack.c.bf16 %v3828_v61, %v3828_v61  ;;  %v16398_v10 = vld [vmem:[#allocation40_spill] sm:$0xff]  ;;  %v3829_v61 = vmul.f32 %v3811_v59, %v16372_v48 }
 0x278   :  { %v3605_v32 = vmul.f32 %v3587_v2, %v16392_v13  ;;  %v14858_v43 = vld [vmem:[#allocation2 + $0x38] sm:$0xff]  ;;  %v11137_v53 = vpack.c.bf16 %v3246_v12, %v3246_v12  ;;  %v14860_v60 = vld [vmem:[#allocation2 + $0x83] sm:$0xff]  ;;  %v11232_v2 = vpack.c.bf16 %v3953_v33, %v3953_v33  ;;  %v14876_v14 = vld [vmem:[#allocation2 + $0x8b] sm:$0xff]  ;;  %3917 = vst [vmem:[#allocation3 + $0x5c] sm:$0xf] %v11214_v52 }
 0x279   :  { %v13320_v25 = vld [vmem:[#allocation3 + $0x168] ss:$36 sps:$4 sm:$0xff]   ;;  %v11173_v29 = vpack.c.bf16 %v3480_v19, %v3480_v19  ;;  %v3247_v57 = vmul.f32 %v14860_v60, %v16397_v44  ;;  %v3355_v4 = vld [vmem:[#allocation2 + $0x84] sm:$0xff]  ;;  %v11191_v19 = vpack.c.bf16 %v3606_v15, %v3606_v15  ;;  %3918 = vst [vmem:[#allocation3 + $0x80] sm:$0xf] %v11215_v23  ;;  %v11199_v0 = vpack.c.bf16 %v14858_v43, %v14858_v43  ;;  %v3589_v52 = vld [vmem:[#allocation2 + $0x8f] sm:$0xff] }
 0x27a   :  { %v11190_v17 = vpack.c.bf16 %v3605_v32, %v3605_v32  ;;  %v3812_v42 = vld [vmem:[#allocation2 + $0x39] sm:$0xff]  ;;  %3336 = vst [vmem:[#allocation3 + $0x21c] sm:$0xf] %v11137_v53  ;;  %v14870_v12 = vld [vmem:[#allocation2 + $0x85] sm:$0xff]  ;;  %v11156_v32 = vpack.c.bf16 %v3355_v4, %v3355_v4  ;;  %4043 = vst [vmem:[#allocation3 + $0x60] sm:$0xf] %v11232_v2  ;;  %5446 = vmatmul.mubr.bf16.gmra.mxu1 %v13320_v25  ;;  %v3607_v2 = vmul.f32 %v3589_v52, %v16397_v44 }
 0x27b   :  { %v13328_v38 = vld [vmem:[#allocation3 + $0x1b4] ss:$36 sps:$4 sm:$0xff]   ;;  %3570 = vst [vmem:[#allocation3 + $0x224] sm:$0xf] %v11173_v29  ;;  %v11138_v36 = vpack.c.bf16 %v3247_v57, %v3247_v57  ;;  %v3481_v35 = vmul.f32 %v14870_v12, %v16398_v10  ;;  %v3356_v53 = vld [vmem:[#allocation2 + $0x8c] sm:$0xff]  ;;  %v3830_v33 = vmul.f32 %v3812_v42, %v16373_v34  ;;  %v3956_v25 = vmul.f32 %v14765_v47, %v14041_v6 }
 0x27c   :  { %3695 = vst [vmem:[#allocation3 + $0x204] sm:$0xf] %v11190_v17  ;;  %v14874_v18 = vld [vmem:[#allocation2 + $0x40] sm:$0xff]  ;;  %4044 = vst [vmem:[#allocation3 + $0x84] sm:$0xf] %v11233_v40  ;;  %v3706_v20 = vld [vmem:[#allocation2 + $0x48] sm:$0xff]  ;;  %v11157_v17 = vpack.c.bf16 %v3356_v53, %v3356_v53  ;;  %v11216_v40 = vpack.c.bf16 %v3829_v61, %v3829_v61  ;;  %5453 = vmatprep.mubr.bf16.mxu1 %v13328_v38 }
 0x27d   :  { %3696 = vst [vmem:[#allocation3 + $0x228] sm:$0xf] %v11191_v19  ;;  %v16399_v29 = vld [vmem:[#allocation24_spill] sm:$0xff]  ;;  %3337 = vst [vmem:[#allocation3 + $0x240] sm:$0xf] %v11138_v36  ;;  %v11174_v4 = vpack.c.bf16 %v3481_v35, %v3481_v35  ;;  %v16400_v59 = vld [vmem:[#allocation41_spill] sm:$0xff]  ;;  %v11217_v19 = vpack.c.bf16 %v3830_v33, %v3830_v33  ;;  %v11235_v33 = vpack.c.bf16 %v3956_v25, %v3956_v25 }
 0x27e   :  { %v3248_v15 = vmul.f32 %v14876_v14, %v16399_v29  ;;  %3445 = vst [vmem:[#allocation3 + $0x244] sm:$0xf] %v11156_v32  ;;  %v3464_v57 = vld [vmem:[#allocation2 + $0x8d] sm:$0xff]  ;;  %v3813_v23 = vld [vmem:[#allocation2 + $0x41] sm:$0xff]  ;;  %4162 = vst [vmem:[#allocation3 + $0x1f0] sm:$0xf] %v11156_v32  ;;  %v11234_v32 = vpack.c.bf16 %v3955_v58, %v3955_v58 }
 0x27f   :  { %v13323_v43 = vld [vmem:[#allocation3 + $0x170] ss:$36 sps:$4 sm:$0xff]   ;;  %v3482_v42 = vmul.f32 %v3464_v57, %v16400_v59  ;;  %3793 = vst [vmem:[#allocation3 + $0xa0] sm:$0xf] %v11198_v24  ;;  %3794 = vst [vmem:[#allocation3 + $0xc4] sm:$0xf] %v11199_v0  ;;  %v11192_v24 = vpack.c.bf16 %v3607_v2, %v3607_v2  ;;  %v11200_v0 = vpack.c.bf16 %v14874_v18, %v14874_v18 }
 0x280   :  { %v3814_v36 = vld [vmem:[#allocation2 + $0x49] sm:$0xff]  ;;  %v11139_v54 = vpack.c.bf16 %v3248_v15, %v3248_v15  ;;  %3446 = vst [vmem:[#allocation3 + $0x268] sm:$0xf] %v11157_v17  ;;  %3571 = vst [vmem:[#allocation3 + $0x248] sm:$0xf] %v11174_v4  ;;  %v3590_v9 = vld [vmem:[#allocation2 + $0x97] sm:$0xff]  ;;  %v11201_v15 = vpack.c.bf16 %v3706_v20, %v3706_v20  ;;  %v3831_v4 = vmul.f32 %v3813_v23, %v16376_v21  ;;  %5551 = vmatmul.mubr.bf16.gmra.mxu0 %v13323_v43 }
 0x281   :  { %v3707_v53 = vld [vmem:[#allocation2 + $0x50] sm:$0xff]  ;;  %4163 = vst [vmem:[#allocation3 + $0x214] sm:$0xf] %v11157_v17  ;;  %v11175_v57 = vpack.c.bf16 %v3482_v42, %v3482_v42  ;;  %v3608_v52 = vmul.f32 %v3590_v9, %v16399_v29  ;;  %3919 = vst [vmem:[#allocation3 + $0xa4] sm:$0xf] %v11216_v40  ;;  %v3708_v38 = vld [vmem:[#allocation2 + $0x58] sm:$0xff]  ;;  %v3832_v47 = vmul.f32 %v3814_v36, %v16377_v8 }
 0x282   :  { %v13335_v35 = vld [vmem:[#allocation3 + $0x1bc] ss:$36 sps:$4 sm:$0xff]   ;;  %3920 = vst [vmem:[#allocation3 + $0xc8] sm:$0xf] %v11217_v19  ;;  %3338 = vst [vmem:[#allocation3 + $0x264] sm:$0xf] %v11139_v54  ;;  %v3957_v18 = vmul.f32 %v14772_v50, %v16374_v49  ;;  %v3958_v54 = vmul.f32 %v14782_v1, %v16375_v31  ;;  %v11202_v40 = vpack.c.bf16 %v3707_v53, %v3707_v53 }
 0x283   :  { %v3815_v61 = vld [vmem:[#allocation2 + $0x51] sm:$0xff]  ;;  %4045 = vst [vmem:[#allocation3 + $0xa8] sm:$0xf] %v11234_v32  ;;  %v3816_v17 = vld [vmem:[#allocation2 + $0x59] sm:$0xff]  ;;  %3572 = vst [vmem:[#allocation3 + $0x26c] sm:$0xf] %v11175_v57  ;;  %v11193_v2 = vpack.c.bf16 %v3608_v52, %v3608_v52  ;;  %5558 = vmatprep.mubr.bf16.mxu0 %v13335_v35  ;;  %v11218_v19 = vpack.c.bf16 %v3831_v4, %v3831_v4  ;;  %v11219_v36 = vpack.c.bf16 %v3832_v47, %v3832_v47 }
 0x284   :  { %v3709_v58 = vld [vmem:[#allocation2 + $0x60] sm:$0xff]  ;;  %3697 = vst [vmem:[#allocation3 + $0x24c] sm:$0xf] %v11192_v24  ;;  %3795 = vst [vmem:[#allocation3 + $0xe8] sm:$0xf] %v11200_v0  ;;  %v3710_v20 = vld [vmem:[#allocation2 + $0x68] sm:$0xff]  ;;  %v11203_v43 = vpack.c.bf16 %v3708_v38, %v3708_v38  ;;  %v3833_v9 = vmul.f32 %v3815_v61, %v16380_v27  ;;  %v11236_v57 = vpack.c.bf16 %v3957_v18, %v3957_v18 }
 0x285   :  { %v13330_v42 = vld [vmem:[#allocation3 + $0x1b0] ss:$36 sps:$4 sm:$0xff]   ;;  %v13342_v23 = vld [vmem:[#allocation3 + $0x1fc] ss:$36 sps:$4 sm:$0xff]   ;;  %4046 = vst [vmem:[#allocation3 + $0xcc] sm:$0xf] %v11235_v33  ;;  %v11237_v52 = vpack.c.bf16 %v3958_v54, %v3958_v54  ;;  %v3834_v50 = vmul.f32 %v3816_v17, %v16382_v51 }
 0x286   :  { %3796 = vst [vmem:[#allocation3 + $0x10c] sm:$0xf] %v11201_v15  ;;  %v3817_v25 = vld [vmem:[#allocation2 + $0x61] sm:$0xff]  ;;  %v3818_v32 = vld [vmem:[#allocation2 + $0x69] sm:$0xff]  ;;  %3698 = vst [vmem:[#allocation3 + $0x270] sm:$0xf] %v11193_v2  ;;  %v11220_v35 = vpack.c.bf16 %v3833_v9, %v3833_v9  ;;  %v11204_v15 = vpack.c.bf16 %v3709_v58, %v3709_v58  ;;  %5454 = vmatmul.mubr.bf16.gmra.mxu1 %v13330_v42  ;;  %v11205_v2 = vpack.c.bf16 %v3710_v20, %v3710_v20 }
 0x287   :  { %3797 = vst [vmem:[#allocation3 + $0x130] sm:$0xf] %v11202_v40  ;;  %v3711_v1 = vld [vmem:[#allocation2 + $0x70] sm:$0xff]  ;;  %v3712_v53 = vld [vmem:[#allocation2 + $0x78] sm:$0xff]  ;;  %3921 = vst [vmem:[#allocation3 + $0xec] sm:$0xf] %v11218_v19  ;;  %v11221_v47 = vpack.c.bf16 %v3834_v50, %v3834_v50  ;;  %v3835_v17 = vmul.f32 %v3817_v25, %v16385_v28  ;;  %v3836_v18 = vmul.f32 %v3818_v32, %v16386_v11  ;;  %5461 = vmatprep.mubr.bf16.mxu1 %v13342_v23 }
 0x288   :  { %3922 = vst [vmem:[#allocation3 + $0x110] sm:$0xf] %v11219_v36  ;;  %3798 = vst [vmem:[#allocation3 + $0x154] sm:$0xf] %v11203_v43  ;;  %v16401_v24 = vld [vmem:[#allocation17_spill] sm:$0xff]  ;;  %v16402_v0 = vld [vmem:[#allocation28_spill] sm:$0xff] }
 0x289   :  { %v3959_v33 = vmul.f32 %v16402_v0, %v16401_v24  ;;  %v16403_v38 = vld [vmem:[#allocation16_spill] sm:$0xff]  ;;  %4047 = vst [vmem:[#allocation3 + $0xf0] sm:$0xf] %v11236_v57  ;;  %4048 = vst [vmem:[#allocation3 + $0x114] sm:$0xf] %v11237_v52  ;;  %v3819_v54 = vld [vmem:[#allocation2 + $0x71] sm:$0xff]  ;;  %v11222_v25 = vpack.c.bf16 %v3835_v17, %v3835_v17  ;;  %v11223_v32 = vpack.c.bf16 %v3836_v18, %v3836_v18 }
 0x28a   :  { %v3960_v61 = vmul.f32 %v14802_v39, %v16403_v38  ;;  %v13337_v4 = vld [vmem:[#allocation3 + $0x1b8] ss:$36 sps:$4 sm:$0xff]   ;;  %v3820_v40 = vld [vmem:[#allocation2 + $0x79] sm:$0xff]  ;;  %3923 = vst [vmem:[#allocation3 + $0x134] sm:$0xf] %v11220_v35  ;;  %v3961_v39 = vmul.f32 %v14811_v16, %v16383_v63  ;;  %v11206_v57 = vpack.c.bf16 %v3711_v1, %v3711_v1  ;;  %v11207_v0 = vpack.c.bf16 %v3712_v53, %v3712_v53  ;;  %v13495_v38 = vld [vmem:[#allocation4 + $0x5f8] sm:$0xff]  }
 0x28b   :  { %v13349_v19 = vld [vmem:[#allocation3 + $0x204] ss:$36 sps:$4 sm:$0xff]   ;;  %v11238_v36 = vpack.c.bf16 %v3959_v33, %v3959_v33  ;;  %3799 = vst [vmem:[#allocation3 + $0x178] sm:$0xf] %v11204_v15  ;;  %v3713_v9 = vld [vmem:[#allocation2 + $0x80] sm:$0xff]  ;;  %v3714_v20 = vld [vmem:[#allocation2 + $0x88] sm:$0xff]  ;;  %5559 = vmatmul.mubr.bf16.gmra.mxu0 %v13337_v4  ;;  %v3963_v1 = vmul.f32 %v14849_v62, %v16387_v5 }
 0x28c   :  { %v11239_v43 = vpack.c.bf16 %v3960_v61, %v3960_v61  ;;  %v16404_v58 = vld [vmem:[#allocation18_spill] sm:$0xff]  ;;  %3924 = vst [vmem:[#allocation3 + $0x158] sm:$0xf] %v11221_v47  ;;  %3800 = vst [vmem:[#allocation3 + $0x19c] sm:$0xf] %v11205_v2  ;;  %v3821_v52 = vld [vmem:[#allocation2 + $0x81] sm:$0xff]  ;;  %v11240_v50 = vpack.c.bf16 %v3961_v39, %v3961_v39  ;;  %v3838_v47 = vmul.f32 %v3820_v40, %v16390_v56  ;;  %5566 = vmatprep.mubr.bf16.mxu0 %v13349_v19 }
 0x28d   :  { %v3962_v42 = vmul.f32 %v14827_v37, %v16404_v58  ;;  %v3822_v23 = vld [vmem:[#allocation2 + $0x89] sm:$0xff]  ;;  %4049 = vst [vmem:[#allocation3 + $0x138] sm:$0xf] %v11238_v36  ;;  %v4167_v16 = vld [vmem:[#allocation2 + $0x1d] sm:$0xff]  ;;  %3925 = vst [vmem:[#allocation3 + $0x17c] sm:$0xf] %v11222_v25  ;;  %v3964_v2 = vmul.f32 %v14860_v60, %v16389_v3  ;;  %v11208_v17 = vpack.c.bf16 %v3713_v9, %v3713_v9 }
 0x28e   :  { %4050 = vst [vmem:[#allocation3 + $0x15c] sm:$0xf] %v11239_v43  ;;  %v16405_v33 = vld [vmem:[#allocation36_spill] sm:$0xff]  ;;  %3926 = vst [vmem:[#allocation3 + $0x1a0] sm:$0xf] %v11223_v32  ;;  %v3948_v18 = vld [vmem:[#allocation2 + $0x93] sm:$0xff]  ;;  %v3839_v36 = vmul.f32 %v3821_v52, %v16393_v46  ;;  %v3840_v43 = vmul.f32 %v3822_v23, %v16396_v55  ;;  %v11225_v39 = vpack.c.bf16 %v3838_v47, %v3838_v47 }
 0x28f   :  { %v11241_v35 = vpack.c.bf16 %v3962_v42, %v3962_v42  ;;  %v3837_v61 = vmul.f32 %v3819_v54, %v16405_v33  ;;  %v4168_v15 = vld [vmem:[#allocation2 + $0x25] sm:$0xff]  ;;  %3801 = vst [vmem:[#allocation3 + $0x1c0] sm:$0xf] %v11206_v57  ;;  %v13356_v53 = vld [vmem:[#allocation3 + $0x244] ss:$36 sps:$4 sm:$0xff]   ;;  %v11209_v54 = vpack.c.bf16 %v3714_v20, %v3714_v20  ;;  %v11242_v42 = vpack.c.bf16 %v3963_v1, %v3963_v1  ;;  %v4171_v19 = vld [vmem:[#allocation2 + $0x3d] sm:$0xff] }
 0x290   :  { %v13344_v37 = vld [vmem:[#allocation3 + $0x1f8] ss:$36 sps:$4 sm:$0xff]   ;;  %4051 = vst [vmem:[#allocation3 + $0x180] sm:$0xf] %v11240_v50  ;;  %3802 = vst [vmem:[#allocation3 + $0x1e4] sm:$0xf] %v11207_v0  ;;  %v11243_v62 = vpack.c.bf16 %v3964_v2, %v3964_v2  ;;  %v3965_v60 = vmul.f32 %v14876_v14, %v16392_v13  ;;  %v11226_v32 = vpack.c.bf16 %v3839_v36, %v3839_v36 }
 0x291   :  { %4052 = vst [vmem:[#allocation3 + $0x1a4] sm:$0xf] %v11241_v35  ;;  %v11224_v4 = vpack.c.bf16 %v3837_v61, %v3837_v61  ;;  %v4169_v40 = vld [vmem:[#allocation2 + $0x2d] sm:$0xff]  ;;  %3803 = vst [vmem:[#allocation3 + $0x208] sm:$0xf] %v11208_v17  ;;  %v4170_v9 = vld [vmem:[#allocation2 + $0x35] sm:$0xff]  ;;  %v11227_v57 = vpack.c.bf16 %v3840_v43, %v3840_v43  ;;  %v3966_v20 = vmul.f32 %v3948_v18, %v16395_v41  ;;  %5462 = vmatmul.mubr.bf16.gmra.mxu1 %v13344_v37 }
 0x292   :  { %v4172_v25 = vld [vmem:[#allocation2 + $0x45] sm:$0xff]  ;;  %3804 = vst [vmem:[#allocation3 + $0x22c] sm:$0xf] %v11209_v54  ;;  %v4173_v52 = vld [vmem:[#allocation2 + $0x4d] sm:$0xff]  ;;  %3928 = vst [vmem:[#allocation3 + $0x1e8] sm:$0xf] %v11225_v39  ;;  %v11244_v50 = vpack.c.bf16 %v3965_v60, %v3965_v60  ;;  %v4185_v0 = vmul.f32 %v4167_v16, %v16394_v22  ;;  %v4186_v14 = vmul.f32 %v4168_v15, %v14137_v26  ;;  %5469 = vmatprep.mubr.bf16.mxu1 %v13356_v53 }
 0x293   :  { %3927 = vst [vmem:[#allocation3 + $0x1c4] sm:$0xf] %v11224_v4  ;;  %v13351_v23 = vld [vmem:[#allocation3 + $0x200] ss:$36 sps:$4 sm:$0xff]   ;;  %4053 = vst [vmem:[#allocation3 + $0x1c8] sm:$0xf] %v11242_v42  ;;  %v4187_v61 = vmul.f32 %v4169_v40, %v14150_v30  ;;  %v11245_v2 = vpack.c.bf16 %v3966_v20, %v3966_v20  ;;  %v4188_v18 = vmul.f32 %v4170_v9, %v14152_v45 }
 0x294   :  { %4054 = vst [vmem:[#allocation3 + $0x1ec] sm:$0xf] %v11243_v62  ;;  %v4074_v35 = vld [vmem:[#allocation2 + $0x94] sm:$0xff]  ;;  %v13365_v1 = vld [vmem:[#allocation3 + $0x24c] ss:$36 sps:$4 sm:$0xff]   ;;  %v4189_v4 = vmul.f32 %v4171_v19, %v16372_v48  ;;  %v11266_v16 = vpack.c.bf16 %v4185_v0, %v4185_v0  ;;  %v11267_v43 = vpack.c.bf16 %v4186_v14, %v4186_v14  ;;  %v4176_v15 = vld [vmem:[#allocation2 + $0x65] sm:$0xff]  ;;  %v4190_v39 = vmul.f32 %v4172_v25, %v16373_v34 }
 0x295   :  { %v4174_v47 = vld [vmem:[#allocation2 + $0x55] sm:$0xff]  ;;  %3929 = vst [vmem:[#allocation3 + $0x20c] sm:$0xf] %v11226_v32  ;;  %3930 = vst [vmem:[#allocation3 + $0x230] sm:$0xf] %v11227_v57  ;;  %v11263_v17 = vpack.c.bf16 %v4074_v35, %v4074_v35  ;;  %v4175_v54 = vld [vmem:[#allocation2 + $0x5d] sm:$0xff]  ;;  %v11268_v40 = vpack.c.bf16 %v4187_v61, %v4187_v61  ;;  %v11269_v53 = vpack.c.bf16 %v4188_v18, %v4188_v18  ;;  %5567 = vmatmul.mubr.bf16.gmra.mxu0 %v13351_v23 }
 0x296   :  { %v3715_v37 = vld [vmem:[#allocation2 + $0x90] sm:$0xff]  ;;  %4055 = vst [vmem:[#allocation3 + $0x210] sm:$0xf] %v11244_v50  ;;  %4056 = vst [vmem:[#allocation3 + $0x234] sm:$0xf] %v11245_v2  ;;  %v11270_v42 = vpack.c.bf16 %v4189_v4, %v4189_v4  ;;  %v4191_v60 = vmul.f32 %v4173_v52, %v16376_v21  ;;  %v4192_v9 = vmul.f32 %v4174_v47, %v16377_v8  ;;  %5574 = vmatprep.mubr.bf16.mxu0 %v13365_v1  ;;  %v3716_v32 = vld [vmem:[#allocation2 + $0x98] sm:$0xff] }
 0x297   :  { %v11210_v36 = vpack.c.bf16 %v3715_v37, %v3715_v37  ;;  %4164 = vst [vmem:[#allocation3 + $0x238] sm:$0xf] %v11263_v17  ;;  %v13358_v62 = vld [vmem:[#allocation3 + $0x240] ss:$36 sps:$4 sm:$0xff]   ;;  %4275 = vst [vmem:[#allocation3 + $0x20] sm:$0xf] %v11266_v16  ;;  %v4193_v19 = vmul.f32 %v4175_v54, %v16380_v27  ;;  %v11271_v57 = vpack.c.bf16 %v4190_v39, %v4190_v39 }
 0x298   :  { %4276 = vst [vmem:[#allocation3 + $0x44] sm:$0xf] %v11267_v43  ;;  %4277 = vst [vmem:[#allocation3 + $0x68] sm:$0xf] %v11268_v40  ;;  %v4194_v25 = vmul.f32 %v4176_v15, %v16382_v51  ;;  %v4198_v20 = vmul.f32 %v14870_v12, %v16390_v56  ;;  %v11211_v23 = vpack.c.bf16 %v3716_v32, %v3716_v32  ;;  %v3823_v50 = vld [vmem:[#allocation2 + $0x91] sm:$0xff]  ;;  %v3824_v35 = vld [vmem:[#allocation2 + $0x99] sm:$0xff] }
 0x299   :  { %3805 = vst [vmem:[#allocation3 + $0x250] sm:$0xf] %v11210_v36  ;;  %4278 = vst [vmem:[#allocation3 + $0x8c] sm:$0xf] %v11269_v53  ;;  %v11272_v0 = vpack.c.bf16 %v4191_v60, %v4191_v60  ;;  %v11273_v52 = vpack.c.bf16 %v4192_v9, %v4192_v9  ;;  %v11274_v14 = vpack.c.bf16 %v4193_v19, %v4193_v19  ;;  %v13362_v61 = vld [vmem:[#allocation3 + $0x14] ss:$36 sps:$4 sm:$0xff]   ;;  %5470 = vmatmul.mubr.bf16.gmra.mxu1 %v13358_v62 }
 0x29a   :  { %4279 = vst [vmem:[#allocation3 + $0xb0] sm:$0xf] %v11270_v42  ;;  %v3841_v47 = vmul.f32 %v3823_v50, %v16398_v10  ;;  %v3842_v1 = vmul.f32 %v3824_v35, %v16400_v59  ;;  %4280 = vst [vmem:[#allocation3 + $0xd4] sm:$0xf] %v11271_v57  ;;  %v11275_v2 = vpack.c.bf16 %v4194_v25, %v4194_v25  ;;  %v13367_v37 = vld [vmem:[#allocation3 + $0x248] ss:$36 sps:$4 sm:$0xff]   ;;  %5615 = vmatprep.mubr.bf16.mxu1 %v13362_v61 }
 0x29b   :  { %v11279_v17 = vpack.c.bf16 %v4198_v20, %v4198_v20  ;;  %3806 = vst [vmem:[#allocation3 + $0x274] sm:$0xf] %v11211_v23  ;;  %4281 = vst [vmem:[#allocation3 + $0xf8] sm:$0xf] %v11272_v0  ;;  %v4300_v4 = vld [vmem:[#allocation3 + $0x34] sm:$0xff]  ;;  %v3949_v36 = vld [vmem:[#allocation2 + $0x9b] sm:$0xff] }
 0x29c   :  { %4282 = vst [vmem:[#allocation3 + $0x11c] sm:$0xf] %v11273_v52  ;;  %4283 = vst [vmem:[#allocation3 + $0x140] sm:$0xf] %v11274_v14  ;;  %v11228_v12 = vpack.c.bf16 %v3841_v47, %v3841_v47  ;;  %v11229_v18 = vpack.c.bf16 %v3842_v1, %v3842_v1  ;;  %v13374_v54 = vld [vmem:[#allocation3 + $0x1c] ss:$36 sps:$4 sm:$0xff]   ;;  %v3967_v15 = vmul.f32 %v3949_v36, %v16397_v44 }
 0x29d   :  { %4284 = vst [vmem:[#allocation3 + $0x164] sm:$0xf] %v11275_v2  ;;  %4288 = vst [vmem:[#allocation3 + $0x1f4] sm:$0xf] %v11279_v17  ;;  %v4075_v16 = vld [vmem:[#allocation2 + $0x9c] sm:$0xff]  ;;  %5575 = vmatmul.mubr.bf16.gmra.mxu0 %v13367_v37  ;;  %v13401_v43 = vld [vmem:[#allocation4 + $0x478] sm:$0xff]  }
 0x29e   :  { %3931 = vst [vmem:[#allocation3 + $0x254] sm:$0xf] %v11228_v12  ;;  %3932 = vst [vmem:[#allocation3 + $0x278] sm:$0xf] %v11229_v18  ;;  %v11264_v40 = vpack.c.bf16 %v4075_v16, %v4075_v16  ;;  %v4295_v53 = vld [vmem:[#allocation3 + $0x10] sm:$0xff]  ;;  %5720 = vmatprep.mubr.bf16.mxu0 %v13374_v54  ;;  %v11246_v42 = vpack.c.bf16 %v3967_v15, %v3967_v15  ;;  %v13407_v60 = vld [vmem:[#allocation4 + $0x470] sm:$0xff]  }
 0x29f   :  { %v10490_v39 = vcombine.low %v4295_v53, %v4300_v4  ;;  %v13376_v62 = vld [vmem:[#allocation3 + $0x5c] ss:$36 sps:$4 sm:$0xff]   ;;  %v4178_v19 = vld [vmem:[#allocation2 + $0x75] sm:$0xff]  ;;  %v4179_v32 = vld [vmem:[#allocation2 + $0x7d] sm:$0xff] }
 0x2a0   :  { %4165 = vst [vmem:[#allocation3 + $0x25c] sm:$0xf] %v11264_v40  ;;  %4057 = vst [vmem:[#allocation3 + $0x258] sm:$0xf] %v11246_v42  ;;  %v4177_v9 = vld [vmem:[#allocation2 + $0x6d] sm:$0xff]  ;;  %v4196_v35 = vmul.f32 %v4178_v19, %v16386_v11  ;;  %v4197_v0 = vmul.f32 %v4179_v32, %v16405_v33  ;;  %v4182_v14 = vld [vmem:[#allocation2 + $0x95] sm:$0xff] }
 0x2a1   :  { %5616 = vmatmul.mubr.bf16.vlgmr.msra.gmra.mxu1 %v10490_v39  ;;  %v13372_v57 = vld [vmem:[#allocation3 + $0x18] ss:$36 sps:$4 sm:$0xff]   ;;  %v13379_v20 = vld [vmem:[#allocation3 + $0x64] ss:$36 sps:$4 sm:$0xff]   ;;  %v4195_v50 = vmul.f32 %v4177_v9, %v16385_v28  ;;  %v4183_v17 = vld [vmem:[#allocation2 + $0x9d] sm:$0xff]  ;;  %v4200_v18 = vmul.f32 %v4182_v14, %v16396_v55 }
 0x2a2   :  { %5623 = vmatprep.mubr.bf16.mxu1 %v13376_v62  ;;  %12604 = vmatpush3.bf16.msra.mxu1 %v13401_v43  ;;  %v4310_v25 = vld [vmem:[#allocation3 + $0x7c] sm:$0xff]  ;;  %v11277_v47 = vpack.c.bf16 %v4196_v35, %v4196_v35  ;;  %v11278_v1 = vpack.c.bf16 %v4197_v0, %v4197_v0  ;;  %v13410_v12 = vld [vmem:[#allocation4 + $0x468] sm:$0xff]   ;;  %v4201_v4 = vmul.f32 %v4183_v17, %v16398_v10  ;;  %v13381_v16 = vld [vmem:[#allocation3 + $0xa4] ss:$36 sps:$4 sm:$0xff]  }
 0x2a3   :  { %v16406_v23 = vld [vmem:[#allocation44_spill] sm:$0xff]  ;;  %v11276_v61 = vpack.c.bf16 %v4195_v50, %v4195_v50  ;;  %v11281_v15 = vpack.c.bf16 %v4200_v18, %v4200_v18  ;;  %v16407_v53 = vld [vmem:[#allocation26_spill] sm:$0xff]  ;;  %v16408_v39 = vld [vmem:[#allocation43_spill] sm:$0xff] }
 0x2a4   :  { %12605 = vmatprep.subr.bf16.mxu1 %v16406_v23  ;;  %v4181_v52 = vld [vmem:[#allocation2 + $0x8d] sm:$0xff]  ;;  %4286 = vst [vmem:[#allocation3 + $0x1ac] sm:$0xf] %v11277_v47  ;;  %4287 = vst [vmem:[#allocation3 + $0x1d0] sm:$0xf] %v11278_v1  ;;  %v11282_v40 = vpack.c.bf16 %v4201_v4, %v4201_v4  ;;  %v13414_v42 = vld [vmem:[#allocation4 + $0x460] sm:$0xff]  }
 0x2a5   :  { %5721 = vmatmul.mubr.bf16.vlgmr.msra.gmra.mxu0 %v13372_v57  ;;  %v4199_v2 = vmul.f32 %v4181_v52, %v16393_v46  ;;  %v4305_v37 = vld [vmem:[#allocation3 + $0x58] sm:$0xff]  ;;  %4285 = vst [vmem:[#allocation3 + $0x188] sm:$0xf] %v11276_v61  ;;  %6969 = vst [vmem:[#allocation3 + $0x27c] sm:$0xf] %v16407_v53  ;;  %v13417_v19 = vld [vmem:[#allocation4 + $0x458] sm:$0xff]  }
 0x2a6   :  { %5728 = vmatprep.mubr.bf16.mxu0 %v13379_v20  ;;  %12606 = vmatpush3.bf16.msra.mxu1 %v13407_v60  ;;  %v10499_v54 = vcombine.low %v4305_v37, %v4310_v25  ;;  %4290 = vst [vmem:[#allocation3 + $0x23c] sm:$0xf] %v11281_v15  ;;  %4291 = vst [vmem:[#allocation3 + $0x260] sm:$0xf] %v11282_v40  ;;  %v13383_v62 = vld [vmem:[#allocation3 + $0x60] ss:$36 sps:$4 sm:$0xff]  }
 0x2a7   :  { %12607 = vmatprep.subr.bf16.mxu1 %v16406_v23  ;;  %v11280_v36 = vpack.c.bf16 %v4199_v2, %v4199_v2  ;;  %v14947_v43 = vld [vmem:[#allocation3 + $0x25c] ss:$36 sps:$4 sm:$0xff]   ;;  %v4320_v60 = vld [vmem:[#allocation3 + $0xc4] sm:$0xff]  ;;  %v13384_v9 = vld [vmem:[#allocation3 + $0xac] ss:$36 sps:$4 sm:$0xff]  }
 0x2a8   :  { %7077 = vst [vmem:[#allocation3 + $0x280] sm:$0xf] %v16408_v39  ;;  %v4315_v32 = vld [vmem:[#allocation3 + $0xa0] sm:$0xff]  ;;  %v13386_v25 = vld [vmem:[#allocation3 + $0xec] ss:$36 sps:$4 sm:$0xff]   ;;  %v13421_v20 = vld [vmem:[#allocation4 + $0x450] sm:$0xff]  }
 0x2a9   :  { %5624 = vmatmul.mubr.bf16.gmra.mxu1 %v10499_v54  ;;  %4289 = vst [vmem:[#allocation3 + $0x218] sm:$0xf] %v11280_v36  ;;  %v10508_v57 = vcombine.low %v4315_v32, %v4320_v60  ;;  %v13388_v35 = vld [vmem:[#allocation3 + $0xa8] ss:$36 sps:$4 sm:$0xff]   ;;  %v13389_v14 = vld [vmem:[#allocation3 + $0xf4] ss:$36 sps:$4 sm:$0xff]  }
 0x2aa   :  { %5631 = vmatprep.mubr.bf16.mxu1 %v13381_v16  ;;  %12608 = vmatpush3.bf16.msra.mxu1 %v13410_v12  ;;  %v16409_v0 = vld [vmem:[#allocation42_spill] sm:$0xff]  ;;  %v13422_v47 = vld [vmem:[#allocation4 + $0x448] sm:$0xff]   ;;  %v13394_v18 = vld [vmem:[#allocation3 + $0x13c] ss:$36 sps:$4 sm:$0xff]  }
 0x2ab   :  { %12609 = vmatprep.subr.bf16.mxu1 %v16406_v23  ;;  %v4330_v52 = vld [vmem:[#allocation3 + $0x10c] sm:$0xff]  ;;  %v13391_v2 = vld [vmem:[#allocation3 + $0x134] ss:$36 sps:$4 sm:$0xff]   ;;  %v13396_v36 = vld [vmem:[#allocation3 + $0x17c] ss:$36 sps:$4 sm:$0xff]  }
 0x2ac   :  { %v4325_v61 = vld [vmem:[#allocation3 + $0xe8] sm:$0xff]  ;;  %v13393_v37 = vld [vmem:[#allocation3 + $0xf0] ss:$36 sps:$4 sm:$0xff]   ;;  %v13398_v16 = vld [vmem:[#allocation3 + $0x138] ss:$36 sps:$4 sm:$0xff]  }
 0x2ad   :  { %5729 = vmatmul.mubr.bf16.gmra.mxu0 %v13383_v62  ;;  %v14953_v50 = vld [vmem:[#allocation3 + $0x260] ss:$36 sps:$4 sm:$0xff]   ;;  %v10517_v1 = vcombine.low %v4325_v61, %v4330_v52  ;;  %v13423_v17 = vld [vmem:[#allocation4 + $0x440] sm:$0xff]   ;;  %v4340_v12 = vld [vmem:[#allocation3 + $0x154] sm:$0xff] }
 0x2ae   :  { %5736 = vmatprep.mubr.bf16.mxu0 %v13384_v9  ;;  %12610 = vmatpush3.bf16.msra.mxu1 %v13414_v42  ;;  %7203 = vst [vmem:[#allocation3 + $0x284] sm:$0xf] %v16409_v0  ;;  %v4335_v4 = vld [vmem:[#allocation3 + $0x130] sm:$0xff]  ;;  %v4350_v15 = vld [vmem:[#allocation3 + $0x19c] sm:$0xff]  ;;  %v13399_v40 = vld [vmem:[#allocation3 + $0x184] ss:$36 sps:$4 sm:$0xff]  }
 0x2af   :  { %12611 = vmatprep.subr.bf16.mxu1 %v16406_v23  ;;  %v10526_v54 = vcombine.low %v4335_v4, %v4340_v12  ;;  %v4345_v53 = vld [vmem:[#allocation3 + $0x178] sm:$0xff]  ;;  %v13402_v42 = vld [vmem:[#allocation3 + $0x1c4] ss:$36 sps:$4 sm:$0xff]   ;;  %v13405_v60 = vld [vmem:[#allocation3 + $0x1cc] ss:$36 sps:$4 sm:$0xff]  }
 0x2b0   :  { %v10535_v39 = vcombine.low %v4345_v53, %v4350_v15  ;;  %v4360_v62 = vld [vmem:[#allocation3 + $0x1e4] sm:$0xff]  ;;  %v13408_v32 = vld [vmem:[#allocation3 + $0x20c] ss:$36 sps:$4 sm:$0xff]   ;;  %v13415_v52 = vld [vmem:[#allocation3 + $0x254] ss:$36 sps:$4 sm:$0xff]  }
 0x2b1   :  { %5632 = vmatmul.mubr.bf16.gmra.mxu1 %v10508_v57  ;;  %v4355_v9 = vld [vmem:[#allocation3 + $0x1c0] sm:$0xff]  ;;  %v13411_v57 = vld [vmem:[#allocation3 + $0x1c8] ss:$36 sps:$4 sm:$0xff]   ;;  %v4375_v61 = vld [vmem:[#allocation3 + $0x250] sm:$0xff] }
 0x2b2   :  { %5639 = vmatprep.mubr.bf16.mxu1 %v13386_v25  ;;  %12612 = vmatpush3.bf16.msra.mxu1 %v13417_v19  ;;  %v10544_v19 = vcombine.low %v4355_v9, %v4360_v62  ;;  %v4370_v25 = vld [vmem:[#allocation3 + $0x22c] sm:$0xff]  ;;  %v13458_v5 = vld [vmem:[#allocation4 + $0x510] sm:$0xff]  }
 0x2b3   :  { %12613 = vmatprep.subr.bf16.mxu1 %v16406_v23  ;;  %v13425_v4 = vld [vmem:[#allocation3 + $0x68] ss:$36 sps:$4 sm:$0xff]   ;;  %v13430_v62 = vld [vmem:[#allocation3 + $0x1d0] ss:$36 sps:$4 sm:$0xff]  }
 0x2b4   :  { %v13429_v15 = vld [vmem:[#allocation3 + $0x188] ss:$36 sps:$4 sm:$0xff]   ;;  %v13446_v46 = vld [vmem:[#allocation4 + $0x528] sm:$0xff]  }
 0x2b5   :  { %5737 = vmatmul.mubr.bf16.gmra.mxu0 %v13388_v35  ;;  %v4365_v35 = vld [vmem:[#allocation3 + $0x208] sm:$0xff]  ;;  %v13462_v28 = vld [vmem:[#allocation4 + $0x508] sm:$0xff]  }
 0x2b6   :  { %5744 = vmatprep.mubr.bf16.mxu0 %v13389_v14  ;;  %12614 = vmatpush3.bf16.msra.mxu1 %v13421_v20  ;;  %v13412_v20 = vld [vmem:[#allocation3 + $0x214] ss:$36 sps:$4 sm:$0xff]   ;;  %v10553_v0 = vcombine.low %v4365_v35, %v4370_v25  ;;  %v13450_v56 = vld [vmem:[#allocation4 + $0x520] sm:$0xff]  }
 0x2b7   :  { %12615 = vmatprep.subr.bf16.mxu1 %v16406_v23  ;;  %v13418_v14 = vld [vmem:[#allocation3 + $0x210] ss:$36 sps:$4 sm:$0xff]  }
 0x2b9   :  { %5640 = vmatmul.mubr.bf16.gmra.mxu1 %v10517_v1 }
 0x2ba   :  { %5647 = vmatprep.mubr.bf16.mxu1 %v13391_v2  ;;  %12616 = vmatpush3.bf16.msra.mxu1 %v13422_v47  ;;  %v4380_v47 = vld [vmem:[#allocation3 + $0x274] sm:$0xff] }
 0x2bb   :  { %12617 = vmatprep.subr.bf16.mxu1 %v16406_v23  ;;  %v13404_v23 = vld [vmem:[#allocation3 + $0x180] ss:$36 sps:$4 sm:$0xff]   ;;  %v10562_v1 = vcombine.low %v4375_v61, %v4380_v47  ;;  %v4376_v2 = vld [vmem:[#allocation3 + $0x258] sm:$0xff] }
 0x2bc   :  { %v13431_v61 = vld [vmem:[#allocation3 + $0x218] ss:$36 sps:$4 sm:$0xff]  }
 0x2bd   :  { %5745 = vmatmul.mubr.bf16.gmra.mxu0 %v13393_v37  ;;  %v13737_v37 = vld [vmem:[#allocation2] sm:$0xff] }
 0x2be   :  { %5752 = vmatprep.mubr.bf16.mxu0 %v13394_v18  ;;  %12618 = vmatpush3.bf16.msra.mxu1 %v13423_v17  ;;  %v4381_v17 = vld [vmem:[#allocation3 + $0x27c] sm:$0xff] }
 0x2bf   :  { %v10564_v12 = vcombine.low %v4376_v2, %v4381_v17  ;;  %v13424_v18 = vld [vmem:[#allocation3 + $0x20] ss:$36 sps:$4 sm:$0xff]  }
 0x2c1   :  { %5648 = vmatmul.mubr.bf16.gmra.mxu1 %v10526_v54  ;;  %v13426_v54 = vld [vmem:[#allocation3 + $0xb0] ss:$36 sps:$4 sm:$0xff]  }
 0x2c2   :  { %5655 = vmatprep.mubr.bf16.mxu1 %v13396_v36  ;;  %v13428_v36 = vld [vmem:[#allocation3 + $0x140] ss:$36 sps:$4 sm:$0xff]  }
 0x2c5   :  { %5753 = vmatmul.mubr.bf16.gmra.mxu0 %v13398_v16 }
 0x2c6   :  { %5760 = vmatprep.mubr.bf16.mxu0 %v13399_v40 }
 0x2c9   :  { %5656 = vmatmul.mubr.bf16.gmra.mxu1 %v10535_v39 }
 0x2ca   :  { %5663 = vmatprep.mubr.bf16.mxu1 %v13402_v42 }
 0x2cd   :  { %5761 = vmatmul.mubr.bf16.gmra.mxu0 %v13404_v23 }
 0x2ce   :  { %5768 = vmatprep.mubr.bf16.mxu0 %v13405_v60 }
 0x2d1   :  { %5664 = vmatmul.mubr.bf16.gmra.mxu1 %v10544_v19 }
 0x2d2   :  { %5671 = vmatprep.mubr.bf16.mxu1 %v13408_v32 }
 0x2d5   :  { %5769 = vmatmul.mubr.bf16.gmra.mxu0 %v13411_v57 }
 0x2d6   :  { %5776 = vmatprep.mubr.bf16.mxu0 %v13412_v20 }
 0x2d9   :  { %5672 = vmatmul.mubr.bf16.gmra.mxu1 %v10553_v0 }
 0x2da   :  { %5679 = vmatprep.mubr.bf16.mxu1 %v13415_v52 }
 0x2dd   :  { %5777 = vmatmul.mubr.bf16.gmra.mxu0 %v13418_v14 }
 0x2de   :  { %5784 = vmatprep.mubr.bf16.mxu0 %v14947_v43  ;;  %v13427_v43 = vld [vmem:[#allocation3 + $0xf8] ss:$36 sps:$4 sm:$0xff]  }
 0x2e1   :  { %5680 = vmatmul.mubr.bf16.gmra.mxu1 %v10562_v1 }
 0x2e2   :  { %12619 = vmatprep.mubr.msk.bf16.mxu1 %vm13795_vm0, %v13737_v37 }
 0x2e5   :  { %5785 = vmatmul.mubr.bf16.gmra.mxu0 %v10564_v12 }
 0x2e9   :  { %12620 = vmatmul.mubr.bf16.vlgmr.msra.gmra.mxu1 %v13424_v18 }
 0x2ea   :  { %12623 = vmatprep.mubr.msk.bf16.mxu1 %vm13795_vm0, %v13737_v37 }
 0x2f1   :  { %12624 = vmatmul.mubr.bf16.gmra.mxu1 %v13425_v4 }
 0x2f2   :  { %12627 = vmatprep.mubr.msk.bf16.mxu1 %vm13795_vm0, %v13737_v37 }
 0x2f8   :  { %v11803_v16 = vpop.f32.mrf.mxu1 }
 0x2f9   :  { %12628 = vmatmul.mubr.bf16.gmra.mxu1 %v13426_v54 }
 0x2fa   :  { %12631 = vmatprep.mubr.msk.bf16.mxu1 %vm13795_vm0, %v13737_v37  ;;  %v11804_v40 = vpop.f32.mrf.mxu1 }
 0x2fb   :  { %v11805_v53 = vadd.f32 %v11804_v40, %v11803_v16 }
 0x2fc   :  { %v11806_v39 = vpop.f32.mrf.mxu1 }
 0x2fe   :  { %v11807_v60 = vpop.f32.mrf.mxu1 }
 0x2ff   :  { %v11808_v25 = vadd.f32 %v11807_v60, %v11806_v39 }
 0x300   :  { %v11873_v42 = vpop.f32.mrf.mxu0 }
 0x301   :  { %12632 = vmatmul.mubr.bf16.gmra.mxu1 %v13427_v43 }
 0x302   :  { %12635 = vmatprep.mubr.msk.bf16.mxu1 %vm13795_vm0, %v13737_v37  ;;  %v11874_v23 = vpop.f32.mrf.mxu0 }
 0x303   :  { %v11875_v9 = vadd.f32 %v11874_v23, %v11873_v42 }
 0x304   :  { %v11876_v19 = vpop.f32.mrf.mxu0 }
 0x305   :  { %v14967_v32 = vadd.f32 %v11875_v9, %v11805_v53 }
 0x306   :  { %v11877_v57 = vpop.f32.mrf.mxu0  ;;  %v11809_v20 = vpop.f32.mrf.mxu1 }
 0x307   :  { %v11878_v35 = vadd.f32 %v11877_v57, %v11876_v19 }
 0x308   :  { %v11810_v0 = vpop.f32.mrf.mxu1 }
 0x309   :  { %12636 = vmatmul.mubr.bf16.gmra.mxu1 %v13428_v36  ;;  %v14970_v52 = vadd.f32 %v11878_v35, %v11808_v25  ;;  %v11811_v14 = vadd.f32 %v11810_v0, %v11809_v20 }
 0x30a   :  { %12639 = vmatprep.mubr.msk.bf16.mxu1 %vm13795_vm0, %v13737_v37  ;;  %v11812_v47 = vpop.f32.mrf.mxu1 }
 0x30c   :  { %v11813_v2 = vpop.f32.mrf.mxu1 }
 0x30d   :  { %v11814_v36 = vadd.f32 %v11813_v2, %v11812_v47 }
 0x30f   :  { %v11879_v1 = vpop.f32.mrf.mxu0 }
 0x311   :  { %12640 = vmatmul.mubr.bf16.gmra.mxu1 %v13429_v15  ;;  %v11880_v17 = vpop.f32.mrf.mxu0 }
 0x312   :  { %12643 = vmatprep.mubr.msk.bf16.mxu1 %vm13795_vm0, %v13737_v37  ;;  %v11881_v12 = vadd.f32 %v11880_v17, %v11879_v1 }
 0x313   :  { %v11882_v18 = vpop.f32.mrf.mxu0 }
 0x314   :  { %v14973_v4 = vadd.f32 %v11881_v12, %v11811_v14 }
 0x315   :  { %v11883_v43 = vpop.f32.mrf.mxu0 }
 0x316   :  { %v11884_v15 = vadd.f32 %v11883_v43, %v11882_v18 }
 0x318   :  { %v14976_v53 = vadd.f32 %v11884_v15, %v11814_v36 }
 0x319   :  { %12644 = vmatmul.mubr.bf16.gmra.mxu1 %v13430_v62  ;;  %v11815_v54 = vpop.f32.mrf.mxu1 }
 0x31a   :  { %12647 = vmatprep.mubr.msk.bf16.mxu1 %vm13795_vm0, %v13737_v37 }
 0x31b   :  { %v11816_v16 = vpop.f32.mrf.mxu1 }
 0x31c   :  { %v11817_v40 = vadd.f32 %v11816_v16, %v11815_v54 }
 0x31d   :  { %v11818_v39 = vpop.f32.mrf.mxu1  ;;  %v11885_v42 = vpop.f32.mrf.mxu0 }
 0x31f   :  { %v11886_v23 = vpop.f32.mrf.mxu0 }
 0x320   :  { %v11887_v62 = vadd.f32 %v11886_v23, %v11885_v42 }
 0x321   :  { %12648 = vmatmul.mubr.bf16.gmra.mxu1 %v13431_v61  ;;  %v11888_v9 = vpop.f32.mrf.mxu0 }
 0x322   :  { %12651 = vmatprep.mubr.msk.bf16.mxu1 %vm13795_vm0, %v13737_v37  ;;  %v11819_v37 = vpop.f32.mrf.mxu1  ;;  %v14978_v19 = vadd.f32 %v11887_v62, %v11817_v40 }
 0x323   :  { %v11889_v25 = vpop.f32.mrf.mxu0  ;;  %v11820_v20 = vadd.f32 %v11819_v37, %v11818_v39 }
 0x324   :  { %v11821_v60 = vpop.f32.mrf.mxu1  ;;  %v11890_v35 = vadd.f32 %v11889_v25, %v11888_v9 }
 0x326   :  { %v11822_v57 = vpop.f32.mrf.mxu1  ;;  %v14980_v61 = vadd.f32 %v11890_v35, %v11820_v20 }
 0x328   :  { %v11824_v0 = vpop.f32.mrf.mxu1  ;;  %v11891_v14 = vpop.f32.mrf.mxu0 }
 0x329   :  { %12652 = vmatmul.mubr.bf16.gmra.mxu1 %v14953_v50  ;;  %v11823_v50 = vadd.f32 %v11822_v57, %v11821_v60 }
 0x32a   :  { %v11825_v47 = vpop.f32.mrf.mxu1  ;;  %v11892_v1 = vpop.f32.mrf.mxu0 }
 0x32b   :  { %v11893_v2 = vadd.f32 %v11892_v1, %v11891_v14  ;;  %v11826_v36 = vadd.f32 %v11825_v47, %v11824_v0 }
 0x32c   :  { %v11894_v12 = vpop.f32.mrf.mxu0 }
 0x32d   :  { %v14982_v18 = vadd.f32 %v11893_v2, %v11823_v50 }
 0x32e   :  { %v11895_v43 = vpop.f32.mrf.mxu0 }
 0x32f   :  { %v11896_v15 = vadd.f32 %v11895_v43, %v11894_v12 }
 0x330   :  { %v11827_v17 = vpop.f32.mrf.mxu1 }
 0x331   :  { %v14984_v42 = vadd.f32 %v11896_v15, %v11826_v36 }
 0x332   :  { %v11828_v54 = vpop.f32.mrf.mxu1 }
 0x333   :  { %v11829_v16 = vadd.f32 %v11828_v54, %v11827_v17  ;;  %v11897_v39 = vpop.f32.mrf.mxu0 }
 0x334   :  { %v11830_v40 = vpop.f32.mrf.mxu1 }
 0x335   :  { %v11898_v23 = vpop.f32.mrf.mxu0 }
 0x336   :  { %v11831_v37 = vpop.f32.mrf.mxu1  ;;  %v11899_v62 = vadd.f32 %v11898_v23, %v11897_v39 }
 0x337   :  { %v11900_v9 = vpop.f32.mrf.mxu0  ;;  %v11832_v50 = vadd.f32 %v11831_v37, %v11830_v40 }
 0x338   :  { %v14986_v57 = vadd.f32 %v11899_v62, %v11829_v16 }
 0x339   :  { %v11901_v20 = vpop.f32.mrf.mxu0 }
 0x33a   :  { %v11833_v60 = vpop.f32.mrf.mxu1  ;;  %v11902_v14 = vadd.f32 %v11901_v20, %v11900_v9 }
 0x33c   :  { %v11834_v25 = vpop.f32.mrf.mxu1  ;;  %v14988_v47 = vadd.f32 %v11902_v14, %v11832_v50 }
 0x33d   :  { %v11835_v35 = vadd.f32 %v11834_v25, %v11833_v60 }
 0x33e   :  { %v11836_v1 = vpop.f32.mrf.mxu1 }
 0x340   :  { %v11903_v0 = vpop.f32.mrf.mxu0  ;;  %v11837_v2 = vpop.f32.mrf.mxu1 }
 0x341   :  { %v11838_v16 = vadd.f32 %v11837_v2, %v11836_v1 }
 0x342   :  { %v11904_v17 = vpop.f32.mrf.mxu0 }
 0x343   :  { %v11905_v12 = vadd.f32 %v11904_v17, %v11903_v0 }
 0x344   :  { %v11906_v43 = vpop.f32.mrf.mxu0 }
 0x345   :  { %v14990_v36 = vadd.f32 %v11905_v12, %v11835_v35 }
 0x346   :  { %v11839_v54 = vpop.f32.mrf.mxu1  ;;  %v11907_v39 = vpop.f32.mrf.mxu0 }
 0x347   :  { %v11908_v62 = vadd.f32 %v11907_v39, %v11906_v43 }
 0x348   :  { %v11840_v15 = vpop.f32.mrf.mxu1 }
 0x349   :  { %v11841_v23 = vadd.f32 %v11840_v15, %v11839_v54  ;;  %v14992_v37 = vadd.f32 %v11908_v62, %v11838_v16 }
 0x34a   :  { %v11842_v59 = vpop.f32.mrf.mxu1 }
 0x34b   :  { %v11909_v40 = vpop.f32.mrf.mxu0 }
 0x34c   :  { %v11843_v60 = vpop.f32.mrf.mxu1 }
 0x34d   :  { %v11910_v9 = vpop.f32.mrf.mxu0  ;;  %v11844_v35 = vadd.f32 %v11843_v60, %v11842_v59 }
 0x34e   :  { %v11911_v25 = vadd.f32 %v11910_v9, %v11909_v40 }
 0x34f   :  { %v11912_v50 = vpop.f32.mrf.mxu0 }
 0x350   :  { %v14994_v14 = vadd.f32 %v11911_v25, %v11841_v23 }
 0x351   :  { %v11845_v20 = vpop.f32.mrf.mxu1  ;;  %v11913_v17 = vpop.f32.mrf.mxu0 }
 0x352   :  { %v11914_v29 = vadd.f32 %v11913_v17, %v11912_v50  ;;  %v13434_v17 = vld [vmem:[#allocation4 + $0x4b8] sm:$0xff]  }
 0x353   :  { %v11846_v0 = vpop.f32.mrf.mxu1 }
 0x354   :  { %v11847_v12 = vadd.f32 %v11846_v0, %v11845_v20  ;;  %v14996_v2 = vadd.f32 %v11914_v29, %v11844_v35  ;;  %v13433_v0 = vld [vmem:[#allocation4 + $0x4f8] sm:$0xff]  }
 0x355   :  { %v11848_v10 = vpop.f32.mrf.mxu1  ;;  %v11915_v1 = vpop.f32.mrf.mxu0  ;;  %12084 = vmatprep.subr.bf16.mxu0 %v13433_v0  ;;  %v13435_v0 = vld [vmem:[#allocation4 + $0x4f0] sm:$0xff]  }
 0x356   :  { %12085 = vmatpush3.bf16.msra.mxu0 %v13434_v17  ;;  %v13436_v17 = vld [vmem:[#allocation4 + $0x578] sm:$0xff]  }
 0x357   :  { %v11849_v54 = vpop.f32.mrf.mxu1  ;;  %v11916_v43 = vpop.f32.mrf.mxu0  ;;  %12086 = vmatprep.subr.bf16.mxu0 %v13435_v0  ;;  %12154 = vmatprep.subr.bf16.mxu1 %v13436_v17  ;;  %v13444_v17 = vld [vmem:[#allocation4 + $0x568] sm:$0xff]  }
 0x358   :  { %v11917_v15 = vadd.f32 %v11916_v43, %v11915_v1  ;;  %v11850_v23 = vadd.f32 %v11849_v54, %v11848_v10 }
 0x359   :  { %v11851_v39 = vpop.f32.mrf.mxu1  ;;  %v11918_v16 = vpop.f32.mrf.mxu0 }
 0x35a   :  { %v14998_v62 = vadd.f32 %v11917_v15, %v11847_v12 }
 0x35b   :  { %v11852_v40 = vpop.f32.mrf.mxu1  ;;  %v11919_v9 = vpop.f32.mrf.mxu0 }
 0x35c   :  { %v11853_v25 = vadd.f32 %v11852_v40, %v11851_v39  ;;  %v11920_v44 = vadd.f32 %v11919_v9, %v11918_v16 }
 0x35d   :  { %v11854_v55 = vpop.f32.mrf.mxu1  ;;  %v11921_v59 = vpop.f32.mrf.mxu0 }
 0x35e   :  { %v15000_v60 = vadd.f32 %v11920_v44, %v11850_v23 }
 0x35f   :  { %v11855_v20 = vpop.f32.mrf.mxu1  ;;  %v11922_v50 = vpop.f32.mrf.mxu0 }
 0x360   :  { %v11923_v29 = vadd.f32 %v11922_v50, %v11921_v59  ;;  %v11856_v10 = vadd.f32 %v11855_v20, %v11854_v55  ;;  %v13437_v55 = vld [vmem:[#allocation4 + $0x4b0] sm:$0xff]  }
 0x361   :  { %v11924_v35 = vpop.f32.mrf.mxu0  ;;  %v11943_v1 = vpop.f32.mrf.mxu1  ;;  %12087 = vmatpush3.bf16.msra.mxu0 %v13437_v55  ;;  %v13445_v55 = vld [vmem:[#allocation4 + $0x4a0] sm:$0xff]  }
 0x362   :  { %v15002_v43 = vadd.f32 %v11923_v29, %v11853_v25 }
 0x363   :  { %v11925_v12 = vpop.f32.mrf.mxu0  ;;  %v11944_v15 = vpop.f32.mrf.mxu1 }
 0x364   :  { %v11926_v54 = vadd.f32 %v11925_v12, %v11924_v35  ;;  %v11945_v39 = vadd.f32 %v11944_v15, %v11943_v1  ;;  %v13438_v35 = vld [vmem:[#allocation4 + $0x538] sm:$0xff]   ;;  %v13439_v15 = vld [vmem:[#allocation4 + $0x4e8] sm:$0xff]  }
 0x365   :  { %v11946_v16 = vpop.f32.mrf.mxu1  ;;  %v15004_v40 = vpop.f32.mrf.mxu0  ;;  %12155 = vmatpush3.bf16.msra.mxu1 %v13438_v35  ;;  %12088 = vmatprep.subr.bf16.mxu0 %v13439_v15 }
 0x366   :  { %v15006_v44 = vadd.f32 %v11926_v54, %v11856_v10  ;;  %v15009_v9 = vadd.f32 %v11945_v39, %v14967_v32  ;;  %v13440_v10 = vld [vmem:[#allocation4 + $0x570] sm:$0xff]   ;;  %v13441_v54 = vld [vmem:[#allocation4 + $0x4a8] sm:$0xff]  }
 0x367   :  { %v11947_v23 = vpop.f32.mrf.mxu1  ;;  %v15011_v59 = vpop.f32.mrf.mxu0  ;;  %12156 = vmatprep.subr.bf16.mxu1 %v13440_v10  ;;  %12089 = vmatpush3.bf16.msra.mxu0 %v13441_v54 }
 0x368   :  { %v11948_v25 = vadd.f32 %v11947_v23, %v11946_v16  ;;  %v13442_v23 = vld [vmem:[#allocation4 + $0x530] sm:$0xff]  }
 0x369   :  { %v11949_v50 = vpop.f32.mrf.mxu1  ;;  %v15013_v29 = vpop.f32.mrf.mxu0  ;;  %12157 = vmatpush3.bf16.msra.mxu1 %v13442_v23  ;;  %v13448_v23 = vld [vmem:[#allocation4 + $0x560] sm:$0xff]  }
 0x36a   :  { %v15016_v20 = vadd.f32 %v11948_v25, %v14970_v52  ;;  %12158 = vmatprep.subr.bf16.mxu1 %v13444_v17 }
 0x36b   :  { %v11950_v1 = vpop.f32.mrf.mxu1  ;;  %v15018_v12 = vpop.f32.mrf.mxu0 }
 0x36c   :  { %v11951_v32 = vadd.f32 %v11950_v1, %v11949_v50  ;;  %v13443_v50 = vld [vmem:[#allocation4 + $0x4e0] sm:$0xff]  }
 0x36d   :  { %v11952_v39 = vpop.f32.mrf.mxu1  ;;  %v15020_v16 = vpop.f32.mrf.mxu0  ;;  %12090 = vmatprep.subr.bf16.mxu0 %v13443_v50  ;;  %12159 = vmatpush3.bf16.msra.mxu1 %v13446_v46 }
 0x36e   :  { %v15023_v41 = vadd.f32 %v11951_v32, %v14973_v4  ;;  %12091 = vmatpush3.bf16.msra.mxu0 %v13445_v55  ;;  %12160 = vmatprep.subr.bf16.mxu1 %v13448_v23  ;;  %v13451_v55 = vld [vmem:[#allocation4 + $0x4d0] sm:$0xff]   ;;  %v13457_v23 = vld [vmem:[#allocation4 + $0x488] sm:$0xff]  }
 0x36f   :  { %v11953_v52 = vpop.f32.mrf.mxu1  ;;  %v15025_v25 = vpop.f32.mrf.mxu0 }
 0x370   :  { %v11954_v0 = vadd.f32 %v11953_v52, %v11952_v39  ;;  %v13447_v39 = vld [vmem:[#allocation4 + $0x4d8] sm:$0xff]  }
 0x371   :  { %v11955_v35 = vpop.f32.mrf.mxu1  ;;  %v15027_v1 = vpop.f32.mrf.mxu0  ;;  %v13449_v52 = vld [vmem:[#allocation4 + $0x498] sm:$0xff]   ;;  %12092 = vmatprep.subr.bf16.mxu0 %v13447_v39  ;;  %12161 = vmatpush3.bf16.msra.mxu1 %v13450_v56  ;;  %v13456_v56 = vld [vmem:[#allocation4 + $0x550] sm:$0xff]  }
 0x372   :  { %v15030_v13 = vadd.f32 %v11954_v0, %v14976_v53  ;;  %12093 = vmatpush3.bf16.msra.mxu0 %v13449_v52 }
 0x373   :  { %v11956_v4 = vpop.f32.mrf.mxu1  ;;  %v15032_v32 = vpop.f32.mrf.mxu0  ;;  %12094 = vmatprep.subr.bf16.mxu0 %v13451_v55 }
 0x374   :  { %v11957_v15 = vadd.f32 %v11956_v4, %v11955_v35  ;;  %v13452_v35 = vld [vmem:[#allocation4 + $0x558] sm:$0xff]   ;;  %v13453_v4 = vld [vmem:[#allocation4 + $0x490] sm:$0xff]  }
 0x375   :  { %v11958_v10 = vpop.f32.mrf.mxu1  ;;  %v15034_v54 = vpop.f32.mrf.mxu0  ;;  %12162 = vmatprep.subr.bf16.mxu1 %v13452_v35  ;;  %v13460_v35 = vld [vmem:[#allocation4 + $0x548] sm:$0xff]  }
 0x376   :  { %v15037_v22 = vadd.f32 %v11957_v15, %v14978_v19  ;;  %v13454_v19 = vld [vmem:[#allocation4 + $0x518] sm:$0xff]   ;;  %12095 = vmatpush3.bf16.msra.mxu0 %v13453_v4  ;;  %v13461_v4 = vld [vmem:[#allocation4 + $0x480] sm:$0xff]  }
 0x377   :  { %v11959_v53 = vpop.f32.mrf.mxu1  ;;  %v15039_v0 = vpop.f32.mrf.mxu0  ;;  %12163 = vmatpush3.bf16.msra.mxu1 %v13454_v19 }
 0x378   :  { %v11960_v50 = vadd.f32 %v11959_v53, %v11958_v10  ;;  %v13455_v10 = vld [vmem:[#allocation4 + $0x4c8] sm:$0xff]   ;;  %12164 = vmatprep.subr.bf16.mxu1 %v13456_v56 }
 0x379   :  { %v11961_v17 = vpop.f32.mrf.mxu1  ;;  %v15041_v46 = vpop.f32.mrf.mxu0  ;;  %12096 = vmatprep.subr.bf16.mxu0 %v13455_v10 }
 0x37a   :  { %v15044_v33 = vadd.f32 %v11960_v50, %v14980_v61  ;;  %12097 = vmatpush3.bf16.msra.mxu0 %v13457_v23  ;;  %v13466_v23 = vld [vmem:[#allocation4 + $0x540] sm:$0xff]  }
 0x37b   :  { %v11962_v15 = vpop.f32.mrf.mxu1  ;;  %v15046_v3 = vpop.f32.mrf.mxu0  ;;  %12165 = vmatpush3.bf16.msra.mxu1 %v13458_v5 }
 0x37c   :  { %v11963_v39 = vadd.f32 %v11962_v15, %v11961_v17  ;;  %v13459_v17 = vld [vmem:[#allocation4 + $0x4c0] sm:$0xff]   ;;  %12166 = vmatprep.subr.bf16.mxu1 %v13460_v35 }
 0x37d   :  { %v11964_v52 = vpop.f32.mrf.mxu1  ;;  %v15048_v53 = vpop.f32.mrf.mxu0  ;;  %12098 = vmatprep.subr.bf16.mxu0 %v13459_v17 }
 0x37e   :  { %v15051_v11 = vadd.f32 %v11963_v39, %v14982_v18  ;;  %12099 = vmatpush3.bf16.msra.mxu0 %v13461_v4 }
 0x37f   :  { %v11965_v61 = vpop.f32.mrf.mxu1  ;;  %v15053_v50 = vpop.f32.mrf.mxu0  ;;  %12167 = vmatpush3.bf16.msra.mxu1 %v13462_v28  ;;  %12224 = vmatprep.subr.bf16.mxu0 %v13495_v38 }
 0x380   :  { %v11966_v55 = vadd.f32 %v11965_v61, %v11964_v52  ;;  %v13467_v52 = vld [vmem:[#allocation4 + $0x500] sm:$0xff]   ;;  %12168 = vmatprep.subr.bf16.mxu1 %v13466_v23 }
 0x381   :  { %v11967_v19 = vpop.f32.mrf.mxu1  ;;  %v15055_v15 = vpop.f32.mrf.mxu0 }
 0x382   :  { %v15058_v58 = vadd.f32 %v11966_v55, %v14984_v42 }
 0x383   :  { %v11968_v18 = vpop.f32.mrf.mxu1  ;;  %v15060_v39 = vpop.f32.mrf.mxu0  ;;  %12169 = vmatpush3.bf16.msra.mxu1 %v13467_v52 }
 0x384   :  { %v11969_v10 = vadd.f32 %v11968_v18, %v11967_v19 }
 0x385   :  { %v11970_v56 = vpop.f32.mrf.mxu1  ;;  %v15062_v5 = vpop.f32.mrf.mxu0 }
 0x386   :  { %v15065_v61 = vadd.f32 %v11969_v10, %v14986_v57 }
 0x387   :  { %v11971_v63 = vpop.f32.mrf.mxu1  ;;  %v15067_v51 = vpop.f32.mrf.mxu0 }
 0x388   :  { %v11972_v42 = vadd.f32 %v11971_v63, %v11970_v56 }
 0x389   :  { %v11973_v55 = vpop.f32.mrf.mxu1  ;;  %v15069_v17 = vpop.f32.mrf.mxu0 }
 0x38a   :  { %v15072_v35 = vadd.f32 %v11972_v42, %v14988_v47 }
 0x38b   :  { %v11974_v28 = vpop.f32.mrf.mxu1  ;;  %v15074_v4 = vpop.f32.mrf.mxu0 }
 0x38c   :  { %v11975_v19 = vadd.f32 %v11974_v28, %v11973_v55 }
 0x38d   :  { %v11976_v18 = vpop.f32.mrf.mxu1  ;;  %v15076_v27 = vpop.f32.mrf.mxu0 }
 0x38e   :  { %v15079_v57 = vadd.f32 %v11975_v19, %v14990_v36 }
 0x38f   :  { %v11977_v10 = vpop.f32.mrf.mxu1  ;;  %v15081_v23 = vpop.f32.mrf.mxu0 }
 0x390   :  { %v11978_v63 = vadd.f32 %v11977_v10, %v11976_v18 }
 0x391   :  { %v11979_v56 = vpop.f32.mrf.mxu1  ;;  %v15086_v47 = vpop.f32.mrf.mxu0 }
 0x392   :  { %v15084_v52 = vadd.f32 %v11978_v63, %v14992_v37  ;;  %v13504_v63 = vld [vmem:[#allocation4 + $0x678] sm:$0xff]  }
 0x393   :  { %v11980_v42 = vpop.f32.mrf.mxu1  ;;  %v15091_v36 = vpop.f32.mrf.mxu0  ;;  %12294 = vmatprep.subr.bf16.mxu1 %v13504_v63 }
 0x394   :  { %v11981_v24 = vadd.f32 %v11980_v42, %v11979_v56 }
 0x395   :  { %v11982_v55 = vpop.f32.mrf.mxu1  ;;  %v15093_v18 = vpop.f32.mrf.mxu0 }
 0x396   :  { %v15089_v28 = vadd.f32 %v11981_v24, %v14994_v14 }
 0x397   :  { %v11983_v19 = vpop.f32.mrf.mxu1  ;;  %v15098_v56 = vpop.f32.mrf.mxu0 }
 0x398   :  { %v11984_v8 = vadd.f32 %v11983_v19, %v11982_v55 }
 0x399   :  { %v11985_v21 = vpop.f32.mrf.mxu1  ;;  %v15103_v55 = vpop.f32.mrf.mxu0 }
 0x39a   :  { %v15096_v37 = vadd.f32 %v11984_v8, %v14996_v2  ;;  %v12015_v2 = vadd.f32 %v15011_v59, %v15004_v40 }
 0x39b   :  { %v11986_v10 = vpop.f32.mrf.mxu1  ;;  %v15110_v63 = vpop.f32.mrf.mxu0 }
 0x39c   :  { %v11987_v31 = vadd.f32 %v11986_v10, %v11985_v21 }
 0x39d   :  { %v11988_v49 = vpop.f32.mrf.mxu1  ;;  %v15123_v40 = vpop.f32.mrf.mxu0 }
 0x39e   :  { %v15101_v24 = vadd.f32 %v11987_v31, %v14998_v62 }
 0x39f   :  { %v11989_v38 = vpop.f32.mrf.mxu1 }
 0x3a0   :  { %v11990_v14 = vadd.f32 %v11989_v38, %v11988_v49  ;;  %v12018_v49 = vadd.f32 %v15018_v12, %v15013_v29  ;;  %v5723_v38 = vadd.f32 %v12015_v2, %v15009_v9  ;;  %v12021_v9 = vadd.f32 %v15025_v25, %v15020_v16 }
 0x3a1   :  { %v11991_v42 = vpop.f32.mrf.mxu1 }
 0x3a2   :  { %v15106_v19 = vadd.f32 %v11990_v14, %v15000_v60  ;;  %v15121_v14 = vld [vmem:[%s16229_s2 + $0x1] ss:$0 sm:$0xff]  ;;  %v5731_v25 = vadd.f32 %v12021_v9, %v15023_v41 }
 0x3a3   :  { %v11992_v8 = vpop.f32.mrf.mxu1 }
 0x3a4   :  { %v11993_v21 = vadd.f32 %v11992_v8, %v11991_v42  ;;  %v15131_v42 = vld [vmem:[%s16230_s3 + $0x1] ss:$0 sm:$0xff]  ;;  %v5726_v8 = vadd.f32 %v12018_v49, %v15016_v20 }
 0x3a5   :  { %v11994_v10 = vpop.f32.mrf.mxu1 }
 0x3a6   :  { %v15113_v34 = vadd.f32 %v11993_v21, %v15002_v43  ;;  %v15137_v21 = vpop.f32.mrf.mxu0 }
 0x3a7   :  { %v11995_v31 = vpop.f32.mrf.mxu1 }
 0x3a8   :  { %v11996_v62 = vadd.f32 %v11995_v31, %v11994_v10  ;;  %v15148_v20 = vpop.f32.mrf.mxu0 }
 0x3a9   :  { %v5827_v60 = vpop.f32.mrf.mxu1 }
 0x3aa   :  { %v15126_v59 = vadd.f32 %v11996_v62, %v15006_v44  ;;  %v5828_v43 = vadd.f32 %v5827_v60, %v5723_v38  ;;  %v12024_v62 = vadd.f32 %v15032_v32, %v15027_v1 }
 0x3ab   :  { %v12621_v29 = vpop.f32.mrf.mxu1 }
 0x3ac   :  { %v5904_v12 = vmul.f32 %v15121_v14, %v5828_v43  ;;  %v5734_v41 = vadd.f32 %v12024_v62, %v15030_v13 }
 0x3ad   :  { %v5830_v2 = vpop.f32.mrf.mxu1 }
 0x3ae   :  { %v15140_v44 = vadd.f32 %v15131_v42, %v5904_v12  ;;  %v5831_v10 = vadd.f32 %v5830_v2, %v5726_v8  ;;  %v12027_v12 = vadd.f32 %v15039_v0, %v15034_v54 }
 0x3af   :  { %v12622_v31 = vpop.f32.mrf.mxu1 }
 0x3b0   :  { %v5962_v38 = vmul.f32 %v15140_v44, %v15140_v44  ;;  %v5905_v16 = vmul.f32 %v15121_v14, %v5831_v10  ;;  %v15160_v10 = vpop.f32.mrf.mxu0 }
 0x3b1   :  { %v5835_v60 = vpop.f32.mrf.mxu1 }
 0x3b2   :  { %v5980_v49 = vmul.f32 %v5962_v38, %v15140_v44  ;;  %v15152_v43 = vadd.f32 %v15131_v42, %v5905_v16  ;;  %v5836_v29 = vadd.f32 %v5835_v60, %v5731_v25  ;;  %v5739_v25 = vadd.f32 %v12027_v12, %v15037_v22 }
 0x3b3   :  { %v12625_v1 = vpop.f32.mrf.mxu1  ;;  %v12030_v60 = vadd.f32 %v15046_v3, %v15041_v46  ;;  %v12033_v22 = vadd.f32 %v15053_v50, %v15048_v53 }
 0x3b4   :  { %v5998_v32 = vmul.f32 0.044715, %v5980_v49  ;;  %v5963_v8 = vmul.f32 %v15152_v43, %v15152_v43  ;;  %v5906_v2 = vmul.f32 %v15121_v14, %v5836_v29 }
 0x3b5   :  { %v5838_v9 = vpop.f32.mrf.mxu1 }
 0x3b6   :  { %v6016_v31 = vadd.f32 %v5998_v32, %v15140_v44  ;;  %v5981_v38 = vmul.f32 %v5963_v8, %v15152_v43  ;;  %v15165_v16 = vadd.f32 %v15131_v42, %v5906_v2  ;;  %v5839_v54 = vadd.f32 %v5838_v9, %v5734_v41  ;;  %v15173_v32 = vpop.f32.mrf.mxu0 }
 0x3b7   :  { %v12626_v0 = vpop.f32.mrf.mxu1 }
 0x3b8   :  { %v6034_v49 = vmul.f32 0.7978846, %v6016_v31  ;;  %v5999_v29 = vmul.f32 0.044715, %v5981_v38  ;;  %v5964_v13 = vmul.f32 %v15165_v16, %v15165_v16  ;;  %v5907_v62 = vmul.f32 %v15121_v14, %v5839_v54 }
 0x3b9   :  { %v5843_v1 = vpop.f32.mrf.mxu1  ;;  %v5742_v38 = vadd.f32 %v12030_v60, %v15044_v33 }
 0x3ba   :  { %13658 = vtanh.f32 %v6034_v49  ;;  %v6017_v8 = vadd.f32 %v5999_v29, %v15152_v43  ;;  %v5982_v2 = vmul.f32 %v5964_v13, %v15165_v16  ;;  %v5844_v41 = vadd.f32 %v5843_v1, %v5739_v25  ;;  %v12062_v49 = vpop.f32.mrf.mxu0 }
 0x3bb   :  { %v15180_v3 = vadd.f32 %v15131_v42, %v5907_v62  ;;  %v12629_v46 = vpop.f32.mrf.mxu1  ;;  %v12036_v29 = vadd.f32 %v15060_v39, %v15055_v15  ;;  %v12039_v13 = vadd.f32 %v15067_v51, %v15062_v5  ;;  %v5747_v62 = vadd.f32 %v12033_v22, %v15051_v11 }
 0x3bc   :  { %v6035_v12 = vmul.f32 0.7978846, %v6017_v8  ;;  %v6000_v9 = vmul.f32 0.044715, %v5982_v2  ;;  %v5908_v31 = vmul.f32 %v15121_v14, %v5844_v41  ;;  %v12042_v1 = vadd.f32 %v15074_v4, %v15069_v17  ;;  %v12064_v22 = vpop.f32.mrf.mxu0 }
 0x3bd   :  { %v5965_v54 = vmul.f32 %v15180_v3, %v15180_v3  ;;  %v5846_v0 = vpop.f32.mrf.mxu1  ;;  %v12045_v15 = vadd.f32 %v15081_v23, %v15076_v27  ;;  %v12048_v51 = vadd.f32 %v15091_v36, %v15086_v47  ;;  %v12051_v39 = vadd.f32 %v15098_v56, %v15093_v18 }
 0x3be   :  { %13660 = vtanh.f32 %v6035_v12  ;;  %v6018_v25 = vadd.f32 %v6000_v9, %v15165_v16  ;;  %v15188_v53 = vadd.f32 %v15131_v42, %v5908_v31  ;;  %v5847_v50 = vadd.f32 %v5846_v0, %v5742_v38 }
 0x3bf   :  { %v5983_v33 = vmul.f32 %v5965_v54, %v15180_v3  ;;  %v12630_v60 = vpop.f32.mrf.mxu1  ;;  %v12054_v12 = vadd.f32 %v15110_v63, %v15103_v55  ;;  %v5750_v47 = vadd.f32 %v12036_v29, %v15058_v58  ;;  %v5755_v36 = vadd.f32 %v12039_v13, %v15065_v61  ;;  %v12065_v61 = vpop.f32.mrf.mxu0 }
 0x3c0   :  { %v6036_v8 = vmul.f32 0.7978846, %v6018_v25  ;;  %v5966_v2 = vmul.f32 %v15188_v53, %v15188_v53  ;;  %v5909_v41 = vmul.f32 %v15121_v14, %v5847_v50  ;;  %v5758_v31 = vadd.f32 %v12042_v1, %v15072_v35 }
 0x3c1   :  { %v6001_v5 = vmul.f32 0.044715, %v5983_v33  ;;  %v5851_v11 = vpop.f32.mrf.mxu1  ;;  %v15221_v0 = vadd.f32 %v12045_v15, %v15079_v57  ;;  %v15224_v55 = vadd.f32 %v12048_v51, %v15084_v52  ;;  %v15227_v58 = vadd.f32 %v12051_v39, %v15089_v28 }
 0x3c2   :  { %13662 = vtanh.f32 %v6036_v8  ;;  %v5984_v17 = vmul.f32 %v5966_v2, %v15188_v53  ;;  %v15209_v4 = vadd.f32 %v15131_v42, %v5909_v41  ;;  %v5852_v46 = vadd.f32 %v5851_v11, %v5747_v62 }
 0x3c3   :  { %v6019_v27 = vadd.f32 %v6001_v5, %v15180_v3  ;;  %v12633_v23 = vpop.f32.mrf.mxu1  ;;  %v12057_v13 = vadd.f32 %v15137_v21, %v15123_v40  ;;  %v12060_v57 = vadd.f32 %v15160_v10, %v15148_v20  ;;  %v15237_v28 = vadd.f32 %v12054_v12, %v15096_v37 }
 0x3c4   :  { %v6002_v18 = vmul.f32 0.044715, %v5984_v17  ;;  %v5967_v56 = vmul.f32 %v15209_v4, %v15209_v4  ;;  %v5910_v9 = vmul.f32 %v15121_v14, %v5852_v46  ;;  %v5944_v33 = vmul.f32 0.5, %v15140_v44 }
 0x3c5   :  { %v6037_v38 = vmul.f32 0.7978846, %v6019_v27  ;;  %v5854_v54 = vpop.f32.mrf.mxu1  ;;  %v12063_v8 = vadd.f32 %v12062_v49, %v15173_v32  ;;  %v12066_v2 = vadd.f32 %v12065_v61, %v12064_v22  ;;  %v15245_v5 = vadd.f32 %v12057_v13, %v15101_v24 }
 0x3c6   :  { %v6020_v63 = vadd.f32 %v6002_v18, %v15188_v53  ;;  %v5985_v25 = vmul.f32 %v5967_v56, %v15209_v4  ;;  %v5932_v50 = vadd.f32 %v15131_v42, %v5910_v9  ;;  %v5855_v29 = vadd.f32 %v5854_v54, %v5750_v47 }
 0x3c7   :  { %v13659_v35 = vpop.eup %13658  ;;  %13664 = vtanh.f32 %v6037_v38  ;;  %v12634_v52 = vpop.f32.mrf.mxu1  ;;  %v15248_v32 = vadd.f32 %v12060_v57, %v15106_v19  ;;  %v5945_v49 = vmul.f32 0.5, %v15152_v43  ;;  %v15253_v23 = vadd.f32 %v12063_v8, %v15113_v34 }
 0x3c8   :  { %v6070_v60 = vadd.f32 1.0, %v13659_v35  ;;  %v6038_v62 = vmul.f32 0.7978846, %v6020_v63  ;;  %v6003_v1 = vmul.f32 0.044715, %v5985_v25  ;;  %v5968_v41 = vmul.f32 %v5932_v50, %v5932_v50 }
 0x3c9   :  { %v5911_v15 = vmul.f32 %v15121_v14, %v5855_v29  ;;  %v5859_v40 = vpop.f32.mrf.mxu1  ;;  %v15256_v47 = vadd.f32 %v12066_v2, %v15126_v59  ;;  %v5946_v43 = vmul.f32 0.5, %v15165_v16  ;;  %v5947_v56 = vmul.f32 0.5, %v15180_v3 }
 0x3ca   :  { %v6088_v21 = vmul.f32 %v6070_v60, %v5944_v33  ;;  %13666 = vtanh.f32 %v6038_v62  ;;  %v6021_v20 = vadd.f32 %v6003_v1, %v15209_v4  ;;  %v5860_v10 = vadd.f32 %v5859_v40, %v5755_v36 }
 0x3cb   :  { %v13661_v51 = vpop.eup %13660  ;;  %v5986_v37 = vmul.f32 %v5968_v41, %v5932_v50  ;;  %v5933_v39 = vadd.f32 %v15131_v42, %v5911_v15  ;;  %v12637_v44 = vpop.f32.mrf.mxu1  ;;  %v5948_v34 = vmul.f32 0.5, %v15188_v53  ;;  %v15264_v25 = vmul.f32 0.5, %v15209_v4 }
 0x3cc   :  { %6106 = vst [vmem:[#allocation2 + $0x10] sm:$0xff] %v6088_v21  ;;  %v6071_v11 = vadd.f32 1.0, %v13661_v51  ;;  %v6039_v22 = vmul.f32 0.7978846, %v6021_v20  ;;  %v5912_v17 = vmul.f32 %v15121_v14, %v5860_v10  ;;  %v15266_v29 = vmul.f32 0.5, %v5932_v50  ;;  %v16410_v10 = vld [vmem:[#allocation13_spill] sm:$0xff] }
 0x3cd   :  { %v6004_v46 = vmul.f32 0.044715, %v5986_v37  ;;  %v5969_v12 = vmul.f32 %v5933_v39, %v5933_v39  ;;  %v5862_v27 = vpop.f32.mrf.mxu1  ;;  %v15270_v33 = vmul.f32 0.5, %v5933_v39 }
 0x3ce   :  { %v6089_v24 = vmul.f32 %v6071_v11, %v5945_v49  ;;  %13668 = vtanh.f32 %v6039_v22  ;;  %v5934_v19 = vadd.f32 %v15131_v42, %v5912_v17  ;;  %v5863_v36 = vadd.f32 %v5862_v27, %v5758_v31 }
 0x3cf   :  { %v13663_v18 = vpop.eup %13662  ;;  %v6022_v9 = vadd.f32 %v6004_v46, %v5932_v50  ;;  %v5987_v38 = vmul.f32 %v5969_v12, %v5933_v39  ;;  %v12638_v54 = vpop.f32.mrf.mxu1 }
 0x3d0   :  { %6107 = vst [vmem:[#allocation2 + $0x18] sm:$0xff] %v6089_v24  ;;  %v6072_v61 = vadd.f32 1.0, %v13663_v18  ;;  %v5970_v63 = vmul.f32 %v5934_v19, %v5934_v19  ;;  %v5913_v59 = vmul.f32 %v15121_v14, %v5863_v36  ;;  %v15272_v60 = vmul.f32 0.5, %v5934_v19 }
 0x3d1   :  { %v6040_v31 = vmul.f32 0.7978846, %v6022_v9  ;;  %v6005_v35 = vmul.f32 0.044715, %v5987_v38  ;;  %v5867_v16 = vpop.f32.mrf.mxu1 }
 0x3d2   :  { %v6090_v13 = vmul.f32 %v6072_v61, %v5946_v43  ;;  %v5988_v3 = vmul.f32 %v5970_v63, %v5934_v19  ;;  %v5935_v57 = vadd.f32 %v15131_v42, %v5913_v59  ;;  %v5868_v52 = vadd.f32 %v5867_v16, %v15221_v0 }
 0x3d3   :  { %13670 = vtanh.f32 %v6040_v31  ;;  %v6023_v53 = vadd.f32 %v6005_v35, %v5933_v39  ;;  %v12641_v62 = vpop.f32.mrf.mxu1  ;;  %v6125_v4 = vld [vmem:[#allocation2 + $0xb] sm:$0xff] }
 0x3d4   :  { %v6251_v1 = vld [vmem:[#allocation2 + $0xc] sm:$0xff]  ;;  %v13665_v50 = vpop.eup %13664  ;;  %6108 = vst [vmem:[#allocation2 + $0x20] sm:$0xff] %v6090_v13  ;;  %v6006_v8 = vmul.f32 0.044715, %v5988_v3  ;;  %v15274_v2 = vmul.f32 0.5, %v5935_v57  ;;  %v5971_v41 = vmul.f32 %v5935_v57, %v5935_v57  ;;  %v5914_v15 = vmul.f32 %v15121_v14, %v5868_v52 }
 0x3d5   :  { %v6359_v40 = vld [vmem:[#allocation2 + $0xd] sm:$0xff]  ;;  %v6073_v21 = vadd.f32 1.0, %v13665_v50  ;;  %v6041_v0 = vmul.f32 0.7978846, %v6023_v53  ;;  %v5870_v20 = vpop.f32.mrf.mxu1  ;;  %v6143_v51 = vmul.f32 %v6125_v4, %v16410_v10  ;;  %v11303_v37 = vpack.c.bf16 %v6251_v1, %v6251_v1 }
 0x3d6   :  { %v6024_v39 = vadd.f32 %v6006_v8, %v5934_v19  ;;  %v5989_v44 = vmul.f32 %v5971_v41, %v5935_v57  ;;  %v5936_v49 = vadd.f32 %v15131_v42, %v5914_v15  ;;  %v5871_v11 = vadd.f32 %v5870_v20, %v15224_v55  ;;  %v6484_v22 = vld [vmem:[#allocation2 + $0xf] sm:$0xff] }
 0x3d7   :  { %v13667_v17 = vpop.eup %13666  ;;  %v6091_v46 = vmul.f32 %v6073_v21, %v5947_v56  ;;  %13672 = vtanh.f32 %v6041_v0  ;;  %v12642_v12 = vpop.f32.mrf.mxu1  ;;  %v11285_v27 = vpack.c.bf16 %v6143_v51, %v6143_v51  ;;  %6341 = vst [vmem:[#allocation3 + $0x28] sm:$0xf] %v11303_v37  ;;  %v6377_v24 = vmul.f32 %v6359_v40, %v14137_v26  ;;  %v6485_v36 = vld [vmem:[#allocation2 + $0x17] sm:$0xff]  ;;  %v16411_v56 = vld [vmem:[#allocation11_spill] sm:$0xff] }
 0x3d8   :  { %v6074_v18 = vadd.f32 1.0, %v13667_v17  ;;  %v6042_v43 = vmul.f32 0.7978846, %v6024_v39  ;;  %v6007_v9 = vmul.f32 0.044715, %v5989_v44  ;;  %v15281_v38 = vmul.f32 0.5, %v5936_v49 }
 0x3d9   :  { %6109 = vst [vmem:[#allocation2 + $0x28] sm:$0xff] %v6091_v46  ;;  %v5972_v19 = vmul.f32 %v5936_v49, %v5936_v49  ;;  %v5915_v54 = vmul.f32 %v15121_v14, %v5871_v11  ;;  %v5875_v55 = vpop.f32.mrf.mxu1  ;;  %6233 = vst [vmem:[#allocation3 + $0x24] sm:$0xf] %v11285_v27  ;;  %v11321_v61 = vpack.c.bf16 %v6377_v24, %v6377_v24  ;;  %v6126_v59 = vld [vmem:[#allocation2 + $0x13] sm:$0xff]  ;;  %v16413_v17 = vld [vmem:[#allocation12_spill] sm:$0xff] }
 0x3da   :  { %v6502_v63 = vmul.f32 %v6484_v22, %v16411_v56  ;;  %v6092_v31 = vmul.f32 %v6074_v18, %v5948_v34  ;;  %13674 = vtanh.f32 %v6042_v43  ;;  %v6025_v35 = vadd.f32 %v6007_v9, %v5935_v57  ;;  %v16412_v34 = vld [vmem:[#allocation10_spill] sm:$0xff] }
 0x3db   :  { %v5876_v16 = vadd.f32 %v5875_v55, %v15227_v58  ;;  %v13669_v13 = vpop.eup %13668  ;;  %v5990_v3 = vmul.f32 %v5972_v19, %v5936_v49  ;;  %v5937_v52 = vadd.f32 %v15131_v42, %v5915_v54  ;;  %v12645_v53 = vpop.f32.mrf.mxu1  ;;  %6467 = vst [vmem:[#allocation3 + $0x2c] sm:$0xf] %v11321_v61  ;;  %v6503_v62 = vmul.f32 %v6485_v36, %v16410_v10  ;;  %v15289_v41 = vld [vmem:[#allocation2 + $0x1b] sm:$0xff]  ;;  %v13496_v36 = vld [vmem:[#allocation4 + $0x5b8] sm:$0xff]  }
 0x3dc   :  { %v11338_v4 = vpack.c.bf16 %v6502_v63, %v6502_v63  ;;  %6110 = vst [vmem:[#allocation2 + $0x30] sm:$0xff] %v6092_v31  ;;  %v6075_v1 = vadd.f32 1.0, %v13669_v13  ;;  %v6043_v50 = vmul.f32 0.7978846, %v6025_v35  ;;  %v6144_v57 = vmul.f32 %v6126_v59, %v16412_v34  ;;  %v6252_v20 = vld [vmem:[#allocation2 + $0x14] sm:$0xff]  ;;  %v6253_v27 = vld [vmem:[#allocation2 + $0x1c] sm:$0xff] }
 0x3dd   :  { %v5916_v8 = vmul.f32 %v15121_v14, %v5876_v16  ;;  %v6008_v15 = vmul.f32 0.044715, %v5990_v3  ;;  %v15292_v58 = vmul.f32 0.5, %v5937_v52  ;;  %v5973_v40 = vmul.f32 %v5937_v52, %v5937_v52  ;;  %v5878_v21 = vpop.f32.mrf.mxu1  ;;  %v6360_v24 = vld [vmem:[#allocation2 + $0x15] sm:$0xff]  ;;  %v13503_v31 = vld [vmem:[#allocation4 + $0x5f0] sm:$0xff]   ;;  %v6361_v53 = vld [vmem:[#allocation2 + $0x1d] sm:$0xff] }
 0x3de   :  { %v11339_v0 = vpack.c.bf16 %v6503_v62, %v6503_v62  ;;  %6592 = vst [vmem:[#allocation3 + $0xc] sm:$0xf] %v11338_v4  ;;  %v6093_v51 = vmul.f32 %v6075_v1, %v15264_v25  ;;  %13676 = vtanh.f32 %v6043_v50  ;;  %v5879_v39 = vadd.f32 %v5878_v21, %v15237_v28  ;;  %v13465_v28 = vld [vmem:[#allocation3 + $0x4] ss:$36 sps:$4 sm:$0xff]   ;;  %v6486_v21 = vld [vmem:[#allocation2 + $0x1f] sm:$0xff] }
 0x3df   :  { %v5938_v37 = vadd.f32 %v15131_v42, %v5916_v8  ;;  %v6026_v44 = vadd.f32 %v6008_v15, %v5936_v49  ;;  %v5991_v11 = vmul.f32 %v5973_v40, %v5937_v52  ;;  %v12646_v22 = vpop.f32.mrf.mxu1  ;;  %v6145_v46 = vmul.f32 %v15289_v41, %v16413_v17  ;;  %8316 = vmatprep.mubr.bf16.mxu0 %v13465_v28 }
 0x3e0   :  { %6593 = vst [vmem:[#allocation3 + $0x30] sm:$0xf] %v11339_v0  ;;  %v11286_v12 = vpack.c.bf16 %v6144_v57, %v6144_v57  ;;  %v13671_v18 = vpop.eup %13670  ;;  %6111 = vst [vmem:[#allocation2 + $0x38] sm:$0xff] %v6093_v51  ;;  %v5917_v9 = vmul.f32 %v15121_v14, %v5879_v39  ;;  %v13463_v19 = vld [vmem:[#allocation3] ss:$36 sps:$4 sm:$0xff]   ;;  %v11304_v49 = vpack.c.bf16 %v6252_v20, %v6252_v20  ;;  %v13510_v22 = vld [vmem:[#allocation4 + $0x5e8] sm:$0xff]  }
 0x3e1   :  { %v15299_v43 = vmul.f32 0.5, %v5938_v37  ;;  %v5974_v25 = vmul.f32 %v5938_v37, %v5938_v37  ;;  %v6076_v54 = vadd.f32 1.0, %v13671_v18  ;;  %v6044_v55 = vmul.f32 0.7978846, %v6026_v44  ;;  %v5883_v63 = vpop.f32.mrf.mxu1  ;;  %8317 = vmatmul.mubr.bf16.vlgmr.msra.gmra.mxu0 %v13463_v19  ;;  %v6487_v44 = vld [vmem:[#allocation2 + $0x27] sm:$0xff] }
 0x3e2   :  { %v6009_v61 = vmul.f32 0.044715, %v5991_v11  ;;  %v11287_v59 = vpack.c.bf16 %v6145_v46, %v6145_v46  ;;  %6234 = vst [vmem:[#allocation3 + $0x48] sm:$0xf] %v11286_v12  ;;  %v15303_v16 = vadd.f32 %v15131_v42, %v5917_v9  ;;  %v5884_v13 = vadd.f32 %v5883_v63, %v15245_v5  ;;  %6342 = vst [vmem:[#allocation3 + $0x4c] sm:$0xf] %v11304_v49 }
 0x3e3   :  { %v5992_v35 = vmul.f32 %v5974_v25, %v5938_v37  ;;  %v11305_v3 = vpack.c.bf16 %v6253_v27, %v6253_v27  ;;  %v6094_v62 = vmul.f32 %v6076_v54, %v15266_v29  ;;  %13678 = vtanh.f32 %v6044_v55  ;;  %v12649_v1 = vpop.f32.mrf.mxu1  ;;  %12225 = vmatpush3.bf16.msra.mxu0 %v13496_v36  ;;  %v13505_v29 = vld [vmem:[#allocation4 + $0x5b0] sm:$0xff]   ;;  %v13506_v11 = vld [vmem:[#allocation4 + $0x638] sm:$0xff]   ;;  %v13468_v36 = vld [vmem:[#allocation3 + $0x8] ss:$36 sps:$4 sm:$0xff]  }
 0x3e4   :  { %v6027_v4 = vadd.f32 %v6009_v61, %v5937_v52  ;;  %6235 = vst [vmem:[#allocation3 + $0x6c] sm:$0xf] %v11287_v59  ;;  %v6378_v50 = vmul.f32 %v6360_v24, %v14150_v30  ;;  %v13673_v8 = vpop.eup %13672  ;;  %v15309_v15 = vmul.f32 0.5, %v15303_v16  ;;  %v5975_v5 = vmul.f32 %v15303_v16, %v15303_v16  ;;  %12226 = vmatprep.subr.bf16.mxu0 %v13503_v31  ;;  %v15322_v54 = vld [vmem:[#allocation2 + $0x23] sm:$0xff] }
 0x3e5   :  { %v6010_v57 = vmul.f32 0.044715, %v5992_v35  ;;  %v5918_v40 = vmul.f32 %v15121_v14, %v5884_v13  ;;  %6343 = vst [vmem:[#allocation3 + $0x70] sm:$0xf] %v11305_v3  ;;  %7060 = vst [vmem:[#allocation3 + $0x1c] sm:$0xf] %v11305_v3  ;;  %v5886_v20 = vpop.f32.mrf.mxu1  ;;  %v6379_v51 = vmul.f32 %v6361_v53, %v14152_v45  ;;  %v6504_v49 = vmul.f32 %v6486_v21, %v16412_v34 }
 0x3e6   :  { %6112 = vst [vmem:[#allocation2 + $0x40] sm:$0xff] %v6094_v62  ;;  %v6077_v52 = vadd.f32 1.0, %v13673_v8  ;;  %v6045_v0 = vmul.f32 0.7978846, %v6027_v4  ;;  %v11322_v39 = vpack.c.bf16 %v6378_v50, %v6378_v50  ;;  %v5993_v12 = vmul.f32 %v5975_v5, %v15303_v16  ;;  %v13512_v55 = vld [vmem:[#allocation4 + $0x5a8] sm:$0xff]   ;;  %v15331_v53 = vld [vmem:[#allocation2 + $0x2b] sm:$0xff] }
 0x3e7   :  { %v6028_v46 = vadd.f32 %v6010_v57, %v5938_v37  ;;  %v15317_v27 = vadd.f32 %v15131_v42, %v5918_v40  ;;  %v5887_v24 = vadd.f32 %v5886_v20, %v15248_v32  ;;  %v13470_v18 = vld [vmem:[#allocation3 + $0xc] ss:$36 sps:$4 sm:$0xff]   ;;  %v13675_v25 = vpop.eup %13674  ;;  %v12650_v19 = vpop.f32.mrf.mxu1  ;;  %v11323_v28 = vpack.c.bf16 %v6379_v51, %v6379_v51  ;;  %v13511_v37 = vld [vmem:[#allocation4 + $0x670] sm:$0xff]   ;;  %12227 = vmatpush3.bf16.msra.mxu0 %v13505_v29 }
 0x3e8   :  { %v6095_v9 = vmul.f32 %v6077_v52, %v15270_v33  ;;  %13680 = vtanh.f32 %v6045_v0  ;;  %6468 = vst [vmem:[#allocation3 + $0x50] sm:$0xf] %v11322_v39  ;;  %v6078_v61 = vadd.f32 1.0, %v13675_v25  ;;  %v6011_v59 = vmul.f32 0.044715, %v5993_v12  ;;  %8421 = vmatprep.mubr.bf16.mxu1 %v13470_v18  ;;  %v13517_v62 = vld [vmem:[#allocation4 + $0x5e0] sm:$0xff]   ;;  %12228 = vmatprep.subr.bf16.mxu0 %v13510_v22 }
 0x3e9   :  { %v6046_v63 = vmul.f32 0.7978846, %v6028_v46  ;;  %v15325_v32 = vmul.f32 0.5, %v15317_v27  ;;  %v5976_v33 = vmul.f32 %v15317_v27, %v15317_v27  ;;  %v5919_v31 = vmul.f32 %v15121_v14, %v5887_v24  ;;  %8422 = vmatmul.mubr.bf16.vlgmr.msra.gmra.mxu1 %v13468_v36  ;;  %v5891_v35 = vpop.f32.mrf.mxu1  ;;  %6469 = vst [vmem:[#allocation3 + $0x74] sm:$0xf] %v11323_v28  ;;  %v13513_v8 = vld [vmem:[#allocation4 + $0x630] sm:$0xff]  }
 0x3ea   :  { %6113 = vst [vmem:[#allocation2 + $0x48] sm:$0xff] %v6095_v9  ;;  %v6505_v13 = vmul.f32 %v6487_v44, %v16413_v17  ;;  %v11340_v3 = vpack.c.bf16 %v6504_v49, %v6504_v49  ;;  %v6096_v4 = vmul.f32 %v6078_v61, %v15272_v60  ;;  %v6029_v1 = vadd.f32 %v6011_v59, %v15303_v16  ;;  %v13518_v57 = vld [vmem:[#allocation4 + $0x668] sm:$0xff]   ;;  %v6255_v18 = vld [vmem:[#allocation2 + $0x2c] sm:$0xff] }
 0x3eb   :  { %13682 = vtanh.f32 %v6046_v63  ;;  %v5892_v50 = vadd.f32 %v5891_v35, %v15253_v23  ;;  %12295 = vmatpush3.bf16.msra.mxu1 %v13506_v11  ;;  %v13677_v5 = vpop.eup %13676  ;;  %v5994_v40 = vmul.f32 %v5976_v33, %v15317_v27  ;;  %v15338_v21 = vadd.f32 %v15131_v42, %v5919_v31  ;;  %v13471_v29 = vld [vmem:[#allocation3 + $0x48] ss:$36 sps:$4 sm:$0xff]   ;;  %v12653_v0 = vpop.f32.mrf.mxu1  ;;  %v6254_v44 = vld [vmem:[#allocation2 + $0x24] sm:$0xff]  ;;  %12229 = vmatpush3.bf16.msra.mxu0 %v13512_v55  ;;  %v13524_v25 = vld [vmem:[#allocation4 + $0x5d8] sm:$0xff]  }
 0x3ec   :  { %v13473_v52 = vld [vmem:[#allocation3 + $0x4c] ss:$36 sps:$4 sm:$0xff]   ;;  %v11341_v20 = vpack.c.bf16 %v6505_v13, %v6505_v13  ;;  %6594 = vst [vmem:[#allocation3 + $0x54] sm:$0xf] %v11340_v3  ;;  %v6146_v60 = vmul.f32 %v15322_v54, %v14043_v7  ;;  %12296 = vmatprep.subr.bf16.mxu1 %v13511_v37  ;;  %6114 = vst [vmem:[#allocation2 + $0x50] sm:$0xff] %v6096_v4  ;;  %v6079_v23 = vadd.f32 1.0, %v13677_v5  ;;  %12230 = vmatprep.subr.bf16.mxu0 %v13517_v62 }
 0x3ed   :  { %v6047_v16 = vmul.f32 0.7978846, %v6029_v1  ;;  %v5920_v51 = vmul.f32 %v15121_v14, %v5892_v50  ;;  %v6147_v39 = vmul.f32 %v15331_v53, %v14041_v6  ;;  %v13519_v11 = vld [vmem:[#allocation4 + $0x5a0] sm:$0xff]   ;;  %v6012_v22 = vmul.f32 0.044715, %v5994_v40  ;;  %8324 = vmatprep.mubr.bf16.mxu0 %v13473_v52  ;;  %v5894_v24 = vpop.f32.mrf.mxu1  ;;  %v6362_v49 = vld [vmem:[#allocation2 + $0x25] sm:$0xff] }
 0x3ee   :  { %v15346_v46 = vmul.f32 0.5, %v15338_v21  ;;  %v5977_v12 = vmul.f32 %v15338_v21, %v15338_v21  ;;  %6595 = vst [vmem:[#allocation3 + $0x78] sm:$0xf] %v11341_v20  ;;  %v11288_v36 = vpack.c.bf16 %v6146_v60, %v6146_v60  ;;  %v6097_v9 = vmul.f32 %v6079_v23, %v15274_v2  ;;  %8325 = vmatmul.mubr.bf16.gmra.mxu0 %v13471_v29  ;;  %v13520_v37 = vld [vmem:[#allocation4 + $0x628] sm:$0xff]   ;;  %v6363_v31 = vld [vmem:[#allocation2 + $0x2d] sm:$0xff]  ;;  %v13525_v35 = vld [vmem:[#allocation4 + $0x660] sm:$0xff]  }
 0x3ef   :  { %13684 = vtanh.f32 %v6047_v16  ;;  %v15352_v19 = vadd.f32 %v15131_v42, %v5920_v51  ;;  %v5895_v28 = vadd.f32 %v5894_v24, %v15256_v47  ;;  %12297 = vmatpush3.bf16.msra.mxu1 %v13513_v8  ;;  %v6030_v55 = vadd.f32 %v6012_v22, %v15317_v27  ;;  %v12654_v63 = vpop.f32.mrf.mxu1  ;;  %v6488_v2 = vld [vmem:[#allocation2 + $0x2f] sm:$0xff]  ;;  %12231 = vmatpush3.bf16.msra.mxu0 %v13519_v11  ;;  %v13527_v1 = vld [vmem:[#allocation4 + $0x620] sm:$0xff]  }
 0x3f0   :  { %v5995_v61 = vmul.f32 %v5977_v12, %v15338_v21  ;;  %v11289_v59 = vpack.c.bf16 %v6147_v39, %v6147_v39  ;;  %6236 = vst [vmem:[#allocation3 + $0x90] sm:$0xf] %v11288_v36  ;;  %v11306_v33 = vpack.c.bf16 %v6254_v44, %v6254_v44  ;;  %12298 = vmatprep.subr.bf16.mxu1 %v13518_v57  ;;  %v13679_v13 = vpop.eup %13678  ;;  %6115 = vst [vmem:[#allocation2 + $0x58] sm:$0xff] %v6097_v9  ;;  %v13526_v4 = vld [vmem:[#allocation4 + $0x598] sm:$0xff]   ;;  %v13531_v50 = vld [vmem:[#allocation4 + $0x5d0] sm:$0xff]  }
 0x3f1   :  { %v15358_v3 = vmul.f32 0.5, %v15352_v19  ;;  %v5978_v47 = vmul.f32 %v15352_v19, %v15352_v19  ;;  %v5921_v27 = vmul.f32 %v15121_v14, %v5895_v28  ;;  %v11307_v62 = vpack.c.bf16 %v6255_v18, %v6255_v18  ;;  %12232 = vmatprep.subr.bf16.mxu0 %v13524_v25  ;;  %v13532_v29 = vld [vmem:[#allocation4 + $0x658] sm:$0xff]   ;;  %v13533_v16 = vld [vmem:[#allocation4 + $0x590] sm:$0xff]   ;;  %v15374_v22 = vld [vmem:[#allocation2 + $0x3b] sm:$0xff] }
 0x3f2   :  { %v6080_v8 = vadd.f32 1.0, %v13679_v13  ;;  %v6048_v5 = vmul.f32 0.7978846, %v6030_v55  ;;  %v6013_v40 = vmul.f32 0.044715, %v5995_v61  ;;  %v6380_v57 = vmul.f32 %v6362_v49, %v16372_v48  ;;  %v16414_v14 = vld [vmem:[#allocation29_spill] sm:$0xff] }
 0x3f3   :  { %6237 = vst [vmem:[#allocation3 + $0xb4] sm:$0xf] %v11289_v59  ;;  %6344 = vst [vmem:[#allocation3 + $0x94] sm:$0xf] %v11306_v33  ;;  %v5996_v52 = vmul.f32 %v5978_v47, %v15352_v19  ;;  %v15366_v0 = vadd.f32 %v15131_v42, %v5921_v27  ;;  %v6381_v20 = vmul.f32 %v6363_v31, %v16414_v14  ;;  %v6489_v60 = vld [vmem:[#allocation2 + $0x37] sm:$0xff]  ;;  %12299 = vmatpush3.bf16.msra.mxu1 %v13520_v37  ;;  %v13538_v12 = vld [vmem:[#allocation4 + $0x5c8] sm:$0xff]  }
 0x3f4   :  { %7061 = vst [vmem:[#allocation3 + $0x40] sm:$0xf] %v11306_v33  ;;  %6345 = vst [vmem:[#allocation3 + $0xb8] sm:$0xf] %v11307_v62  ;;  %v6506_v23 = vmul.f32 %v6488_v2, %v14043_v7  ;;  %v6098_v51 = vmul.f32 %v6080_v8, %v15281_v38  ;;  %13686 = vtanh.f32 %v6048_v5  ;;  %v6031_v39 = vadd.f32 %v6013_v40, %v15338_v21  ;;  %v15372_v11 = vld [vmem:[#allocation2 + $0x33] sm:$0xff]  ;;  %v16415_v31 = vld [vmem:[#allocation15_spill] sm:$0xff] }
 0x3f5   :  { %7062 = vst [vmem:[#allocation3 + $0x64] sm:$0xf] %v11307_v62  ;;  %v11324_v44 = vpack.c.bf16 %v6380_v57, %v6380_v57  ;;  %v6256_v42 = vld [vmem:[#allocation2 + $0x34] sm:$0xff]  ;;  %12300 = vmatprep.subr.bf16.mxu1 %v13525_v35  ;;  %v13681_v24 = vpop.eup %13680  ;;  %v6014_v36 = vmul.f32 0.044715, %v5996_v52  ;;  %v15377_v18 = vmul.f32 0.5, %v15366_v0  ;;  %v5979_v25 = vmul.f32 %v15366_v0, %v15366_v0  ;;  %12233 = vmatpush3.bf16.msra.mxu0 %v13526_v4 }
 0x3f6   :  { %v13474_v38 = vld [vmem:[#allocation3 + $0x50] ss:$36 sps:$4 sm:$0xff]   ;;  %v11325_v9 = vpack.c.bf16 %v6381_v20, %v6381_v20  ;;  %v13534_v21 = vld [vmem:[#allocation4 + $0x618] sm:$0xff]   ;;  %6116 = vst [vmem:[#allocation2 + $0x60] sm:$0xff] %v6098_v51  ;;  %v6081_v28 = vadd.f32 1.0, %v13681_v24  ;;  %v6507_v55 = vmul.f32 %v6489_v60, %v14041_v6  ;;  %v11342_v61 = vpack.c.bf16 %v6506_v23, %v6506_v23  ;;  %12234 = vmatprep.subr.bf16.mxu0 %v13531_v50  ;;  %v16416_v35 = vld [vmem:[#allocation14_spill] sm:$0xff] }
 0x3f7   :  { %v6049_v49 = vmul.f32 0.7978846, %v6031_v39  ;;  %v13476_v37 = vld [vmem:[#allocation3 + $0x54] ss:$36 sps:$4 sm:$0xff]   ;;  %6470 = vst [vmem:[#allocation3 + $0x98] sm:$0xf] %v11324_v44  ;;  %v6032_v59 = vadd.f32 %v6014_v36, %v15352_v19  ;;  %v5997_v33 = vmul.f32 %v5979_v25, %v15366_v0  ;;  %v6148_v2 = vmul.f32 %v15372_v11, %v16415_v31  ;;  %12301 = vmatpush3.bf16.msra.mxu1 %v13527_v1 }
 0x3f8   :  { %v6364_v63 = vld [vmem:[#allocation2 + $0x35] sm:$0xff]  ;;  %6471 = vst [vmem:[#allocation3 + $0xbc] sm:$0xf] %v11325_v9  ;;  %v6149_v13 = vmul.f32 %v15374_v22, %v16416_v35  ;;  %v6365_v27 = vld [vmem:[#allocation2 + $0x3d] sm:$0xff]  ;;  %v13539_v4 = vld [vmem:[#allocation4 + $0x650] sm:$0xff]   ;;  %v13683_v8 = vpop.eup %13682  ;;  %v6099_v5 = vmul.f32 %v6081_v28, %v15292_v58  ;;  %8429 = vmatprep.mubr.bf16.mxu1 %v13476_v37  ;;  %v11343_v19 = vpack.c.bf16 %v6507_v55, %v6507_v55 }
 0x3f9   :  { %v6257_v47 = vld [vmem:[#allocation2 + $0x3c] sm:$0xff]  ;;  %13688 = vtanh.f32 %v6049_v49  ;;  %6596 = vst [vmem:[#allocation3 + $0x9c] sm:$0xf] %v11342_v61  ;;  %v11308_v50 = vpack.c.bf16 %v6256_v42, %v6256_v42  ;;  %v6491_v40 = vld [vmem:[#allocation2 + $0x47] sm:$0xff]  ;;  %12302 = vmatprep.subr.bf16.mxu1 %v13532_v29  ;;  %v6082_v60 = vadd.f32 1.0, %v13683_v8  ;;  %8430 = vmatmul.mubr.bf16.gmra.mxu1 %v13474_v38  ;;  %v11290_v1 = vpack.c.bf16 %v6148_v2, %v6148_v2  ;;  %v16419_v2 = vld [vmem:[#allocation17_spill] sm:$0xff] }
 0x3fa   :  { %v6490_v62 = vld [vmem:[#allocation2 + $0x3f] sm:$0xff]  ;;  %v15391_v52 = vld [vmem:[#allocation2 + $0x4b] sm:$0xff]  ;;  %v6050_v23 = vmul.f32 0.7978846, %v6032_v59  ;;  %v6015_v51 = vmul.f32 0.044715, %v5997_v33  ;;  %12235 = vmatpush3.bf16.msra.mxu0 %v13533_v16  ;;  %v11291_v42 = vpack.c.bf16 %v6149_v13, %v6149_v13  ;;  %v11309_v36 = vpack.c.bf16 %v6257_v47, %v6257_v47 }
 0x3fb   :  { %v15389_v57 = vld [vmem:[#allocation2 + $0x43] sm:$0xff]  ;;  %v13548_v58 = vld [vmem:[#allocation4 + $0x5c0] sm:$0xff]   ;;  %6117 = vst [vmem:[#allocation2 + $0x68] sm:$0xff] %v6099_v5  ;;  %6597 = vst [vmem:[#allocation3 + $0xc0] sm:$0xf] %v11343_v19  ;;  %12236 = vmatprep.subr.bf16.mxu0 %v13538_v12  ;;  %v6100_v49 = vmul.f32 %v6082_v60, %v15299_v43  ;;  %v6508_v38 = vmul.f32 %v6490_v62, %v16415_v31  ;;  %12303 = vmatpush3.bf16.msra.mxu1 %v13534_v21 }
 0x3fc   :  { %v13540_v20 = vld [vmem:[#allocation4 + $0x588] sm:$0xff]   ;;  %v13544_v39 = vld [vmem:[#allocation4 + $0x610] sm:$0xff]   ;;  %6346 = vst [vmem:[#allocation3 + $0xdc] sm:$0xf] %v11308_v50  ;;  %v16417_v25 = vld [vmem:[#allocation30_spill] sm:$0xff]  ;;  %13690 = vtanh.f32 %v6050_v23  ;;  %v6033_v16 = vadd.f32 %v6015_v51, %v15366_v0  ;;  %v13685_v59 = vpop.eup %13684  ;;  %v6509_v12 = vmul.f32 %v6491_v40, %v16416_v35  ;;  %v6150_v43 = vmul.f32 %v15389_v57, %v16419_v2  ;;  %12304 = vmatprep.subr.bf16.mxu1 %v13539_v4 }
 0x3fd   :  { %v13477_v44 = vld [vmem:[#allocation3 + $0x90] ss:$36 sps:$4 sm:$0xff]   ;;  %v6382_v9 = vmul.f32 %v6364_v63, %v16417_v25  ;;  %7063 = vst [vmem:[#allocation3 + $0x88] sm:$0xf] %v11308_v50  ;;  %6238 = vst [vmem:[#allocation3 + $0xd8] sm:$0xf] %v11290_v1  ;;  %v11344_v21 = vpack.c.bf16 %v6508_v38, %v6508_v38 }
 0x3fe   :  { %v13479_v24 = vld [vmem:[#allocation3 + $0x94] ss:$36 sps:$4 sm:$0xff]   ;;  %v6259_v55 = vld [vmem:[#allocation2 + $0x4c] sm:$0xff]  ;;  %6239 = vst [vmem:[#allocation3 + $0xfc] sm:$0xf] %v11291_v42  ;;  %v13550_v47 = vld [vmem:[#allocation4 + $0x580] sm:$0xff]   ;;  %v11345_v40 = vpack.c.bf16 %v6509_v12, %v6509_v12  ;;  %v11292_v23 = vpack.c.bf16 %v6150_v43, %v6150_v43  ;;  %12237 = vmatpush3.bf16.msra.mxu0 %v13540_v20 }
 0x3ff   :  { %v16418_v28 = vld [vmem:[#allocation31_spill] sm:$0xff]  ;;  %8332 = vmatprep.mubr.bf16.mxu0 %v13479_v24  ;;  %6347 = vst [vmem:[#allocation3 + $0x100] sm:$0xf] %v11309_v36  ;;  %v11326_v63 = vpack.c.bf16 %v6382_v9, %v6382_v9  ;;  %v6367_v0 = vld [vmem:[#allocation2 + $0x4d] sm:$0xff]  ;;  %7064 = vst [vmem:[#allocation3 + $0xac] sm:$0xf] %v11309_v36  ;;  %v11311_v1 = vpack.c.bf16 %v6259_v55, %v6259_v55  ;;  %12305 = vmatpush3.bf16.msra.mxu1 %v13544_v39 }
 0x400   :  { %v6383_v29 = vmul.f32 %v6365_v27, %v16418_v28  ;;  %v6258_v37 = vld [vmem:[#allocation2 + $0x44] sm:$0xff]  ;;  %6118 = vst [vmem:[#allocation2 + $0x70] sm:$0xff] %v6100_v49  ;;  %v6083_v27 = vadd.f32 1.0, %v13685_v59  ;;  %v6051_v62 = vmul.f32 0.7978846, %v6033_v16  ;;  %8333 = vmatmul.mubr.bf16.gmra.mxu0 %v13477_v44  ;;  %v6492_v19 = vld [vmem:[#allocation2 + $0x4f] sm:$0xff]  ;;  %12238 = vmatprep.subr.bf16.mxu0 %v13548_v58 }
 0x401   :  { %v13549_v61 = vld [vmem:[#allocation4 + $0x648] sm:$0xff]   ;;  %v16420_v8 = vld [vmem:[#allocation16_spill] sm:$0xff]  ;;  %v6493_v50 = vld [vmem:[#allocation2 + $0x57] sm:$0xff]  ;;  %6472 = vst [vmem:[#allocation3 + $0xe0] sm:$0xf] %v11326_v63  ;;  %v11310_v51 = vpack.c.bf16 %v6258_v37, %v6258_v37  ;;  %v6510_v38 = vmul.f32 %v6492_v19, %v16419_v2  ;;  %v13687_v39 = vpop.eup %13686 }
 0x402   :  { %v11327_v33 = vpack.c.bf16 %v6383_v29, %v6383_v29  ;;  %v6366_v13 = vld [vmem:[#allocation2 + $0x45] sm:$0xff]  ;;  %v6151_v5 = vmul.f32 %v15391_v52, %v16420_v8  ;;  %v15403_v60 = vld [vmem:[#allocation2 + $0x53] sm:$0xff]  ;;  %v15405_v24 = vld [vmem:[#allocation2 + $0x5b] sm:$0xff]  ;;  %v6101_v44 = vmul.f32 %v6083_v27, %v15309_v15  ;;  %13692 = vtanh.f32 %v6051_v62  ;;  %6598 = vst [vmem:[#allocation3 + $0xe4] sm:$0xf] %v11344_v21  ;;  %12306 = vmatprep.subr.bf16.mxu1 %v13549_v61 }
 0x403   :  { %v6260_v42 = vld [vmem:[#allocation2 + $0x54] sm:$0xff]  ;;  %v6261_v36 = vld [vmem:[#allocation2 + $0x5c] sm:$0xff]  ;;  %v16421_v29 = vld [vmem:[#allocation32_spill] sm:$0xff]  ;;  %6599 = vst [vmem:[#allocation3 + $0x108] sm:$0xf] %v11345_v40  ;;  %v6511_v37 = vmul.f32 %v6493_v50, %v16420_v8  ;;  %v11346_v50 = vpack.c.bf16 %v6510_v38, %v6510_v38  ;;  %12239 = vmatpush3.bf16.msra.mxu0 %v13550_v47 }
 0x404   :  { %6473 = vst [vmem:[#allocation3 + $0x104] sm:$0xf] %v11327_v33  ;;  %v11293_v9 = vpack.c.bf16 %v6151_v5, %v6151_v5  ;;  %v6384_v49 = vmul.f32 %v6366_v13, %v16421_v29  ;;  %6240 = vst [vmem:[#allocation3 + $0x120] sm:$0xf] %v11292_v23  ;;  %v16422_v4 = vld [vmem:[#allocation33_spill] sm:$0xff]  ;;  %v16423_v20 = vld [vmem:[#allocation19_spill] sm:$0xff]  ;;  %v11312_v27 = vpack.c.bf16 %v6260_v42, %v6260_v42 }
 0x405   :  { %6348 = vst [vmem:[#allocation3 + $0x124] sm:$0xf] %v11310_v51  ;;  %6349 = vst [vmem:[#allocation3 + $0x148] sm:$0xf] %v11311_v1  ;;  %v6385_v16 = vmul.f32 %v6367_v0, %v16422_v4  ;;  %v6152_v15 = vmul.f32 %v15403_v60, %v16423_v20  ;;  %v6368_v55 = vld [vmem:[#allocation2 + $0x55] sm:$0xff]  ;;  %v6369_v59 = vld [vmem:[#allocation2 + $0x5d] sm:$0xff]  ;;  %v11313_v62 = vpack.c.bf16 %v6261_v36, %v6261_v36 }
 0x406   :  { %v6494_v63 = vld [vmem:[#allocation2 + $0x5f] sm:$0xff]  ;;  %7065 = vst [vmem:[#allocation3 + $0xd0] sm:$0xf] %v11310_v51  ;;  %7066 = vst [vmem:[#allocation3 + $0xf4] sm:$0xf] %v11311_v1  ;;  %v11328_v43 = vpack.c.bf16 %v6384_v49, %v6384_v49  ;;  %v6084_v5 = vadd.f32 1.0, %v13687_v39  ;;  %v11347_v40 = vpack.c.bf16 %v6511_v37, %v6511_v37 }
 0x407   :  { %v13551_v33 = vld [vmem:[#allocation4 + $0x608] sm:$0xff]   ;;  %6119 = vst [vmem:[#allocation2 + $0x78] sm:$0xff] %v6101_v44  ;;  %v13480_v58 = vld [vmem:[#allocation3 + $0x98] ss:$36 sps:$4 sm:$0xff]   ;;  %6241 = vst [vmem:[#allocation3 + $0x144] sm:$0xf] %v11293_v9  ;;  %v11329_v19 = vpack.c.bf16 %v6385_v16, %v6385_v16  ;;  %v11294_v44 = vpack.c.bf16 %v6152_v15, %v6152_v15  ;;  %v6512_v38 = vmul.f32 %v6494_v63, %v16423_v20 }
 0x408   :  { %v13482_v12 = vld [vmem:[#allocation3 + $0x9c] ss:$36 sps:$4 sm:$0xff]   ;;  %v16424_v13 = vld [vmem:[#allocation18_spill] sm:$0xff]  ;;  %v15416_v23 = vld [vmem:[#allocation2 + $0x63] sm:$0xff]  ;;  %6474 = vst [vmem:[#allocation3 + $0x128] sm:$0xf] %v11328_v43  ;;  %v6102_v47 = vmul.f32 %v6084_v5, %v15325_v32  ;;  %12307 = vmatpush3.bf16.msra.mxu1 %v13551_v33 }
 0x409   :  { %v6153_v0 = vmul.f32 %v15405_v24, %v16424_v13  ;;  %v13555_v21 = vld [vmem:[#allocation4 + $0x640] sm:$0xff]   ;;  %v6495_v61 = vld [vmem:[#allocation2 + $0x67] sm:$0xff]  ;;  %16425 = vst [vmem:[#allocation28_spill] sm:$0xff] %v15416_v23  ;;  %8437 = vmatprep.mubr.bf16.mxu1 %v13482_v12  ;;  %6350 = vst [vmem:[#allocation3 + $0x16c] sm:$0xf] %v11312_v27 }
 0x40a   :  { %v13483_v51 = vld [vmem:[#allocation3 + $0xd8] ss:$36 sps:$4 sm:$0xff]   ;;  %6351 = vst [vmem:[#allocation3 + $0x190] sm:$0xf] %v11313_v62  ;;  %v16426_v49 = vld [vmem:[#allocation34_spill] sm:$0xff]  ;;  %v16427_v36 = vld [vmem:[#allocation35_spill] sm:$0xff]  ;;  %8438 = vmatmul.mubr.bf16.gmra.mxu1 %v13480_v58  ;;  %v6513_v37 = vmul.f32 %v6495_v61, %v16424_v13  ;;  %v11348_v61 = vpack.c.bf16 %v6512_v38, %v6512_v38  ;;  %12308 = vmatprep.subr.bf16.mxu1 %v13555_v21 }
 0x40b   :  { %v13485_v1 = vld [vmem:[#allocation3 + $0xdc] ss:$36 sps:$4 sm:$0xff]   ;;  %v11295_v9 = vpack.c.bf16 %v6153_v0, %v6153_v0  ;;  %v6386_v42 = vmul.f32 %v6368_v55, %v16426_v49  ;;  %v6387_v8 = vmul.f32 %v6369_v59, %v16427_v36  ;;  %v15422_v16 = vld [vmem:[#allocation2 + $0x18] sm:$0xff]  ;;  %7067 = vst [vmem:[#allocation3 + $0x118] sm:$0xf] %v11312_v27  ;;  %v6262_v12 = vld [vmem:[#allocation2 + $0x64] sm:$0xff]  ;;  %v13689_v0 = vpop.eup %13688 }
 0x40c   :  { %v15420_v39 = vld [vmem:[#allocation2 + $0x10] sm:$0xff]  ;;  %7068 = vst [vmem:[#allocation3 + $0x13c] sm:$0xf] %v11313_v62  ;;  %6475 = vst [vmem:[#allocation3 + $0x14c] sm:$0xf] %v11329_v19  ;;  %8340 = vmatprep.mubr.bf16.mxu0 %v13485_v1  ;;  %v16430_v27 = vld [vmem:[#allocation20_spill] sm:$0xff]  ;;  %v11314_v5 = vpack.c.bf16 %v6262_v12, %v6262_v12  ;;  %v11349_v13 = vpack.c.bf16 %v6513_v37, %v6513_v37 }
 0x40d   :  { %6600 = vst [vmem:[#allocation3 + $0x12c] sm:$0xf] %v11346_v50  ;;  %6601 = vst [vmem:[#allocation3 + $0x150] sm:$0xf] %v11347_v40  ;;  %v15427_v15 = vld [vmem:[#allocation2 + $0x6b] sm:$0xff]  ;;  %v11330_v32 = vpack.c.bf16 %v6386_v42, %v6386_v42  ;;  %v11331_v58 = vpack.c.bf16 %v6387_v8, %v6387_v8  ;;  %v6085_v40 = vadd.f32 1.0, %v13689_v0  ;;  %8341 = vmatmul.mubr.bf16.gmra.mxu0 %v13483_v51  ;;  %v13691_v51 = vpop.eup %13690 }
 0x40e   :  { %16428 = vst [vmem:[#allocation44_spill] sm:$0xff] %v15427_v15  ;;  %v16429_v55 = vld [vmem:[#allocation21_spill] sm:$0xff]  ;;  %6242 = vst [vmem:[#allocation3 + $0x168] sm:$0xf] %v11294_v44  ;;  %v6155_v62 = vmul.f32 %v15427_v15, %v16430_v27  ;;  %v6370_v63 = vld [vmem:[#allocation2 + $0x65] sm:$0xff]  ;;  %v11356_v37 = vpack.c.bf16 %v15420_v39, %v15420_v39  ;;  %v6086_v21 = vadd.f32 1.0, %v13691_v51 }
 0x40f   :  { %v6154_v59 = vmul.f32 %v15416_v23, %v16429_v55  ;;  %v6263_v43 = vld [vmem:[#allocation2 + $0x6c] sm:$0xff]  ;;  %6243 = vst [vmem:[#allocation3 + $0x18c] sm:$0xf] %v11295_v9  ;;  %6120 = vst [vmem:[#allocation2 + $0x80] sm:$0xff] %v6102_v47  ;;  %v13559_v1 = vld [vmem:[#allocation4 + $0x600] sm:$0xff]   ;;  %v6103_v47 = vmul.f32 %v6085_v40, %v15346_v46 }
 0x410   :  { %v6371_v19 = vld [vmem:[#allocation2 + $0x6d] sm:$0xff]  ;;  %6476 = vst [vmem:[#allocation3 + $0x170] sm:$0xf] %v11330_v32  ;;  %6477 = vst [vmem:[#allocation3 + $0x194] sm:$0xf] %v11331_v58  ;;  %v11297_v8 = vpack.c.bf16 %v6155_v62, %v6155_v62  ;;  %v11315_v9 = vpack.c.bf16 %v6263_v43, %v6263_v43  ;;  %v6719_v23 = vld [vmem:[#allocation2 + $0x19] sm:$0xff]  ;;  %12309 = vmatpush3.bf16.msra.mxu1 %v13559_v1 }
 0x411   :  { %v6496_v50 = vld [vmem:[#allocation2 + $0x6f] sm:$0xff]  ;;  %v11296_v20 = vpack.c.bf16 %v6154_v59, %v6154_v59  ;;  %6352 = vst [vmem:[#allocation3 + $0x1b4] sm:$0xf] %v11314_v5  ;;  %7069 = vst [vmem:[#allocation3 + $0x160] sm:$0xf] %v11314_v5  ;;  %v11357_v59 = vpack.c.bf16 %v15422_v16, %v15422_v16  ;;  %v15441_v43 = vld [vmem:[#allocation2 + $0x20] sm:$0xff] }
 0x412   :  { %v6718_v36 = vld [vmem:[#allocation2 + $0x11] sm:$0xff]  ;;  %v16431_v42 = vld [vmem:[#allocation36_spill] sm:$0xff]  ;;  %6602 = vst [vmem:[#allocation3 + $0x174] sm:$0xf] %v11348_v61  ;;  %6603 = vst [vmem:[#allocation3 + $0x198] sm:$0xf] %v11349_v13  ;;  %v6514_v33 = vmul.f32 %v6496_v50, %v16429_v55 }
 0x413   :  { %v13488_v44 = vld [vmem:[#allocation3 + $0xe4] ss:$36 sps:$4 sm:$0xff]   ;;  %v6388_v12 = vmul.f32 %v6370_v63, %v16431_v42  ;;  %6244 = vst [vmem:[#allocation3 + $0x1b0] sm:$0xf] %v11296_v20  ;;  %v15443_v0 = vld [vmem:[#allocation2] sm:$0xff]  ;;  %v15449_v5 = vld [vmem:[#allocation2 + $0x28] sm:$0xff] }
 0x414   :  { %v16432_v15 = vld [vmem:[#allocation37_spill] sm:$0xff]  ;;  %12655 = vmatprep.subr.bf16.mxu0 %v15443_v0  ;;  %8445 = vmatprep.mubr.bf16.mxu1 %v13488_v44  ;;  %6245 = vst [vmem:[#allocation3 + $0x1d4] sm:$0xf] %v11297_v8  ;;  %6353 = vst [vmem:[#allocation3 + $0x1d8] sm:$0xf] %v11315_v9  ;;  %v16433_v39 = vld [vmem:[#allocation27_spill] sm:$0xff] }
 0x415   :  { %v6389_v49 = vmul.f32 %v6371_v19, %v16432_v15  ;;  %v13486_v38 = vld [vmem:[#allocation3 + $0xe0] ss:$36 sps:$4 sm:$0xff]   ;;  %v11332_v20 = vpack.c.bf16 %v6388_v12, %v6388_v12  ;;  %v6736_v62 = vmul.f32 %v6718_v36, %v16433_v39  ;;  %7070 = vst [vmem:[#allocation3 + $0x184] sm:$0xf] %v11315_v9  ;;  %6121 = vst [vmem:[#allocation2 + $0x88] sm:$0xff] %v6103_v47  ;;  %v16434_v50 = vld [vmem:[#allocation23_spill] sm:$0xff]  ;;  %9028 = vmatprep.subr.mxu1 %v15443_v0 }
 0x416   :  { %v13491_v46 = vld [vmem:[#allocation3 + $0x124] ss:$36 sps:$4 sm:$0xff]   ;;  %v11350_v19 = vpack.c.bf16 %v6514_v33, %v6514_v33  ;;  %6700 = vst [vmem:[#allocation3 + $0x10] sm:$0xf] %v11356_v37  ;;  %6701 = vst [vmem:[#allocation3 + $0x34] sm:$0xf] %v11357_v59  ;;  %v6104_v36 = vmul.f32 %v6086_v21, %v15358_v3  ;;  %8446 = vmatmul.mubr.bf16.gmra.mxu1 %v13486_v38  ;;  %v11358_v38 = vpack.c.bf16 %v15441_v43, %v15441_v43 }
 0x417   :  { %v11333_v13 = vpack.c.bf16 %v6389_v49, %v6389_v49  ;;  %v6497_v32 = vld [vmem:[#allocation2 + $0x77] sm:$0xff]  ;;  %v6737_v49 = vmul.f32 %v6719_v23, %v14137_v26  ;;  %8348 = vmatprep.mubr.bf16.mxu0 %v13491_v46  ;;  %6478 = vst [vmem:[#allocation3 + $0x1b8] sm:$0xf] %v11332_v20  ;;  %v11374_v51 = vpack.c.bf16 %v6736_v62, %v6736_v62  ;;  %v6720_v47 = vld [vmem:[#allocation2 + $0x21] sm:$0xff]  ;;  %v6721_v33 = vld [vmem:[#allocation2 + $0x29] sm:$0xff] }
 0x418   :  { %v15446_v58 = vld [vmem:[#allocation2 + $0x73] sm:$0xff]  ;;  %v6515_v63 = vmul.f32 %v6497_v32, %v16430_v27  ;;  %v13693_v32 = vpop.eup %13692  ;;  %v13494_v39 = vld [vmem:[#allocation3 + $0x12c] ss:$36 sps:$4 sm:$0xff]   ;;  %6604 = vst [vmem:[#allocation3 + $0x1bc] sm:$0xf] %v11350_v19  ;;  %v6862_v23 = vmul.f32 %v15289_v41, %v16411_v56  ;;  %6122 = vst [vmem:[#allocation2 + $0x90] sm:$0xff] %v6104_v36  ;;  %v6863_v20 = vmul.f32 %v15322_v54, %v16410_v10 }
 0x419   :  { %v13489_v16 = vld [vmem:[#allocation3 + $0x120] ss:$36 sps:$4 sm:$0xff]   ;;  %v6156_v40 = vmul.f32 %v15446_v58, %v16434_v50  ;;  %6479 = vst [vmem:[#allocation3 + $0x1dc] sm:$0xf] %v11333_v13  ;;  %v16435_v9 = vld [vmem:[#allocation38_spill] sm:$0xff]  ;;  %v11375_v59 = vpack.c.bf16 %v6737_v49, %v6737_v49  ;;  %v6087_v3 = vadd.f32 1.0, %v13693_v32  ;;  %8453 = vmatprep.mubr.bf16.mxu1 %v13494_v39  ;;  %v11359_v54 = vpack.c.bf16 %v15449_v5, %v15449_v5 }
 0x41a   :  { %v6264_v61 = vld [vmem:[#allocation2 + $0x74] sm:$0xff]  ;;  %v11351_v27 = vpack.c.bf16 %v6515_v63, %v6515_v63  ;;  %v13499_v1 = vld [vmem:[#allocation3 + $0x16c] ss:$36 sps:$4 sm:$0xff]   ;;  %6826 = vst [vmem:[#allocation3 + $0x14] sm:$0xf] %v11374_v51  ;;  %8349 = vmatmul.mubr.bf16.gmra.mxu0 %v13489_v16  ;;  %v11392_v10 = vpack.c.bf16 %v6862_v23, %v6862_v23  ;;  %v6739_v5 = vmul.f32 %v6721_v33, %v14152_v45 }
 0x41b   :  { %v6372_v44 = vld [vmem:[#allocation2 + $0x75] sm:$0xff]  ;;  %v11316_v8 = vpack.c.bf16 %v6264_v61, %v6264_v61  ;;  %v11298_v37 = vpack.c.bf16 %v6156_v40, %v6156_v40  ;;  %v6373_v63 = vld [vmem:[#allocation2 + $0x7d] sm:$0xff]  ;;  %6827 = vst [vmem:[#allocation3 + $0x38] sm:$0xf] %v11375_v59  ;;  %v6105_v43 = vmul.f32 %v6087_v3, %v15377_v18  ;;  %8356 = vmatprep.mubr.bf16.mxu0 %v13499_v1  ;;  %6702 = vst [vmem:[#allocation3 + $0x58] sm:$0xf] %v11358_v38 }
 0x41c   :  { %v6390_v12 = vmul.f32 %v6372_v44, %v16435_v9  ;;  %v15459_v21 = vld [vmem:[#allocation2 + $0x7b] sm:$0xff]  ;;  %v15465_v13 = vld [vmem:[#allocation2 + $0x30] sm:$0xff]  ;;  %6605 = vst [vmem:[#allocation3 + $0x1e0] sm:$0xf] %v11351_v27  ;;  %6952 = vst [vmem:[#allocation3 + $0x18] sm:$0xf] %v11392_v10  ;;  %v6864_v23 = vmul.f32 %v15331_v53, %v16412_v34  ;;  %v6865_v3 = vmul.f32 %v15372_v11, %v16413_v17 }
 0x41d   :  { %6354 = vst [vmem:[#allocation3 + $0x1fc] sm:$0xf] %v11316_v8  ;;  %7071 = vst [vmem:[#allocation3 + $0x1a8] sm:$0xf] %v11316_v8  ;;  %v16436_v56 = vld [vmem:[#allocation22_spill] sm:$0xff]  ;;  %v16437_v61 = vld [vmem:[#allocation39_spill] sm:$0xff]  ;;  %v11393_v8 = vpack.c.bf16 %v6863_v20, %v6863_v20 }
 0x41e   :  { %v11334_v46 = vpack.c.bf16 %v6390_v12, %v6390_v12  ;;  %v6157_v41 = vmul.f32 %v15459_v21, %v16436_v56  ;;  %6246 = vst [vmem:[#allocation3 + $0x1f8] sm:$0xf] %v11298_v37  ;;  %v6265_v62 = vld [vmem:[#allocation2 + $0x7c] sm:$0xff]  ;;  %v6391_v16 = vmul.f32 %v6373_v63, %v16437_v61  ;;  %v6722_v44 = vld [vmem:[#allocation2 + $0x31] sm:$0xff]  ;;  %6703 = vst [vmem:[#allocation3 + $0x7c] sm:$0xf] %v11359_v54 }
 0x41f   :  { %v6498_v19 = vld [vmem:[#allocation2 + $0x7f] sm:$0xff]  ;;  %v11317_v40 = vpack.c.bf16 %v6265_v62, %v6265_v62  ;;  %v6738_v12 = vmul.f32 %v6720_v47, %v14150_v30  ;;  %6123 = vst [vmem:[#allocation2 + $0x98] sm:$0xff] %v6105_v43  ;;  %v6499_v37 = vld [vmem:[#allocation2 + $0x87] sm:$0xff]  ;;  %6953 = vst [vmem:[#allocation3 + $0x3c] sm:$0xf] %v11393_v8  ;;  %v11360_v62 = vpack.c.bf16 %v15465_v13, %v15465_v13 }
 0x420   :  { %6480 = vst [vmem:[#allocation3 + $0x200] sm:$0xf] %v11334_v46  ;;  %v6516_v27 = vmul.f32 %v6498_v19, %v16434_v50  ;;  %v6615_v39 = vld [vmem:[#allocation2 + $0x38] sm:$0xff]  ;;  %v11299_v36 = vpack.c.bf16 %v6157_v41, %v6157_v41  ;;  %v13502_v51 = vld [vmem:[#allocation3 + $0x174] ss:$36 sps:$4 sm:$0xff]   ;;  %v11335_v32 = vpack.c.bf16 %v6391_v16, %v6391_v16  ;;  %v6517_v47 = vmul.f32 %v6499_v37, %v16436_v56  ;;  %v16438_v11 = vld [vmem:[#allocation25_spill] sm:$0xff] }
 0x421   :  { %v13492_v49 = vld [vmem:[#allocation3 + $0x128] ss:$36 sps:$4 sm:$0xff]   ;;  %6355 = vst [vmem:[#allocation3 + $0x220] sm:$0xf] %v11317_v40  ;;  %7072 = vst [vmem:[#allocation3 + $0x1cc] sm:$0xf] %v11317_v40  ;;  %v11376_v38 = vpack.c.bf16 %v6738_v12, %v6738_v12  ;;  %v11377_v41 = vpack.c.bf16 %v6739_v5, %v6739_v5  ;;  %v11394_v43 = vpack.c.bf16 %v6864_v23, %v6864_v23 }
 0x422   :  { %v13497_v18 = vld [vmem:[#allocation3 + $0x168] ss:$36 sps:$4 sm:$0xff]   ;;  %v11352_v59 = vpack.c.bf16 %v6516_v27, %v6516_v27  ;;  %6247 = vst [vmem:[#allocation3 + $0x21c] sm:$0xf] %v11299_v36  ;;  %v15482_v46 = vld [vmem:[#allocation2 + $0x83] sm:$0xff]  ;;  %8454 = vmatmul.mubr.bf16.gmra.mxu1 %v13492_v49  ;;  %v11353_v16 = vpack.c.bf16 %v6517_v47, %v6517_v47  ;;  %v15496_v27 = vld [vmem:[#allocation2 + $0x8b] sm:$0xff]  ;;  %v11395_v36 = vpack.c.bf16 %v6865_v3, %v6865_v3 }
 0x423   :  { %v6723_v1 = vld [vmem:[#allocation2 + $0x39] sm:$0xff]  ;;  %v6266_v33 = vld [vmem:[#allocation2 + $0x84] sm:$0xff]  ;;  %6481 = vst [vmem:[#allocation3 + $0x224] sm:$0xf] %v11335_v32  ;;  %v6158_v63 = vmul.f32 %v15482_v46, %v16438_v11  ;;  %v6267_v13 = vld [vmem:[#allocation2 + $0x8c] sm:$0xff]  ;;  %v11361_v8 = vpack.c.bf16 %v6615_v39, %v6615_v39  ;;  %v6740_v12 = vmul.f32 %v6722_v44, %v16372_v48  ;;  %8461 = vmatprep.mubr.bf16.mxu1 %v13502_v51 }
 0x424   :  { %v15484_v20 = vld [vmem:[#allocation2 + $0x85] sm:$0xff]  ;;  %6606 = vst [vmem:[#allocation3 + $0x204] sm:$0xf] %v11352_v59  ;;  %v11318_v19 = vpack.c.bf16 %v6266_v33, %v6266_v33  ;;  %6828 = vst [vmem:[#allocation3 + $0x5c] sm:$0xf] %v11376_v38  ;;  %v11319_v59 = vpack.c.bf16 %v6267_v13, %v6267_v13  ;;  %8357 = vmatmul.mubr.bf16.gmra.mxu0 %v13497_v18  ;;  %v6741_v39 = vmul.f32 %v6723_v1, %v16414_v14  ;;  %v6618_v47 = vld [vmem:[#allocation2 + $0x50] sm:$0xff] }
 0x425   :  { %v15488_v34 = vld [vmem:[#allocation2 + $0x40] sm:$0xff]  ;;  %v15490_v53 = vld [vmem:[#allocation2 + $0x48] sm:$0xff]  ;;  %6829 = vst [vmem:[#allocation3 + $0x80] sm:$0xf] %v11377_v41  ;;  %6704 = vst [vmem:[#allocation3 + $0xa0] sm:$0xf] %v11360_v62  ;;  %v11300_v37 = vpack.c.bf16 %v6158_v63, %v6158_v63  ;;  %v11378_v3 = vpack.c.bf16 %v6740_v12, %v6740_v12  ;;  %v6866_v44 = vmul.f32 %v15374_v22, %v14043_v7 }
 0x426   :  { %v13509_v17 = vld [vmem:[#allocation3 + $0x1b4] ss:$36 sps:$4 sm:$0xff]   ;;  %6356 = vst [vmem:[#allocation3 + $0x244] sm:$0xf] %v11318_v19  ;;  %6954 = vst [vmem:[#allocation3 + $0x60] sm:$0xf] %v11394_v43  ;;  %v6867_v51 = vmul.f32 %v15389_v57, %v14041_v6  ;;  %v11362_v62 = vpack.c.bf16 %v15488_v34, %v15488_v34  ;;  %v11363_v1 = vpack.c.bf16 %v15490_v53, %v15490_v53 }
 0x427   :  { %v16439_v10 = vld [vmem:[#allocation40_spill] sm:$0xff]  ;;  %7073 = vst [vmem:[#allocation3 + $0x1f0] sm:$0xf] %v11318_v19  ;;  %6607 = vst [vmem:[#allocation3 + $0x228] sm:$0xf] %v11353_v16  ;;  %v6619_v33 = vld [vmem:[#allocation2 + $0x58] sm:$0xff]  ;;  %8364 = vmatprep.mubr.bf16.mxu0 %v13509_v17  ;;  %v11379_v43 = vpack.c.bf16 %v6741_v39, %v6741_v39  ;;  %v11396_v16 = vpack.c.bf16 %v6866_v44, %v6866_v44  ;;  %v6868_v39 = vmul.f32 %v15391_v52, %v16415_v31 }
 0x428   :  { %v6392_v54 = vmul.f32 %v15484_v20, %v16439_v10  ;;  %v6724_v40 = vld [vmem:[#allocation2 + $0x41] sm:$0xff]  ;;  %v6725_v49 = vld [vmem:[#allocation2 + $0x49] sm:$0xff]  ;;  %6955 = vst [vmem:[#allocation3 + $0x84] sm:$0xf] %v11395_v36  ;;  %6705 = vst [vmem:[#allocation3 + $0xc4] sm:$0xf] %v11361_v8  ;;  %v11397_v8 = vpack.c.bf16 %v6867_v51, %v6867_v51  ;;  %v6870_v31 = vmul.f32 %v15405_v24, %v16419_v2 }
 0x429   :  { %v16440_v5 = vld [vmem:[#allocation24_spill] sm:$0xff]  ;;  %6248 = vst [vmem:[#allocation3 + $0x240] sm:$0xf] %v11300_v37  ;;  %6357 = vst [vmem:[#allocation3 + $0x268] sm:$0xf] %v11319_v59  ;;  %v6742_v7 = vmul.f32 %v6724_v40, %v16417_v25  ;;  %v6726_v22 = vld [vmem:[#allocation2 + $0x51] sm:$0xff]  ;;  %v6743_v40 = vmul.f32 %v6725_v49, %v16418_v28  ;;  %v11364_v49 = vpack.c.bf16 %v6618_v47, %v6618_v47 }
 0x42a   :  { %v6159_v32 = vmul.f32 %v15496_v27, %v16440_v5  ;;  %v11336_v23 = vpack.c.bf16 %v6392_v54, %v6392_v54  ;;  %v6375_v41 = vld [vmem:[#allocation2 + $0x8d] sm:$0xff]  ;;  %v6727_v63 = vld [vmem:[#allocation2 + $0x59] sm:$0xff]  ;;  %7074 = vst [vmem:[#allocation3 + $0x214] sm:$0xf] %v11319_v59  ;;  %6830 = vst [vmem:[#allocation3 + $0xa4] sm:$0xf] %v11378_v3  ;;  %v6869_v3 = vmul.f32 %v15403_v60, %v16416_v35 }
 0x42b   :  { %v6500_v18 = vld [vmem:[#allocation2 + $0x8f] sm:$0xff]  ;;  %v13500_v6 = vld [vmem:[#allocation3 + $0x170] ss:$36 sps:$4 sm:$0xff]   ;;  %v6501_v19 = vld [vmem:[#allocation2 + $0x97] sm:$0xff]  ;;  %6706 = vst [vmem:[#allocation3 + $0xe8] sm:$0xf] %v11362_v62  ;;  %v11380_v12 = vpack.c.bf16 %v6742_v7, %v6742_v7  ;;  %v11381_v51 = vpack.c.bf16 %v6743_v40, %v6743_v40  ;;  %v6745_v7 = vmul.f32 %v6727_v63, %v16422_v4  ;;  %v11400_v2 = vpack.c.bf16 %v6870_v31, %v6870_v31 }
 0x42c   :  { %v11301_v38 = vpack.c.bf16 %v6159_v32, %v6159_v32  ;;  %6482 = vst [vmem:[#allocation3 + $0x248] sm:$0xf] %v11336_v23  ;;  %v16441_v57 = vld [vmem:[#allocation41_spill] sm:$0xff]  ;;  %v6518_v54 = vmul.f32 %v6500_v18, %v16438_v11  ;;  %v6620_v13 = vld [vmem:[#allocation2 + $0x60] sm:$0xff]  ;;  %v6621_v36 = vld [vmem:[#allocation2 + $0x68] sm:$0xff]  ;;  %v6519_v53 = vmul.f32 %v6501_v19, %v16440_v5  ;;  %8462 = vmatmul.mubr.bf16.gmra.mxu1 %v13500_v6 }
 0x42d   :  { %v6393_v17 = vmul.f32 %v6375_v41, %v16441_v57  ;;  %v13516_v34 = vld [vmem:[#allocation3 + $0x1bc] ss:$36 sps:$4 sm:$0xff]   ;;  %6707 = vst [vmem:[#allocation3 + $0x10c] sm:$0xf] %v11363_v1  ;;  %v6728_v32 = vld [vmem:[#allocation2 + $0x61] sm:$0xff]  ;;  %v11398_v18 = vpack.c.bf16 %v6868_v39, %v6868_v39  ;;  %v11399_v62 = vpack.c.bf16 %v6869_v3, %v6869_v3  ;;  %v6744_v1 = vmul.f32 %v6726_v22, %v16421_v29  ;;  %v7085_v31 = vld [vmem:[#allocation2 + $0x55] sm:$0xff] }
 0x42e   :  { %6249 = vst [vmem:[#allocation3 + $0x264] sm:$0xf] %v11301_v38  ;;  %v6729_v37 = vld [vmem:[#allocation2 + $0x69] sm:$0xff]  ;;  %v13507_v59 = vld [vmem:[#allocation3 + $0x1b0] ss:$36 sps:$4 sm:$0xff]   ;;  %v11354_v41 = vpack.c.bf16 %v6518_v54, %v6518_v54  ;;  %v11355_v44 = vpack.c.bf16 %v6519_v53, %v6519_v53  ;;  %v11365_v38 = vpack.c.bf16 %v6619_v33, %v6619_v33  ;;  %8469 = vmatprep.mubr.bf16.mxu1 %v13516_v34  ;;  %v16444_v54 = vld [vmem:[#allocation34_spill] sm:$0xff] }
 0x42f   :  { %v11337_v23 = vpack.c.bf16 %v6393_v17, %v6393_v17  ;;  %6831 = vst [vmem:[#allocation3 + $0xc8] sm:$0xf] %v11379_v43  ;;  %6956 = vst [vmem:[#allocation3 + $0xa8] sm:$0xf] %v11396_v16  ;;  %v13523_v5 = vld [vmem:[#allocation3 + $0x1fc] ss:$36 sps:$4 sm:$0xff]   ;;  %v11366_v47 = vpack.c.bf16 %v6620_v13, %v6620_v13  ;;  %v11367_v33 = vpack.c.bf16 %v6621_v36, %v6621_v36  ;;  %8365 = vmatmul.mubr.bf16.gmra.mxu0 %v13507_v59 }
 0x430   :  { %6957 = vst [vmem:[#allocation3 + $0xcc] sm:$0xf] %v11397_v8  ;;  %6832 = vst [vmem:[#allocation3 + $0xec] sm:$0xf] %v11380_v12  ;;  %v16442_v35 = vld [vmem:[#allocation16_spill] sm:$0xff]  ;;  %v6622_v6 = vld [vmem:[#allocation2 + $0x70] sm:$0xff]  ;;  %v11382_v22 = vpack.c.bf16 %v6744_v1, %v6744_v1  ;;  %v11383_v63 = vpack.c.bf16 %v6745_v7, %v6745_v7  ;;  %v6746_v43 = vmul.f32 %v6728_v32, %v16444_v54  ;;  %8372 = vmatprep.mubr.bf16.mxu0 %v13523_v5 }
 0x431   :  { %6483 = vst [vmem:[#allocation3 + $0x26c] sm:$0xf] %v11337_v23  ;;  %6608 = vst [vmem:[#allocation3 + $0x24c] sm:$0xf] %v11354_v41  ;;  %v16443_v52 = vld [vmem:[#allocation28_spill] sm:$0xff]  ;;  %v6623_v17 = vld [vmem:[#allocation2 + $0x78] sm:$0xff]  ;;  %v11368_v3 = vpack.c.bf16 %v6622_v6, %v6622_v6  ;;  %v6876_v6 = vmul.f32 %v15496_v27, %v16434_v50 }
 0x432   :  { %6609 = vst [vmem:[#allocation3 + $0x270] sm:$0xf] %v11355_v44  ;;  %6833 = vst [vmem:[#allocation3 + $0x110] sm:$0xf] %v11381_v51  ;;  %v6871_v60 = vmul.f32 %v16443_v52, %v16442_v35  ;;  %v7078_v19 = vld [vmem:[#allocation2 + $0x1d] sm:$0xff]  ;;  %v6730_v53 = vld [vmem:[#allocation2 + $0x71] sm:$0xff]  ;;  %v11384_v32 = vpack.c.bf16 %v6746_v43, %v6746_v43  ;;  %v11369_v44 = vpack.c.bf16 %v6623_v17, %v6623_v17 }
 0x433   :  { %6708 = vst [vmem:[#allocation3 + $0x130] sm:$0xf] %v11364_v49  ;;  %6709 = vst [vmem:[#allocation3 + $0x154] sm:$0xf] %v11365_v38  ;;  %v16445_v16 = vld [vmem:[#allocation35_spill] sm:$0xff]  ;;  %v16447_v36 = vld [vmem:[#allocation44_spill] sm:$0xff] }
 0x434   :  { %6958 = vst [vmem:[#allocation3 + $0xf0] sm:$0xf] %v11398_v18  ;;  %6959 = vst [vmem:[#allocation3 + $0x114] sm:$0xf] %v11399_v62  ;;  %v6747_v34 = vmul.f32 %v6729_v37, %v16445_v16  ;;  %v7079_v8 = vld [vmem:[#allocation2 + $0x25] sm:$0xff]  ;;  %v11401_v24 = vpack.c.bf16 %v6871_v60, %v6871_v60  ;;  %v16448_v12 = vld [vmem:[#allocation18_spill] sm:$0xff]  ;;  %v6748_v62 = vmul.f32 %v6730_v53, %v16431_v42 }
 0x435   :  { %6710 = vst [vmem:[#allocation3 + $0x178] sm:$0xf] %v11366_v47  ;;  %6711 = vst [vmem:[#allocation3 + $0x19c] sm:$0xf] %v11367_v33  ;;  %v16446_v13 = vld [vmem:[#allocation19_spill] sm:$0xff]  ;;  %v6873_v59 = vmul.f32 %v15446_v58, %v16448_v12  ;;  %v7080_v41 = vld [vmem:[#allocation2 + $0x2d] sm:$0xff]  ;;  %v6874_v60 = vmul.f32 %v15459_v21, %v16429_v55  ;;  %v7097_v53 = vmul.f32 %v7079_v8, %v14137_v26 }
 0x436   :  { %v6872_v40 = vmul.f32 %v16447_v36, %v16446_v13  ;;  %v6731_v23 = vld [vmem:[#allocation2 + $0x79] sm:$0xff]  ;;  %v13514_v39 = vld [vmem:[#allocation3 + $0x1b8] ss:$36 sps:$4 sm:$0xff]   ;;  %6834 = vst [vmem:[#allocation3 + $0x134] sm:$0xf] %v11382_v22  ;;  %v11385_v37 = vpack.c.bf16 %v6747_v34, %v6747_v34  ;;  %v11386_v43 = vpack.c.bf16 %v6748_v62, %v6748_v62  ;;  %v11406_v21 = vpack.c.bf16 %v6876_v6, %v6876_v6 }
 0x437   :  { %6835 = vst [vmem:[#allocation3 + $0x158] sm:$0xf] %v11383_v63  ;;  %v7081_v5 = vld [vmem:[#allocation2 + $0x35] sm:$0xff]  ;;  %v7082_v51 = vld [vmem:[#allocation2 + $0x3d] sm:$0xff]  ;;  %6960 = vst [vmem:[#allocation3 + $0x138] sm:$0xf] %v11400_v2  ;;  %v11403_v18 = vpack.c.bf16 %v6873_v59, %v6873_v59  ;;  %v6749_v58 = vmul.f32 %v6731_v23, %v16432_v15  ;;  %v7098_v2 = vmul.f32 %v7080_v41, %v14150_v30  ;;  %8470 = vmatmul.mubr.bf16.gmra.mxu1 %v13514_v39 }
 0x438   :  { %v13530_v49 = vld [vmem:[#allocation3 + $0x204] ss:$36 sps:$4 sm:$0xff]   ;;  %6961 = vst [vmem:[#allocation3 + $0x15c] sm:$0xf] %v11401_v24  ;;  %v11402_v38 = vpack.c.bf16 %v6872_v40, %v6872_v40  ;;  %v7083_v1 = vld [vmem:[#allocation2 + $0x45] sm:$0xff]  ;;  %v7086_v35 = vld [vmem:[#allocation2 + $0x5d] sm:$0xff]  ;;  %v11404_v24 = vpack.c.bf16 %v6874_v60, %v6874_v60  ;;  %v11429_v50 = vpack.c.bf16 %v7097_v53, %v7097_v53  ;;  %v7103_v8 = vmul.f32 %v7085_v31, %v16418_v28 }
 0x439   :  { %v7084_v7 = vld [vmem:[#allocation2 + $0x4d] sm:$0xff]  ;;  %6836 = vst [vmem:[#allocation3 + $0x17c] sm:$0xf] %v11384_v32  ;;  %6837 = vst [vmem:[#allocation3 + $0x1a0] sm:$0xf] %v11385_v37  ;;  %v16450_v17 = vld [vmem:[#allocation27_spill] sm:$0xff]  ;;  %v11387_v34 = vpack.c.bf16 %v6749_v58, %v6749_v58  ;;  %8477 = vmatprep.mubr.bf16.mxu1 %v13530_v49  ;;  %v11430_v27 = vpack.c.bf16 %v7098_v2, %v7098_v2  ;;  %v7101_v26 = vmul.f32 %v7083_v1, %v16414_v14 }
 0x43a   :  { %v13521_v52 = vld [vmem:[#allocation3 + $0x1f8] ss:$36 sps:$4 sm:$0xff]   ;;  %6712 = vst [vmem:[#allocation3 + $0x1c0] sm:$0xf] %v11368_v3  ;;  %6713 = vst [vmem:[#allocation3 + $0x1e4] sm:$0xf] %v11369_v44  ;;  %v7096_v22 = vmul.f32 %v7078_v19, %v16450_v17  ;;  %v7100_v19 = vmul.f32 %v7082_v51, %v16372_v48  ;;  %v7102_v30 = vmul.f32 %v7084_v7, %v16417_v25 }
 0x43b   :  { %v16449_v47 = vld [vmem:[#allocation20_spill] sm:$0xff]  ;;  %v13537_v63 = vld [vmem:[#allocation3 + $0x244] ss:$36 sps:$4 sm:$0xff]   ;;  %6962 = vst [vmem:[#allocation3 + $0x180] sm:$0xf] %v11402_v38  ;;  %8373 = vmatmul.mubr.bf16.gmra.mxu0 %v13521_v52  ;;  %v7104_v36 = vmul.f32 %v7086_v35, %v16421_v29  ;;  %v7109_v48 = vmul.f32 %v15484_v20, %v16432_v15  ;;  %v11433_v59 = vpack.c.bf16 %v7101_v26, %v7101_v26  ;;  %v6624_v20 = vld [vmem:[#allocation2 + $0x80] sm:$0xff] }
 0x43c   :  { %v6875_v33 = vmul.f32 %v15482_v46, %v16449_v47  ;;  %6963 = vst [vmem:[#allocation3 + $0x1a4] sm:$0xf] %v11403_v18  ;;  %v11428_v13 = vpack.c.bf16 %v7096_v22, %v7096_v22  ;;  %6838 = vst [vmem:[#allocation3 + $0x1c4] sm:$0xf] %v11386_v43  ;;  %v7099_v46 = vmul.f32 %v7081_v5, %v14152_v45  ;;  %8380 = vmatprep.mubr.bf16.mxu0 %v13537_v63  ;;  %v13528_v12 = vld [vmem:[#allocation3 + $0x200] ss:$36 sps:$4 sm:$0xff]  }
 0x43d   :  { %6839 = vst [vmem:[#allocation3 + $0x1e8] sm:$0xf] %v11387_v34  ;;  %6964 = vst [vmem:[#allocation3 + $0x1c8] sm:$0xf] %v11404_v24  ;;  %v11432_v45 = vpack.c.bf16 %v7100_v19, %v7100_v19  ;;  %v11434_v23 = vpack.c.bf16 %v7102_v30, %v7102_v30  ;;  %v11435_v41 = vpack.c.bf16 %v7103_v8, %v7103_v8  ;;  %v13547_v14 = vld [vmem:[#allocation3 + $0x24c] ss:$36 sps:$4 sm:$0xff]  }
 0x43e   :  { %v11405_v55 = vpack.c.bf16 %v6875_v33, %v6875_v33  ;;  %6966 = vst [vmem:[#allocation3 + $0x210] sm:$0xf] %v11406_v21  ;;  %7186 = vst [vmem:[#allocation3 + $0x20] sm:$0xf] %v11428_v13  ;;  %v11431_v40 = vpack.c.bf16 %v7099_v46, %v7099_v46  ;;  %v11436_v39 = vpack.c.bf16 %v7104_v36, %v7104_v36  ;;  %v13535_v28 = vld [vmem:[#allocation3 + $0x240] ss:$36 sps:$4 sm:$0xff]  }
 0x43f   :  { %7187 = vst [vmem:[#allocation3 + $0x44] sm:$0xf] %v11429_v50  ;;  %7188 = vst [vmem:[#allocation3 + $0x68] sm:$0xf] %v11430_v27  ;;  %v11441_v25 = vpack.c.bf16 %v7109_v48, %v7109_v48  ;;  %8478 = vmatmul.mubr.bf16.gmra.mxu1 %v13528_v12  ;;  %v13543_v29 = vld [vmem:[#allocation3 + $0x14] ss:$36 sps:$4 sm:$0xff]   ;;  %v11370_v37 = vpack.c.bf16 %v6624_v20, %v6624_v20 }
 0x440   :  { %6965 = vst [vmem:[#allocation3 + $0x1ec] sm:$0xf] %v11405_v55  ;;  %7189 = vst [vmem:[#allocation3 + $0x8c] sm:$0xf] %v11431_v40  ;;  %8485 = vmatprep.mubr.bf16.mxu1 %v13547_v14  ;;  %v13545_v15 = vld [vmem:[#allocation3 + $0x248] ss:$36 sps:$4 sm:$0xff]  }
 0x441   :  { %7190 = vst [vmem:[#allocation3 + $0xb0] sm:$0xf] %v11432_v45  ;;  %7191 = vst [vmem:[#allocation3 + $0xd4] sm:$0xf] %v11433_v59  ;;  %v6625_v32 = vld [vmem:[#allocation2 + $0x88] sm:$0xff]  ;;  %v6859_v51 = vld [vmem:[#allocation2 + $0x93] sm:$0xff] }
 0x442   :  { %7192 = vst [vmem:[#allocation3 + $0xf8] sm:$0xf] %v11434_v23  ;;  %7193 = vst [vmem:[#allocation3 + $0x11c] sm:$0xf] %v11435_v41  ;;  %v11371_v3 = vpack.c.bf16 %v6625_v32, %v6625_v32  ;;  %v6732_v44 = vld [vmem:[#allocation2 + $0x81] sm:$0xff]  ;;  %v6733_v5 = vld [vmem:[#allocation2 + $0x89] sm:$0xff]  ;;  %v6877_v58 = vmul.f32 %v6859_v51, %v16436_v56 }
 0x443   :  { %7194 = vst [vmem:[#allocation3 + $0x140] sm:$0xf] %v11436_v39  ;;  %7199 = vst [vmem:[#allocation3 + $0x1f4] sm:$0xf] %v11441_v25  ;;  %8381 = vmatmul.mubr.bf16.gmra.mxu0 %v13535_v28  ;;  %v13554_v49 = vld [vmem:[#allocation3 + $0x1c] ss:$36 sps:$4 sm:$0xff]   ;;  %v6750_v18 = vmul.f32 %v6732_v44, %v16435_v9  ;;  %v6751_v62 = vmul.f32 %v6733_v5, %v16437_v61 }
 0x444   :  { %8526 = vmatprep.mubr.bf16.mxu0 %v13543_v29  ;;  %v13587_v38 = vld [vmem:[#allocation4 + $0x6b8] sm:$0xff]   ;;  %6714 = vst [vmem:[#allocation3 + $0x208] sm:$0xf] %v11370_v37  ;;  %6715 = vst [vmem:[#allocation3 + $0x22c] sm:$0xf] %v11371_v3  ;;  %v6627_v35 = vld [vmem:[#allocation2 + $0x98] sm:$0xff]  ;;  %v11407_v17 = vpack.c.bf16 %v6877_v58, %v6877_v58 }
 0x445   :  { %v6985_v1 = vld [vmem:[#allocation2 + $0x94] sm:$0xff]  ;;  %v11388_v33 = vpack.c.bf16 %v6750_v18, %v6750_v18  ;;  %v11389_v6 = vpack.c.bf16 %v6751_v62, %v6751_v62  ;;  %v11373_v22 = vpack.c.bf16 %v6627_v35, %v6627_v35  ;;  %v6986_v43 = vld [vmem:[#allocation2 + $0x9c] sm:$0xff]  ;;  %v13558_v55 = vld [vmem:[#allocation3 + $0x5c] ss:$36 sps:$4 sm:$0xff]  }
 0x446   :  { %v6626_v7 = vld [vmem:[#allocation2 + $0x90] sm:$0xff]  ;;  %v11425_v31 = vpack.c.bf16 %v6985_v1, %v6985_v1  ;;  %v6735_v47 = vld [vmem:[#allocation2 + $0x99] sm:$0xff]  ;;  %v11426_v24 = vpack.c.bf16 %v6986_v43, %v6986_v43  ;;  %6967 = vst [vmem:[#allocation3 + $0x234] sm:$0xf] %v11407_v17  ;;  %v13594_v46 = vld [vmem:[#allocation4 + $0x6b0] sm:$0xff]  }
 0x447   :  { %v11372_v52 = vpack.c.bf16 %v6626_v7, %v6626_v7  ;;  %v6734_v60 = vld [vmem:[#allocation2 + $0x91] sm:$0xff]  ;;  %v6860_v63 = vld [vmem:[#allocation2 + $0x9b] sm:$0xff]  ;;  %8486 = vmatmul.mubr.bf16.gmra.mxu1 %v13545_v15  ;;  %v6753_v53 = vmul.f32 %v6735_v47, %v16441_v57  ;;  %6840 = vst [vmem:[#allocation3 + $0x20c] sm:$0xf] %v11388_v33  ;;  %6841 = vst [vmem:[#allocation3 + $0x230] sm:$0xf] %v11389_v6 }
 0x448   :  { %v13541_v34 = vld [vmem:[#allocation3 + $0x10] ss:$36 sps:$4 sm:$0xff]   ;;  %7075 = vst [vmem:[#allocation3 + $0x238] sm:$0xf] %v11425_v31  ;;  %v6752_v56 = vmul.f32 %v6734_v60, %v16439_v10  ;;  %v6878_v2 = vmul.f32 %v6860_v63, %v16438_v11  ;;  %8631 = vmatprep.mubr.bf16.mxu1 %v13554_v49  ;;  %6717 = vst [vmem:[#allocation3 + $0x274] sm:$0xf] %v11373_v22 }
 0x449   :  { %6716 = vst [vmem:[#allocation3 + $0x250] sm:$0xf] %v11372_v52  ;;  %v11391_v13 = vpack.c.bf16 %v6753_v53, %v6753_v53  ;;  %7076 = vst [vmem:[#allocation3 + $0x25c] sm:$0xf] %v11426_v24  ;;  %v7087_v27 = vld [vmem:[#allocation2 + $0x65] sm:$0xff]  ;;  %v7088_v57 = vld [vmem:[#allocation2 + $0x6d] sm:$0xff] }
 0x44a   :  { %v11390_v21 = vpack.c.bf16 %v6752_v56, %v6752_v56  ;;  %v11408_v50 = vpack.c.bf16 %v6878_v2, %v6878_v2  ;;  %v7105_v11 = vmul.f32 %v7087_v27, %v16422_v4  ;;  %v7089_v19 = vld [vmem:[#allocation2 + $0x75] sm:$0xff]  ;;  %v7106_v26 = vmul.f32 %v7088_v57, %v16444_v54  ;;  %v7090_v8 = vld [vmem:[#allocation2 + $0x7d] sm:$0xff]  ;;  %v7092_v36 = vld [vmem:[#allocation2 + $0x8d] sm:$0xff] }
 0x44b   :  { %8527 = vmatmul.mubr.bf16.vlgmr.msra.gmra.mxu0 %v13541_v34  ;;  %6843 = vst [vmem:[#allocation3 + $0x278] sm:$0xf] %v11391_v13  ;;  %v7107_v30 = vmul.f32 %v7089_v19, %v16445_v16  ;;  %v13552_v40 = vld [vmem:[#allocation3 + $0x18] ss:$36 sps:$4 sm:$0xff]   ;;  %v7108_v48 = vmul.f32 %v7090_v8, %v16431_v42  ;;  %v7093_v12 = vld [vmem:[#allocation2 + $0x95] sm:$0xff]  ;;  %v7110_v59 = vmul.f32 %v7092_v36, %v16435_v9  ;;  %v7094_v23 = vld [vmem:[#allocation2 + $0x9d] sm:$0xff] }
 0x44c   :  { %8534 = vmatprep.mubr.bf16.mxu0 %v13558_v55  ;;  %12656 = vmatpush3.bf16.msra.mxu0 %v13587_v38  ;;  %6842 = vst [vmem:[#allocation3 + $0x254] sm:$0xf] %v11390_v21  ;;  %6968 = vst [vmem:[#allocation3 + $0x258] sm:$0xf] %v11408_v50  ;;  %v11437_v45 = vpack.c.bf16 %v7105_v11, %v7105_v11  ;;  %v13562_v41 = vld [vmem:[#allocation3 + $0x64] ss:$36 sps:$4 sm:$0xff]   ;;  %v11438_v4 = vpack.c.bf16 %v7106_v26, %v7106_v26 }
 0x44d   :  { %12657 = vmatprep.subr.bf16.mxu0 %v15443_v0  ;;  %v13598_v39 = vld [vmem:[#allocation4 + $0x6a8] sm:$0xff]   ;;  %v11439_v14 = vpack.c.bf16 %v7107_v30, %v7107_v30  ;;  %v7111_v25 = vmul.f32 %v7093_v12, %v16437_v61  ;;  %v7112_v54 = vmul.f32 %v7094_v23, %v16439_v10  ;;  %v13556_v16 = vld [vmem:[#allocation3 + $0x58] ss:$36 sps:$4 sm:$0xff]   ;;  %v11440_v28 = vpack.c.bf16 %v7108_v48, %v7108_v48  ;;  %v13565_v29 = vld [vmem:[#allocation3 + $0xa4] ss:$36 sps:$4 sm:$0xff]  }
 0x44e   :  { %7195 = vst [vmem:[#allocation3 + $0x164] sm:$0xf] %v11437_v45  ;;  %v11442_v42 = vpack.c.bf16 %v7110_v59, %v7110_v59  ;;  %7196 = vst [vmem:[#allocation3 + $0x188] sm:$0xf] %v11438_v4  ;;  %v13602_v61 = vld [vmem:[#allocation4 + $0x6a0] sm:$0xff]   ;;  %v13606_v32 = vld [vmem:[#allocation4 + $0x698] sm:$0xff]  }
 0x44f   :  { %8632 = vmatmul.mubr.bf16.vlgmr.msra.gmra.mxu1 %v13552_v40  ;;  %7197 = vst [vmem:[#allocation3 + $0x1ac] sm:$0xf] %v11439_v14  ;;  %v11443_v9 = vpack.c.bf16 %v7111_v25, %v7111_v25  ;;  %v11444_v15 = vpack.c.bf16 %v7112_v54, %v7112_v54  ;;  %7198 = vst [vmem:[#allocation3 + $0x1d0] sm:$0xf] %v11440_v28  ;;  %v13560_v10 = vld [vmem:[#allocation3 + $0x60] ss:$36 sps:$4 sm:$0xff]  }
 0x450   :  { %12658 = vmatpush3.bf16.msra.mxu0 %v13594_v46  ;;  %8639 = vmatprep.mubr.bf16.mxu1 %v13562_v41  ;;  %7200 = vst [vmem:[#allocation3 + $0x218] sm:$0xf] %v11442_v42  ;;  %v13568_v20 = vld [vmem:[#allocation3 + $0xac] ss:$36 sps:$4 sm:$0xff]   ;;  %v13563_v37 = vld [vmem:[#allocation3 + $0xa0] ss:$36 sps:$4 sm:$0xff]  }
 0x451   :  { %12659 = vmatprep.subr.bf16.mxu0 %v15443_v0  ;;  %7201 = vst [vmem:[#allocation3 + $0x23c] sm:$0xf] %v11443_v9  ;;  %7202 = vst [vmem:[#allocation3 + $0x260] sm:$0xf] %v11444_v15  ;;  %v13571_v3 = vld [vmem:[#allocation3 + $0xec] ss:$36 sps:$4 sm:$0xff]  }
 0x452   :  { %v13610_v44 = vld [vmem:[#allocation4 + $0x690] sm:$0xff]   ;;  %v13566_v5 = vld [vmem:[#allocation3 + $0xa8] ss:$36 sps:$4 sm:$0xff]   ;;  %v13611_v49 = vld [vmem:[#allocation4 + $0x688] sm:$0xff]  }
 0x453   :  { %8535 = vmatmul.mubr.bf16.gmra.mxu0 %v13556_v16  ;;  %v13574_v51 = vld [vmem:[#allocation3 + $0xf4] ss:$36 sps:$4 sm:$0xff]   ;;  %v13569_v38 = vld [vmem:[#allocation3 + $0xe8] ss:$36 sps:$4 sm:$0xff]   ;;  %v13580_v1 = vld [vmem:[#allocation3 + $0x13c] ss:$36 sps:$4 sm:$0xff]  }
 0x454   :  { %8542 = vmatprep.mubr.bf16.mxu0 %v13565_v29  ;;  %12660 = vmatpush3.bf16.msra.mxu0 %v13598_v39  ;;  %v13577_v18 = vld [vmem:[#allocation3 + $0x134] ss:$36 sps:$4 sm:$0xff]   ;;  %v13612_v62 = vld [vmem:[#allocation4 + $0x680] sm:$0xff]   ;;  %v13583_v31 = vld [vmem:[#allocation3 + $0x17c] ss:$36 sps:$4 sm:$0xff]  }
 0x455   :  { %12661 = vmatprep.subr.bf16.mxu0 %v15443_v0  ;;  %v13572_v58 = vld [vmem:[#allocation3 + $0xf0] ss:$36 sps:$4 sm:$0xff]   ;;  %v13578_v35 = vld [vmem:[#allocation3 + $0x138] ss:$36 sps:$4 sm:$0xff]   ;;  %v13586_v52 = vld [vmem:[#allocation3 + $0x184] ss:$36 sps:$4 sm:$0xff]  }
 0x456   :  { %v13575_v7 = vld [vmem:[#allocation3 + $0x130] ss:$36 sps:$4 sm:$0xff]   ;;  %v13581_v60 = vld [vmem:[#allocation3 + $0x178] ss:$36 sps:$4 sm:$0xff]   ;;  %v13590_v47 = vld [vmem:[#allocation3 + $0x1c4] ss:$36 sps:$4 sm:$0xff]  }
 0x457   :  { %8640 = vmatmul.mubr.bf16.gmra.mxu1 %v13560_v10  ;;  %v13584_v33 = vld [vmem:[#allocation3 + $0x180] ss:$36 sps:$4 sm:$0xff]   ;;  %v13593_v6 = vld [vmem:[#allocation3 + $0x1cc] ss:$36 sps:$4 sm:$0xff]   ;;  %v13601_v63 = vld [vmem:[#allocation3 + $0x214] ss:$36 sps:$4 sm:$0xff]  }
 0x458   :  { %12662 = vmatpush3.bf16.msra.mxu0 %v13602_v61  ;;  %8647 = vmatprep.mubr.bf16.mxu1 %v13568_v20  ;;  %v13588_v17 = vld [vmem:[#allocation3 + $0x1c0] ss:$36 sps:$4 sm:$0xff]   ;;  %v13597_v22 = vld [vmem:[#allocation3 + $0x20c] ss:$36 sps:$4 sm:$0xff]   ;;  %v13605_v34 = vld [vmem:[#allocation3 + $0x254] ss:$36 sps:$4 sm:$0xff]  }
 0x459   :  { %12663 = vmatprep.subr.bf16.mxu0 %v15443_v0  ;;  %v13595_v43 = vld [vmem:[#allocation3 + $0x208] ss:$36 sps:$4 sm:$0xff]   ;;  %v13599_v56 = vld [vmem:[#allocation3 + $0x210] ss:$36 sps:$4 sm:$0xff]   ;;  %v13609_v53 = vld [vmem:[#allocation3 + $0x25c] ss:$36 sps:$4 sm:$0xff]  }
 0x45a   :  { %v13603_v2 = vld [vmem:[#allocation3 + $0x250] ss:$36 sps:$4 sm:$0xff]   ;;  %v13607_v55 = vld [vmem:[#allocation3 + $0x258] ss:$36 sps:$4 sm:$0xff]   ;;  %v13613_v21 = vld [vmem:[#allocation3 + $0x20] ss:$36 sps:$4 sm:$0xff]  }
 0x45b   :  { %8543 = vmatmul.mubr.bf16.gmra.mxu0 %v13563_v37  ;;  %v15571_v24 = vld [vmem:[#allocation2] sm:$0xff]  ;;  %v13614_v13 = vld [vmem:[#allocation3 + $0x68] ss:$36 sps:$4 sm:$0xff]   ;;  %v13616_v46 = vld [vmem:[#allocation3 + $0xf8] ss:$36 sps:$4 sm:$0xff]  }
 0x45c   :  { %8550 = vmatprep.mubr.bf16.mxu0 %v13571_v3  ;;  %12664 = vmatpush3.bf16.msra.mxu0 %v13606_v32  ;;  %v13615_v50 = vld [vmem:[#allocation3 + $0xb0] ss:$36 sps:$4 sm:$0xff]   ;;  %v13617_v27 = vld [vmem:[#allocation3 + $0x140] ss:$36 sps:$4 sm:$0xff]   ;;  %v13618_v11 = vld [vmem:[#allocation3 + $0x188] ss:$36 sps:$4 sm:$0xff]  }
 0x45d   :  { %12665 = vmatprep.subr.bf16.mxu0 %v15443_v0  ;;  %v13619_v36 = vld [vmem:[#allocation3 + $0x1d0] ss:$36 sps:$4 sm:$0xff]   ;;  %v13620_v28 = vld [vmem:[#allocation3 + $0x218] ss:$36 sps:$4 sm:$0xff]   ;;  %v13621_v10 = vld [vmem:[#allocation3 + $0x260] ss:$36 sps:$4 sm:$0xff]  }
 0x45f   :  { %8648 = vmatmul.mubr.bf16.gmra.mxu1 %v13566_v5 }
 0x460   :  { %12666 = vmatpush3.bf16.msra.mxu0 %v13610_v44  ;;  %8655 = vmatprep.mubr.bf16.mxu1 %v13574_v51 }
 0x461   :  { %12667 = vmatprep.subr.bf16.mxu0 %v15443_v0 }
 0x463   :  { %8551 = vmatmul.mubr.bf16.gmra.mxu0 %v13569_v38 }
 0x464   :  { %8558 = vmatprep.mubr.bf16.mxu0 %v13577_v18  ;;  %12668 = vmatpush3.bf16.msra.mxu0 %v13611_v49 }
 0x465   :  { %12669 = vmatprep.subr.bf16.mxu0 %v15443_v0 }
 0x467   :  { %8656 = vmatmul.mubr.bf16.gmra.mxu1 %v13572_v58 }
 0x468   :  { %12670 = vmatpush3.bf16.msra.mxu0 %v13612_v62  ;;  %8663 = vmatprep.mubr.bf16.mxu1 %v13580_v1 }
 0x469   :  { %12777 = vmatprep.subr.mxu0 %v15443_v0  ;;  %v13591_v0 = vld [vmem:[#allocation3 + $0x1c8] ss:$36 sps:$4 sm:$0xff]  }
 0x46b   :  { %8559 = vmatmul.mubr.bf16.gmra.mxu0 %v13575_v7 }
 0x46c   :  { %8566 = vmatprep.mubr.bf16.mxu0 %v13583_v31 }
 0x46f   :  { %8664 = vmatmul.mubr.bf16.gmra.mxu1 %v13578_v35 }
 0x470   :  { %8671 = vmatprep.mubr.bf16.mxu1 %v13586_v52 }
 0x473   :  { %8567 = vmatmul.mubr.bf16.gmra.mxu0 %v13581_v60 }
 0x474   :  { %8574 = vmatprep.mubr.bf16.mxu0 %v13590_v47 }
 0x477   :  { %8672 = vmatmul.mubr.bf16.gmra.mxu1 %v13584_v33 }
 0x478   :  { %8679 = vmatprep.mubr.bf16.mxu1 %v13593_v6 }
 0x47b   :  { %8575 = vmatmul.mubr.bf16.gmra.mxu0 %v13588_v17 }
 0x47c   :  { %8582 = vmatprep.mubr.bf16.mxu0 %v13597_v22 }
 0x47f   :  { %8680 = vmatmul.mubr.bf16.gmra.mxu1 %v13591_v0 }
 0x480   :  { %8687 = vmatprep.mubr.bf16.mxu1 %v13601_v63 }
 0x483   :  { %8583 = vmatmul.mubr.bf16.gmra.mxu0 %v13595_v43 }
 0x484   :  { %8590 = vmatprep.mubr.bf16.mxu0 %v13605_v34 }
 0x487   :  { %8688 = vmatmul.mubr.bf16.gmra.mxu1 %v13599_v56 }
 0x488   :  { %8695 = vmatprep.mubr.bf16.mxu1 %v13609_v53 }
 0x48b   :  { %8591 = vmatmul.mubr.bf16.gmra.mxu0 %v13603_v2 }
 0x48c   :  { %12671 = vmatprep.mubr.msk.bf16.mxu0 %vm13795_vm0, %v15571_v24 }
 0x48f   :  { %8696 = vmatmul.mubr.bf16.gmra.mxu1 %v13607_v55 }
 0x493   :  { %12672 = vmatmul.mubr.bf16.vlgmr.msra.gmra.mxu0 %v13613_v21 }
 0x494   :  { %12675 = vmatprep.mubr.msk.bf16.mxu0 %vm13795_vm0, %v15571_v24 }
 0x49b   :  { %12676 = vmatmul.mubr.bf16.gmra.mxu0 %v13614_v13 }
 0x49c   :  { %12679 = vmatprep.mubr.msk.bf16.mxu0 %vm13795_vm0, %v15571_v24 }
 0x4a1   :  { %v12100_v57 = vpop.f32.mrf.mxu0 }
 0x4a3   :  { %12680 = vmatmul.mubr.bf16.gmra.mxu0 %v13615_v50  ;;  %v12101_v19 = vpop.f32.mrf.mxu0 }
 0x4a4   :  { %12683 = vmatprep.mubr.msk.bf16.mxu0 %vm13795_vm0, %v15571_v24  ;;  %v12102_v45 = vadd.f32 %v12101_v19, %v12100_v57 }
 0x4a5   :  { %v12103_v26 = vpop.f32.mrf.mxu0 }
 0x4a7   :  { %v12104_v8 = vpop.f32.mrf.mxu0 }
 0x4a8   :  { %v12105_v39 = vadd.f32 %v12104_v8, %v12103_v26 }
 0x4a9   :  { %v12170_v30 = vpop.f32.mrf.mxu1 }
 0x4ab   :  { %12684 = vmatmul.mubr.bf16.gmra.mxu0 %v13616_v46  ;;  %v12171_v40 = vpop.f32.mrf.mxu1 }
 0x4ac   :  { %12687 = vmatprep.mubr.msk.bf16.mxu0 %vm13795_vm0, %v15571_v24  ;;  %v12172_v48 = vadd.f32 %v12171_v40, %v12170_v30 }
 0x4ad   :  { %v12173_v12 = vpop.f32.mrf.mxu1 }
 0x4ae   :  { %v15587_v59 = vadd.f32 %v12172_v48, %v12102_v45  ;;  %v12106_v23 = vpop.f32.mrf.mxu0 }
 0x4af   :  { %v12174_v41 = vpop.f32.mrf.mxu1 }
 0x4b0   :  { %v12107_v4 = vpop.f32.mrf.mxu0  ;;  %v12175_v14 = vadd.f32 %v12174_v41, %v12173_v12 }
 0x4b1   :  { %v12108_v25 = vadd.f32 %v12107_v4, %v12106_v23 }
 0x4b2   :  { %v15591_v54 = vadd.f32 %v12175_v14, %v12105_v39  ;;  %v12109_v16 = vpop.f32.mrf.mxu0 }
 0x4b3   :  { %12688 = vmatmul.mubr.bf16.gmra.mxu0 %v13617_v27 }
 0x4b4   :  { %12691 = vmatprep.mubr.msk.bf16.mxu0 %vm13795_vm0, %v15571_v24  ;;  %v12110_v42 = vpop.f32.mrf.mxu0 }
 0x4b5   :  { %v12111_v29 = vadd.f32 %v12110_v42, %v12109_v16 }
 0x4b9   :  { %v12176_v9 = vpop.f32.mrf.mxu1 }
 0x4bb   :  { %12692 = vmatmul.mubr.bf16.gmra.mxu0 %v13618_v11  ;;  %v12177_v15 = vpop.f32.mrf.mxu1 }
 0x4bc   :  { %12695 = vmatprep.mubr.msk.bf16.mxu0 %vm13795_vm0, %v15571_v24  ;;  %v12178_v61 = vadd.f32 %v12177_v15, %v12176_v9 }
 0x4bd   :  { %v12179_v32 = vpop.f32.mrf.mxu1 }
 0x4be   :  { %v15595_v37 = vadd.f32 %v12178_v61, %v12108_v25 }
 0x4bf   :  { %v12180_v44 = vpop.f32.mrf.mxu1 }
 0x4c0   :  { %v12112_v20 = vpop.f32.mrf.mxu0  ;;  %v12181_v51 = vadd.f32 %v12180_v44, %v12179_v32 }
 0x4c2   :  { %v12113_v3 = vpop.f32.mrf.mxu0  ;;  %v15599_v38 = vadd.f32 %v12181_v51, %v12111_v29 }
 0x4c3   :  { %12696 = vmatmul.mubr.bf16.gmra.mxu0 %v13619_v36  ;;  %v12114_v5 = vadd.f32 %v12113_v3, %v12112_v20 }
 0x4c4   :  { %12699 = vmatprep.mubr.msk.bf16.mxu0 %vm13795_vm0, %v15571_v24  ;;  %v12115_v49 = vpop.f32.mrf.mxu0 }
 0x4c6   :  { %v12116_v18 = vpop.f32.mrf.mxu0 }
 0x4c7   :  { %v12117_v58 = vadd.f32 %v12116_v18, %v12115_v49 }
 0x4ca   :  { %v12182_v62 = vpop.f32.mrf.mxu1 }
 0x4cb   :  { %12700 = vmatmul.mubr.bf16.gmra.mxu0 %v13620_v28 }
 0x4cc   :  { %12703 = vmatprep.mubr.msk.bf16.mxu0 %vm13795_vm0, %v15571_v24  ;;  %v12183_v1 = vpop.f32.mrf.mxu1 }
 0x4cd   :  { %v12118_v7 = vpop.f32.mrf.mxu0  ;;  %v12184_v31 = vadd.f32 %v12183_v1, %v12182_v62 }
 0x4ce   :  { %v12185_v35 = vpop.f32.mrf.mxu1 }
 0x4cf   :  { %v12119_v52 = vpop.f32.mrf.mxu0  ;;  %v15601_v60 = vadd.f32 %v12184_v31, %v12114_v5 }
 0x4d0   :  { %v12120_v47 = vadd.f32 %v12119_v52, %v12118_v7  ;;  %v12186_v33 = vpop.f32.mrf.mxu1 }
 0x4d1   :  { %v12121_v6 = vpop.f32.mrf.mxu0  ;;  %v12187_v17 = vadd.f32 %v12186_v33, %v12185_v35 }
 0x4d3   :  { %12704 = vmatmul.mubr.bf16.gmra.mxu0 %v13621_v10  ;;  %v12122_v0 = vpop.f32.mrf.mxu0  ;;  %v15603_v63 = vadd.f32 %v12187_v17, %v12117_v58 }
 0x4d4   :  { %12809 = vmatprep.mubr.msk.f32.mxu0 %vm13795_vm0, %v15571_v24  ;;  %v12123_v43 = vadd.f32 %v12122_v0, %v12121_v6 }
 0x4d6   :  { %v12188_v22 = vpop.f32.mrf.mxu1 }
 0x4d8   :  { %v12189_v34 = vpop.f32.mrf.mxu1 }
 0x4d9   :  { %v12190_v53 = vadd.f32 %v12189_v34, %v12188_v22 }
 0x4da   :  { %v12124_v56 = vpop.f32.mrf.mxu0  ;;  %v12191_v2 = vpop.f32.mrf.mxu1 }
 0x4db   :  { %v15605_v21 = vadd.f32 %v12190_v53, %v12120_v47 }
 0x4dc   :  { %v12125_v55 = vpop.f32.mrf.mxu0  ;;  %v12192_v50 = vpop.f32.mrf.mxu1 }
 0x4dd   :  { %v12126_v13 = vadd.f32 %v12125_v55, %v12124_v56  ;;  %v12193_v27 = vadd.f32 %v12192_v50, %v12191_v2 }
 0x4de   :  { %v12127_v46 = vpop.f32.mrf.mxu0 }
 0x4df   :  { %v15607_v19 = vadd.f32 %v12193_v27, %v12123_v43 }
 0x4e0   :  { %v12128_v57 = vpop.f32.mrf.mxu0 }
 0x4e1   :  { %v12129_v26 = vadd.f32 %v12128_v57, %v12127_v46 }
 0x4e2   :  { %v12194_v11 = vpop.f32.mrf.mxu1 }
 0x4e4   :  { %v12195_v30 = vpop.f32.mrf.mxu1  ;;  %v12130_v8 = vpop.f32.mrf.mxu0 }
 0x4e5   :  { %v12196_v36 = vadd.f32 %v12195_v30, %v12194_v11 }
 0x4e6   :  { %v12197_v40 = vpop.f32.mrf.mxu1  ;;  %v12131_v45 = vpop.f32.mrf.mxu0 }
 0x4e7   :  { %v15609_v48 = vadd.f32 %v12196_v36, %v12126_v13  ;;  %v12132_v12 = vadd.f32 %v12131_v45, %v12130_v8 }
 0x4e8   :  { %v12198_v23 = vpop.f32.mrf.mxu1  ;;  %v12133_v41 = vpop.f32.mrf.mxu0 }
 0x4e9   :  { %v12199_v39 = vadd.f32 %v12198_v23, %v12197_v40 }
 0x4ea   :  { %v12134_v14 = vpop.f32.mrf.mxu0 }
 0x4eb   :  { %v15611_v25 = vadd.f32 %v12199_v39, %v12129_v26  ;;  %v12135_v16 = vadd.f32 %v12134_v14, %v12133_v41 }
 0x4ec   :  { %v12200_v4 = vpop.f32.mrf.mxu1 }
 0x4ee   :  { %v12201_v28 = vpop.f32.mrf.mxu1 }
 0x4ef   :  { %v12136_v42 = vpop.f32.mrf.mxu0  ;;  %v12202_v29 = vadd.f32 %v12201_v28, %v12200_v4 }
 0x4f0   :  { %v12203_v9 = vpop.f32.mrf.mxu1 }
 0x4f1   :  { %v12137_v15 = vpop.f32.mrf.mxu0  ;;  %v15613_v61 = vadd.f32 %v12202_v29, %v12132_v12 }
 0x4f2   :  { %v12138_v10 = vadd.f32 %v12137_v15, %v12136_v42  ;;  %v12204_v20 = vpop.f32.mrf.mxu1 }
 0x4f3   :  { %v12139_v32 = vpop.f32.mrf.mxu0  ;;  %v12205_v3 = vadd.f32 %v12204_v20, %v12203_v9 }
 0x4f5   :  { %v12140_v5 = vpop.f32.mrf.mxu0  ;;  %v15615_v51 = vadd.f32 %v12205_v3, %v12135_v16 }
 0x4f6   :  { %v12141_v49 = vadd.f32 %v12140_v5, %v12139_v32 }
 0x4f7   :  { %v12206_v44 = vpop.f32.mrf.mxu1 }
 0x4f9   :  { %v12207_v18 = vpop.f32.mrf.mxu1 }
 0x4fa   :  { %v12208_v58 = vadd.f32 %v12207_v18, %v12206_v44 }
 0x4fb   :  { %v12142_v62 = vpop.f32.mrf.mxu0  ;;  %v12209_v1 = vpop.f32.mrf.mxu1 }
 0x4fc   :  { %v15617_v31 = vadd.f32 %v12208_v58, %v12138_v10 }
 0x4fd   :  { %v12143_v7 = vpop.f32.mrf.mxu0  ;;  %v12210_v52 = vpop.f32.mrf.mxu1 }
 0x4fe   :  { %v12144_v35 = vadd.f32 %v12143_v7, %v12142_v62  ;;  %v12211_v33 = vadd.f32 %v12210_v52, %v12209_v1 }
 0x4ff   :  { %v12145_v47 = vpop.f32.mrf.mxu0  ;;  %v12212_v6 = vpop.f32.mrf.mxu1 }
 0x500   :  { %v15619_v22 = vadd.f32 %v12211_v33, %v12141_v49 }
 0x501   :  { %v12146_v17 = vpop.f32.mrf.mxu0  ;;  %v12213_v43 = vpop.f32.mrf.mxu1 }
 0x502   :  { %v12147_v0 = vadd.f32 %v12146_v17, %v12145_v47  ;;  %v12214_v56 = vadd.f32 %v12213_v43, %v12212_v6 }
 0x503   :  { %v12148_v34 = vpop.f32.mrf.mxu0  ;;  %v12215_v53 = vpop.f32.mrf.mxu1 }
 0x504   :  { %v15621_v55 = vadd.f32 %v12214_v56, %v12144_v35 }
 0x505   :  { %v12149_v2 = vpop.f32.mrf.mxu0  ;;  %v12216_v50 = vpop.f32.mrf.mxu1 }
 0x506   :  { %v12150_v13 = vadd.f32 %v12149_v2, %v12148_v34  ;;  %v12217_v27 = vadd.f32 %v12216_v50, %v12215_v53 }
 0x507   :  { %v12151_v46 = vpop.f32.mrf.mxu0  ;;  %v12218_v11 = vpop.f32.mrf.mxu1 }
 0x508   :  { %v15623_v26 = vadd.f32 %v12217_v27, %v12147_v0 }
 0x509   :  { %v12152_v57 = vpop.f32.mrf.mxu0  ;;  %v12219_v8 = vpop.f32.mrf.mxu1 }
 0x50a   :  { %v12153_v30 = vadd.f32 %v12152_v57, %v12151_v46  ;;  %v12220_v40 = vadd.f32 %v12219_v8, %v12218_v11 }
 0x50b   :  { %v12240_v36 = vpop.f32.mrf.mxu0  ;;  %v12221_v45 = vpop.f32.mrf.mxu1 }
 0x50c   :  { %v15625_v23 = vadd.f32 %v12220_v40, %v12150_v13 }
 0x50d   :  { %v12241_v12 = vpop.f32.mrf.mxu0  ;;  %v12222_v39 = vpop.f32.mrf.mxu1 }
 0x50e   :  { %v12242_v41 = vadd.f32 %v12241_v12, %v12240_v36  ;;  %v12223_v14 = vadd.f32 %v12222_v39, %v12221_v45 }
 0x50f   :  { %v12243_v4 = vpop.f32.mrf.mxu0  ;;  %v12310_v28 = vpop.f32.mrf.mxu1 }
 0x510   :  { %v8529_v16 = vadd.f32 %v12242_v41, %v15587_v59  ;;  %v15628_v29 = vadd.f32 %v12223_v14, %v12153_v30 }
 0x511   :  { %v12244_v42 = vpop.f32.mrf.mxu0  ;;  %v12311_v15 = vpop.f32.mrf.mxu1 }
 0x512   :  { %v12245_v9 = vadd.f32 %v12244_v42, %v12243_v4  ;;  %v12312_v32 = vadd.f32 %v12311_v15, %v12310_v28 }
 0x513   :  { %v12246_v10 = vpop.f32.mrf.mxu0  ;;  %v12313_v3 = vpop.f32.mrf.mxu1 }
 0x514   :  { %v8532_v20 = vadd.f32 %v12245_v9, %v15591_v54  ;;  %v15631_v49 = vadd.f32 %v12312_v32, %v8529_v16 }
 0x515   :  { %v12247_v44 = vpop.f32.mrf.mxu0  ;;  %v12314_v18 = vpop.f32.mrf.mxu1 }
 0x516   :  { %v12248_v5 = vadd.f32 %v12247_v44, %v12246_v10  ;;  %v12315_v59 = vadd.f32 %v12314_v18, %v12313_v3 }
 0x517   :  { %v12249_v62 = vpop.f32.mrf.mxu0  ;;  %v12316_v1 = vpop.f32.mrf.mxu1 }
 0x518   :  { %v8537_v58 = vadd.f32 %v12248_v5, %v15595_v37  ;;  %v15634_v52 = vadd.f32 %v12315_v59, %v8532_v20 }
 0x519   :  { %v12250_v7 = vpop.f32.mrf.mxu0  ;;  %v12317_v47 = vpop.f32.mrf.mxu1 }
 0x51a   :  { %v12251_v35 = vadd.f32 %v12250_v7, %v12249_v62  ;;  %v12318_v6 = vadd.f32 %v12317_v47, %v12316_v1 }
 0x51b   :  { %v12252_v33 = vpop.f32.mrf.mxu0  ;;  %v12319_v17 = vpop.f32.mrf.mxu1 }
 0x51c   :  { %v8540_v54 = vadd.f32 %v12251_v35, %v15599_v38  ;;  %v15637_v34 = vadd.f32 %v12318_v6, %v8537_v58 }
 0x51d   :  { %v12253_v0 = vpop.f32.mrf.mxu0  ;;  %v12320_v56 = vpop.f32.mrf.mxu1 }
 0x51e   :  { %v12254_v43 = vadd.f32 %v12253_v0, %v12252_v33  ;;  %v12321_v2 = vadd.f32 %v12320_v56, %v12319_v17 }
 0x51f   :  { %v12255_v53 = vpop.f32.mrf.mxu0  ;;  %v12322_v13 = vpop.f32.mrf.mxu1 }
 0x520   :  { %v8545_v37 = vadd.f32 %v12254_v43, %v15601_v60  ;;  %v15640_v27 = vadd.f32 %v12321_v2, %v8540_v54 }
 0x521   :  { %v12256_v50 = vpop.f32.mrf.mxu0  ;;  %v12323_v11 = vpop.f32.mrf.mxu1 }
 0x522   :  { %v12257_v46 = vadd.f32 %v12256_v50, %v12255_v53  ;;  %v12324_v30 = vadd.f32 %v12323_v11, %v12322_v13 }
 0x523   :  { %v12258_v57 = vpop.f32.mrf.mxu0  ;;  %v15647_v45 = vpop.f32.mrf.mxu1 }
 0x524   :  { %v15643_v38 = vadd.f32 %v12257_v46, %v15603_v63  ;;  %v15645_v40 = vadd.f32 %v12324_v30, %v8545_v37 }
 0x525   :  { %v12259_v8 = vpop.f32.mrf.mxu0  ;;  %v15652_v4 = vpop.f32.mrf.mxu1 }
 0x526   :  { %v12260_v36 = vadd.f32 %v12259_v8, %v12258_v57 }
 0x527   :  { %v12261_v12 = vpop.f32.mrf.mxu0  ;;  %v15657_v42 = vpop.f32.mrf.mxu1 }
 0x528   :  { %v15650_v60 = vadd.f32 %v12260_v36, %v15605_v21 }
 0x529   :  { %v12262_v41 = vpop.f32.mrf.mxu0  ;;  %v15662_v21 = vpop.f32.mrf.mxu1 }
 0x52a   :  { %v12263_v39 = vadd.f32 %v12262_v41, %v12261_v12 }
 0x52b   :  { %v12264_v14 = vpop.f32.mrf.mxu0 }
 0x52c   :  { %v15655_v16 = vadd.f32 %v12263_v39, %v15607_v19  ;;  %v15667_v19 = vpop.f32.mrf.mxu1 }
 0x52d   :  { %v12265_v63 = vpop.f32.mrf.mxu0 }
 0x52e   :  { %v12266_v28 = vadd.f32 %v12265_v63, %v12264_v14 }
 0x52f   :  { %v12267_v9 = vpop.f32.mrf.mxu0 }
 0x530   :  { %v15660_v15 = vadd.f32 %v12266_v28, %v15609_v48  ;;  %v15672_v48 = vpop.f32.mrf.mxu1 }
 0x531   :  { %v12268_v10 = vpop.f32.mrf.mxu0 }
 0x532   :  { %v12269_v20 = vadd.f32 %v12268_v10, %v12267_v9 }
 0x533   :  { %v12270_v32 = vpop.f32.mrf.mxu0 }
 0x534   :  { %v15665_v3 = vadd.f32 %v12269_v20, %v15611_v25  ;;  %v15677_v25 = vpop.f32.mrf.mxu1 }
 0x535   :  { %v12271_v44 = vpop.f32.mrf.mxu0 }
 0x536   :  { %v12272_v5 = vadd.f32 %v12271_v44, %v12270_v32  ;;  %v9295_v32 = vld [vmem:[#allocation6 + $0x170] sm:$0xff] }
 0x537   :  { %v12273_v18 = vpop.f32.mrf.mxu0 }
 0x538   :  { %v15670_v62 = vadd.f32 %v12272_v5, %v15613_v61  ;;  %v15682_v61 = vpop.f32.mrf.mxu1 }
 0x539   :  { %v12274_v58 = vpop.f32.mrf.mxu0 }
 0x53a   :  { %v12275_v59 = vadd.f32 %v12274_v58, %v12273_v18  ;;  %v9294_v18 = vld [vmem:[#allocation6 + $0x168] sm:$0xff] }
 0x53b   :  { %v12276_v1 = vpop.f32.mrf.mxu0 }
 0x53c   :  { %v15675_v7 = vadd.f32 %v12275_v59, %v15615_v51  ;;  %v15687_v51 = vpop.f32.mrf.mxu1 }
 0x53d   :  { %v12277_v35 = vpop.f32.mrf.mxu0 }
 0x53e   :  { %v12278_v47 = vadd.f32 %v12277_v35, %v12276_v1 }
 0x53f   :  { %v12279_v33 = vpop.f32.mrf.mxu0 }
 0x540   :  { %v15680_v54 = vadd.f32 %v12278_v47, %v15617_v31  ;;  %v15692_v31 = vpop.f32.mrf.mxu1  ;;  %v9292_v47 = vld [vmem:[#allocation6 + $0x158] sm:$0xff] }
 0x541   :  { %v12280_v6 = vpop.f32.mrf.mxu0 }
 0x542   :  { %v12281_v17 = vadd.f32 %v12280_v6, %v12279_v33 }
 0x543   :  { %v12282_v0 = vpop.f32.mrf.mxu0 }
 0x544   :  { %v15685_v43 = vadd.f32 %v12281_v17, %v15619_v22  ;;  %v15697_v22 = vpop.f32.mrf.mxu1 }
 0x545   :  { %v12283_v56 = vpop.f32.mrf.mxu0 }
 0x546   :  { %v12284_v53 = vadd.f32 %v12283_v56, %v12282_v0  ;;  %v9290_v56 = vld [vmem:[#allocation6 + $0x148] sm:$0xff] }
 0x547   :  { %v12285_v37 = vpop.f32.mrf.mxu0 }
 0x548   :  { %v15690_v2 = vadd.f32 %v12284_v53, %v15621_v55  ;;  %v15702_v55 = vpop.f32.mrf.mxu1 }
 0x549   :  { %v12286_v13 = vpop.f32.mrf.mxu0 }
 0x54a   :  { %v12287_v50 = vadd.f32 %v12286_v13, %v12285_v37 }
 0x54b   :  { %v12288_v46 = vpop.f32.mrf.mxu0 }
 0x54c   :  { %v15695_v11 = vadd.f32 %v12287_v50, %v15623_v26  ;;  %v9018_v26 = vld [vmem:[%s16232_s5 + $0x8] sm:$0xff]  ;;  %v9288_v50 = vld [vmem:[#allocation6 + $0x138] sm:$0xff] }
 0x54d   :  { %v12289_v57 = vpop.f32.mrf.mxu0  ;;  %10958 = vmatprep.mubr.msk.f32.mxu1 %vm9021_vm1, %v9018_v26 }
 0x54e   :  { %v12290_v30 = vadd.f32 %v12289_v57, %v12288_v46 }
 0x54f   :  { %v12291_v8 = vpop.f32.mrf.mxu0 }
 0x550   :  { %v15700_v36 = vadd.f32 %v12290_v30, %v15625_v23  ;;  %v15714_v23 = vpop.f32.mrf.mxu1 }
 0x551   :  { %v12292_v12 = vpop.f32.mrf.mxu0 }
 0x552   :  { %v12293_v41 = vadd.f32 %v12292_v12, %v12291_v8  ;;  %v9286_v8 = vld [vmem:[#allocation6 + $0x128] sm:$0xff] }
 0x553   :  { %v8738_v39 = vpop.f32.mrf.mxu0 }
 0x554   :  { %v15705_v14 = vadd.f32 %v12293_v41, %v15628_v29  ;;  %v15708_v63 = vadd.f32 %v8738_v39, %v15631_v49  ;;  %v9296_v29 = vld [vmem:[#allocation6 + $0x178] sm:$0xff]  ;;  %v15719_v49 = vpop.f32.mrf.mxu1  ;;  %v9285_v41 = vld [vmem:[#allocation6 + $0x120] sm:$0xff] }
 0x555   :  { %v12673_v28 = vpop.f32.mrf.mxu0  ;;  %12778 = vmatpush3.msra.mxu0 %v9296_v29 }
 0x556   :  { %12779 = vmatprep.subr.mxu0 %v15571_v24  ;;  %v15726_v59 = vpop.f32.mrf.mxu1  ;;  %v9284_v28 = vld [vmem:[#allocation6 + $0x118] sm:$0xff] }
 0x557   :  { %v8741_v9 = vpop.f32.mrf.mxu0  ;;  %12780 = vmatpush3.msra.mxu0 %v9295_v32 }
 0x558   :  { %v15717_v10 = vadd.f32 %v8741_v9, %v15634_v52  ;;  %12781 = vmatprep.subr.mxu0 %v15571_v24  ;;  %v9293_v52 = vld [vmem:[#allocation6 + $0x160] sm:$0xff]  ;;  %v12347_v6 = vpop.f32.mrf.mxu1 }
 0x559   :  { %v12674_v20 = vpop.f32.mrf.mxu0  ;;  %12782 = vmatpush3.msra.mxu0 %v9294_v18 }
 0x55a   :  { %12783 = vmatprep.subr.mxu0 %v15571_v24  ;;  %v12349_v37 = vpop.f32.mrf.mxu1  ;;  %v9283_v20 = vld [vmem:[#allocation6 + $0x110] sm:$0xff] }
 0x55b   :  { %v8746_v44 = vpop.f32.mrf.mxu0  ;;  %12784 = vmatpush3.msra.mxu0 %v9293_v52 }
 0x55c   :  { %v15723_v5 = vadd.f32 %v8746_v44, %v15637_v34  ;;  %12785 = vmatprep.subr.mxu0 %v15571_v24  ;;  %v9291_v34 = vld [vmem:[#allocation6 + $0x150] sm:$0xff]  ;;  %v12350_v57 = vpop.f32.mrf.mxu1  ;;  %v9282_v44 = vld [vmem:[#allocation6 + $0x108] sm:$0xff] }
 0x55d   :  { %v12677_v58 = vpop.f32.mrf.mxu0  ;;  %12786 = vmatpush3.msra.mxu0 %v9292_v47 }
 0x55e   :  { %12787 = vmatprep.subr.mxu0 %v15571_v24  ;;  %v12352_v39 = vpop.f32.mrf.mxu1 }
 0x55f   :  { %v8749_v1 = vpop.f32.mrf.mxu0  ;;  %12788 = vmatpush3.msra.mxu0 %v9291_v34 }
 0x560   :  { %v15730_v35 = vadd.f32 %v8749_v1, %v15640_v27  ;;  %12789 = vmatprep.subr.mxu0 %v15571_v24  ;;  %v9289_v27 = vld [vmem:[#allocation6 + $0x140] sm:$0xff]  ;;  %v12353_v29 = vpop.f32.mrf.mxu1 }
 0x561   :  { %v12678_v33 = vpop.f32.mrf.mxu0  ;;  %12790 = vmatpush3.msra.mxu0 %v9290_v56  ;;  %v12348_v56 = vadd.f32 %v12347_v6, %v15726_v59 }
 0x562   :  { %12791 = vmatprep.subr.mxu0 %v15571_v24  ;;  %v12355_v58 = vpop.f32.mrf.mxu1 }
 0x563   :  { %v8754_v17 = vpop.f32.mrf.mxu0  ;;  %12792 = vmatpush3.msra.mxu0 %v9289_v27 }
 0x564   :  { %v15735_v0 = vadd.f32 %v8754_v17, %v15645_v40  ;;  %12793 = vmatprep.subr.mxu0 %v15571_v24  ;;  %v9287_v40 = vld [vmem:[#allocation6 + $0x130] sm:$0xff]  ;;  %v12356_v47 = vpop.f32.mrf.mxu1  ;;  %v12345_v17 = vadd.f32 %v15719_v49, %v15714_v23 }
 0x565   :  { %v12681_v53 = vpop.f32.mrf.mxu0  ;;  %12794 = vmatpush3.msra.mxu0 %v9288_v50 }
 0x566   :  { %12795 = vmatprep.subr.mxu0 %v15571_v24  ;;  %v12342_v53 = vadd.f32 %v15702_v55, %v15697_v22  ;;  %v12358_v27 = vpop.f32.mrf.mxu1  ;;  %v12333_v55 = vadd.f32 %v15672_v48, %v15667_v19  ;;  %v12330_v19 = vadd.f32 %v15662_v21, %v15657_v42  ;;  %v12357_v48 = vadd.f32 %v12356_v47, %v12355_v58 }
 0x567   :  { %v15738_v13 = vpop.f32.mrf.mxu0  ;;  %12796 = vmatpush3.msra.mxu0 %v9287_v40 }
 0x568   :  { %12797 = vmatprep.subr.mxu0 %v15571_v24  ;;  %v12359_v23 = vpop.f32.mrf.mxu1  ;;  %v8674_v49 = vadd.f32 %v12342_v53, %v15670_v62  ;;  %v8693_v47 = vadd.f32 %v12357_v48, %v15695_v11 }
 0x569   :  { %v12682_v46 = vpop.f32.mrf.mxu0  ;;  %12798 = vmatpush3.msra.mxu0 %v9286_v8  ;;  %v12351_v8 = vadd.f32 %v12350_v57, %v12349_v37 }
 0x56a   :  { %12799 = vmatprep.subr.mxu0 %v15571_v24  ;;  %v12339_v46 = vadd.f32 %v15692_v31, %v15687_v51  ;;  %v15770_v51 = vld [vmem:[%s16229_s2 + $0x2] ss:$0 sm:$0xff]  ;;  %v12361_v57 = vpop.f32.mrf.mxu1 }
 0x56b   :  { %v15742_v30 = vpop.f32.mrf.mxu0  ;;  %12800 = vmatpush3.msra.mxu0 %v9285_v41  ;;  %v12336_v41 = vadd.f32 %v15682_v61, %v15677_v25  ;;  %v12327_v25 = vadd.f32 %v15652_v4, %v15647_v45  ;;  %v12354_v61 = vadd.f32 %v12353_v29, %v12352_v39  ;;  %v8685_v37 = vadd.f32 %v12351_v8, %v15685_v43  ;;  %v15784_v45 = vld [vmem:[%s16230_s3 + $0x2] ss:$0 sm:$0xff] }
 0x56c   :  { %12801 = vmatprep.subr.mxu0 %v15571_v24  ;;  %v8661_v4 = vadd.f32 %v12333_v55, %v15655_v16  ;;  %v12362_v58 = vpop.f32.mrf.mxu1 }
 0x56d   :  { %v12685_v12 = vpop.f32.mrf.mxu0  ;;  %12802 = vmatpush3.msra.mxu0 %v9284_v28  ;;  %v8666_v28 = vadd.f32 %v12336_v41, %v15660_v15  ;;  %v8653_v21 = vadd.f32 %v12327_v25, %v15643_v38  ;;  %v12363_v53 = vadd.f32 %v12362_v58, %v12361_v57 }
 0x56e   :  { %12803 = vmatprep.subr.mxu0 %v15571_v24  ;;  %v8682_v12 = vadd.f32 %v12348_v56, %v15680_v54 }
 0x56f   :  { %v15746_v26 = vpop.f32.mrf.mxu0  ;;  %12804 = vmatpush3.msra.mxu0 %v9283_v20 }
 0x570   :  { %12805 = vmatprep.subr.mxu0 %v15571_v24 }
 0x571   :  { %v12686_v9 = vpop.f32.mrf.mxu0  ;;  %12806 = vmatpush3.msra.mxu0 %v9282_v44 }
 0x572   :  { %12807 = vmatprep.subr.mxu0 %v15571_v24  ;;  %v8677_v24 = vadd.f32 %v12345_v17, %v15675_v7  ;;  %v8669_v7 = vadd.f32 %v12339_v46, %v15665_v3 }
 0x573   :  { %v8770_v32 = vpop.f32.mrf.mxu0 }
 0x574   :  { %v8771_v43 = vadd.f32 %v8770_v32, %v8666_v28 }
 0x575   :  { %v12689_v18 = vpop.f32.mrf.mxu0 }
 0x576   :  { %v8690_v18 = vadd.f32 %v12354_v61, %v15690_v2  ;;  %v15806_v2 = vmul.f32 %v15770_v51, %v15708_v63  ;;  %v8816_v63 = vmul.f32 %v15770_v51, %v15717_v10 }
 0x577   :  { %v8773_v52 = vpop.f32.mrf.mxu0 }
 0x578   :  { %v8774_v9 = vadd.f32 %v8773_v52, %v8669_v7  ;;  %v8658_v52 = vadd.f32 %v12330_v19, %v15650_v60  ;;  %v15844_v25 = vadd.f32 %v15784_v45, %v8816_v63 }
 0x579   :  { %v12690_v1 = vpop.f32.mrf.mxu0 }
 0x57a   :  { %v8766_v1 = vadd.f32 %v15746_v26, %v8661_v4  ;;  %v8824_v16 = vmul.f32 %v15770_v51, %v8774_v9  ;;  %v8763_v60 = vadd.f32 %v15742_v30, %v8658_v52  ;;  %v8823_v26 = vmul.f32 %v15770_v51, %v8771_v43 }
 0x57b   :  { %v8778_v33 = vpop.f32.mrf.mxu0  ;;  %v8758_v30 = vadd.f32 %v15738_v13, %v8653_v21  ;;  %v8817_v4 = vmul.f32 %v15770_v51, %v15723_v5 }
 0x57c   :  { %v8779_v54 = vadd.f32 %v8778_v33, %v8674_v49  ;;  %v12360_v33 = vadd.f32 %v12359_v23, %v12358_v27  ;;  %v15823_v8 = vadd.f32 %v15784_v45, %v8824_v16  ;;  %v15833_v10 = vadd.f32 %v15784_v45, %v8823_v26 }
 0x57d   :  { %v12693_v34 = vpop.f32.mrf.mxu0  ;;  %v8820_v61 = vmul.f32 %v15770_v51, %v8758_v30 }
 0x57e   :  { %v8825_v39 = vmul.f32 %v15770_v51, %v8779_v54 }
 0x57f   :  { %v8781_v50 = vpop.f32.mrf.mxu0  ;;  %v15872_v21 = vadd.f32 %v15784_v45, %v8820_v61 }
 0x580   :  { %v8782_v6 = vadd.f32 %v8781_v50, %v8677_v24  ;;  %v15811_v56 = vadd.f32 %v15784_v45, %v8825_v39 }
 0x581   :  { %v12694_v40 = vpop.f32.mrf.mxu0 }
 0x582   :  { %v8826_v3 = vmul.f32 %v15770_v51, %v8782_v6  ;;  %v8822_v40 = vmul.f32 %v15770_v51, %v8766_v1  ;;  %v8883_v13 = vmul.f32 %v15811_v56, %v15811_v56 }
 0x583   :  { %v8786_v59 = vpop.f32.mrf.mxu0 }
 0x584   :  { %v8787_v22 = vadd.f32 %v8786_v59, %v8682_v12  ;;  %v15799_v38 = vadd.f32 %v15784_v45, %v8826_v3  ;;  %v8821_v59 = vmul.f32 %v15770_v51, %v8763_v60  ;;  %v8901_v3 = vmul.f32 %v8883_v13, %v15811_v56 }
 0x585   :  { %v12697_v31 = vpop.f32.mrf.mxu0  ;;  %v15887_v60 = vadd.f32 %v15784_v45, %v8817_v4  ;;  %v8874_v4 = vmul.f32 %v15844_v25, %v15844_v25 }
 0x586   :  { %v8827_v62 = vmul.f32 %v15770_v51, %v8787_v22  ;;  %v8884_v12 = vmul.f32 %v15799_v38, %v15799_v38  ;;  %v8698_v22 = vadd.f32 %v12360_v33, %v15700_v36  ;;  %v8701_v31 = vadd.f32 %v12363_v53, %v15705_v14 }
 0x587   :  { %v8789_v20 = vpop.f32.mrf.mxu0  ;;  %v8882_v36 = vmul.f32 %v15823_v8, %v15823_v8  ;;  %v8819_v14 = vmul.f32 %v15770_v51, %v15735_v0  ;;  %v15860_v9 = vadd.f32 %v15784_v45, %v8821_v59  ;;  %v8818_v0 = vmul.f32 %v15770_v51, %v15730_v35 }
 0x588   :  { %v8790_v44 = vadd.f32 %v8789_v20, %v8685_v37  ;;  %v15790_v15 = vadd.f32 %v15784_v45, %v8827_v62  ;;  %v15848_v62 = vadd.f32 %v15784_v45, %v8822_v40  ;;  %v8902_v48 = vmul.f32 %v8884_v12, %v15799_v38 }
 0x589   :  { %v12698_v42 = vpop.f32.mrf.mxu0  ;;  %v8881_v20 = vmul.f32 %v15833_v10, %v15833_v10  ;;  %v8900_v52 = vmul.f32 %v8882_v36, %v15823_v8  ;;  %v8879_v35 = vmul.f32 %v15860_v9, %v15860_v9  ;;  %v8919_v33 = vmul.f32 0.044715, %v8901_v3 }
 0x58a   :  { %v8828_v29 = vmul.f32 %v15770_v51, %v8790_v44  ;;  %v8885_v27 = vmul.f32 %v15790_v15, %v15790_v15  ;;  %v8920_v5 = vmul.f32 0.044715, %v8902_v48 }
 0x58b   :  { %v8794_v32 = vpop.f32.mrf.mxu0  ;;  %v8918_v30 = vmul.f32 0.044715, %v8900_v52  ;;  %v8937_v13 = vadd.f32 %v8919_v33, %v15811_v56 }
 0x58c   :  { %v15802_v34 = vadd.f32 %v15784_v45, %v8828_v29  ;;  %v8795_v17 = vadd.f32 %v8794_v32, %v8690_v18  ;;  %v8903_v55 = vmul.f32 %v8885_v27, %v15790_v15  ;;  %v8880_v29 = vmul.f32 %v15848_v62, %v15848_v62 }
 0x58d   :  { %v12701_v11 = vpop.f32.mrf.mxu0  ;;  %v15881_v32 = vadd.f32 %v15784_v45, %v8819_v14  ;;  %v15891_v27 = vadd.f32 %v15784_v45, %v8818_v0  ;;  %v8938_v40 = vadd.f32 %v8920_v5, %v15799_v38  ;;  %v8955_v3 = vmul.f32 0.7978846, %v8937_v13 }
 0x58e   :  { %v8886_v50 = vmul.f32 %v15802_v34, %v15802_v34  ;;  %v8829_v46 = vmul.f32 %v15770_v51, %v8795_v17  ;;  %v8921_v43 = vmul.f32 0.044715, %v8903_v55 }
 0x58f   :  { %v8797_v24 = vpop.f32.mrf.mxu0  ;;  %v8956_v36 = vmul.f32 0.7978846, %v8938_v40 }
 0x590   :  { %v8904_v41 = vmul.f32 %v8886_v50, %v15802_v34  ;;  %v15829_v23 = vadd.f32 %v15784_v45, %v8829_v46  ;;  %v8798_v49 = vadd.f32 %v8797_v24, %v8693_v47  ;;  %v8899_v47 = vmul.f32 %v8881_v20, %v15833_v10 }
 0x591   :  { %v12702_v6 = vpop.f32.mrf.mxu0  ;;  %v8939_v26 = vadd.f32 %v8921_v43, %v15790_v15  ;;  %v8878_v50 = vmul.f32 %v15872_v21, %v15872_v21  ;;  %v8898_v46 = vmul.f32 %v8880_v29, %v15848_v62 }
 0x592   :  { %v8887_v7 = vmul.f32 %v15829_v23, %v15829_v23  ;;  %v8830_v54 = vmul.f32 %v15770_v51, %v8798_v49  ;;  %v8922_v37 = vmul.f32 0.044715, %v8904_v41  ;;  %v8877_v41 = vmul.f32 %v15881_v32, %v15881_v32 }
 0x593   :  { %v8802_v19 = vpop.f32.mrf.mxu0  ;;  %v8897_v49 = vmul.f32 %v8879_v35, %v15860_v9  ;;  %v8917_v59 = vmul.f32 0.044715, %v8899_v47  ;;  %v8957_v6 = vmul.f32 0.7978846, %v8939_v26  ;;  %v8896_v61 = vmul.f32 %v8878_v50, %v15872_v21 }
 0x594   :  { %v8905_v57 = vmul.f32 %v8887_v7, %v15829_v23  ;;  %v15855_v28 = vadd.f32 %v15784_v45, %v8830_v54  ;;  %v8940_v18 = vadd.f32 %v8922_v37, %v15802_v34  ;;  %v8803_v7 = vadd.f32 %v8802_v19, %v8698_v22 }
 0x595   :  { %v12705_v44 = vpop.f32.mrf.mxu0  ;;  %v8876_v54 = vmul.f32 %v15891_v27, %v15891_v27  ;;  %v8916_v37 = vmul.f32 0.044715, %v8898_v46  ;;  %v8875_v22 = vmul.f32 %v15887_v60, %v15887_v60  ;;  %v8895_v19 = vmul.f32 %v8877_v41, %v15881_v32 }
 0x596   :  { %v8923_v39 = vmul.f32 0.044715, %v8905_v57  ;;  %v8888_v42 = vmul.f32 %v15855_v28, %v15855_v28  ;;  %v8958_v63 = vmul.f32 0.7978846, %v8940_v18  ;;  %v15909_v57 = vadd.f32 %v15784_v45, %v15806_v2 }
 0x597   :  { %v8805_v58 = vpop.f32.mrf.mxu0  ;;  %v8915_v14 = vmul.f32 0.044715, %v8897_v49  ;;  %v8935_v20 = vadd.f32 %v8917_v59, %v15833_v10  ;;  %v8831_v44 = vmul.f32 %v15770_v51, %v8803_v7  ;;  %v8894_v43 = vmul.f32 %v8876_v54, %v15891_v27 }
 0x598   :  { %v8941_v1 = vadd.f32 %v8923_v39, %v15829_v23  ;;  %v8906_v16 = vmul.f32 %v8888_v42, %v15855_v28  ;;  %v8806_v12 = vadd.f32 %v8805_v58, %v8701_v31  ;;  %v8936_v31 = vadd.f32 %v8918_v30, %v15823_v8 }
 0x599   :  { %v12706_v17 = vpop.f32.mrf.mxu0  ;;  %v8914_v39 = vmul.f32 0.044715, %v8896_v61  ;;  %v8934_v2 = vadd.f32 %v8916_v37, %v15848_v62  ;;  %v8873_v29 = vmul.f32 %v15909_v57, %v15909_v57  ;;  %v8893_v18 = vmul.f32 %v8875_v22, %v15887_v60 }
 0x59a   :  { %v8959_v11 = vmul.f32 0.7978846, %v8941_v1  ;;  %v8924_v53 = vmul.f32 0.044715, %v8906_v16  ;;  %v8832_v48 = vmul.f32 %v15770_v51, %v8806_v12  ;;  %v8954_v42 = vmul.f32 0.7978846, %v8936_v31 }
 0x59b   :  { %v8913_v51 = vmul.f32 0.044715, %v8895_v19  ;;  %v8933_v58 = vadd.f32 %v8915_v14, %v15860_v9  ;;  %v8953_v52 = vmul.f32 0.7978846, %v8935_v20  ;;  %v15928_v5 = vadd.f32 %v15784_v45, %v8831_v44 }
 0x59c   :  { %v8942_v24 = vadd.f32 %v8924_v53, %v15855_v28  ;;  %13694 = vtanh.f32 %v8959_v11  ;;  %v15921_v0 = vadd.f32 %v15784_v45, %v8832_v48  ;;  %v8892_v1 = vmul.f32 %v8874_v4, %v15844_v25 }
 0x59d   :  { %13696 = vtanh.f32 %v8958_v63  ;;  %v8912_v16 = vmul.f32 0.044715, %v8894_v43  ;;  %v8932_v35 = vadd.f32 %v8914_v39, %v15872_v21  ;;  %v8952_v47 = vmul.f32 0.7978846, %v8934_v2  ;;  %v15947_v2 = vld [vmem:[#allocation2] sm:$0xff] }
 0x59e   :  { %v8960_v55 = vmul.f32 0.7978846, %v8942_v24  ;;  %v8890_v33 = vmul.f32 %v15921_v0, %v15921_v0  ;;  %v8891_v17 = vmul.f32 %v8873_v29, %v15909_v57  ;;  %v8911_v26 = vmul.f32 0.044715, %v8893_v18 }
 0x59f   :  { %v8931_v11 = vadd.f32 %v8913_v51, %v15881_v32  ;;  %v8951_v53 = vmul.f32 0.7978846, %v8933_v58  ;;  %v8889_v45 = vmul.f32 %v15928_v5, %v15928_v5  ;;  %v8910_v46 = vmul.f32 0.044715, %v8892_v1 }
 0x5a0   :  { %13698 = vtanh.f32 %v8960_v55  ;;  %v8930_v63 = vadd.f32 %v8912_v16, %v15891_v27  ;;  %v8950_v30 = vmul.f32 0.7978846, %v8932_v35  ;;  %v8908_v24 = vmul.f32 %v8890_v33, %v15921_v0 }
 0x5a1   :  { %13700 = vtanh.f32 %v8957_v6  ;;  %v8909_v41 = vmul.f32 0.044715, %v8891_v17  ;;  %v8929_v49 = vadd.f32 %v8911_v26, %v15887_v60  ;;  %v8949_v59 = vmul.f32 0.7978846, %v8931_v11 }
 0x5a2   :  { %13702 = vtanh.f32 %v8956_v36  ;;  %v8907_v13 = vmul.f32 %v8889_v45, %v15928_v5  ;;  %v8870_v6 = vmul.f32 0.5, %v15855_v28  ;;  %v8928_v61 = vadd.f32 %v8910_v46, %v15844_v25 }
 0x5a3   :  { %13704 = vtanh.f32 %v8955_v3  ;;  %v8948_v37 = vmul.f32 0.7978846, %v8930_v63  ;;  %v8926_v31 = vmul.f32 0.044715, %v8908_v24  ;;  %v8869_v48 = vmul.f32 0.5, %v15829_v23 }
 0x5a4   :  { %13706 = vtanh.f32 %v8954_v42  ;;  %v8927_v14 = vadd.f32 %v8909_v41, %v15909_v57  ;;  %v8947_v20 = vmul.f32 0.7978846, %v8929_v49  ;;  %v8925_v3 = vmul.f32 0.044715, %v8907_v13 }
 0x5a5   :  { %13708 = vtanh.f32 %v8953_v52  ;;  %v8868_v44 = vmul.f32 0.5, %v15802_v34  ;;  %v8946_v39 = vmul.f32 0.7978846, %v8928_v61  ;;  %v8944_v23 = vadd.f32 %v8926_v31, %v15921_v0 }
 0x5a6   :  { %13710 = vtanh.f32 %v8952_v47  ;;  %v8867_v29 = vmul.f32 0.5, %v15790_v15  ;;  %v8945_v58 = vmul.f32 0.7978846, %v8927_v14  ;;  %v8943_v34 = vadd.f32 %v8925_v3, %v15928_v5 }
 0x5a7   :  { %13712 = vtanh.f32 %v8951_v53  ;;  %v8866_v1 = vmul.f32 0.5, %v15799_v38  ;;  %v8962_v47 = vmul.f32 0.7978846, %v8944_v23  ;;  %v8865_v33 = vmul.f32 0.5, %v15811_v56 }
 0x5a8   :  { %13714 = vtanh.f32 %v8950_v30  ;;  %v8961_v53 = vmul.f32 0.7978846, %v8943_v34  ;;  %v8864_v38 = vmul.f32 0.5, %v15823_v8  ;;  %v8863_v30 = vmul.f32 0.5, %v15833_v10  ;;  %v9115_v34 = vld [vmem:[#allocation6 + $0x58] sm:$0xff] }
 0x5a9   :  { %v13695_v50 = vpop.eup %13694  ;;  %13716 = vtanh.f32 %v8949_v59  ;;  %v8861_v59 = vmul.f32 0.5, %v15860_v9  ;;  %v8859_v61 = vmul.f32 0.5, %v15881_v32  ;;  %v8871_v23 = vmul.f32 0.5, %v15928_v5  ;;  %v9118_v5 = vld [vmem:[#allocation6 + $0x70] sm:$0xff] }
 0x5aa   :  { %v13697_v40 = vpop.eup %13696  ;;  %v8995_v7 = vadd.f32 1.0, %v13695_v50  ;;  %13718 = vtanh.f32 %v8948_v37 }
 0x5ab   :  { %v8994_v22 = vadd.f32 1.0, %v13697_v40  ;;  %13720 = vtanh.f32 %v8947_v20  ;;  %v8856_v20 = vmul.f32 0.5, %v15844_v25 }
 0x5ac   :  { %v9013_v28 = vmul.f32 %v8995_v7, %v8869_v48  ;;  %13722 = vtanh.f32 %v8946_v39 }
 0x5ad   :  { %v13699_v12 = vpop.eup %13698  ;;  %v9012_v42 = vmul.f32 %v8994_v22, %v8868_v44  ;;  %13724 = vtanh.f32 %v8945_v58  ;;  %v8857_v22 = vmul.f32 0.5, %v15887_v60  ;;  %v8855_v44 = vmul.f32 0.5, %v15909_v57  ;;  %v9017_v57 = vld [vmem:[%s16232_s5] sm:$0xff]  ;;  %v9116_v58 = vld [vmem:[#allocation6 + $0x60] sm:$0xff] }
 0x5ae   :  { %v8996_v55 = vadd.f32 1.0, %v13699_v12  ;;  %v13701_v54 = vpop.eup %13700  ;;  %13726 = vtanh.f32 %v8962_v47  ;;  %v8862_v12 = vmul.f32 0.5, %v15848_v62  ;;  %v9110_v47 = vld [vmem:[#allocation6 + $0x30] sm:$0xff] }
 0x5af   :  { %v13703_v19 = vpop.eup %13702  ;;  %v8993_v4 = vadd.f32 1.0, %v13701_v54  ;;  %13728 = vtanh.f32 %v8961_v53  ;;  %v9104_v53 = vld [vmem:[#allocation6] sm:$0xff] }
 0x5b0   :  { %v9014_v36 = vmul.f32 %v8996_v55, %v8870_v6  ;;  %v13705_v43 = vpop.eup %13704  ;;  %v8992_v18 = vadd.f32 1.0, %v13703_v19  ;;  %v8860_v55 = vmul.f32 0.5, %v15872_v21 }
 0x5b1   :  { %v13707_v51 = vpop.eup %13706  ;;  %v9011_v52 = vmul.f32 %v8993_v4, %v8867_v29  ;;  %v8991_v16 = vadd.f32 1.0, %v13705_v43  ;;  %v8872_v43 = vmul.f32 0.5, %v15921_v0  ;;  %v9020_v0 = vld [vmem:[%s16232_s5 + $0x18] sm:$0x1]  ;;  %v9119_v29 = vld [vmem:[#allocation6 + $0x78] sm:$0xff] }
 0x5b2   :  { %9029 = vmatpush1.msra.mxu1 %v9014_v36  ;;  %v13709_v35 = vpop.eup %13708  ;;  %v9010_v15 = vmul.f32 %v8992_v18, %v8866_v1  ;;  %v8990_v17 = vadd.f32 1.0, %v13707_v51  ;;  %v8858_v36 = vmul.f32 0.5, %v15891_v27  ;;  %v9019_v18 = vld [vmem:[%s16232_s5 + $0x10] sm:$0x1]  ;;  %v9117_v51 = vld [vmem:[#allocation6 + $0x68] sm:$0xff] }
 0x5b3   :  { %9030 = vmatprep.subr.mxu1 %v15947_v2  ;;  %v13711_v26 = vpop.eup %13710  ;;  %v9009_v45 = vmul.f32 %v8991_v16, %v8865_v33  ;;  %v8989_v50 = vadd.f32 1.0, %v13709_v35  ;;  %v9113_v1 = vld [vmem:[#allocation6 + $0x48] sm:$0xff]  ;;  %v9112_v16 = vld [vmem:[#allocation6 + $0x40] sm:$0xff]  ;;  %v9111_v35 = vld [vmem:[#allocation6 + $0x38] sm:$0xff] }
 0x5b4   :  { %9031 = vmatpush1.msra.mxu1 %v9013_v28  ;;  %v13713_v11 = vpop.eup %13712  ;;  %v9008_v63 = vmul.f32 %v8990_v17, %v8864_v38  ;;  %v8988_v56 = vadd.f32 1.0, %v13711_v26  ;;  %v9108_v33 = vld [vmem:[#allocation6 + $0x20] sm:$0xff]  ;;  %v9107_v17 = vld [vmem:[#allocation6 + $0x18] sm:$0xff]  ;;  %v9106_v26 = vld [vmem:[#allocation6 + $0x10] sm:$0xff] }
 0x5b5   :  { %9032 = vmatprep.subr.mxu1 %v15947_v2  ;;  %v13715_v46 = vpop.eup %13714  ;;  %v9007_v24 = vmul.f32 %v8989_v50, %v8863_v30  ;;  %v8987_v41 = vadd.f32 1.0, %v13713_v11  ;;  %v9105_v11 = vld [vmem:[#allocation6 + $0x8] sm:$0xff]  ;;  %v9206_v38 = vld [vmem:[#allocation6 + $0xf8] sm:$0xff] }
 0x5b6   :  { %9033 = vmatpush1.msra.mxu1 %v9012_v42  ;;  %v13717_v40 = vpop.eup %13716  ;;  %v9006_v49 = vmul.f32 %v8988_v56, %v8862_v12  ;;  %v8986_v13 = vadd.f32 1.0, %v13715_v46  ;;  %v9205_v46 = vld [vmem:[#allocation6 + $0xf0] sm:$0xff]  ;;  %v9474_v30 = vld [vmem:[#allocation6 + $0x278] sm:$0xff] }
 0x5b7   :  { %9034 = vmatprep.subr.mxu1 %v15947_v2  ;;  %v13719_v8 = vpop.eup %13718  ;;  %v9005_v6 = vmul.f32 %v8987_v41, %v8861_v59  ;;  %v8985_v7 = vadd.f32 1.0, %v13717_v40  ;;  %v9204_v40 = vld [vmem:[#allocation6 + $0xe8] sm:$0xff]  ;;  %v9203_v41 = vld [vmem:[#allocation6 + $0xe0] sm:$0xff]  ;;  %v9202_v59 = vld [vmem:[#allocation6 + $0xd8] sm:$0xff] }
 0x5b8   :  { %9035 = vmatpush1.msra.mxu1 %v9011_v52  ;;  %v13721_v10 = vpop.eup %13720  ;;  %v9004_v54 = vmul.f32 %v8986_v13, %v8860_v55  ;;  %v8984_v37 = vadd.f32 1.0, %v13719_v8  ;;  %v9114_v52 = vld [vmem:[#allocation6 + $0x50] sm:$0xff]  ;;  %v9472_v8 = vld [vmem:[#allocation6 + $0x268] sm:$0xff]  ;;  %v9471_v13 = vld [vmem:[#allocation6 + $0x260] sm:$0xff] }
 0x5b9   :  { %9036 = vmatprep.subr.mxu1 %v15947_v2  ;;  %v13723_v62 = vpop.eup %13722  ;;  %v9003_v31 = vmul.f32 %v8985_v7, %v8859_v61  ;;  %v8983_v48 = vadd.f32 1.0, %v13721_v10  ;;  %v9201_v10 = vld [vmem:[#allocation6 + $0xd0] sm:$0xff]  ;;  %v9200_v55 = vld [vmem:[#allocation6 + $0xc8] sm:$0xff]  ;;  %v9198_v61 = vld [vmem:[#allocation6 + $0xb8] sm:$0xff] }
 0x5ba   :  { %9037 = vmatpush1.msra.mxu1 %v9010_v15  ;;  %v13725_v9 = vpop.eup %13724  ;;  %v9002_v21 = vmul.f32 %v8984_v37, %v8858_v36  ;;  %v8982_v19 = vadd.f32 1.0, %v13723_v62  ;;  %v9109_v15 = vld [vmem:[#allocation6 + $0x28] sm:$0xff]  ;;  %v9469_v7 = vld [vmem:[#allocation6 + $0x250] sm:$0xff]  ;;  %v9199_v62 = vld [vmem:[#allocation6 + $0xc0] sm:$0xff] }
 0x5bb   :  { %9038 = vmatprep.subr.mxu1 %v15947_v2  ;;  %v13727_v14 = vpop.eup %13726  ;;  %v9001_v32 = vmul.f32 %v8983_v48, %v8857_v22  ;;  %v8981_v3 = vadd.f32 1.0, %v13725_v9  ;;  %v9467_v37 = vld [vmem:[#allocation6 + $0x240] sm:$0xff]  ;;  %v9197_v9 = vld [vmem:[#allocation6 + $0xb0] sm:$0xff]  ;;  %v9196_v36 = vld [vmem:[#allocation6 + $0xa8] sm:$0xff] }
 0x5bc   :  { %9039 = vmatpush1.msra.mxu1 %v9009_v45  ;;  %v13729_v28 = vpop.eup %13728  ;;  %v9000_v27 = vmul.f32 %v8982_v19, %v8856_v20  ;;  %v8998_v4 = vadd.f32 1.0, %v13727_v14  ;;  %v9281_v45 = vld [vmem:[#allocation6 + $0x100] sm:$0xff]  ;;  %v9465_v48 = vld [vmem:[#allocation6 + $0x230] sm:$0xff]  ;;  %v9464_v22 = vld [vmem:[#allocation6 + $0x228] sm:$0xff] }
 0x5bd   :  { %9040 = vmatprep.subr.mxu1 %v15947_v2  ;;  %v8999_v60 = vmul.f32 %v8981_v3, %v8855_v44  ;;  %v8997_v39 = vadd.f32 1.0, %v13729_v28  ;;  %12808 = vmatpush3.msra.mxu0 %v9281_v45  ;;  %v9194_v19 = vld [vmem:[#allocation6 + $0x98] sm:$0xff]  ;;  %v9463_v14 = vld [vmem:[#allocation6 + $0x220] sm:$0xff]  ;;  %v9192_v3 = vld [vmem:[#allocation6 + $0x88] sm:$0xff] }
 0x5be   :  { %9041 = vmatpush1.msra.mxu1 %v9008_v63  ;;  %v9016_v25 = vmul.f32 %v8998_v4, %v8872_v43  ;;  %12847 = vmatprep.subr.mxu0 %v15947_v2  ;;  %v9462_v20 = vld [vmem:[#allocation6 + $0x218] sm:$0xff]  ;;  %v9461_v28 = vld [vmem:[#allocation6 + $0x210] sm:$0xff]  ;;  %v9460_v44 = vld [vmem:[#allocation6 + $0x208] sm:$0xff] }
 0x5bf   :  { %9042 = vmatprep.subr.mxu1 %v15947_v2  ;;  %v9015_v42 = vmul.f32 %v8997_v39, %v8871_v23  ;;  %v9459_v4 = vld [vmem:[#allocation6 + $0x200] sm:$0xff]  ;;  %v9385_v43 = vld [vmem:[#allocation6 + $0x1f8] sm:$0xff]  ;;  %v9384_v39 = vld [vmem:[#allocation6 + $0x1f0] sm:$0xff] }
 0x5c0   :  { %9043 = vmatpush1.msra.mxu1 %v9007_v24  ;;  %v9473_v24 = vld [vmem:[#allocation6 + $0x270] sm:$0xff]  ;;  %v9652_v23 = vld [vmem:[#allocation6 + $0x378] sm:$0xff] }
 0x5c1   :  { %9044 = vmatprep.subr.mxu1 %v15947_v2  ;;  %v9373_v45 = vld [vmem:[#allocation6 + $0x198] sm:$0xff] }
 0x5c2   :  { %9045 = vmatpush1.msra.mxu1 %v9006_v49 }
 0x5c3   :  { %9046 = vmatprep.subr.mxu1 %v15947_v2 }
 0x5c4   :  { %9047 = vmatpush1.msra.mxu1 %v9005_v6  ;;  %v9470_v6 = vld [vmem:[#allocation6 + $0x258] sm:$0xff] }
 0x5c5   :  { %9048 = vmatprep.subr.mxu1 %v15947_v2 }
 0x5c6   :  { %9049 = vmatpush1.msra.mxu1 %v9004_v54  ;;  %v9468_v54 = vld [vmem:[#allocation6 + $0x248] sm:$0xff] }
 0x5c7   :  { %9050 = vmatprep.subr.mxu1 %v15947_v2 }
 0x5c8   :  { %9051 = vmatpush1.msra.mxu1 %v9003_v31  ;;  %v9466_v31 = vld [vmem:[#allocation6 + $0x238] sm:$0xff] }
 0x5c9   :  { %9052 = vmatprep.subr.mxu1 %v15947_v2 }
 0x5ca   :  { %9053 = vmatpush1.msra.mxu1 %v9002_v21  ;;  %v9195_v21 = vld [vmem:[#allocation6 + $0xa0] sm:$0xff] }
 0x5cb   :  { %9054 = vmatprep.subr.mxu1 %v15947_v2 }
 0x5cc   :  { %9055 = vmatpush1.msra.mxu1 %v9001_v32  ;;  %v9193_v32 = vld [vmem:[#allocation6 + $0x90] sm:$0xff] }
 0x5cd   :  { %9056 = vmatprep.subr.mxu1 %v15947_v2 }
 0x5ce   :  { %9057 = vmatpush1.msra.mxu1 %v9000_v27  ;;  %v9191_v27 = vld [vmem:[#allocation6 + $0x80] sm:$0xff] }
 0x5cf   :  { %9058 = vmatprep.subr.mxu1 %v15947_v2 }
 0x5d0   :  { %9059 = vmatpush1.msra.mxu1 %v8999_v60 }
 0x5d1   :  { %9088 = vmatprep.subr.mxu1 %v15947_v2 }
 0x5d2   :  { %9089 = vmatpush2.msra.mxu1 %v9016_v25 }
 0x5d3   :  { %9090 = vmatprep.subr.mxu1 %v15947_v2 }
 0x5d4   :  { %9091 = vmatpush2.msra.mxu1 %v9015_v42  ;;  %v9383_v42 = vld [vmem:[#allocation6 + $0x1e8] sm:$0xff] }
 0x5d5   :  { %9093 = vmatmul.mubr.f32.vlgmr.msra.gmra.mxu1 %v9017_v57  ;;  %12707 = vmatprep.subr.mxu1 %v15947_v2  ;;  %v9651_v57 = vld [vmem:[#allocation6 + $0x370] sm:$0xff] }
 0x5d6   :  { %10959 = vmatprep.mubr.msk.f32.mxu1 %vm9021_vm1, %v9020_v0  ;;  %12708 = vmatpush3.msra.mxu1 %v9119_v29  ;;  %v9382_v0 = vld [vmem:[#allocation6 + $0x1e0] sm:$0xff]  ;;  %v9650_v29 = vld [vmem:[#allocation6 + $0x368] sm:$0xff] }
 0x5d7   :  { %12709 = vmatprep.subr.mxu1 %v15947_v2 }
 0x5d8   :  { %12710 = vmatpush3.msra.mxu1 %v9118_v5  ;;  %v9381_v5 = vld [vmem:[#allocation6 + $0x1d8] sm:$0xff] }
 0x5d9   :  { %9098 = vmatmul.mubr.f32.gmra.mxu1 %v9019_v18  ;;  %12711 = vmatprep.subr.mxu1 %v15947_v2  ;;  %v9649_v18 = vld [vmem:[#allocation6 + $0x360] sm:$0xff] }
 0x5da   :  { %12712 = vmatpush3.msra.mxu1 %v9117_v51  ;;  %12739 = vmatprep.mubr.msk.f32.mxu1 %vm13795_vm0, %v15947_v2  ;;  %v9380_v51 = vld [vmem:[#allocation6 + $0x1d0] sm:$0xff] }
 0x5db   :  { %12713 = vmatprep.subr.mxu1 %v15947_v2 }
 0x5dc   :  { %12714 = vmatpush3.msra.mxu1 %v9116_v58  ;;  %v9648_v58 = vld [vmem:[#allocation6 + $0x358] sm:$0xff] }
 0x5dd   :  { %12715 = vmatprep.subr.mxu1 %v15947_v2 }
 0x5de   :  { %12716 = vmatpush3.msra.mxu1 %v9115_v34  ;;  %v9379_v34 = vld [vmem:[#allocation6 + $0x1c8] sm:$0xff] }
 0x5df   :  { %12717 = vmatprep.subr.mxu1 %v15947_v2 }
 0x5e0   :  { %12718 = vmatpush3.msra.mxu1 %v9114_v52  ;;  %v9647_v52 = vld [vmem:[#allocation6 + $0x350] sm:$0xff] }
 0x5e1   :  { %12719 = vmatprep.subr.mxu1 %v15947_v2 }
 0x5e2   :  { %12720 = vmatpush3.msra.mxu1 %v9113_v1  ;;  %v9378_v1 = vld [vmem:[#allocation6 + $0x1c0] sm:$0xff] }
 0x5e3   :  { %12721 = vmatprep.subr.mxu1 %v15947_v2 }
 0x5e4   :  { %12722 = vmatpush3.msra.mxu1 %v9112_v16  ;;  %v9646_v16 = vld [vmem:[#allocation6 + $0x348] sm:$0xff] }
 0x5e5   :  { %12723 = vmatprep.subr.mxu1 %v15947_v2 }
 0x5e6   :  { %12724 = vmatpush3.msra.mxu1 %v9111_v35  ;;  %v9377_v35 = vld [vmem:[#allocation6 + $0x1b8] sm:$0xff] }
 0x5e7   :  { %12725 = vmatprep.subr.mxu1 %v15947_v2 }
 0x5e8   :  { %12726 = vmatpush3.msra.mxu1 %v9110_v47  ;;  %v9645_v47 = vld [vmem:[#allocation6 + $0x340] sm:$0xff] }
 0x5e9   :  { %12727 = vmatprep.subr.mxu1 %v15947_v2 }
 0x5ea   :  { %12728 = vmatpush3.msra.mxu1 %v9109_v15  ;;  %v9376_v15 = vld [vmem:[#allocation6 + $0x1b0] sm:$0xff] }
 0x5eb   :  { %12729 = vmatprep.subr.mxu1 %v15947_v2 }
 0x5ec   :  { %12730 = vmatpush3.msra.mxu1 %v9108_v33  ;;  %v9644_v33 = vld [vmem:[#allocation6 + $0x338] sm:$0xff] }
 0x5ed   :  { %12731 = vmatprep.subr.mxu1 %v15947_v2 }
 0x5ee   :  { %12732 = vmatpush3.msra.mxu1 %v9107_v17  ;;  %v9375_v17 = vld [vmem:[#allocation6 + $0x1a8] sm:$0xff] }
 0x5ef   :  { %12733 = vmatprep.subr.mxu1 %v15947_v2 }
 0x5f0   :  { %12734 = vmatpush3.msra.mxu1 %v9106_v26  ;;  %v9643_v26 = vld [vmem:[#allocation6 + $0x330] sm:$0xff] }
 0x5f1   :  { %12735 = vmatprep.subr.mxu1 %v15947_v2 }
 0x5f2   :  { %12736 = vmatpush3.msra.mxu1 %v9105_v11  ;;  %v9374_v11 = vld [vmem:[#allocation6 + $0x1a0] sm:$0xff] }
 0x5f3   :  { %12737 = vmatprep.subr.mxu1 %v15947_v2 }
 0x5f4   :  { %12738 = vmatpush3.msra.mxu1 %v9104_v53  ;;  %v9642_v53 = vld [vmem:[#allocation6 + $0x328] sm:$0xff] }
 0x5f5   :  { %12742 = vmatprep.subr.mxu1 %v15947_v2 }
 0x695   :  { %v16013_v50 = vpop.f32.mrf.mxu1 }
 0x696   :  { %12740 = vmatmul.mubr.f32.vlgmr.msra.gmra.mxu1 %v16013_v50  ;;  %v9297_v63 = vrot.slane %v16013_v50, 2  ;;  %v9208_v60 = vrot.slane %v16013_v50, 1  ;;  %v9475_v25 = vrot.slane %v16013_v50, 4 }
 0x697   :  { %12743 = vmatpush3.msra.mxu1 %v9206_v38  ;;  %12774 = vmatprep.mubr.msk.f32.mxu1 %vm13795_vm0, %v15947_v2  ;;  %v9096_v56 = vpop.f32.mrf.mxu1  ;;  %v9641_v38 = vld [vmem:[#allocation6 + $0x320] sm:$0xff] }
 0x698   :  { %12744 = vmatprep.subr.mxu1 %v15947_v2  ;;  %12810 = vmatmul.mubr.f32.vlgmr.msra.gmra.mxu0 %v9297_v63  ;;  %v9640_v63 = vld [vmem:[#allocation6 + $0x318] sm:$0xff]  ;;  %v9639_v56 = vld [vmem:[#allocation6 + $0x310] sm:$0xff] }
 0x699   :  { %12745 = vmatpush3.msra.mxu1 %v9205_v46  ;;  %12848 = vmatpush3.msra.mxu0 %v9474_v30  ;;  %v16020_v12 = vpop.f32.mrf.mxu1  ;;  %v9372_v46 = vld [vmem:[#allocation6 + $0x190] sm:$0xff]  ;;  %v9371_v30 = vld [vmem:[#allocation6 + $0x188] sm:$0xff] }
 0x69a   :  { %12746 = vmatprep.subr.mxu1 %v15947_v2  ;;  %12849 = vmatprep.subr.mxu0 %v15947_v2 }
 0x69b   :  { %12747 = vmatpush3.msra.mxu1 %v9204_v40  ;;  %12850 = vmatpush3.msra.mxu0 %v9473_v24  ;;  %v9101_v49 = vpop.f32.mrf.mxu1  ;;  %v9370_v40 = vld [vmem:[#allocation6 + $0x180] sm:$0xff]  ;;  %v9638_v24 = vld [vmem:[#allocation6 + $0x308] sm:$0xff] }
 0x69c   :  { %12748 = vmatprep.subr.mxu1 %v15947_v2  ;;  %12851 = vmatprep.subr.mxu0 %v15947_v2  ;;  %v9637_v49 = vld [vmem:[#allocation6 + $0x300] sm:$0xff] }
 0x69d   :  { %12749 = vmatpush3.msra.mxu1 %v9203_v41  ;;  %12852 = vmatpush3.msra.mxu0 %v9472_v8  ;;  %v9386_v41 = vrot.slane %v16013_v50, 3  ;;  %v9563_v8 = vld [vmem:[#allocation6 + $0x2f8] sm:$0xff] }
 0x69e   :  { %12750 = vmatprep.subr.mxu1 %v15947_v2  ;;  %12853 = vmatprep.subr.mxu0 %v15947_v2 }
 0x69f   :  { %12751 = vmatpush3.msra.mxu1 %v9202_v59  ;;  %12854 = vmatpush3.msra.mxu0 %v9471_v13  ;;  %v9653_v59 = vrot.slane %v16013_v50, 6  ;;  %v9562_v13 = vld [vmem:[#allocation6 + $0x2f0] sm:$0xff] }
 0x6a0   :  { %12752 = vmatprep.subr.mxu1 %v15947_v2  ;;  %12855 = vmatprep.subr.mxu0 %v15947_v2 }
 0x6a1   :  { %12753 = vmatpush3.msra.mxu1 %v9201_v10  ;;  %12856 = vmatpush3.msra.mxu0 %v9470_v6  ;;  %v9561_v10 = vld [vmem:[#allocation6 + $0x2e8] sm:$0xff]  ;;  %v9830_v6 = vld [vmem:[#allocation6 + $0x478] sm:$0xff] }
 0x6a2   :  { %12754 = vmatprep.subr.mxu1 %v15947_v2  ;;  %12857 = vmatprep.subr.mxu0 %v15947_v2 }
 0x6a3   :  { %12755 = vmatpush3.msra.mxu1 %v9200_v55  ;;  %12858 = vmatpush3.msra.mxu0 %v9469_v7  ;;  %v9560_v55 = vld [vmem:[#allocation6 + $0x2e0] sm:$0xff]  ;;  %v9829_v7 = vld [vmem:[#allocation6 + $0x470] sm:$0xff] }
 0x6a4   :  { %12756 = vmatprep.subr.mxu1 %v15947_v2  ;;  %12859 = vmatprep.subr.mxu0 %v15947_v2 }
 0x6a5   :  { %12757 = vmatpush3.msra.mxu1 %v9199_v62  ;;  %12860 = vmatpush3.msra.mxu0 %v9468_v54  ;;  %v9559_v62 = vld [vmem:[#allocation6 + $0x2d8] sm:$0xff]  ;;  %v9828_v54 = vld [vmem:[#allocation6 + $0x468] sm:$0xff] }
 0x6a6   :  { %12758 = vmatprep.subr.mxu1 %v15947_v2  ;;  %12861 = vmatprep.subr.mxu0 %v15947_v2 }
 0x6a7   :  { %12759 = vmatpush3.msra.mxu1 %v9198_v61  ;;  %12862 = vmatpush3.msra.mxu0 %v9467_v37  ;;  %v9558_v61 = vld [vmem:[#allocation6 + $0x2d0] sm:$0xff]  ;;  %v9827_v37 = vld [vmem:[#allocation6 + $0x460] sm:$0xff] }
 0x6a8   :  { %12760 = vmatprep.subr.mxu1 %v15947_v2  ;;  %12863 = vmatprep.subr.mxu0 %v15947_v2 }
 0x6a9   :  { %12761 = vmatpush3.msra.mxu1 %v9197_v9  ;;  %12864 = vmatpush3.msra.mxu0 %v9466_v31  ;;  %v9557_v9 = vld [vmem:[#allocation6 + $0x2c8] sm:$0xff]  ;;  %v9826_v31 = vld [vmem:[#allocation6 + $0x458] sm:$0xff] }
 0x6aa   :  { %12762 = vmatprep.subr.mxu1 %v15947_v2  ;;  %12865 = vmatprep.subr.mxu0 %v15947_v2 }
 0x6ab   :  { %12763 = vmatpush3.msra.mxu1 %v9196_v36  ;;  %12866 = vmatpush3.msra.mxu0 %v9465_v48  ;;  %v9556_v36 = vld [vmem:[#allocation6 + $0x2c0] sm:$0xff]  ;;  %v9825_v48 = vld [vmem:[#allocation6 + $0x450] sm:$0xff] }
 0x6ac   :  { %12764 = vmatprep.subr.mxu1 %v15947_v2  ;;  %12867 = vmatprep.subr.mxu0 %v15947_v2 }
 0x6ad   :  { %12765 = vmatpush3.msra.mxu1 %v9195_v21  ;;  %12868 = vmatpush3.msra.mxu0 %v9464_v22  ;;  %v9555_v21 = vld [vmem:[#allocation6 + $0x2b8] sm:$0xff]  ;;  %v9824_v22 = vld [vmem:[#allocation6 + $0x448] sm:$0xff] }
 0x6ae   :  { %12766 = vmatprep.subr.mxu1 %v15947_v2  ;;  %12869 = vmatprep.subr.mxu0 %v15947_v2 }
 0x6af   :  { %12767 = vmatpush3.msra.mxu1 %v9194_v19  ;;  %12870 = vmatpush3.msra.mxu0 %v9463_v14  ;;  %v9554_v19 = vld [vmem:[#allocation6 + $0x2b0] sm:$0xff]  ;;  %v9823_v14 = vld [vmem:[#allocation6 + $0x440] sm:$0xff] }
 0x6b0   :  { %12768 = vmatprep.subr.mxu1 %v15947_v2  ;;  %12871 = vmatprep.subr.mxu0 %v15947_v2 }
 0x6b1   :  { %12769 = vmatpush3.msra.mxu1 %v9193_v32  ;;  %12872 = vmatpush3.msra.mxu0 %v9462_v20  ;;  %v9553_v32 = vld [vmem:[#allocation6 + $0x2a8] sm:$0xff]  ;;  %v9822_v20 = vld [vmem:[#allocation6 + $0x438] sm:$0xff] }
 0x6b2   :  { %12770 = vmatprep.subr.mxu1 %v15947_v2  ;;  %12873 = vmatprep.subr.mxu0 %v15947_v2 }
 0x6b3   :  { %12771 = vmatpush3.msra.mxu1 %v9192_v3  ;;  %12874 = vmatpush3.msra.mxu0 %v9461_v28  ;;  %v9552_v3 = vld [vmem:[#allocation6 + $0x2a0] sm:$0xff]  ;;  %v9821_v28 = vld [vmem:[#allocation6 + $0x430] sm:$0xff] }
 0x6b4   :  { %12772 = vmatprep.subr.mxu1 %v15947_v2  ;;  %12875 = vmatprep.subr.mxu0 %v15947_v2 }
 0x6b5   :  { %12773 = vmatpush3.msra.mxu1 %v9191_v27  ;;  %12876 = vmatpush3.msra.mxu0 %v9460_v44  ;;  %v9551_v27 = vld [vmem:[#allocation6 + $0x298] sm:$0xff]  ;;  %v9820_v44 = vld [vmem:[#allocation6 + $0x428] sm:$0xff] }
 0x6b6   :  { %12812 = vmatprep.subr.mxu1 %v15947_v2  ;;  %12877 = vmatprep.subr.mxu0 %v15947_v2 }
 0x6b7   :  { %12775 = vmatmul.mubr.f32.vlgmr.msra.gmra.mxu1 %v9208_v60  ;;  %12878 = vmatpush3.msra.mxu0 %v9459_v4  ;;  %v9550_v4 = vld [vmem:[#allocation6 + $0x290] sm:$0xff]  ;;  %v9819_v60 = vld [vmem:[#allocation6 + $0x420] sm:$0xff] }
 0x6b8   :  { %12813 = vmatpush3.msra.mxu1 %v9385_v43  ;;  %12879 = vmatprep.mubr.msk.f32.mxu0 %vm13795_vm0, %v15947_v2  ;;  %v9549_v43 = vld [vmem:[#allocation6 + $0x288] sm:$0xff] }
 0x6b9   :  { %12814 = vmatprep.subr.mxu1 %v15947_v2  ;;  %12917 = vmatprep.subr.mxu0 %v15947_v2 }
 0x6ba   :  { %12815 = vmatpush3.msra.mxu1 %v9384_v39  ;;  %12880 = vmatmul.mubr.f32.vlgmr.msra.gmra.mxu0 %v9475_v25  ;;  %v9818_v39 = vld [vmem:[#allocation6 + $0x418] sm:$0xff]  ;;  %v9548_v25 = vld [vmem:[#allocation6 + $0x280] sm:$0xff] }
 0x6bb   :  { %12918 = vmatpush3.msra.mxu0 %v9652_v23  ;;  %12816 = vmatprep.subr.mxu1 %v15947_v2  ;;  %v9817_v23 = vld [vmem:[#allocation6 + $0x410] sm:$0xff] }
 0x6bc   :  { %12919 = vmatprep.subr.mxu0 %v15947_v2  ;;  %12817 = vmatpush3.msra.mxu1 %v9383_v42  ;;  %v9564_v42 = vrot.slane %v16013_v50, 5 }
 0x6bd   :  { %12920 = vmatpush3.msra.mxu0 %v9651_v57  ;;  %12818 = vmatprep.subr.mxu1 %v15947_v2  ;;  %v9741_v57 = vld [vmem:[#allocation6 + $0x3f8] sm:$0xff] }
 0x6be   :  { %12921 = vmatprep.subr.mxu0 %v15947_v2  ;;  %12819 = vmatpush3.msra.mxu1 %v9382_v0  ;;  %v9740_v0 = vld [vmem:[#allocation6 + $0x3f0] sm:$0xff] }
 0x6bf   :  { %12922 = vmatpush3.msra.mxu0 %v9650_v29  ;;  %12820 = vmatprep.subr.mxu1 %v15947_v2  ;;  %v9816_v29 = vld [vmem:[#allocation6 + $0x408] sm:$0xff] }
 0x6c0   :  { %12923 = vmatprep.subr.mxu0 %v15947_v2  ;;  %12821 = vmatpush3.msra.mxu1 %v9381_v5  ;;  %v9739_v5 = vld [vmem:[#allocation6 + $0x3e8] sm:$0xff] }
 0x6c1   :  { %12924 = vmatpush3.msra.mxu0 %v9649_v18  ;;  %12822 = vmatprep.subr.mxu1 %v15947_v2  ;;  %v9815_v18 = vld [vmem:[#allocation6 + $0x400] sm:$0xff] }
 0x6c2   :  { %12925 = vmatprep.subr.mxu0 %v15947_v2  ;;  %12823 = vmatpush3.msra.mxu1 %v9380_v51  ;;  %v9738_v51 = vld [vmem:[#allocation6 + $0x3e0] sm:$0xff] }
 0x6c3   :  { %12926 = vmatpush3.msra.mxu0 %v9648_v58  ;;  %12824 = vmatprep.subr.mxu1 %v15947_v2  ;;  %v9737_v58 = vld [vmem:[#allocation6 + $0x3d8] sm:$0xff] }
 0x6c4   :  { %12927 = vmatprep.subr.mxu0 %v15947_v2  ;;  %12825 = vmatpush3.msra.mxu1 %v9379_v34  ;;  %v9736_v34 = vld [vmem:[#allocation6 + $0x3d0] sm:$0xff] }
 0x6c5   :  { %12928 = vmatpush3.msra.mxu0 %v9647_v52  ;;  %12826 = vmatprep.subr.mxu1 %v15947_v2  ;;  %v9735_v52 = vld [vmem:[#allocation6 + $0x3c8] sm:$0xff] }
 0x6c6   :  { %12929 = vmatprep.subr.mxu0 %v15947_v2  ;;  %12827 = vmatpush3.msra.mxu1 %v9378_v1  ;;  %v9734_v1 = vld [vmem:[#allocation6 + $0x3c0] sm:$0xff] }
 0x6c7   :  { %12930 = vmatpush3.msra.mxu0 %v9646_v16  ;;  %12828 = vmatprep.subr.mxu1 %v15947_v2  ;;  %v9733_v16 = vld [vmem:[#allocation6 + $0x3b8] sm:$0xff] }
 0x6c8   :  { %12931 = vmatprep.subr.mxu0 %v15947_v2  ;;  %12829 = vmatpush3.msra.mxu1 %v9377_v35  ;;  %v9732_v35 = vld [vmem:[#allocation6 + $0x3b0] sm:$0xff] }
 0x6c9   :  { %12932 = vmatpush3.msra.mxu0 %v9645_v47  ;;  %12830 = vmatprep.subr.mxu1 %v15947_v2  ;;  %v9730_v47 = vld [vmem:[#allocation6 + $0x3a0] sm:$0xff] }
 0x6ca   :  { %12933 = vmatprep.subr.mxu0 %v15947_v2  ;;  %12831 = vmatpush3.msra.mxu1 %v9376_v15  ;;  %v9729_v15 = vld [vmem:[#allocation6 + $0x398] sm:$0xff] }
 0x6cb   :  { %12934 = vmatpush3.msra.mxu0 %v9644_v33  ;;  %12832 = vmatprep.subr.mxu1 %v15947_v2  ;;  %v9728_v33 = vld [vmem:[#allocation6 + $0x390] sm:$0xff] }
 0x6cc   :  { %12935 = vmatprep.subr.mxu0 %v15947_v2  ;;  %12833 = vmatpush3.msra.mxu1 %v9375_v17  ;;  %v16146_v17 = vld [vmem:[#allocation2] sm:$0xff] }
 0x6cd   :  { %12936 = vmatpush3.msra.mxu0 %v9643_v26  ;;  %12834 = vmatprep.subr.mxu1 %v15947_v2  ;;  %v9727_v26 = vld [vmem:[#allocation6 + $0x388] sm:$0xff] }
 0x6ce   :  { %12937 = vmatprep.subr.mxu0 %v15947_v2  ;;  %12835 = vmatpush3.msra.mxu1 %v9374_v11  ;;  %v9726_v11 = vld [vmem:[#allocation6 + $0x380] sm:$0xff] }
 0x6cf   :  { %12938 = vmatpush3.msra.mxu0 %v9642_v53  ;;  %12836 = vmatprep.subr.mxu1 %v15947_v2  ;;  %v9742_v53 = vrot.slane %v16013_v50, 7  ;;  %v9926_v50 = vld [vmem:[%s16235_s8 + $0x78] sm:$0xff] }
 0x6d0   :  { %12939 = vmatprep.subr.mxu0 %v15947_v2  ;;  %12837 = vmatpush3.msra.mxu1 %v9373_v45 }
 0x6d1   :  { %12940 = vmatpush3.msra.mxu0 %v9641_v38  ;;  %12838 = vmatprep.subr.mxu1 %v15947_v2 }
 0x6d2   :  { %12941 = vmatprep.subr.mxu0 %v15947_v2  ;;  %12839 = vmatpush3.msra.mxu1 %v9372_v46 }
 0x6d3   :  { %12942 = vmatpush3.msra.mxu0 %v9640_v63  ;;  %12840 = vmatprep.subr.mxu1 %v15947_v2  ;;  %v9103_v63 = vld [vmem:[%s16234_s7] sm:$0x1] }
 0x6d4   :  { %12943 = vmatprep.subr.mxu0 %v15947_v2  ;;  %12841 = vmatpush3.msra.mxu1 %v9371_v30 }
 0x6d5   :  { %12944 = vmatpush3.msra.mxu0 %v9639_v56  ;;  %12842 = vmatprep.subr.mxu1 %v15947_v2 }
 0x6d6   :  { %12945 = vmatprep.subr.mxu0 %v15947_v2  ;;  %12843 = vmatpush3.msra.mxu1 %v9370_v40 }
 0x6d7   :  { %12844 = vmatprep.mubr.msk.f32.mxu1 %vm13795_vm0, %v15947_v2  ;;  %12946 = vmatpush3.msra.mxu0 %v9638_v24  ;;  %v9925_v24 = vld [vmem:[%s16235_s8 + $0x70] sm:$0xff] }
 0x6d8   :  { %12845 = vmatmul.mubr.f32.vlgmr.msra.gmra.mxu1 %v9386_v41  ;;  %12882 = vmatprep.subr.mxu1 %v15947_v2 }
 0x6d9   :  { %12947 = vmatprep.subr.mxu0 %v15947_v2  ;;  %12883 = vmatpush3.msra.mxu1 %v9563_v8 }
 0x6da   :  { %12948 = vmatpush3.msra.mxu0 %v9637_v49  ;;  %12949 = vmatprep.mubr.msk.f32.mxu0 %vm13795_vm0, %v15947_v2 }
 0x6db   :  { %12884 = vmatprep.subr.mxu1 %v15947_v2  ;;  %12950 = vmatmul.mubr.f32.vlgmr.msra.gmra.mxu0 %v9653_v59  ;;  %v9924_v59 = vld [vmem:[%s16235_s8 + $0x68] sm:$0xff] }
 0x6dc   :  { %12885 = vmatpush3.msra.mxu1 %v9562_v13  ;;  %12914 = vmatprep.mubr.msk.f32.mxu1 %vm13795_vm0, %v15947_v2 }
 0x6dd   :  { %12886 = vmatprep.subr.mxu1 %v15947_v2  ;;  %12987 = vmatprep.subr.mxu0 %v15947_v2 }
 0x6de   :  { %12887 = vmatpush3.msra.mxu1 %v9561_v10  ;;  %12988 = vmatpush3.msra.mxu0 %v9830_v6  ;;  %v9923_v10 = vld [vmem:[%s16235_s8 + $0x60] sm:$0xff]  ;;  %v9922_v6 = vld [vmem:[%s16235_s8 + $0x58] sm:$0xff] }
 0x6df   :  { %12888 = vmatprep.subr.mxu1 %v15947_v2  ;;  %12989 = vmatprep.subr.mxu0 %v15947_v2 }
 0x6e0   :  { %12889 = vmatpush3.msra.mxu1 %v9560_v55  ;;  %12990 = vmatpush3.msra.mxu0 %v9829_v7  ;;  %v9921_v55 = vld [vmem:[%s16235_s8 + $0x50] sm:$0xff]  ;;  %v9920_v7 = vld [vmem:[%s16235_s8 + $0x48] sm:$0xff] }
 0x6e1   :  { %12890 = vmatprep.subr.mxu1 %v15947_v2  ;;  %12991 = vmatprep.subr.mxu0 %v15947_v2 }
 0x6e2   :  { %12891 = vmatpush3.msra.mxu1 %v9559_v62  ;;  %12992 = vmatpush3.msra.mxu0 %v9828_v54  ;;  %v9919_v62 = vld [vmem:[%s16235_s8 + $0x40] sm:$0xff]  ;;  %v9918_v54 = vld [vmem:[%s16235_s8 + $0x38] sm:$0xff] }
 0x6e3   :  { %12892 = vmatprep.subr.mxu1 %v15947_v2  ;;  %12993 = vmatprep.subr.mxu0 %v15947_v2 }
 0x6e4   :  { %12893 = vmatpush3.msra.mxu1 %v9558_v61  ;;  %12994 = vmatpush3.msra.mxu0 %v9827_v37  ;;  %v9917_v61 = vld [vmem:[%s16235_s8 + $0x30] sm:$0xff]  ;;  %v9916_v37 = vld [vmem:[%s16235_s8 + $0x28] sm:$0xff] }
 0x6e5   :  { %12894 = vmatprep.subr.mxu1 %v15947_v2  ;;  %12995 = vmatprep.subr.mxu0 %v15947_v2 }
 0x6e6   :  { %12895 = vmatpush3.msra.mxu1 %v9557_v9  ;;  %12996 = vmatpush3.msra.mxu0 %v9826_v31  ;;  %v9915_v9 = vld [vmem:[%s16235_s8 + $0x20] sm:$0xff]  ;;  %v9914_v31 = vld [vmem:[%s16235_s8 + $0x18] sm:$0xff] }
 0x6e7   :  { %12896 = vmatprep.subr.mxu1 %v15947_v2  ;;  %12997 = vmatprep.subr.mxu0 %v15947_v2 }
 0x6e8   :  { %12897 = vmatpush3.msra.mxu1 %v9556_v36  ;;  %12998 = vmatpush3.msra.mxu0 %v9825_v48  ;;  %v9913_v36 = vld [vmem:[%s16235_s8 + $0x10] sm:$0xff]  ;;  %v9912_v48 = vld [vmem:[%s16235_s8 + $0x8] sm:$0xff] }
 0x6e9   :  { %12898 = vmatprep.subr.mxu1 %v15947_v2  ;;  %12999 = vmatprep.subr.mxu0 %v15947_v2 }
 0x6ea   :  { %12899 = vmatpush3.msra.mxu1 %v9555_v21  ;;  %13000 = vmatpush3.msra.mxu0 %v9824_v22  ;;  %v9911_v21 = vld [vmem:[%s16235_s8] sm:$0xff] }
 0x6eb   :  { %12900 = vmatprep.subr.mxu1 %v15947_v2  ;;  %13001 = vmatprep.subr.mxu0 %v15947_v2 }
 0x6ec   :  { %12901 = vmatpush3.msra.mxu1 %v9554_v19  ;;  %13002 = vmatpush3.msra.mxu0 %v9823_v14 }
 0x6ed   :  { %12902 = vmatprep.subr.mxu1 %v15947_v2  ;;  %13003 = vmatprep.subr.mxu0 %v15947_v2 }
 0x6ee   :  { %12903 = vmatpush3.msra.mxu1 %v9553_v32  ;;  %13004 = vmatpush3.msra.mxu0 %v9822_v20 }
 0x6ef   :  { %12904 = vmatprep.subr.mxu1 %v15947_v2  ;;  %13005 = vmatprep.subr.mxu0 %v15947_v2 }
 0x6f0   :  { %12905 = vmatpush3.msra.mxu1 %v9552_v3  ;;  %13006 = vmatpush3.msra.mxu0 %v9821_v28 }
 0x6f1   :  { %12906 = vmatprep.subr.mxu1 %v15947_v2  ;;  %13007 = vmatprep.subr.mxu0 %v15947_v2 }
 0x6f2   :  { %12907 = vmatpush3.msra.mxu1 %v9551_v27  ;;  %13008 = vmatpush3.msra.mxu0 %v9820_v44 }
 0x6f3   :  { %12908 = vmatprep.subr.mxu1 %v15947_v2  ;;  %13009 = vmatprep.subr.mxu0 %v15947_v2 }
 0x6f4   :  { %12909 = vmatpush3.msra.mxu1 %v9550_v4  ;;  %13010 = vmatpush3.msra.mxu0 %v9819_v60 }
 0x6f5   :  { %12910 = vmatprep.subr.mxu1 %v15947_v2  ;;  %13011 = vmatprep.subr.mxu0 %v15947_v2 }
 0x6f6   :  { %12911 = vmatpush3.msra.mxu1 %v9549_v43  ;;  %13012 = vmatpush3.msra.mxu0 %v9818_v39 }
 0x6f7   :  { %12912 = vmatprep.subr.mxu1 %v15947_v2  ;;  %13013 = vmatprep.subr.mxu0 %v15947_v2 }
 0x6f8   :  { %12913 = vmatpush3.msra.mxu1 %v9548_v25  ;;  %13014 = vmatpush3.msra.mxu0 %v9817_v23 }
 0x6f9   :  { %12915 = vmatmul.mubr.f32.vlgmr.msra.gmra.mxu1 %v9564_v42  ;;  %12952 = vmatprep.subr.mxu1 %v15947_v2 }
 0x6fa   :  { %12953 = vmatpush3.msra.mxu1 %v9741_v57  ;;  %13015 = vmatprep.subr.mxu0 %v15947_v2 }
 0x6fb   :  { %12954 = vmatprep.subr.mxu1 %v15947_v2  ;;  %12984 = vmatprep.mubr.msk.f32.mxu1 %vm13795_vm0, %v15947_v2 }
 0x6fc   :  { %12955 = vmatpush3.msra.mxu1 %v9740_v0  ;;  %13016 = vmatpush3.msra.mxu0 %v9816_v29 }
 0x6fd   :  { %12956 = vmatprep.subr.mxu1 %v15947_v2  ;;  %13017 = vmatprep.subr.mxu0 %v15947_v2 }
 0x6fe   :  { %12957 = vmatpush3.msra.mxu1 %v9739_v5  ;;  %13018 = vmatpush3.msra.mxu0 %v9815_v18 }
 0x6ff   :  { %12958 = vmatprep.subr.mxu1 %v15947_v2  ;;  %13019 = vmatprep.mubr.msk.f32.mxu0 %vm13795_vm0, %v15947_v2 }
 0x700   :  { %12959 = vmatpush3.msra.mxu1 %v9738_v51  ;;  %13020 = vmatmul.mubr.f32.vlgmr.msra.gmra.mxu0 %v16020_v12  ;;  %v9731_v12 = vld [vmem:[#allocation6 + $0x3a8] sm:$0xff] }
 0x701   :  { %12960 = vmatprep.subr.mxu1 %v15947_v2 }
 0x702   :  { %12961 = vmatpush3.msra.mxu1 %v9737_v58 }
 0x703   :  { %12962 = vmatprep.subr.mxu1 %v15947_v2 }
 0x704   :  { %12963 = vmatpush3.msra.mxu1 %v9736_v34 }
 0x705   :  { %12964 = vmatprep.subr.mxu1 %v15947_v2 }
 0x706   :  { %12965 = vmatpush3.msra.mxu1 %v9735_v52 }
 0x707   :  { %12966 = vmatprep.subr.mxu1 %v15947_v2 }
 0x708   :  { %12967 = vmatpush3.msra.mxu1 %v9734_v1  ;;  %v9927_v1 = vld [vmem:[%s16236_s9] sm:$0x1] }
 0x709   :  { %12968 = vmatprep.subr.mxu1 %v15947_v2 }
 0x70a   :  { %12969 = vmatpush3.msra.mxu1 %v9733_v16 }
 0x70b   :  { %12970 = vmatprep.subr.mxu1 %v15947_v2 }
 0x70c   :  { %12971 = vmatpush3.msra.mxu1 %v9732_v35 }
 0x70d   :  { %12972 = vmatprep.subr.mxu1 %v15947_v2 }
 0x70e   :  { %12973 = vmatpush3.msra.mxu1 %v9731_v12 }
 0x70f   :  { %12974 = vmatprep.subr.mxu1 %v15947_v2 }
 0x710   :  { %12975 = vmatpush3.msra.mxu1 %v9730_v47 }
 0x711   :  { %12976 = vmatprep.subr.mxu1 %v15947_v2 }
 0x712   :  { %12977 = vmatpush3.msra.mxu1 %v9729_v15 }
 0x713   :  { %12978 = vmatprep.subr.mxu1 %v16146_v17 }
 0x714   :  { %12979 = vmatpush3.msra.mxu1 %v9728_v33 }
 0x715   :  { %12980 = vmatprep.subr.mxu1 %v16146_v17 }
 0x716   :  { %12981 = vmatpush3.msra.mxu1 %v9727_v26 }
 0x717   :  { %12982 = vmatprep.subr.mxu1 %v16146_v17 }
 0x718   :  { %12983 = vmatpush3.msra.mxu1 %v9726_v11 }
 0x719   :  { %12985 = vmatmul.mubr.f32.vlgmr.msra.gmra.mxu1 %v9742_v53  ;;  %13022 = vmatprep.subr.mxu1 %v16146_v17 }
 0x71a   :  { %13054 = vmatprep.mubr.msk.f32.mxu1 %vm13795_vm0, %v16146_v17  ;;  %13023 = vmatpush3.msra.mxu1 %v9926_v50 }
 0x71b   :  { %13024 = vmatprep.subr.mxu1 %v16146_v17 }
 0x71c   :  { %13025 = vmatpush3.msra.mxu1 %v9925_v24 }
 0x71d   :  { %13026 = vmatprep.subr.mxu1 %v16146_v17 }
 0x71e   :  { %13027 = vmatpush3.msra.mxu1 %v9924_v59 }
 0x71f   :  { %13028 = vmatprep.subr.mxu1 %v16146_v17 }
 0x720   :  { %13029 = vmatpush3.msra.mxu1 %v9923_v10 }
 0x721   :  { %13030 = vmatprep.subr.mxu1 %v16146_v17 }
 0x722   :  { %13031 = vmatpush3.msra.mxu1 %v9922_v6 }
 0x723   :  { %13032 = vmatprep.subr.mxu1 %v16146_v17 }
 0x724   :  { %13033 = vmatpush3.msra.mxu1 %v9921_v55 }
 0x725   :  { %13034 = vmatprep.subr.mxu1 %v16146_v17 }
 0x726   :  { %13035 = vmatpush3.msra.mxu1 %v9920_v7 }
 0x727   :  { %13036 = vmatprep.subr.mxu1 %v16146_v17 }
 0x728   :  { %13037 = vmatpush3.msra.mxu1 %v9919_v62 }
 0x729   :  { %13038 = vmatprep.subr.mxu1 %v16146_v17 }
 0x72a   :  { %13039 = vmatpush3.msra.mxu1 %v9918_v54 }
 0x72b   :  { %13040 = vmatprep.subr.mxu1 %v16146_v17 }
 0x72c   :  { %13041 = vmatpush3.msra.mxu1 %v9917_v61 }
 0x72d   :  { %13042 = vmatprep.subr.mxu1 %v16146_v17 }
 0x72e   :  { %13043 = vmatpush3.msra.mxu1 %v9916_v37 }
 0x72f   :  { %13044 = vmatprep.subr.mxu1 %v16146_v17 }
 0x730   :  { %13045 = vmatpush3.msra.mxu1 %v9915_v9 }
 0x731   :  { %13046 = vmatprep.subr.mxu1 %v16146_v17 }
 0x732   :  { %13047 = vmatpush3.msra.mxu1 %v9914_v31 }
 0x733   :  { %13048 = vmatprep.subr.mxu1 %v16146_v17 }
 0x734   :  { %13049 = vmatpush3.msra.mxu1 %v9913_v36 }
 0x735   :  { %13050 = vmatprep.subr.mxu1 %v16146_v17 }
 0x736   :  { %13051 = vmatpush3.msra.mxu1 %v9912_v48 }
 0x737   :  { %13052 = vmatprep.subr.mxu1 %v16146_v17 }
 0x738   :  { %13053 = vmatpush3.msra.mxu1 %v9911_v21 }
 0x756   :  { %v9186_v2 = vpop.f32.mrf.mxu1 }
 0x757   :  { %v9190_v30 = vadd.f32 %v9186_v2, %v9103_v63 }
 0x758   :  { %v9365_v45 = vpop.f32.mrf.mxu0  ;;  %v12741_v38 = vpop.f32.mrf.mxu1 }
 0x75a   :  { %v12811_v46 = vpop.f32.mrf.mxu0 }
 0x777   :  { %v9276_v56 = vpop.f32.mrf.mxu1 }
 0x778   :  { %v9280_v40 = vadd.f32 %v9276_v56, %v9190_v30 }
 0x779   :  { %v12776_v41 = vpop.f32.mrf.mxu1 }
 0x77a   :  { %v9543_v8 = vpop.f32.mrf.mxu0  ;;  %v9369_v49 = vadd.f32 %v9365_v45, %v9280_v40 }
 0x77c   :  { %v12881_v13 = vpop.f32.mrf.mxu0 }
 0x798   :  { %v9454_v22 = vpop.f32.mrf.mxu1 }
 0x799   :  { %v9458_v19 = vadd.f32 %v9454_v22, %v9369_v49 }
 0x79a   :  { %v12846_v14 = vpop.f32.mrf.mxu1 }
 0x79b   :  { %v9721_v32 = vpop.f32.mrf.mxu0  ;;  %v9547_v20 = vadd.f32 %v9543_v8, %v9458_v19 }
 0x79d   :  { %v12951_v3 = vpop.f32.mrf.mxu0 }
 0x7b9   :  { %v9632_v28 = vpop.f32.mrf.mxu1 }
 0x7ba   :  { %v9636_v60 = vadd.f32 %v9632_v28, %v9547_v20 }
 0x7bb   :  { %v12916_v27 = vpop.f32.mrf.mxu1 }
 0x7bc   :  { %v9725_v43 = vadd.f32 %v9721_v32, %v9636_v60 }
 0x7c0   :  { %v9897_v44 = vpop.f32.mrf.mxu0 }
 0x7c2   :  { %v13021_v4 = vpop.f32.mrf.mxu0 }
 0x7d9   :  { %v9810_v39 = vpop.f32.mrf.mxu1 }
 0x7da   :  { %v9814_v25 = vadd.f32 %v9810_v39, %v9725_v43 }
 0x7db   :  { %v12986_v23 = vpop.f32.mrf.mxu1 }
 0x7dc   :  { %v9901_v42 = vadd.f32 %v9897_v44, %v9814_v25 }
 0x7de   :  { %v9903_v57 = vmul.f32 %v9901_v42, %v9901_v42  ;;  %v9902_v58 = vmul.f32 0.5, %v9901_v42 }
 0x7e0   :  { %v9904_v0 = vmul.f32 %v9903_v57, %v9901_v42 }
 0x7e2   :  { %v9905_v29 = vmul.f32 0.044715, %v9904_v0 }
 0x7e4   :  { %v9906_v5 = vadd.f32 %v9905_v29, %v9901_v42 }
 0x7e6   :  { %v9907_v18 = vmul.f32 0.7978846, %v9906_v5 }
 0x7e8   :  { %13730 = vtanh.f32 %v9907_v18 }
 0x7f5   :  { %v13731_v51 = vpop.eup %13730 }
 0x7f6   :  { %v9909_v34 = vadd.f32 1.0, %v13731_v51 }
 0x7f8   :  { %v9910_v52 = vmul.f32 %v9909_v34, %v9902_v58 }
 0x7fa   :  { %13055 = vmatmul.mubr.f32.vlgmr.msra.gmra.mxu1 %v9910_v52 }
 0x8ba   :  { %v9994_v16 = vpop.f32.mrf.mxu1 }
 0x8bb   :  { %v9995_v35 = vadd.f32 %v9994_v16, %v9927_v1 }
 0x8bc   :  { %v13056_v12 = vpop.f32.mrf.mxu1 }
 0x8bd   :  { %13732 = vtanh.f32 %v9995_v35 }
 0x8ca   :  { %v13733_v47 = vpop.eup %13732 }
 0x8cb   :  { %10000 = vst.msk [vmem:[%s16237_s10] sm:$0x1] %vm9999_vm2, %v13733_v47 }
 0x8cc   :  { %10005 = vsyncpa [#allocation5], 1 }
 0x8cd   :  { %10006 = vsyncpa [#allocation7], 1 }

</bundles_post_ra>
